<compile_context>
chip_gen: v6e
topology: v6e:2x2x1
jax: 0.10.0
libtpu: 0.0.40
codegen_flags: <defaults>
</compile_context>

<pallas_src>
import math
import functools

import jax
import jax.numpy as jnp
from jax.experimental import pallas as pl
from jax.experimental.pallas import tpu as pltpu

C_MID = 16           # side_prep output channels (fixed by the module)
C17 = C_MID + 1      # side_prep channels + folded score_dsn channel
CPAD = 32            # 17 channels padded to 32 (4 taps * 32 = 128 lanes)


def _round_up(v, m):
    return ((v + m - 1) // m) * m


def _vmem_limit_bytes():
    # v5e/v6e: 128 MiB physical VMEM -> raise the scoped limit; v7x: 64 MiB/TC.
    try:
        cap = pltpu.get_tpu_info().vmem_capacity_bytes
    except Exception:
        cap = 64 * 1024 * 1024
    return (100 * 1024 * 1024) if cap >= (128 * 1024 * 1024) else (48 * 1024 * 1024)


# --------------------------------------------------------------------------
# Fused kernel, grid = (N, T):
#   t-axis: accumulate the temporal sum (AvgPool3d; 1/T folded into weights)
#   last t: side_prep(3x3)+score_dsn(1x1) via 9 accumulating tap matmuls,
#           then BOTH ConvTranspose2d ops / all phases via ONE wide matmul.
# --------------------------------------------------------------------------
def _fused_kernel(x_ref, w3p_ref, b_ref, wf_ref,        # inputs
                  st_ref, up_ref,                        # outputs
                  xm_ref, stp_ref,                       # VMEM scratch
                  *, T, H, W, CIN, QH, QW, NPAD):
    t = pl.program_id(1)
    f32 = jnp.float32
    bf16 = jnp.bfloat16

    @pl.when(t == 0)
    def _init():
        # Zero ONLY the halo ring of xm and the halo + round-up margin of stp
        # (interiors are fully overwritten below). Re-done every batch item so
        # the batch grid axis stays safely "parallel".
        xm_ref[0:1, :, :] = jnp.zeros((1, W + 2, CIN), f32)
        xm_ref[H + 1:H + 2, :, :] = jnp.zeros((1, W + 2, CIN), f32)
        xm_ref[:, 0:1, :] = jnp.zeros((H + 2, 1, CIN), f32)
        xm_ref[:, W + 1:W + 2, :] = jnp.zeros((H + 2, 1, CIN), f32)

        stp_ref[0:1, :, :] = jnp.zeros((1, QW + 1, CPAD), bf16)
        stp_ref[H + 1:QH + 1, :, :] = jnp.zeros((QH - H, QW + 1, CPAD), bf16)
        stp_ref[:, 0:1, :] = jnp.zeros((QH + 1, 1, CPAD), bf16)
        stp_ref[:, W + 1:QW + 1, :] = jnp.zeros((QH + 1, QW - W, CPAD), bf16)

        # first temporal frame initializes the sum (f32 accumulation)
        xm_ref[1:1 + H, 1:1 + W, :] = x_ref[...].astype(f32)

    @pl.when(t > 0)
    def _accum():
        xm_ref[1:1 + H, 1:1 + W, :] += x_ref[...].astype(f32)

    @pl.when(t == T - 1)
    def _compute():
        # ---- side_prep(3x3, pad 1) + folded score_dsn(1x1):
        #      9 accumulating tap matmuls, no materialized im2col.
        acc = None
        for tap in range(9):
            dy, dx = tap // 3, tap % 3
            lhs = xm_ref[dy:dy + H, dx:dx + W, :].reshape(H * W, CIN).astype(bf16)
            part = jnp.dot(lhs, w3p_ref[tap], preferred_element_type=f32)
            acc = part if acc is None else acc + part
        st = (acc + b_ref[...]).reshape(H, W, CPAD)   # channels 17..31 are exact zeros

        st_ref[...] = st                               # score_dsn output is channel 16
        stp_ref[1:1 + H, 1:1 + W, :] = st.astype(bf16)

        # ---- both ConvTranspose2d ops, ALL S*S stride phases, in ONE matmul:
        #      (QH*QW, 4*CPAD=128) @ (128, NPAD). Phase de-interleave happens
        #      in the XLA glue of the wrapper.
        slabs = [stp_ref[dy:dy + QH, dx:dx + QW, :]
                 for dy, dx in ((1, 1), (0, 1), (1, 0), (0, 0))]
        patch4 = jnp.concatenate(slabs, axis=-1).reshape(QH * QW, 4 * CPAD)
        up_ref[...] = jnp.dot(patch4, wf_ref[...],
                              preferred_element_type=f32).reshape(QH, QW, NPAD)


# --------------------------------------------------------------------------
# center_crop (== torch F.pad with negative pads) -- pure layout glue
# --------------------------------------------------------------------------
def _center_crop(x, height, width, h_axis, w_axis):
    dh = height - x.shape[h_axis]
    dw = width - x.shape[w_axis]
    pads = [(0, 0, 0)] * x.ndim
    pads[h_axis] = (math.ceil(dh / 2), math.floor(dh / 2), 0)
    pads[w_axis] = (math.ceil(dw / 2), math.floor(dw / 2), 0)
    return jax.lax.pad(x, jnp.array(0.0, x.dtype), pads)


def _center_crop_nhwc(x, height, width):
    return _center_crop(x, height, width, 1, 2)


def _center_crop_nchw(x, height, width):
    return _center_crop(x, height, width, 2, 3)


# --------------------------------------------------------------------------
# Wrapper: full DSAMScoreDSN.forward
# --------------------------------------------------------------------------
@functools.partial(jax.jit, static_argnums=(2, 3, 4))
def dsam_score_dsn_forward(x, params, crop_h, crop_w, prev_layer):
    N, CIN, T, H, W = x.shape
    S = 2 ** prev_layer            # ConvTranspose stride
    K = 2 ** (prev_layer + 1)      # ConvTranspose kernel size
    P = S * S                      # number of stride phases
    HP, WP = H + 1, W + 1          # per-phase valid output size
    QH, QW = _round_up(HP, 8), _round_up(WP, 8)
    NPAD = _round_up(P * CPAD, 128)
    f32, bf16 = jnp.float32, jnp.bfloat16

    # ---- side_prep(3x3) + score_dsn(1x1) folded into one (9, CIN, CPAD) weight;
    #      the AvgPool 1/T is folded in too (kernel accumulates the raw sum).
    w3 = jnp.transpose(params["w_side_prep"], (2, 3, 1, 0)).astype(f32) * (1.0 / T)
    b3 = params["b_side_prep"].astype(f32)                               # (16,)
    w1 = params["w_score_dsn"].reshape(C_MID).astype(f32)                # (16,)
    b1 = params["b_score_dsn"].reshape(()).astype(f32)
    w_extra = jnp.einsum("abic,c->abi", w3, w1)[..., None]               # (3,3,CIN,1)
    w3p = jnp.concatenate([w3, w_extra], axis=-1)                        # (3,3,CIN,17)
    w3p = jnp.pad(w3p, ((0, 0), (0, 0), (0, 0), (0, CPAD - C17)))
    w3p = w3p.reshape(9, CIN, CPAD).astype(bf16)
    b17 = jnp.concatenate([b3, (jnp.dot(b3, w1) + b1)[None]])
    b17 = jnp.pad(b17, (0, CPAD - C17)).reshape(1, CPAD).astype(f32)

    # ---- fused block-diagonal weight covering BOTH ConvTranspose2d ops and all
    #      P phases: rows = tap*CPAD + cin, cols = p*CPAD + cout.
    # slab order in the kernel: (dy,dx) = (1,1),(0,1),(1,0),(0,0)
    #   -> kernel-tap offsets    (ky,kx) = (r,c),(r+S,c),(r,c+S),(r+S,c+S)
    wu16 = jnp.transpose(params["w_upscale"], (2, 3, 0, 1)).astype(f32)  # (K,K,Cin,Cout)
    wu1 = params["w_upscale_"].reshape(K, K).astype(f32)
    wtap = jnp.zeros((K, K, CPAD, CPAD), f32)
    wtap = wtap.at[:, :, :C_MID, :C_MID].set(wu16)
    wtap = wtap.at[:, :, C_MID, C_MID].set(wu1)
    ky = jnp.arange(S)[:, None, None] + jnp.array([0, S, 0, S])[None, None, :]
    kx = jnp.arange(S)[None, :, None] + jnp.array([0, 0, S, S])[None, None, :]
    wph = wtap[ky, kx].reshape(P, 4, CPAD, CPAD)                         # p = r*S + c
    wf = jnp.transpose(wph, (1, 2, 0, 3)).reshape(4 * CPAD, P * CPAD)
    if NPAD > P * CPAD:
        wf = jnp.pad(wf, ((0, 0), (0, NPAD - P * CPAD)))
    wf = wf.astype(bf16)

    # ---- NCTHW -> NTHWC (channels on the lane axis); keep x's native dtype.
    x_nthwc = jnp.transpose(x, (0, 2, 3, 4, 1))

    kern = functools.partial(_fused_kernel, T=T, H=H, W=W, CIN=CIN,
                             QH=QH, QW=QW, NPAD=NPAD)
    st_full, up = pl.pallas_call(
        kern,
        out_shape=(jax.ShapeDtypeStruct((N, H, W, CPAD), f32),
                   jax.ShapeDtypeStruct((N, QH, QW, NPAD), f32)),
        grid_spec=pltpu.PrefetchScalarGridSpec(
            num_scalar_prefetch=0,
            grid=(N, T),
            in_specs=[
                pl.BlockSpec((None, None, H, W, CIN), lambda n, t: (n, t, 0, 0, 0)),
                pl.BlockSpec((9, CIN, CPAD), lambda n, t: (0, 0, 0)),
                pl.BlockSpec((1, CPAD), lambda n, t: (0, 0)),
                pl.BlockSpec((4 * CPAD, NPAD), lambda n, t: (0, 0)),
            ],
            out_specs=[
                pl.BlockSpec((None, H, W, CPAD), lambda n, t: (n, 0, 0, 0)),
                pl.BlockSpec((None, QH, QW, NPAD), lambda n, t: (n, 0, 0, 0)),
            ],
            scratch_shapes=[
                pltpu.VMEM((H + 2, W + 2, CIN), f32),      # padded temporal sum
                pltpu.VMEM((QH + 1, QW + 1, CPAD), bf16),  # padded st slab (tconv input)
            ]),
        compiler_params=pltpu.CompilerParams(
            dimension_semantics=("parallel", "arbitrary"),
            vmem_limit_bytes=_vmem_limit_bytes()),
    )(x_nthwc, w3p, b17, wf)

    # ---- phase interleave + crop (pure layout glue, fused by XLA under jit).
    v = up[..., :P * CPAD].reshape(N, QH, QW, S, S, CPAD)
    v = v[:, :HP, :WP, :, :, :C17]
    v = jnp.transpose(v, (0, 1, 3, 2, 4, 5)).reshape(N, HP * S, WP * S, C17)
    side = _center_crop_nhwc(v[..., :C_MID], crop_h, crop_w)
    side_out = _center_crop_nhwc(v[..., C_MID:], crop_h, crop_w)

    # back to PyTorch NCHW
    side = jnp.transpose(side, (0, 3, 1, 2))
    side_out = jnp.transpose(side_out, (0, 3, 1, 2))
    side_out_tmp = jnp.transpose(st_full[..., C_MID:C17], (0, 3, 1, 2))
    return side, side_out, side_out_tmp


# --------------------------------------------------------------------------
# Pure-JAX (XLA conv) reference of the torch forward, for validation.
# --------------------------------------------------------------------------
def _reference_forward(x, params, crop_h, crop_w, prev_layer):
    S = 2 ** prev_layer
    K = 2 ** (prev_layer + 1)
    dn = ("NCHW", "OIHW", "NCHW")
    prec = jax.lax.Precision.HIGHEST

    xm = jnp.mean(x.astype(jnp.float32), axis=2)                # AvgPool3d + squeeze
    side_temp = jax.lax.conv_general_dilated(
        xm, params["w_side_prep"], (1, 1), ((1, 1), (1, 1)),
        dimension_numbers=dn, precision=prec
    ) + params["b_side_prep"][None, :, None, None]
    side_out_tmp = jax.lax.conv_general_dilated(
        side_temp, params["w_score_dsn"], (1, 1), ((0, 0), (0, 0)),
        dimension_numbers=dn, precision=prec
    ) + params["b_score_dsn"][None, :, None, None]

    def tconv(inp, w):   # torch ConvTranspose2d, weight (Cin, Cout, K, K)
        wt = jnp.flip(jnp.transpose(w, (1, 0, 2, 3)), axis=(2, 3))
        return jax.lax.conv_general_dilated(
            inp, wt, (1, 1), ((K - 1, K - 1), (K - 1, K - 1)),
            lhs_dilation=(S, S), dimension_numbers=dn, precision=prec)

    side = _center_crop_nchw(tconv(side_temp, params["w_upscale"]), crop_h, crop_w)
    side_out = _center_crop_nchw(tconv(side_out_tmp, params["w_upscale_"]),
                                 crop_h, crop_w)
    return side, side_out, side_out_tmp


# --------------------------------------------------------------------------
if __name__ == "__main__":
    prev_layer = 1        # i  -> ConvTranspose kernel 4, stride 2
    prev_nfilters = 4     # input channels
    prev_nsamples = 4     # temporal samples (AvgPool3d window)
    N, H, W = 2, 16, 16
    crop_h = crop_w = H * (2 ** prev_layer)   # 32
    K = 2 ** (prev_layer + 1)

    key = jax.random.PRNGKey(0)
    ks = jax.random.split(key, 7)
    params = {
        "w_side_prep": 0.1 * jax.random.normal(ks[0], (C_MID, prev_nfilters, 3, 3), jnp.float32),
        "b_side_prep": 0.05 * jax.random.normal(ks[1], (C_MID,), jnp.float32),
        "w_score_dsn": 0.1 * jax.random.normal(ks[2], (1, C_MID, 1, 1), jnp.float32),
        "b_score_dsn": 0.05 * jax.random.normal(ks[3], (1,), jnp.float32),
        "w_upscale":   0.1 * jax.random.normal(ks[4], (C_MID, C_MID, K, K), jnp.float32),
        "w_upscale_":  0.1 * jax.random.normal(ks[5], (1, 1, K, K), jnp.float32),
    }
    x = jax.random.normal(ks[6], (N, prev_nfilters, prev_nsamples, H, W), jnp.float32)

    outs = dsam_score_dsn_forward(x, params, crop_h, crop_w, prev_layer)
    outs = jax.block_until_ready(outs)

    refs = _reference_forward(x, params, crop_h, crop_w, prev_layer)
    refs = jax.block_until_ready(refs)

    for name, a, b in zip(("side", "side_out", "side_out_tmp"), outs, refs):
        assert a.shape == b.shape, (name, a.shape, b.shape)
        err = float(jnp.max(jnp.abs(a - b)))
        # bf16 MXU operands with f32 accumulation: typical max err ~1e-3 here.
        assert err < 1e-2, (name, err)

    print("KERNEL_OK")
</pallas_src>

<mosaic_0001>
module attributes {stable_mosaic.version = 11 : i64} {
  func.func @_fused_kernel(%arg0: i32, %arg1: i32, %arg2: memref<1x1x16x16x4xf32, #tpu.memory_space<vmem>>, %arg3: memref<9x4x32xbf16, #tpu.memory_space<vmem>>, %arg4: memref<1x32xf32, #tpu.memory_space<vmem>>, %arg5: memref<128x128xbf16, #tpu.memory_space<vmem>>, %arg6: memref<1x16x16x32xf32, #tpu.memory_space<vmem>>, %arg7: memref<1x24x24x128xf32, #tpu.memory_space<vmem>>, %arg8: memref<18x18x4xf32, #tpu.memory_space<vmem>>, %arg9: memref<25x25x32xbf16, #tpu.memory_space<vmem>>) attributes {dimension_semantics = [#tpu.dimension_semantics<parallel>, #tpu.dimension_semantics<arbitrary>], iteration_bounds = array<i64: 2, 4>, scalar_prefetch = 0 : i64, scratch_operands = 2 : i64, tpu.core_type = #tpu.core_type<tc>, window_params = [{transform_indices = @transform_0, window_bounds = array<i64: 1, 1, 16, 16, 4>}, {pipeline_mode = #tpu.pipeline_mode<synchronous>, transform_indices = @transform_1, window_bounds = array<i64: 9, 4, 32>}, {pipeline_mode = #tpu.pipeline_mode<synchronous>, transform_indices = @transform_2, window_bounds = array<i64: 1, 32>}, {pipeline_mode = #tpu.pipeline_mode<synchronous>, transform_indices = @transform_3, window_bounds = array<i64: 128, 128>}, {transform_indices = @transform_4, window_bounds = array<i64: 1, 16, 16, 32>}, {transform_indices = @transform_5, window_bounds = array<i64: 1, 24, 24, 128>}]} {
    %c0_i32 = arith.constant 0 : i32
    %0 = arith.cmpi eq, %arg1, %c0_i32 : i32
    %1 = arith.extui %0 : i1 to i32
    %c0_i32_0 = arith.constant 0 : i32
    %2 = arith.cmpi ne, %1, %c0_i32_0 : i32
    scf.if %2 {
      %cst = arith.constant 0.000000e+00 : f32
      %9 = vector.broadcast %cst : f32 to vector<1x18x4xf32>
      %c0 = arith.constant 0 : index
      %c0_4 = arith.constant 0 : index
      %c0_5 = arith.constant 0 : index
      %10 = vector.load %arg8[%c0, %c0_4, %c0_5] : memref<18x18x4xf32, #tpu.memory_space<vmem>>, vector<1x18x4xf32>
      tpu.vector_store %arg8[%c0, %c0_4, %c0_5], %9 {strides = array<i32>} : memref<18x18x4xf32, #tpu.memory_space<vmem>>, vector<1x18x4xf32>,
      %cst_6 = arith.constant 0.000000e+00 : f32
      %11 = vector.broadcast %cst_6 : f32 to vector<1x18x4xf32>
      %c17 = arith.constant 17 : index
      %c0_7 = arith.constant 0 : index
      %c0_8 = arith.constant 0 : index
      %12 = vector.load %arg8[%c17, %c0_7, %c0_8] : memref<18x18x4xf32, #tpu.memory_space<vmem>>, vector<1x18x4xf32>
      tpu.vector_store %arg8[%c17, %c0_7, %c0_8], %11 {strides = array<i32>} : memref<18x18x4xf32, #tpu.memory_space<vmem>>, vector<1x18x4xf32>,
      %cst_9 = arith.constant 0.000000e+00 : f32
      %13 = vector.broadcast %cst_9 : f32 to vector<18x1x4xf32>
      %c0_10 = arith.constant 0 : index
      %c0_11 = arith.constant 0 : index
      %c0_12 = arith.constant 0 : index
      %14 = vector.load %arg8[%c0_10, %c0_11, %c0_12] : memref<18x18x4xf32, #tpu.memory_space<vmem>>, vector<18x1x4xf32>
      tpu.vector_store %arg8[%c0_10, %c0_11, %c0_12], %13 {strides = array<i32>} : memref<18x18x4xf32, #tpu.memory_space<vmem>>, vector<18x1x4xf32>,
      %cst_13 = arith.constant 0.000000e+00 : f32
      %15 = vector.broadcast %cst_13 : f32 to vector<18x1x4xf32>
      %c0_14 = arith.constant 0 : index
      %c17_15 = arith.constant 17 : index
      %c0_16 = arith.constant 0 : index
      %16 = vector.load %arg8[%c0_14, %c17_15, %c0_16] : memref<18x18x4xf32, #tpu.memory_space<vmem>>, vector<18x1x4xf32>
      tpu.vector_store %arg8[%c0_14, %c17_15, %c0_16], %15 {strides = array<i32>} : memref<18x18x4xf32, #tpu.memory_space<vmem>>, vector<18x1x4xf32>,
      %cst_17 = arith.constant 0.000000e+00 : bf16
      %17 = vector.broadcast %cst_17 : bf16 to vector<1x25x32xbf16>
      %c0_18 = arith.constant 0 : index
      %c0_19 = arith.constant 0 : index
      %c0_20 = arith.constant 0 : index
      %18 = vector.load %arg9[%c0_18, %c0_19, %c0_20] : memref<25x25x32xbf16, #tpu.memory_space<vmem>>, vector<1x25x32xbf16>
      tpu.vector_store %arg9[%c0_18, %c0_19, %c0_20], %17 {strides = array<i32>} : memref<25x25x32xbf16, #tpu.memory_space<vmem>>, vector<1x25x32xbf16>,
      %cst_21 = arith.constant 0.000000e+00 : bf16
      %19 = vector.broadcast %cst_21 : bf16 to vector<8x25x32xbf16>
      %c17_22 = arith.constant 17 : index
      %c0_23 = arith.constant 0 : index
      %c0_24 = arith.constant 0 : index
      %20 = vector.load %arg9[%c17_22, %c0_23, %c0_24] : memref<25x25x32xbf16, #tpu.memory_space<vmem>>, vector<8x25x32xbf16>
      tpu.vector_store %arg9[%c17_22, %c0_23, %c0_24], %19 {strides = array<i32>} : memref<25x25x32xbf16, #tpu.memory_space<vmem>>, vector<8x25x32xbf16>,
      %cst_25 = arith.constant 0.000000e+00 : bf16
      %21 = vector.broadcast %cst_25 : bf16 to vector<25x1x32xbf16>
      %c0_26 = arith.constant 0 : index
      %c0_27 = arith.constant 0 : index
      %c0_28 = arith.constant 0 : index
      %22 = vector.load %arg9[%c0_26, %c0_27, %c0_28] : memref<25x25x32xbf16, #tpu.memory_space<vmem>>, vector<25x1x32xbf16>
      tpu.vector_store %arg9[%c0_26, %c0_27, %c0_28], %21 {strides = array<i32>} : memref<25x25x32xbf16, #tpu.memory_space<vmem>>, vector<25x1x32xbf16>,
      %cst_29 = arith.constant 0.000000e+00 : bf16
      %23 = vector.broadcast %cst_29 : bf16 to vector<25x8x32xbf16>
      %c0_30 = arith.constant 0 : index
      %c17_31 = arith.constant 17 : index
      %c0_32 = arith.constant 0 : index
      %24 = vector.load %arg9[%c0_30, %c17_31, %c0_32] : memref<25x25x32xbf16, #tpu.memory_space<vmem>>, vector<25x8x32xbf16>
      tpu.vector_store %arg9[%c0_30, %c17_31, %c0_32], %23 {strides = array<i32>} : memref<25x25x32xbf16, #tpu.memory_space<vmem>>, vector<25x8x32xbf16>,
      %c0_33 = arith.constant 0 : index
      %c0_34 = arith.constant 0 : index
      %c0_35 = arith.constant 0 : index
      %c0_36 = arith.constant 0 : index
      %c0_37 = arith.constant 0 : index
      %25 = vector.load %arg2[%c0_33, %c0_34, %c0_35, %c0_36, %c0_37] : memref<1x1x16x16x4xf32, #tpu.memory_space<vmem>>, vector<1x1x16x16x4xf32>
      %26 = vector.shape_cast %25 : vector<1x1x16x16x4xf32> to vector<16x16x4xf32>
      %c1 = arith.constant 1 : index
      %c1_38 = arith.constant 1 : index
      %c0_39 = arith.constant 0 : index
      %27 = vector.load %arg8[%c1, %c1_38, %c0_39] : memref<18x18x4xf32, #tpu.memory_space<vmem>>, vector<16x16x4xf32>
      tpu.vector_store %arg8[%c1, %c1_38, %c0_39], %26 {strides = array<i32>} : memref<18x18x4xf32, #tpu.memory_space<vmem>>, vector<16x16x4xf32>,
    } else {
    }
    %c0_i32_1 = arith.constant 0 : i32
    %3 = arith.cmpi sgt, %arg1, %c0_i32_1 : i32
    %4 = arith.extui %3 : i1 to i32
    %c0_i32_2 = arith.constant 0 : i32
    %5 = arith.cmpi ne, %4, %c0_i32_2 : i32
    scf.if %5 {
      %c1 = arith.constant 1 : index
      %c1_4 = arith.constant 1 : index
      %c0 = arith.constant 0 : index
      %9 = vector.load %arg8[%c1, %c1_4, %c0] : memref<18x18x4xf32, #tpu.memory_space<vmem>>, vector<16x16x4xf32>
      %c0_5 = arith.constant 0 : index
      %c0_6 = arith.constant 0 : index
      %c0_7 = arith.constant 0 : index
      %c0_8 = arith.constant 0 : index
      %c0_9 = arith.constant 0 : index
      %10 = vector.load %arg2[%c0_5, %c0_6, %c0_7, %c0_8, %c0_9] : memref<1x1x16x16x4xf32, #tpu.memory_space<vmem>>, vector<1x1x16x16x4xf32>
      %11 = vector.shape_cast %10 : vector<1x1x16x16x4xf32> to vector<16x16x4xf32>
      %12 = arith.addf %9, %11 : vector<16x16x4xf32>
      %c1_10 = arith.constant 1 : index
      %c1_11 = arith.constant 1 : index
      %c0_12 = arith.constant 0 : index
      %13 = vector.load %arg8[%c1_10, %c1_11, %c0_12] : memref<18x18x4xf32, #tpu.memory_space<vmem>>, vector<16x16x4xf32>
      tpu.vector_store %arg8[%c1_10, %c1_11, %c0_12], %12 {strides = array<i32>} : memref<18x18x4xf32, #tpu.memory_space<vmem>>, vector<16x16x4xf32>,
    } else {
    }
    %c3_i32 = arith.constant 3 : i32
    %6 = arith.cmpi eq, %arg1, %c3_i32 : i32
    %7 = arith.extui %6 : i1 to i32
    %c0_i32_3 = arith.constant 0 : i32
    %8 = arith.cmpi ne, %7, %c0_i32_3 : i32
    scf.if %8 {
      %c0 = arith.constant 0 : index
      %c0_4 = arith.constant 0 : index
      %c0_5 = arith.constant 0 : index
      %9 = vector.load %arg8[%c0, %c0_4, %c0_5] : memref<18x18x4xf32, #tpu.memory_space<vmem>>, vector<16x16x4xf32>
      %10 = vector.shape_cast %9 : vector<16x16x4xf32> to vector<256x4xf32>
      %11 = arith.truncf %10 : vector<256x4xf32> to vector<256x4xbf16>
      %c0_6 = arith.constant 0 : index
      %c0_7 = arith.constant 0 : index
      %c0_8 = arith.constant 0 : index
      %12 = vector.load %arg3[%c0_6, %c0_7, %c0_8] : memref<9x4x32xbf16, #tpu.memory_space<vmem>>, vector<1x4x32xbf16>
      %13 = vector.shape_cast %12 : vector<1x4x32xbf16> to vector<4x32xbf16>
      %cst = arith.constant dense<0.000000e+00> : vector<256x32xf32>
      %14 = tpu.matmul %11, %13, %cst {dimension_numbers = #tpu.dot_dimension_numbers<[1], [0], [0], [1], [0, 0, 1, 1], [], []>} : vector<256x4xbf16>, vector<4x32xbf16>, vector<256x32xf32> -> vector<256x32xf32>
      %c0_9 = arith.constant 0 : index
      %c1 = arith.constant 1 : index
      %c0_10 = arith.constant 0 : index
      %15 = vector.load %arg8[%c0_9, %c1, %c0_10] : memref<18x18x4xf32, #tpu.memory_space<vmem>>, vector<16x16x4xf32>
      %16 = vector.shape_cast %15 : vector<16x16x4xf32> to vector<256x4xf32>
      %17 = arith.truncf %16 : vector<256x4xf32> to vector<256x4xbf16>
      %c1_11 = arith.constant 1 : index
      %c0_12 = arith.constant 0 : index
      %c0_13 = arith.constant 0 : index
      %18 = vector.load %arg3[%c1_11, %c0_12, %c0_13] : memref<9x4x32xbf16, #tpu.memory_space<vmem>>, vector<1x4x32xbf16>
      %19 = vector.shape_cast %18 : vector<1x4x32xbf16> to vector<4x32xbf16>
      %cst_14 = arith.constant dense<0.000000e+00> : vector<256x32xf32>
      %20 = tpu.matmul %17, %19, %cst_14 {dimension_numbers = #tpu.dot_dimension_numbers<[1], [0], [0], [1], [0, 0, 1, 1], [], []>} : vector<256x4xbf16>, vector<4x32xbf16>, vector<256x32xf32> -> vector<256x32xf32>
      %21 = arith.addf %14, %20 : vector<256x32xf32>
      %c0_15 = arith.constant 0 : index
      %c2 = arith.constant 2 : index
      %c0_16 = arith.constant 0 : index
      %22 = vector.load %arg8[%c0_15, %c2, %c0_16] : memref<18x18x4xf32, #tpu.memory_space<vmem>>, vector<16x16x4xf32>
      %23 = vector.shape_cast %22 : vector<16x16x4xf32> to vector<256x4xf32>
      %24 = arith.truncf %23 : vector<256x4xf32> to vector<256x4xbf16>
      %c2_17 = arith.constant 2 : index
      %c0_18 = arith.constant 0 : index
      %c0_19 = arith.constant 0 : index
      %25 = vector.load %arg3[%c2_17, %c0_18, %c0_19] : memref<9x4x32xbf16, #tpu.memory_space<vmem>>, vector<1x4x32xbf16>
      %26 = vector.shape_cast %25 : vector<1x4x32xbf16> to vector<4x32xbf16>
      %cst_20 = arith.constant dense<0.000000e+00> : vector<256x32xf32>
      %27 = tpu.matmul %24, %26, %cst_20 {dimension_numbers = #tpu.dot_dimension_numbers<[1], [0], [0], [1], [0, 0, 1, 1], [], []>} : vector<256x4xbf16>, vector<4x32xbf16>, vector<256x32xf32> -> vector<256x32xf32>
      %28 = arith.addf %21, %27 : vector<256x32xf32>
      %c1_21 = arith.constant 1 : index
      %c0_22 = arith.constant 0 : index
      %c0_23 = arith.constant 0 : index
      %29 = vector.load %arg8[%c1_21, %c0_22, %c0_23] : memref<18x18x4xf32, #tpu.memory_space<vmem>>, vector<16x16x4xf32>
      %30 = vector.shape_cast %29 : vector<16x16x4xf32> to vector<256x4xf32>
      %31 = arith.truncf %30 : vector<256x4xf32> to vector<256x4xbf16>
      %c3 = arith.constant 3 : index
      %c0_24 = arith.constant 0 : index
      %c0_25 = arith.constant 0 : index
      %32 = vector.load %arg3[%c3, %c0_24, %c0_25] : memref<9x4x32xbf16, #tpu.memory_space<vmem>>, vector<1x4x32xbf16>
      %33 = vector.shape_cast %32 : vector<1x4x32xbf16> to vector<4x32xbf16>
      %cst_26 = arith.constant dense<0.000000e+00> : vector<256x32xf32>
      %34 = tpu.matmul %31, %33, %cst_26 {dimension_numbers = #tpu.dot_dimension_numbers<[1], [0], [0], [1], [0, 0, 1, 1], [], []>} : vector<256x4xbf16>, vector<4x32xbf16>, vector<256x32xf32> -> vector<256x32xf32>
      %35 = arith.addf %28, %34 : vector<256x32xf32>
      %c1_27 = arith.constant 1 : index
      %c1_28 = arith.constant 1 : index
      %c0_29 = arith.constant 0 : index
      %36 = vector.load %arg8[%c1_27, %c1_28, %c0_29] : memref<18x18x4xf32, #tpu.memory_space<vmem>>, vector<16x16x4xf32>
      %37 = vector.shape_cast %36 : vector<16x16x4xf32> to vector<256x4xf32>
      %38 = arith.truncf %37 : vector<256x4xf32> to vector<256x4xbf16>
      %c4 = arith.constant 4 : index
      %c0_30 = arith.constant 0 : index
      %c0_31 = arith.constant 0 : index
      %39 = vector.load %arg3[%c4, %c0_30, %c0_31] : memref<9x4x32xbf16, #tpu.memory_space<vmem>>, vector<1x4x32xbf16>
      %40 = vector.shape_cast %39 : vector<1x4x32xbf16> to vector<4x32xbf16>
      %cst_32 = arith.constant dense<0.000000e+00> : vector<256x32xf32>
      %41 = tpu.matmul %38, %40, %cst_32 {dimension_numbers = #tpu.dot_dimension_numbers<[1], [0], [0], [1], [0, 0, 1, 1], [], []>} : vector<256x4xbf16>, vector<4x32xbf16>, vector<256x32xf32> -> vector<256x32xf32>
      %42 = arith.addf %35, %41 : vector<256x32xf32>
      %c1_33 = arith.constant 1 : index
      %c2_34 = arith.constant 2 : index
      %c0_35 = arith.constant 0 : index
      %43 = vector.load %arg8[%c1_33, %c2_34, %c0_35] : memref<18x18x4xf32, #tpu.memory_space<vmem>>, vector<16x16x4xf32>
      %44 = vector.shape_cast %43 : vector<16x16x4xf32> to vector<256x4xf32>
      %45 = arith.truncf %44 : vector<256x4xf32> to vector<256x4xbf16>
      %c5 = arith.constant 5 : index
      %c0_36 = arith.constant 0 : index
      %c0_37 = arith.constant 0 : index
      %46 = vector.load %arg3[%c5, %c0_36, %c0_37] : memref<9x4x32xbf16, #tpu.memory_space<vmem>>, vector<1x4x32xbf16>
      %47 = vector.shape_cast %46 : vector<1x4x32xbf16> to vector<4x32xbf16>
      %cst_38 = arith.constant dense<0.000000e+00> : vector<256x32xf32>
      %48 = tpu.matmul %45, %47, %cst_38 {dimension_numbers = #tpu.dot_dimension_numbers<[1], [0], [0], [1], [0, 0, 1, 1], [], []>} : vector<256x4xbf16>, vector<4x32xbf16>, vector<256x32xf32> -> vector<256x32xf32>
      %49 = arith.addf %42, %48 : vector<256x32xf32>
      %c2_39 = arith.constant 2 : index
      %c0_40 = arith.constant 0 : index
      %c0_41 = arith.constant 0 : index
      %50 = vector.load %arg8[%c2_39, %c0_40, %c0_41] : memref<18x18x4xf32, #tpu.memory_space<vmem>>, vector<16x16x4xf32>
      %51 = vector.shape_cast %50 : vector<16x16x4xf32> to vector<256x4xf32>
      %52 = arith.truncf %51 : vector<256x4xf32> to vector<256x4xbf16>
      %c6 = arith.constant 6 : index
      %c0_42 = arith.constant 0 : index
      %c0_43 = arith.constant 0 : index
      %53 = vector.load %arg3[%c6, %c0_42, %c0_43] : memref<9x4x32xbf16, #tpu.memory_space<vmem>>, vector<1x4x32xbf16>
      %54 = vector.shape_cast %53 : vector<1x4x32xbf16> to vector<4x32xbf16>
      %cst_44 = arith.constant dense<0.000000e+00> : vector<256x32xf32>
      %55 = tpu.matmul %52, %54, %cst_44 {dimension_numbers = #tpu.dot_dimension_numbers<[1], [0], [0], [1], [0, 0, 1, 1], [], []>} : vector<256x4xbf16>, vector<4x32xbf16>, vector<256x32xf32> -> vector<256x32xf32>
      %56 = arith.addf %49, %55 : vector<256x32xf32>
      %c2_45 = arith.constant 2 : index
      %c1_46 = arith.constant 1 : index
      %c0_47 = arith.constant 0 : index
      %57 = vector.load %arg8[%c2_45, %c1_46, %c0_47] : memref<18x18x4xf32, #tpu.memory_space<vmem>>, vector<16x16x4xf32>
      %58 = vector.shape_cast %57 : vector<16x16x4xf32> to vector<256x4xf32>
      %59 = arith.truncf %58 : vector<256x4xf32> to vector<256x4xbf16>
      %c7 = arith.constant 7 : index
      %c0_48 = arith.constant 0 : index
      %c0_49 = arith.constant 0 : index
      %60 = vector.load %arg3[%c7, %c0_48, %c0_49] : memref<9x4x32xbf16, #tpu.memory_space<vmem>>, vector<1x4x32xbf16>
      %61 = vector.shape_cast %60 : vector<1x4x32xbf16> to vector<4x32xbf16>
      %cst_50 = arith.constant dense<0.000000e+00> : vector<256x32xf32>
      %62 = tpu.matmul %59, %61, %cst_50 {dimension_numbers = #tpu.dot_dimension_numbers<[1], [0], [0], [1], [0, 0, 1, 1], [], []>} : vector<256x4xbf16>, vector<4x32xbf16>, vector<256x32xf32> -> vector<256x32xf32>
      %63 = arith.addf %56, %62 : vector<256x32xf32>
      %c2_51 = arith.constant 2 : index
      %c2_52 = arith.constant 2 : index
      %c0_53 = arith.constant 0 : index
      %64 = vector.load %arg8[%c2_51, %c2_52, %c0_53] : memref<18x18x4xf32, #tpu.memory_space<vmem>>, vector<16x16x4xf32>
      %65 = vector.shape_cast %64 : vector<16x16x4xf32> to vector<256x4xf32>
      %66 = arith.truncf %65 : vector<256x4xf32> to vector<256x4xbf16>
      %c8 = arith.constant 8 : index
      %c0_54 = arith.constant 0 : index
      %c0_55 = arith.constant 0 : index
      %67 = vector.load %arg3[%c8, %c0_54, %c0_55] : memref<9x4x32xbf16, #tpu.memory_space<vmem>>, vector<1x4x32xbf16>
      %68 = vector.shape_cast %67 : vector<1x4x32xbf16> to vector<4x32xbf16>
      %cst_56 = arith.constant dense<0.000000e+00> : vector<256x32xf32>
      %69 = tpu.matmul %66, %68, %cst_56 {dimension_numbers = #tpu.dot_dimension_numbers<[1], [0], [0], [1], [0, 0, 1, 1], [], []>} : vector<256x4xbf16>, vector<4x32xbf16>, vector<256x32xf32> -> vector<256x32xf32>
      %70 = arith.addf %63, %69 : vector<256x32xf32>
      %c0_57 = arith.constant 0 : index
      %c0_58 = arith.constant 0 : index
      %71 = vector.load %arg4[%c0_57, %c0_58] : memref<1x32xf32, #tpu.memory_space<vmem>>, vector<1x32xf32>
      %72 = vector.broadcast %71 : vector<1x32xf32> to vector<256x32xf32>
      %73 = arith.addf %70, %72 : vector<256x32xf32>
      %74 = vector.shape_cast %73 : vector<256x32xf32> to vector<16x16x32xf32>
      %c0_59 = arith.constant 0 : index
      %c0_60 = arith.constant 0 : index
      %c0_61 = arith.constant 0 : index
      %c0_62 = arith.constant 0 : index
      %75 = vector.load %arg6[%c0_59, %c0_60, %c0_61, %c0_62] : memref<1x16x16x32xf32, #tpu.memory_space<vmem>>, vector<1x16x16x32xf32>
      %76 = vector.shape_cast %75 : vector<1x16x16x32xf32> to vector<16x16x32xf32>
      %77 = vector.shape_cast %74 : vector<16x16x32xf32> to vector<1x16x16x32xf32>
      tpu.vector_store %arg6[%c0_59, %c0_60, %c0_61, %c0_62], %77 {strides = array<i32>} : memref<1x16x16x32xf32, #tpu.memory_space<vmem>>, vector<1x16x16x32xf32>,
      %78 = arith.truncf %74 : vector<16x16x32xf32> to vector<16x16x32xbf16>
      %c1_63 = arith.constant 1 : index
      %c1_64 = arith.constant 1 : index
      %c0_65 = arith.constant 0 : index
      %79 = vector.load %arg9[%c1_63, %c1_64, %c0_65] : memref<25x25x32xbf16, #tpu.memory_space<vmem>>, vector<16x16x32xbf16>
      tpu.vector_store %arg9[%c1_63, %c1_64, %c0_65], %78 {strides = array<i32>} : memref<25x25x32xbf16, #tpu.memory_space<vmem>>, vector<16x16x32xbf16>,
      %c1_66 = arith.constant 1 : index
      %c1_67 = arith.constant 1 : index
      %c0_68 = arith.constant 0 : index
      %80 = vector.load %arg9[%c1_66, %c1_67, %c0_68] : memref<25x25x32xbf16, #tpu.memory_space<vmem>>, vector<24x24x32xbf16>
      %c0_69 = arith.constant 0 : index
      %c1_70 = arith.constant 1 : index
      %c0_71 = arith.constant 0 : index
      %81 = vector.load %arg9[%c0_69, %c1_70, %c0_71] : memref<25x25x32xbf16, #tpu.memory_space<vmem>>, vector<24x24x32xbf16>
      %c1_72 = arith.constant 1 : index
      %c0_73 = arith.constant 0 : index
      %c0_74 = arith.constant 0 : index
      %82 = vector.load %arg9[%c1_72, %c0_73, %c0_74] : memref<25x25x32xbf16, #tpu.memory_space<vmem>>, vector<24x24x32xbf16>
      %c0_75 = arith.constant 0 : index
      %c0_76 = arith.constant 0 : index
      %c0_77 = arith.constant 0 : index
      %83 = vector.load %arg9[%c0_75, %c0_76, %c0_77] : memref<25x25x32xbf16, #tpu.memory_space<vmem>>, vector<24x24x32xbf16>
      %84 = tpu.concatenate %80, %81, %82, %83 in 2 : vector<24x24x32xbf16>, vector<24x24x32xbf16>, vector<24x24x32xbf16>, vector<24x24x32xbf16> -> vector<24x24x128xbf16>
      %85 = vector.shape_cast %84 : vector<24x24x128xbf16> to vector<576x128xbf16>
      %c0_78 = arith.constant 0 : index
      %c0_79 = arith.constant 0 : index
      %86 = vector.load %arg5[%c0_78, %c0_79] : memref<128x128xbf16, #tpu.memory_space<vmem>>, vector<128x128xbf16>
      %cst_80 = arith.constant dense<0.000000e+00> : vector<576x128xf32>
      %87 = tpu.matmul %85, %86, %cst_80 {dimension_numbers = #tpu.dot_dimension_numbers<[1], [0], [0], [1], [0, 0, 1, 1], [], []>} : vector<576x128xbf16>, vector<128x128xbf16>, vector<576x128xf32> -> vector<576x128xf32>
      %88 = vector.shape_cast %87 : vector<576x128xf32> to vector<24x24x128xf32>
      %c0_81 = arith.constant 0 : index
      %c0_82 = arith.constant 0 : index
      %c0_83 = arith.constant 0 : index
      %c0_84 = arith.constant 0 : index
      %89 = vector.load %arg7[%c0_81, %c0_82, %c0_83, %c0_84] : memref<1x24x24x128xf32, #tpu.memory_space<vmem>>, vector<1x24x24x128xf32>
      %90 = vector.shape_cast %89 : vector<1x24x24x128xf32> to vector<24x24x128xf32>
      %91 = vector.shape_cast %88 : vector<24x24x128xf32> to vector<1x24x24x128xf32>
      tpu.vector_store %arg7[%c0_81, %c0_82, %c0_83, %c0_84], %91 {strides = array<i32>} : memref<1x24x24x128xf32, #tpu.memory_space<vmem>>, vector<1x24x24x128xf32>,
    } else {
    }
    return
  }
  func.func @transform_0(%arg0: i32, %arg1: i32) -> (i32, i32, i32, i32, i32) {
    %c0_i32 = arith.constant 0 : i32
    %c0_i32_0 = arith.constant 0 : i32
    %c0_i32_1 = arith.constant 0 : i32
    %c0_i32_2 = arith.constant 0 : i32
    return %arg0, %arg1, %c0_i32, %c0_i32_0, %c0_i32_1 : i32, i32, i32, i32, i32
  }
  func.func @transform_1(%arg0: i32, %arg1: i32) -> (i32, i32, i32) {
    %c0_i32 = arith.constant 0 : i32
    %c0_i32_0 = arith.constant 0 : i32
    %c0_i32_1 = arith.constant 0 : i32
    %c0_i32_2 = arith.constant 0 : i32
    return %c0_i32, %c0_i32_0, %c0_i32_1 : i32, i32, i32
  }
  func.func @transform_2(%arg0: i32, %arg1: i32) -> (i32, i32) {
    %c0_i32 = arith.constant 0 : i32
    %c0_i32_0 = arith.constant 0 : i32
    %c0_i32_1 = arith.constant 0 : i32
    return %c0_i32, %c0_i32_0 : i32, i32
  }
  func.func @transform_3(%arg0: i32, %arg1: i32) -> (i32, i32) {
    %c0_i32 = arith.constant 0 : i32
    %c0_i32_0 = arith.constant 0 : i32
    %c0_i32_1 = arith.constant 0 : i32
    return %c0_i32, %c0_i32_0 : i32, i32
  }
  func.func @transform_4(%arg0: i32, %arg1: i32) -> (i32, i32, i32, i32) {
    %c0_i32 = arith.constant 0 : i32
    %c0_i32_0 = arith.constant 0 : i32
    %c0_i32_1 = arith.constant 0 : i32
    %c0_i32_2 = arith.constant 0 : i32
    return %arg0, %c0_i32, %c0_i32_0, %c0_i32_1 : i32, i32, i32, i32
  }
  func.func @transform_5(%arg0: i32, %arg1: i32) -> (i32, i32, i32, i32) {
    %c0_i32 = arith.constant 0 : i32
    %c0_i32_0 = arith.constant 0 : i32
    %c0_i32_1 = arith.constant 0 : i32
    %c0_i32_2 = arith.constant 0 : i32
    return %arg0, %c0_i32, %c0_i32_0, %c0_i32_1 : i32, i32, i32, i32
  }
}

</mosaic_0001>

<bundles_post_ra>
// kernel: dsam_score_dsn_forward.1
= control target key start
LH: loop header
LB: loop body
LE: loop exit
PB: predicated region body
PF: predicated region fallthrough
CT: control target
= control target key end

     0   :  { %s9240_s18 = smov 0   ;;  %s9242_s19 = smov 0   ;;  %s13093_s0 = inlined_call_operand.vmem [shape: f32[2,4,16,16,4], index: 0, kind: input, shape index: {}]   ;;  %s13094_s1 = inlined_call_operand.vmem [shape: bf16[9,4,32], index: 1, kind: input, shape index: {}]   ;;  %s13095_s2 = inlined_call_operand.vmem [shape: f32[1,32], index: 2, kind: input, shape index: {}]   ;;  %s13096_s3 = inlined_call_operand.vmem [shape: bf16[128,128], index: 3, kind: input, shape index: {}]   ;;  %s13097_s4 = inlined_call_operand.vmem [shape: f32[2,16,16,32], index: 4, kind: output, shape index: {0}]   ;;  %s13098_s5 = inlined_call_operand.vmem [shape: f32[2,24,24,128], index: 5, kind: output, shape index: {1}]  }
   0x1   :  { %s9244_s20 = smov 0   ;;  %s9246_s21 = smov 0  }
   0x2   :  { %s9248_s22 = smov 0  }
   0x3 LB: > { %s25_s23 = sadd.s32 1, %s9195_s20  ;;  %s28_s24 = sadd.s32 1, %s9199_s21  ;;  %s9203_s22 = sphi %s9248_s22, %s16_s22   ;;  %s9199_s21 = sphi %s9246_s21, %s13320_s21   ;;  %s9195_s20 = sphi %s9244_s20, %s13319_s20   ;;  %s9191_s19 = sphi %s9242_s19, %s13318_s19   ;;  %s9187_s18 = sphi %s9240_s18, %s13317_s18  }
   0x4   : > { %p26_p0 = scmp.ge.s32.totalorder %s25_s23, 4  ;;  %p7814_p1 = scmp.ge.s32.totalorder %s9203_s22, 1 }
   0x5   : > { %p208_p2 = scmp.lt.s32.totalorder %s9203_s22, 9 }
   0x6   : > { %s13322_s23 = smov (%p26_p0, %s25_s23), 0  ;;  %s13324_s24 = smov (!%p26_p0, %s28_s24), %s9199_s21 }
   0x7   : > { %p209_p3 = pnand %p7814_p1, %p208_p2  ;;  %p30_p4 = scmp.ge.s32.totalorder %s13324_s24, 2 }
   0x8   : > { %p245_p5 = scmp.lt.s32.totalorder (!%p209_p3), %s9191_s19, 1  ;;  %p247_p6 = scmp.lt.s32.totalorder (!%p209_p3), %s9187_s18, 3 }
   0x9   : > { %s13326_s24 = smov (%p30_p4, %s13324_s24), 0  ;;  %212 = sbr.rel (%p209_p3) target bundleno = 1319 (0x527), region = 36 }
   0xa   : > { %p7821_p7 = scmp.ne.s32.totalorder (!%p209_p3), %s9187_s18, 0 }
   0xe   : > { %s13328_s19 = smov (!%p245_p5, %s9191_s19), 1 }
   0xf   : > { %s248_s25 = scalar_select %p247_p6, %s9187_s18, 3 }
  0x10   : > { %s7816_s26 = sshll.u32 %s13328_s19, 7  ;;  %s8295_s27 = sshll.u32 %s13328_s19, 8 }
  0x11   : > { %s7815_s28 = sshll.u32 %s248_s25, 5  ;;  %s9277_s6 = scalar_lea.vmem %s13097_s4, %s8295_s27 }
  0x12   : > { %s251_s7 = sadd.s32 %s7816_s26, %s7815_s28  ;;  %s8931_s8 = smul.u32 576, %s13328_s19 }
  0x13   : > { %s7817_s9 = sshll.u32 %s251_s7, 3  ;;  %268 = sbr.rel (%p7821_p7) target bundleno = 135 (0x87), region = 40 }
  0x14   : > { %s9282_s12 = scalar_lea.vmem %s13093_s0, %s7817_s9  ;;  %s9287_s15 = scalar_lea.vmem %s13098_s5, %s8931_s8 }
  0x18   : > { %vm315_vm0 = vcmask 257024   ;;  %vm319_vm1 = vcmask 253952   ;;  %vm320_vm2 = vsmask.f32 256  ;;  %v602_v0 = vld [vmem:[%s9282_s12] sm:$0xff]  ;;  %v9205_v1 = vmov 0  }
  0x19   : > { %316 = vst.msk [vmem:[#allocation3] sm:$0xf] %vm315_vm0, %v9205_v1  ;;  %317 = vst.msk [vmem:[#allocation3 + $0x4] sm:$0xf] %vm315_vm0, %v9205_v1  ;;  %v322_v3 = vld [vmem:[#allocation3 + $0xc] sm:$0x1] }
  0x1a   : > { %318 = vst.msk [vmem:[#allocation3 + $0x8] sm:$0xf] %vm315_vm0, %v9205_v1  ;;  %326 = vst.msk [vmem:[#allocation3 + $0x110] sm:$0xf] %vm315_vm0, %v9205_v1  ;;  %v329_v4 = vld [vmem:[#allocation3 + $0x11c] sm:$0x1] }
  0x1b   : > { %327 = vst.msk [vmem:[#allocation3 + $0x114] sm:$0xf] %vm315_vm0, %v9205_v1  ;;  %328 = vst.msk [vmem:[#allocation3 + $0x118] sm:$0xf] %vm315_vm0, %v9205_v1  ;;  %vm269_vm4 = vcmask 31744   ;;  %v9206_v9 = vmov 0.0  }
  0x1c   : > { %332 = vst.msk [vmem:[#allocation3 + $0x120] sm:$0xf] %vm315_vm0, %v9205_v1  ;;  %333 = vst.msk [vmem:[#allocation3 + $0x124] sm:$0xf] %vm315_vm0, %v9205_v1  ;;  %v335_v7 = vld [vmem:[#allocation3 + $0x12c] sm:$0x1] }
  0x1d   : > { %334 = vst.msk [vmem:[#allocation3 + $0x128] sm:$0xf] %vm315_vm0, %v9205_v1  ;;  %338 = vst.msk [vmem:[#allocation3 + $0x130] sm:$0xf] %vm315_vm0, %v9205_v1  ;;  %v341_v8 = vld [vmem:[#allocation3 + $0x13c] sm:$0x1] }
  0x1e   : > { %339 = vst.msk [vmem:[#allocation3 + $0x134] sm:$0xf] %vm315_vm0, %v9205_v1  ;;  %340 = vst.msk [vmem:[#allocation3 + $0x138] sm:$0xf] %vm315_vm0, %v9205_v1  ;;  %v347_v12 = vld [vmem:[#allocation3 + $0x14c] sm:$0x1] }
  0x1f   : > { %344 = vst.msk [vmem:[#allocation3 + $0x140] sm:$0xf] %vm315_vm0, %v9205_v1  ;;  %345 = vst.msk [vmem:[#allocation3 + $0x144] sm:$0xf] %vm315_vm0, %v9205_v1  ;;  %v353_v13 = vld [vmem:[#allocation3 + $0x15c] sm:$0x1] }
  0x20   : > { %346 = vst.msk [vmem:[#allocation3 + $0x148] sm:$0xf] %vm315_vm0, %v9205_v1  ;;  %350 = vst.msk [vmem:[#allocation3 + $0x150] sm:$0xf] %vm315_vm0, %v9205_v1  ;;  %v359_v16 = vld [vmem:[#allocation3 + $0x16c] sm:$0x1] }
  0x21   : > { %351 = vst.msk [vmem:[#allocation3 + $0x154] sm:$0xf] %vm315_vm0, %v9205_v1  ;;  %352 = vst.msk [vmem:[#allocation3 + $0x158] sm:$0xf] %vm315_vm0, %v9205_v1  ;;  %v365_v17 = vld [vmem:[#allocation3 + $0x17c] sm:$0x1] }
  0x22   : > { %356 = vst.msk [vmem:[#allocation3 + $0x160] sm:$0xf] %vm315_vm0, %v9205_v1  ;;  %357 = vst.msk [vmem:[#allocation3 + $0x164] sm:$0xf] %vm315_vm0, %v9205_v1  ;;  %v371_v20 = vld [vmem:[#allocation3 + $0x18c] sm:$0x1] }
  0x23   : > { %358 = vst.msk [vmem:[#allocation3 + $0x168] sm:$0xf] %vm315_vm0, %v9205_v1  ;;  %362 = vst.msk [vmem:[#allocation3 + $0x170] sm:$0xf] %vm315_vm0, %v9205_v1  ;;  %vm272_vm5 = vcmask 25600   ;;  %vm278_vm6 = vcmask 24576  }
  0x24   : > { %363 = vst.msk [vmem:[#allocation3 + $0x174] sm:$0xf] %vm315_vm0, %v9205_v1  ;;  %364 = vst.msk [vmem:[#allocation3 + $0x178] sm:$0xf] %vm315_vm0, %v9205_v1  ;;  %v377_v22 = vld [vmem:[#allocation3 + $0x10] sm:$0x1] }
  0x25   : > { %368 = vst.msk [vmem:[#allocation3 + $0x180] sm:$0xf] %vm315_vm0, %v9205_v1  ;;  %369 = vst.msk [vmem:[#allocation3 + $0x184] sm:$0xf] %vm315_vm0, %v9205_v1  ;;  %v380_v23 = vld [vmem:[#allocation3 + $0x20] sm:$0x1] }
  0x26   : > { %370 = vst.msk [vmem:[#allocation3 + $0x188] sm:$0xf] %vm315_vm0, %v9205_v1  ;;  %vm9320_vm3 = vmand %vm319_vm1, %vm320_vm2  ;;  %v603_v24 = vld [vmem:[%s9282_s12 + $0x8] sm:$0xff]  ;;  %v383_v27 = vld [vmem:[#allocation3 + $0x30] sm:$0x1] }
  0x27   : > { %v323_v5 = vsel %vm9320_vm3, 0, %v322_v3  ;;  %v330_v6 = vsel %vm9320_vm3, 0, %v329_v4  ;;  %270 = vst.msk [vmem:[#allocation2] sm:$0xff] %vm269_vm4, %v9206_v9  ;;  %271 = vst.msk [vmem:[#allocation2 + $0x8] sm:$0xff] %vm269_vm4, %v9206_v9  ;;  %v336_v10 = vsel %vm9320_vm3, 0, %v335_v7  ;;  %v342_v11 = vsel %vm9320_vm3, 0, %v341_v8 }
  0x28   : > { %275 = vst.msk [vmem:[#allocation2 + $0x198] sm:$0xff] %vm269_vm4, %v9206_v9  ;;  %276 = vst.msk [vmem:[#allocation2 + $0x1a0] sm:$0xff] %vm269_vm4, %v9206_v9  ;;  %v348_v14 = vsel %vm9320_vm3, 0, %v347_v12  ;;  %v354_v15 = vsel %vm9320_vm3, 0, %v353_v13  ;;  %v360_v18 = vsel %vm9320_vm3, 0, %v359_v16  ;;  %v366_v19 = vsel %vm9320_vm3, 0, %v365_v17 }
  0x29   : > { %635 = vst.msk [vmem:[#allocation2 + $0x19] sm:$0xff] %vm269_vm4, %v602_v0  ;;  %324 = vst [vmem:[#allocation3 + $0xc] sm:$0x1] %v323_v5  ;;  %v372_v21 = vsel %vm9320_vm3, 0, %v371_v20  ;;  %v378_v25 = vsel %vm9320_vm3, 0, %v377_v22  ;;  %v381_v26 = vsel %vm9320_vm3, 0, %v380_v23 }
  0x2a   : > { %331 = vst [vmem:[#allocation3 + $0x11c] sm:$0x1] %v330_v6  ;;  %337 = vst [vmem:[#allocation3 + $0x12c] sm:$0x1] %v336_v10  ;;  %v386_v28 = vld [vmem:[#allocation3 + $0x40] sm:$0x1] }
  0x2b   : > { %343 = vst [vmem:[#allocation3 + $0x13c] sm:$0x1] %v342_v11  ;;  %349 = vst [vmem:[#allocation3 + $0x14c] sm:$0x1] %v348_v14  ;;  %v374_v29 = vld [vmem:[#allocation3] sm:$0x1] }
  0x2c   : > { %355 = vst [vmem:[#allocation3 + $0x15c] sm:$0x1] %v354_v15  ;;  %361 = vst [vmem:[#allocation3 + $0x16c] sm:$0x1] %v360_v18  ;;  %v384_v30 = vsel %vm9320_vm3, 0, %v383_v27  ;;  %v387_v31 = vsel %vm9320_vm3, 0, %v386_v28 }
  0x2d   : > { %367 = vst [vmem:[#allocation3 + $0x17c] sm:$0x1] %v366_v19  ;;  %273 = vst.msk [vmem:[#allocation2 + $0x10] sm:$0x3] %vm272_vm5, %v9206_v9  ;;  %v389_v32 = vld [vmem:[#allocation3 + $0x50] sm:$0x1] }
  0x2e   : > { %277 = vst.msk [vmem:[#allocation2 + $0x1a8] sm:$0x3] %vm272_vm5, %v9206_v9  ;;  %373 = vst [vmem:[#allocation3 + $0x18c] sm:$0x1] %v372_v21  ;;  %v375_v33 = vsel %vm9320_vm3, 0, %v374_v29  ;;  %v390_v34 = vsel %vm9320_vm3, 0, %v389_v32 }
  0x2f   : > { %279 = vst.msk [vmem:[#allocation2] sm:$0x1] %vm278_vm6, %v9206_v9  ;;  %280 = vst.msk [vmem:[#allocation2 + $0x18] sm:$0x1] %vm278_vm6, %v9206_v9  ;;  %v392_v35 = vld [vmem:[#allocation3 + $0x60] sm:$0x1] }
  0x30   : > { %281 = vst.msk [vmem:[#allocation2 + $0x30] sm:$0x1] %vm278_vm6, %v9206_v9  ;;  %282 = vst.msk [vmem:[#allocation2 + $0x48] sm:$0x1] %vm278_vm6, %v9206_v9  ;;  %v395_v36 = vld [vmem:[#allocation3 + $0x70] sm:$0x1] }
  0x31   : > { %283 = vst.msk [vmem:[#allocation2 + $0x60] sm:$0x1] %vm278_vm6, %v9206_v9  ;;  %284 = vst.msk [vmem:[#allocation2 + $0x78] sm:$0x1] %vm278_vm6, %v9206_v9  ;;  %v393_v37 = vsel %vm9320_vm3, 0, %v392_v35  ;;  %v396_v38 = vsel %vm9320_vm3, 0, %v395_v36 }
  0x32   : > { %285 = vst.msk [vmem:[#allocation2 + $0x90] sm:$0x1] %vm278_vm6, %v9206_v9  ;;  %286 = vst.msk [vmem:[#allocation2 + $0xa8] sm:$0x1] %vm278_vm6, %v9206_v9  ;;  %v398_v39 = vld [vmem:[#allocation3 + $0x80] sm:$0x1] }
  0x33   : > { %287 = vst.msk [vmem:[#allocation2 + $0xc0] sm:$0x1] %vm278_vm6, %v9206_v9  ;;  %288 = vst.msk [vmem:[#allocation2 + $0xd8] sm:$0x1] %vm278_vm6, %v9206_v9  ;;  %v401_v40 = vld [vmem:[#allocation3 + $0x90] sm:$0x1] }
  0x34   : > { %289 = vst.msk [vmem:[#allocation2 + $0xf0] sm:$0x1] %vm278_vm6, %v9206_v9  ;;  %290 = vst.msk [vmem:[#allocation2 + $0x108] sm:$0x1] %vm278_vm6, %v9206_v9  ;;  %v399_v41 = vsel %vm9320_vm3, 0, %v398_v39  ;;  %v402_v42 = vsel %vm9320_vm3, 0, %v401_v40 }
  0x35   : > { %291 = vst.msk [vmem:[#allocation2 + $0x120] sm:$0x1] %vm278_vm6, %v9206_v9  ;;  %292 = vst.msk [vmem:[#allocation2 + $0x138] sm:$0x1] %vm278_vm6, %v9206_v9  ;;  %v404_v43 = vld [vmem:[#allocation3 + $0xa0] sm:$0x1] }
  0x36   : > { %293 = vst.msk [vmem:[#allocation2 + $0x150] sm:$0x1] %vm278_vm6, %v9206_v9  ;;  %294 = vst.msk [vmem:[#allocation2 + $0x168] sm:$0x1] %vm278_vm6, %v9206_v9  ;;  %v407_v44 = vld [vmem:[#allocation3 + $0xb0] sm:$0x1] }
  0x37   : > { %295 = vst.msk [vmem:[#allocation2 + $0x180] sm:$0x1] %vm278_vm6, %v9206_v9  ;;  %296 = vst.msk [vmem:[#allocation2 + $0x198] sm:$0x1] %vm278_vm6, %v9206_v9  ;;  %v405_v45 = vsel %vm9320_vm3, 0, %v404_v43  ;;  %v408_v46 = vsel %vm9320_vm3, 0, %v407_v44 }
  0x38   : > { %298 = vst.msk [vmem:[#allocation2 + $0x29] sm:$0x1] %vm278_vm6, %v9206_v9  ;;  %299 = vst.msk [vmem:[#allocation2 + $0x41] sm:$0x1] %vm278_vm6, %v9206_v9  ;;  %v410_v47 = vld [vmem:[#allocation3 + $0xc0] sm:$0x1] }
  0x39   : > { %300 = vst.msk [vmem:[#allocation2 + $0x59] sm:$0x1] %vm278_vm6, %v9206_v9  ;;  %301 = vst.msk [vmem:[#allocation2 + $0x71] sm:$0x1] %vm278_vm6, %v9206_v9  ;;  %v413_v48 = vld [vmem:[#allocation3 + $0xd0] sm:$0x1] }
  0x3a   : > { %302 = vst.msk [vmem:[#allocation2 + $0x89] sm:$0x1] %vm278_vm6, %v9206_v9  ;;  %303 = vst.msk [vmem:[#allocation2 + $0xa1] sm:$0x1] %vm278_vm6, %v9206_v9  ;;  %v411_v49 = vsel %vm9320_vm3, 0, %v410_v47  ;;  %v414_v50 = vsel %vm9320_vm3, 0, %v413_v48 }
  0x3b   : > { %304 = vst.msk [vmem:[#allocation2 + $0xb9] sm:$0x1] %vm278_vm6, %v9206_v9  ;;  %305 = vst.msk [vmem:[#allocation2 + $0xd1] sm:$0x1] %vm278_vm6, %v9206_v9  ;;  %v416_v51 = vld [vmem:[#allocation3 + $0xe0] sm:$0x1] }
  0x3c   : > { %306 = vst.msk [vmem:[#allocation2 + $0xe9] sm:$0x1] %vm278_vm6, %v9206_v9  ;;  %307 = vst.msk [vmem:[#allocation2 + $0x101] sm:$0x1] %vm278_vm6, %v9206_v9  ;;  %v419_v52 = vld [vmem:[#allocation3 + $0xf0] sm:$0x1] }
  0x3d   : > { %308 = vst.msk [vmem:[#allocation2 + $0x119] sm:$0x1] %vm278_vm6, %v9206_v9  ;;  %309 = vst.msk [vmem:[#allocation2 + $0x131] sm:$0x1] %vm278_vm6, %v9206_v9  ;;  %v417_v53 = vsel %vm9320_vm3, 0, %v416_v51  ;;  %v420_v54 = vsel %vm9320_vm3, 0, %v419_v52 }
  0x3e   : > { %310 = vst.msk [vmem:[#allocation2 + $0x149] sm:$0x1] %vm278_vm6, %v9206_v9  ;;  %311 = vst.msk [vmem:[#allocation2 + $0x161] sm:$0x1] %vm278_vm6, %v9206_v9  ;;  %v422_v55 = vld [vmem:[#allocation3 + $0x100] sm:$0x1] }
  0x3f   : > { %312 = vst.msk [vmem:[#allocation2 + $0x179] sm:$0x1] %vm278_vm6, %v9206_v9  ;;  %313 = vst.msk [vmem:[#allocation2 + $0x191] sm:$0x1] %vm278_vm6, %v9206_v9  ;;  %v425_v56 = vld [vmem:[#allocation3 + $0x110] sm:$0x1] }
  0x40   : > { %297 = vst.msk [vmem:[#allocation2 + $0x11] sm:$0x1] %vm278_vm6, %v9206_v9  ;;  %314 = vst.msk [vmem:[#allocation2 + $0x1a9] sm:$0x1] %vm278_vm6, %v9206_v9  ;;  %v423_v57 = vsel %vm9320_vm3, 0, %v422_v55  ;;  %v426_v58 = vsel %vm9320_vm3, 0, %v425_v56 }
  0x41   : > { %636 = vst.msk [vmem:[#allocation2 + $0x21] sm:$0xff] %vm269_vm4, %v603_v24  ;;  %379 = vst [vmem:[#allocation3 + $0x10] sm:$0x1] %v378_v25  ;;  %v428_v59 = vld [vmem:[#allocation3 + $0x120] sm:$0x1]  ;;  %v607_v10 = vld [vmem:[%s9282_s12 + $0x28] sm:$0xff] }
  0x42   : > { %382 = vst [vmem:[#allocation3 + $0x20] sm:$0x1] %v381_v26  ;;  %385 = vst [vmem:[#allocation3 + $0x30] sm:$0x1] %v384_v30  ;;  %v431_v60 = vld [vmem:[#allocation3 + $0x130] sm:$0x1] }
  0x43   : > { %388 = vst [vmem:[#allocation3 + $0x40] sm:$0x1] %v387_v31  ;;  %376 = vst [vmem:[#allocation3] sm:$0x1] %v375_v33  ;;  %v429_v61 = vsel %vm9320_vm3, 0, %v428_v59  ;;  %v432_v62 = vsel %vm9320_vm3, 0, %v431_v60 }
  0x44   : > { %391 = vst [vmem:[#allocation3 + $0x50] sm:$0x1] %v390_v34  ;;  %394 = vst [vmem:[#allocation3 + $0x60] sm:$0x1] %v393_v37  ;;  %v434_v63 = vld [vmem:[#allocation3 + $0x140] sm:$0x1] }
  0x45   : > { %397 = vst [vmem:[#allocation3 + $0x70] sm:$0x1] %v396_v38  ;;  %400 = vst [vmem:[#allocation3 + $0x80] sm:$0x1] %v399_v41  ;;  %v437_v0 = vld [vmem:[#allocation3 + $0x150] sm:$0x1] }
  0x46   : > { %403 = vst [vmem:[#allocation3 + $0x90] sm:$0x1] %v402_v42  ;;  %406 = vst [vmem:[#allocation3 + $0xa0] sm:$0x1] %v405_v45  ;;  %v435_v1 = vsel %vm9320_vm3, 0, %v434_v63  ;;  %v438_v3 = vsel %vm9320_vm3, 0, %v437_v0 }
  0x47   : > { %409 = vst [vmem:[#allocation3 + $0xb0] sm:$0x1] %v408_v46  ;;  %412 = vst [vmem:[#allocation3 + $0xc0] sm:$0x1] %v411_v49  ;;  %v440_v4 = vld [vmem:[#allocation3 + $0x160] sm:$0x1] }
  0x48   : > { %415 = vst [vmem:[#allocation3 + $0xd0] sm:$0x1] %v414_v50  ;;  %418 = vst [vmem:[#allocation3 + $0xe0] sm:$0x1] %v417_v53  ;;  %v443_v5 = vld [vmem:[#allocation3 + $0x170] sm:$0x1] }
  0x49   : > { %421 = vst [vmem:[#allocation3 + $0xf0] sm:$0x1] %v420_v54  ;;  %424 = vst [vmem:[#allocation3 + $0x100] sm:$0x1] %v423_v57  ;;  %v441_v6 = vsel %vm9320_vm3, 0, %v440_v4  ;;  %v444_v7 = vsel %vm9320_vm3, 0, %v443_v5 }
  0x4a   : > { %427 = vst [vmem:[#allocation3 + $0x110] sm:$0x1] %v426_v58  ;;  %430 = vst [vmem:[#allocation3 + $0x120] sm:$0x1] %v429_v61  ;;  %v446_v8 = vld [vmem:[#allocation3 + $0x180] sm:$0x1] }
  0x4b   : > { %433 = vst [vmem:[#allocation3 + $0x130] sm:$0x1] %v432_v62  ;;  %436 = vst [vmem:[#allocation3 + $0x140] sm:$0x1] %v435_v1  ;;  %vm450_vm7 = vsmask.f32 7938 }
  0x4c   : > { %439 = vst [vmem:[#allocation3 + $0x150] sm:$0x1] %v438_v3  ;;  %442 = vst [vmem:[#allocation3 + $0x160] sm:$0x1] %v441_v6  ;;  %v447_v9 = vsel %vm9320_vm3, 0, %v446_v8  ;;  %v608_v2 = vld [vmem:[%s9282_s12 + $0x30] sm:$0xff] }
  0x4d   : > { %445 = vst [vmem:[#allocation3 + $0x170] sm:$0x1] %v444_v7  ;;  %vm9478_vm8 = vmand %vm315_vm0, %vm450_vm7  ;;  %v452_v11 = vld [vmem:[#allocation3 + $0x8] sm:$0xf]  ;;  %v455_v12 = vld [vmem:[#allocation3 + $0xc] sm:$0x1] }
  0x4e   : > { %448 = vst [vmem:[#allocation3 + $0x180] sm:$0x1] %v447_v9  ;;  %v453_v13 = vsel %vm9478_vm8, 0, %v452_v11  ;;  %v456_v14 = vsel %vm9320_vm3, 0, %v455_v12  ;;  %v458_v15 = vld [vmem:[#allocation3 + $0x18] sm:$0xf] }
  0x4f   : > { %v461_v16 = vld [vmem:[#allocation3 + $0x1c] sm:$0x1]  ;;  %454 = vst [vmem:[#allocation3 + $0x8] sm:$0xf] %v453_v13  ;;  %457 = vst [vmem:[#allocation3 + $0xc] sm:$0x1] %v456_v14 }
  0x50   : > { %v459_v17 = vsel %vm9478_vm8, 0, %v458_v15  ;;  %v462_v18 = vsel %vm9320_vm3, 0, %v461_v16  ;;  %v464_v19 = vld [vmem:[#allocation3 + $0x28] sm:$0xf]  ;;  %v467_v20 = vld [vmem:[#allocation3 + $0x2c] sm:$0x1] }
  0x51   : > { %460 = vst [vmem:[#allocation3 + $0x18] sm:$0xf] %v459_v17  ;;  %463 = vst [vmem:[#allocation3 + $0x1c] sm:$0x1] %v462_v18  ;;  %v465_v21 = vsel %vm9478_vm8, 0, %v464_v19  ;;  %v468_v22 = vsel %vm9320_vm3, 0, %v467_v20 }
  0x52   : > { %v470_v23 = vld [vmem:[#allocation3 + $0x38] sm:$0xf]  ;;  %v473_v24 = vld [vmem:[#allocation3 + $0x3c] sm:$0x1]  ;;  %466 = vst [vmem:[#allocation3 + $0x28] sm:$0xf] %v465_v21 }
  0x53   : > { %469 = vst [vmem:[#allocation3 + $0x2c] sm:$0x1] %v468_v22  ;;  %v471_v25 = vsel %vm9478_vm8, 0, %v470_v23  ;;  %v474_v26 = vsel %vm9320_vm3, 0, %v473_v24  ;;  %v476_v27 = vld [vmem:[#allocation3 + $0x48] sm:$0xf] }
  0x54   : > { %v479_v28 = vld [vmem:[#allocation3 + $0x4c] sm:$0x1]  ;;  %472 = vst [vmem:[#allocation3 + $0x38] sm:$0xf] %v471_v25  ;;  %475 = vst [vmem:[#allocation3 + $0x3c] sm:$0x1] %v474_v26 }
  0x55   : > { %v477_v29 = vsel %vm9478_vm8, 0, %v476_v27  ;;  %v480_v30 = vsel %vm9320_vm3, 0, %v479_v28  ;;  %v482_v31 = vld [vmem:[#allocation3 + $0x58] sm:$0xf]  ;;  %v485_v32 = vld [vmem:[#allocation3 + $0x5c] sm:$0x1] }
  0x56   : > { %478 = vst [vmem:[#allocation3 + $0x48] sm:$0xf] %v477_v29  ;;  %481 = vst [vmem:[#allocation3 + $0x4c] sm:$0x1] %v480_v30  ;;  %v483_v33 = vsel %vm9478_vm8, 0, %v482_v31  ;;  %v486_v34 = vsel %vm9320_vm3, 0, %v485_v32 }
  0x57   : > { %v488_v35 = vld [vmem:[#allocation3 + $0x68] sm:$0xf]  ;;  %v491_v36 = vld [vmem:[#allocation3 + $0x6c] sm:$0x1]  ;;  %484 = vst [vmem:[#allocation3 + $0x58] sm:$0xf] %v483_v33 }
  0x58   : > { %487 = vst [vmem:[#allocation3 + $0x5c] sm:$0x1] %v486_v34  ;;  %v489_v37 = vsel %vm9478_vm8, 0, %v488_v35  ;;  %v492_v38 = vsel %vm9320_vm3, 0, %v491_v36  ;;  %v494_v39 = vld [vmem:[#allocation3 + $0x78] sm:$0xf] }
  0x59   : > { %v497_v40 = vld [vmem:[#allocation3 + $0x7c] sm:$0x1]  ;;  %490 = vst [vmem:[#allocation3 + $0x68] sm:$0xf] %v489_v37  ;;  %493 = vst [vmem:[#allocation3 + $0x6c] sm:$0x1] %v492_v38 }
  0x5a   : > { %v495_v41 = vsel %vm9478_vm8, 0, %v494_v39  ;;  %v498_v42 = vsel %vm9320_vm3, 0, %v497_v40  ;;  %v500_v43 = vld [vmem:[#allocation3 + $0x88] sm:$0xf]  ;;  %v503_v44 = vld [vmem:[#allocation3 + $0x8c] sm:$0x1] }
  0x5b   : > { %496 = vst [vmem:[#allocation3 + $0x78] sm:$0xf] %v495_v41  ;;  %499 = vst [vmem:[#allocation3 + $0x7c] sm:$0x1] %v498_v42  ;;  %v501_v45 = vsel %vm9478_vm8, 0, %v500_v43  ;;  %v504_v46 = vsel %vm9320_vm3, 0, %v503_v44 }
  0x5c   : > { %v506_v47 = vld [vmem:[#allocation3 + $0x98] sm:$0xf]  ;;  %v509_v48 = vld [vmem:[#allocation3 + $0x9c] sm:$0x1]  ;;  %502 = vst [vmem:[#allocation3 + $0x88] sm:$0xf] %v501_v45 }
  0x5d   : > { %505 = vst [vmem:[#allocation3 + $0x8c] sm:$0x1] %v504_v46  ;;  %v507_v49 = vsel %vm9478_vm8, 0, %v506_v47  ;;  %v510_v50 = vsel %vm9320_vm3, 0, %v509_v48  ;;  %v512_v51 = vld [vmem:[#allocation3 + $0xa8] sm:$0xf] }
  0x5e   : > { %v515_v52 = vld [vmem:[#allocation3 + $0xac] sm:$0x1]  ;;  %508 = vst [vmem:[#allocation3 + $0x98] sm:$0xf] %v507_v49  ;;  %511 = vst [vmem:[#allocation3 + $0x9c] sm:$0x1] %v510_v50 }
  0x5f   : > { %v513_v53 = vsel %vm9478_vm8, 0, %v512_v51  ;;  %v516_v54 = vsel %vm9320_vm3, 0, %v515_v52  ;;  %v518_v55 = vld [vmem:[#allocation3 + $0xb8] sm:$0xf]  ;;  %v521_v56 = vld [vmem:[#allocation3 + $0xbc] sm:$0x1] }
  0x60   : > { %514 = vst [vmem:[#allocation3 + $0xa8] sm:$0xf] %v513_v53  ;;  %517 = vst [vmem:[#allocation3 + $0xac] sm:$0x1] %v516_v54  ;;  %v519_v57 = vsel %vm9478_vm8, 0, %v518_v55  ;;  %v522_v58 = vsel %vm9320_vm3, 0, %v521_v56 }
  0x61   : > { %v524_v59 = vld [vmem:[#allocation3 + $0xc8] sm:$0xf]  ;;  %v527_v60 = vld [vmem:[#allocation3 + $0xcc] sm:$0x1]  ;;  %520 = vst [vmem:[#allocation3 + $0xb8] sm:$0xf] %v519_v57 }
  0x62   : > { %523 = vst [vmem:[#allocation3 + $0xbc] sm:$0x1] %v522_v58  ;;  %v525_v61 = vsel %vm9478_vm8, 0, %v524_v59  ;;  %v528_v62 = vsel %vm9320_vm3, 0, %v527_v60  ;;  %v530_v63 = vld [vmem:[#allocation3 + $0xd8] sm:$0xf] }
  0x63   : > { %v533_v0 = vld [vmem:[#allocation3 + $0xdc] sm:$0x1]  ;;  %526 = vst [vmem:[#allocation3 + $0xc8] sm:$0xf] %v525_v61  ;;  %529 = vst [vmem:[#allocation3 + $0xcc] sm:$0x1] %v528_v62 }
  0x64   : > { %v531_v1 = vsel %vm9478_vm8, 0, %v530_v63  ;;  %v534_v3 = vsel %vm9320_vm3, 0, %v533_v0  ;;  %v536_v4 = vld [vmem:[#allocation3 + $0xe8] sm:$0xf]  ;;  %v539_v5 = vld [vmem:[#allocation3 + $0xec] sm:$0x1] }
  0x65   : > { %532 = vst [vmem:[#allocation3 + $0xd8] sm:$0xf] %v531_v1  ;;  %535 = vst [vmem:[#allocation3 + $0xdc] sm:$0x1] %v534_v3  ;;  %v537_v6 = vsel %vm9478_vm8, 0, %v536_v4  ;;  %v540_v7 = vsel %vm9320_vm3, 0, %v539_v5 }
  0x66   : > { %v542_v8 = vld [vmem:[#allocation3 + $0xf8] sm:$0xf]  ;;  %v545_v9 = vld [vmem:[#allocation3 + $0xfc] sm:$0x1]  ;;  %538 = vst [vmem:[#allocation3 + $0xe8] sm:$0xf] %v537_v6 }
  0x67   : > { %541 = vst [vmem:[#allocation3 + $0xec] sm:$0x1] %v540_v7  ;;  %v543_v11 = vsel %vm9478_vm8, 0, %v542_v8  ;;  %v546_v12 = vsel %vm9320_vm3, 0, %v545_v9  ;;  %v548_v13 = vld [vmem:[#allocation3 + $0x108] sm:$0xf] }
  0x68   : > { %v551_v14 = vld [vmem:[#allocation3 + $0x10c] sm:$0x1]  ;;  %544 = vst [vmem:[#allocation3 + $0xf8] sm:$0xf] %v543_v11  ;;  %547 = vst [vmem:[#allocation3 + $0xfc] sm:$0x1] %v546_v12 }
  0x69   : > { %v549_v15 = vsel %vm9478_vm8, 0, %v548_v13  ;;  %v552_v16 = vsel %vm9320_vm3, 0, %v551_v14  ;;  %v554_v17 = vld [vmem:[#allocation3 + $0x118] sm:$0xf]  ;;  %v557_v18 = vld [vmem:[#allocation3 + $0x11c] sm:$0x1] }
  0x6a   : > { %550 = vst [vmem:[#allocation3 + $0x108] sm:$0xf] %v549_v15  ;;  %553 = vst [vmem:[#allocation3 + $0x10c] sm:$0x1] %v552_v16  ;;  %v555_v19 = vsel %vm9478_vm8, 0, %v554_v17  ;;  %v558_v20 = vsel %vm9320_vm3, 0, %v557_v18 }
  0x6b   : > { %v560_v21 = vld [vmem:[#allocation3 + $0x128] sm:$0xf]  ;;  %v563_v22 = vld [vmem:[#allocation3 + $0x12c] sm:$0x1]  ;;  %556 = vst [vmem:[#allocation3 + $0x118] sm:$0xf] %v555_v19 }
  0x6c   : > { %559 = vst [vmem:[#allocation3 + $0x11c] sm:$0x1] %v558_v20  ;;  %v561_v23 = vsel %vm9478_vm8, 0, %v560_v21  ;;  %v564_v24 = vsel %vm9320_vm3, 0, %v563_v22  ;;  %v566_v25 = vld [vmem:[#allocation3 + $0x138] sm:$0xf] }
  0x6d   : > { %v569_v26 = vld [vmem:[#allocation3 + $0x13c] sm:$0x1]  ;;  %562 = vst [vmem:[#allocation3 + $0x128] sm:$0xf] %v561_v23  ;;  %565 = vst [vmem:[#allocation3 + $0x12c] sm:$0x1] %v564_v24 }
  0x6e   : > { %v567_v27 = vsel %vm9478_vm8, 0, %v566_v25  ;;  %v570_v28 = vsel %vm9320_vm3, 0, %v569_v26  ;;  %v572_v29 = vld [vmem:[#allocation3 + $0x148] sm:$0xf]  ;;  %v575_v30 = vld [vmem:[#allocation3 + $0x14c] sm:$0x1] }
  0x6f   : > { %568 = vst [vmem:[#allocation3 + $0x138] sm:$0xf] %v567_v27  ;;  %571 = vst [vmem:[#allocation3 + $0x13c] sm:$0x1] %v570_v28  ;;  %v573_v31 = vsel %vm9478_vm8, 0, %v572_v29  ;;  %v576_v32 = vsel %vm9320_vm3, 0, %v575_v30 }
  0x70   : > { %v578_v33 = vld [vmem:[#allocation3 + $0x158] sm:$0xf]  ;;  %v581_v34 = vld [vmem:[#allocation3 + $0x15c] sm:$0x1]  ;;  %574 = vst [vmem:[#allocation3 + $0x148] sm:$0xf] %v573_v31 }
  0x71   : > { %577 = vst [vmem:[#allocation3 + $0x14c] sm:$0x1] %v576_v32  ;;  %v579_v35 = vsel %vm9478_vm8, 0, %v578_v33  ;;  %v582_v36 = vsel %vm9320_vm3, 0, %v581_v34  ;;  %v584_v37 = vld [vmem:[#allocation3 + $0x168] sm:$0xf] }
  0x72   : > { %v587_v38 = vld [vmem:[#allocation3 + $0x16c] sm:$0x1]  ;;  %580 = vst [vmem:[#allocation3 + $0x158] sm:$0xf] %v579_v35  ;;  %583 = vst [vmem:[#allocation3 + $0x15c] sm:$0x1] %v582_v36 }
  0x73   : > { %v585_v39 = vsel %vm9478_vm8, 0, %v584_v37  ;;  %v588_v40 = vsel %vm9320_vm3, 0, %v587_v38  ;;  %v590_v41 = vld [vmem:[#allocation3 + $0x178] sm:$0xf]  ;;  %v593_v42 = vld [vmem:[#allocation3 + $0x17c] sm:$0x1] }
  0x74   : > { %586 = vst [vmem:[#allocation3 + $0x168] sm:$0xf] %v585_v39  ;;  %589 = vst [vmem:[#allocation3 + $0x16c] sm:$0x1] %v588_v40  ;;  %v591_v43 = vsel %vm9478_vm8, 0, %v590_v41  ;;  %v594_v44 = vsel %vm9320_vm3, 0, %v593_v42 }
  0x75   : > { %v596_v45 = vld [vmem:[#allocation3 + $0x188] sm:$0xf]  ;;  %v599_v46 = vld [vmem:[#allocation3 + $0x18c] sm:$0x1]  ;;  %592 = vst [vmem:[#allocation3 + $0x178] sm:$0xf] %v591_v43 }
  0x76   : > { %595 = vst [vmem:[#allocation3 + $0x17c] sm:$0x1] %v594_v44  ;;  %v597_v47 = vsel %vm9478_vm8, 0, %v596_v45  ;;  %v600_v48 = vsel %vm9320_vm3, 0, %v599_v46  ;;  %v604_v49 = vld [vmem:[%s9282_s12 + $0x10] sm:$0xff]  ;;  %v605_v50 = vld [vmem:[%s9282_s12 + $0x18] sm:$0xff] }
  0x77   : > { %v606_v51 = vld [vmem:[%s9282_s12 + $0x20] sm:$0xff]  ;;  %598 = vst [vmem:[#allocation3 + $0x188] sm:$0xf] %v597_v47  ;;  %601 = vst [vmem:[#allocation3 + $0x18c] sm:$0x1] %v600_v48  ;;  %v609_v52 = vld [vmem:[%s9282_s12 + $0x38] sm:$0xff] }
  0x78   : > { %637 = vst.msk [vmem:[#allocation2 + $0x31] sm:$0xff] %vm269_vm4, %v604_v49  ;;  %638 = vst.msk [vmem:[#allocation2 + $0x39] sm:$0xff] %vm269_vm4, %v605_v50  ;;  %v610_v53 = vld [vmem:[%s9282_s12 + $0x40] sm:$0xff]  ;;  %v611_v54 = vld [vmem:[%s9282_s12 + $0x48] sm:$0xff] }
  0x79   : > { %639 = vst.msk [vmem:[#allocation2 + $0x49] sm:$0xff] %vm269_vm4, %v606_v51  ;;  %640 = vst.msk [vmem:[#allocation2 + $0x51] sm:$0xff] %vm269_vm4, %v607_v10  ;;  %v612_v55 = vld [vmem:[%s9282_s12 + $0x50] sm:$0xff]  ;;  %v613_v56 = vld [vmem:[%s9282_s12 + $0x58] sm:$0xff] }
  0x7a   : > { %641 = vst.msk [vmem:[#allocation2 + $0x61] sm:$0xff] %vm269_vm4, %v608_v2  ;;  %642 = vst.msk [vmem:[#allocation2 + $0x69] sm:$0xff] %vm269_vm4, %v609_v52  ;;  %v614_v57 = vld [vmem:[%s9282_s12 + $0x60] sm:$0xff]  ;;  %v615_v58 = vld [vmem:[%s9282_s12 + $0x68] sm:$0xff] }
  0x7b   : > { %643 = vst.msk [vmem:[#allocation2 + $0x79] sm:$0xff] %vm269_vm4, %v610_v53  ;;  %644 = vst.msk [vmem:[#allocation2 + $0x81] sm:$0xff] %vm269_vm4, %v611_v54  ;;  %v616_v59 = vld [vmem:[%s9282_s12 + $0x70] sm:$0xff]  ;;  %v617_v60 = vld [vmem:[%s9282_s12 + $0x78] sm:$0xff] }
  0x7c   : > { %645 = vst.msk [vmem:[#allocation2 + $0x91] sm:$0xff] %vm269_vm4, %v612_v55  ;;  %646 = vst.msk [vmem:[#allocation2 + $0x99] sm:$0xff] %vm269_vm4, %v613_v56  ;;  %v618_v61 = vld [vmem:[%s9282_s12 + $0x80] sm:$0xff]  ;;  %v619_v62 = vld [vmem:[%s9282_s12 + $0x88] sm:$0xff] }
  0x7d   : > { %647 = vst.msk [vmem:[#allocation2 + $0xa9] sm:$0xff] %vm269_vm4, %v614_v57  ;;  %648 = vst.msk [vmem:[#allocation2 + $0xb1] sm:$0xff] %vm269_vm4, %v615_v58  ;;  %v620_v63 = vld [vmem:[%s9282_s12 + $0x90] sm:$0xff]  ;;  %v621_v0 = vld [vmem:[%s9282_s12 + $0x98] sm:$0xff] }
  0x7e   : > { %649 = vst.msk [vmem:[#allocation2 + $0xc1] sm:$0xff] %vm269_vm4, %v616_v59  ;;  %650 = vst.msk [vmem:[#allocation2 + $0xc9] sm:$0xff] %vm269_vm4, %v617_v60  ;;  %v622_v1 = vld [vmem:[%s9282_s12 + $0xa0] sm:$0xff]  ;;  %v623_v3 = vld [vmem:[%s9282_s12 + $0xa8] sm:$0xff] }
  0x7f   : > { %651 = vst.msk [vmem:[#allocation2 + $0xd9] sm:$0xff] %vm269_vm4, %v618_v61  ;;  %652 = vst.msk [vmem:[#allocation2 + $0xe1] sm:$0xff] %vm269_vm4, %v619_v62  ;;  %v624_v4 = vld [vmem:[%s9282_s12 + $0xb0] sm:$0xff]  ;;  %v625_v5 = vld [vmem:[%s9282_s12 + $0xb8] sm:$0xff] }
  0x80   : > { %653 = vst.msk [vmem:[#allocation2 + $0xf1] sm:$0xff] %vm269_vm4, %v620_v63  ;;  %654 = vst.msk [vmem:[#allocation2 + $0xf9] sm:$0xff] %vm269_vm4, %v621_v0  ;;  %v626_v6 = vld [vmem:[%s9282_s12 + $0xc0] sm:$0xff]  ;;  %v627_v7 = vld [vmem:[%s9282_s12 + $0xc8] sm:$0xff] }
  0x81   : > { %655 = vst.msk [vmem:[#allocation2 + $0x109] sm:$0xff] %vm269_vm4, %v622_v1  ;;  %656 = vst.msk [vmem:[#allocation2 + $0x111] sm:$0xff] %vm269_vm4, %v623_v3  ;;  %v628_v8 = vld [vmem:[%s9282_s12 + $0xd0] sm:$0xff]  ;;  %v629_v9 = vld [vmem:[%s9282_s12 + $0xd8] sm:$0xff] }
  0x82   : > { %657 = vst.msk [vmem:[#allocation2 + $0x121] sm:$0xff] %vm269_vm4, %v624_v4  ;;  %658 = vst.msk [vmem:[#allocation2 + $0x129] sm:$0xff] %vm269_vm4, %v625_v5  ;;  %v630_v11 = vld [vmem:[%s9282_s12 + $0xe0] sm:$0xff]  ;;  %v631_v12 = vld [vmem:[%s9282_s12 + $0xe8] sm:$0xff] }
  0x83   : > { %659 = vst.msk [vmem:[#allocation2 + $0x139] sm:$0xff] %vm269_vm4, %v626_v6  ;;  %660 = vst.msk [vmem:[#allocation2 + $0x141] sm:$0xff] %vm269_vm4, %v627_v7  ;;  %v632_v13 = vld [vmem:[%s9282_s12 + $0xf0] sm:$0xff]  ;;  %v633_v14 = vld [vmem:[%s9282_s12 + $0xf8] sm:$0xff] }
  0x84   : > { %661 = vst.msk [vmem:[#allocation2 + $0x151] sm:$0xff] %vm269_vm4, %v628_v8  ;;  %662 = vst.msk [vmem:[#allocation2 + $0x159] sm:$0xff] %vm269_vm4, %v629_v9 }
  0x85   : > { %663 = vst.msk [vmem:[#allocation2 + $0x169] sm:$0xff] %vm269_vm4, %v630_v11  ;;  %664 = vst.msk [vmem:[#allocation2 + $0x171] sm:$0xff] %vm269_vm4, %v631_v12 }
  0x86   : > { %665 = vst.msk [vmem:[#allocation2 + $0x181] sm:$0xff] %vm269_vm4, %v632_v13  ;;  %666 = vst.msk [vmem:[#allocation2 + $0x189] sm:$0xff] %vm269_vm4, %v633_v14 }
  0x87 PF: > { %p7822_p8 = scmp.le.s32.totalorder %s9187_s18, 0 }
  0x89   : > { %670 = sbr.rel (%p7822_p8) target bundleno = 170 (0xaa), region = 44 }
  0x8e   : > { %v672_v15 = vld [vmem:[#allocation2 + $0x19] sm:$0xff]  ;;  %vm768_vm9 = vcmask 31744   ;;  %v673_v17 = vld [vmem:[#allocation2 + $0x21] sm:$0xff]  ;;  %v674_v20 = vld [vmem:[#allocation2 + $0x31] sm:$0xff] }
  0x8f   : > { %v704_v16 = vld [vmem:[%s9282_s12] sm:$0xff]  ;;  %v705_v19 = vld [vmem:[%s9282_s12 + $0x8] sm:$0xff]  ;;  %v706_v21 = vld [vmem:[%s9282_s12 + $0x10] sm:$0xff] }
  0x90   : > { %v736_v18 = vadd.f32 %v704_v16, %v672_v15  ;;  %v737_v22 = vadd.f32 %v705_v19, %v673_v17  ;;  %v738_v23 = vadd.f32 %v706_v21, %v674_v20  ;;  %v675_v24 = vld [vmem:[#allocation2 + $0x39] sm:$0xff]  ;;  %v676_v26 = vld [vmem:[#allocation2 + $0x49] sm:$0xff]  ;;  %v677_v29 = vld [vmem:[#allocation2 + $0x51] sm:$0xff] }
  0x91   : > { %v707_v25 = vld [vmem:[%s9282_s12 + $0x18] sm:$0xff]  ;;  %v708_v28 = vld [vmem:[%s9282_s12 + $0x20] sm:$0xff]  ;;  %v709_v30 = vld [vmem:[%s9282_s12 + $0x28] sm:$0xff] }
  0x92   : > { %769 = vst.msk [vmem:[#allocation2 + $0x19] sm:$0xff] %vm768_vm9, %v736_v18  ;;  %v739_v27 = vadd.f32 %v707_v25, %v675_v24  ;;  %770 = vst.msk [vmem:[#allocation2 + $0x21] sm:$0xff] %vm768_vm9, %v737_v22  ;;  %v740_v31 = vadd.f32 %v708_v28, %v676_v26  ;;  %v741_v32 = vadd.f32 %v709_v30, %v677_v29  ;;  %v678_v33 = vld [vmem:[#allocation2 + $0x61] sm:$0xff]  ;;  %v710_v34 = vld [vmem:[%s9282_s12 + $0x30] sm:$0xff] }
  0x93   : > { %771 = vst.msk [vmem:[#allocation2 + $0x31] sm:$0xff] %vm768_vm9, %v738_v23  ;;  %v679_v35 = vld [vmem:[#allocation2 + $0x69] sm:$0xff]  ;;  %v742_v36 = vadd.f32 %v710_v34, %v678_v33  ;;  %v711_v37 = vld [vmem:[%s9282_s12 + $0x38] sm:$0xff]  ;;  %v712_v39 = vld [vmem:[%s9282_s12 + $0x40] sm:$0xff] }
  0x94   : > { %772 = vst.msk [vmem:[#allocation2 + $0x39] sm:$0xff] %vm768_vm9, %v739_v27  ;;  %v680_v38 = vld [vmem:[#allocation2 + $0x79] sm:$0xff]  ;;  %773 = vst.msk [vmem:[#allocation2 + $0x49] sm:$0xff] %vm768_vm9, %v740_v31  ;;  %v743_v40 = vadd.f32 %v711_v37, %v679_v35  ;;  %v681_v42 = vld [vmem:[#allocation2 + $0x81] sm:$0xff] }
  0x95   : > { %774 = vst.msk [vmem:[#allocation2 + $0x51] sm:$0xff] %vm768_vm9, %v741_v32  ;;  %v744_v41 = vadd.f32 %v712_v39, %v680_v38  ;;  %v713_v43 = vld [vmem:[%s9282_s12 + $0x48] sm:$0xff]  ;;  %v682_v44 = vld [vmem:[#allocation2 + $0x91] sm:$0xff]  ;;  %775 = vst.msk [vmem:[#allocation2 + $0x61] sm:$0xff] %vm768_vm9, %v742_v36 }
  0x96   : > { %v745_v45 = vadd.f32 %v713_v43, %v681_v42  ;;  %v714_v46 = vld [vmem:[%s9282_s12 + $0x50] sm:$0xff]  ;;  %v683_v47 = vld [vmem:[#allocation2 + $0x99] sm:$0xff]  ;;  %776 = vst.msk [vmem:[#allocation2 + $0x69] sm:$0xff] %vm768_vm9, %v743_v40  ;;  %v717_v53 = vld [vmem:[%s9282_s12 + $0x68] sm:$0xff] }
  0x97   : > { %v715_v48 = vld [vmem:[%s9282_s12 + $0x58] sm:$0xff]  ;;  %777 = vst.msk [vmem:[#allocation2 + $0x79] sm:$0xff] %vm768_vm9, %v744_v41  ;;  %v746_v49 = vadd.f32 %v714_v46, %v682_v44  ;;  %v684_v51 = vld [vmem:[#allocation2 + $0xa9] sm:$0xff]  ;;  %v716_v10 = vld [vmem:[%s9282_s12 + $0x60] sm:$0xff] }
  0x98   : > { %v747_v50 = vadd.f32 %v715_v48, %v683_v47  ;;  %v685_v2 = vld [vmem:[#allocation2 + $0xb1] sm:$0xff]  ;;  %778 = vst.msk [vmem:[#allocation2 + $0x81] sm:$0xff] %vm768_vm9, %v745_v45  ;;  %v748_v52 = vadd.f32 %v716_v10, %v684_v51  ;;  %v686_v54 = vld [vmem:[#allocation2 + $0xc1] sm:$0xff]  ;;  %v687_v58 = vld [vmem:[#allocation2 + $0xc9] sm:$0xff] }
  0x99   : > { %v718_v55 = vld [vmem:[%s9282_s12 + $0x70] sm:$0xff]  ;;  %779 = vst.msk [vmem:[#allocation2 + $0x91] sm:$0xff] %vm768_vm9, %v746_v49  ;;  %v749_v56 = vadd.f32 %v717_v53, %v685_v2  ;;  %v719_v59 = vld [vmem:[%s9282_s12 + $0x78] sm:$0xff]  ;;  %v720_v62 = vld [vmem:[%s9282_s12 + $0x80] sm:$0xff] }
  0x9a   : > { %780 = vst.msk [vmem:[#allocation2 + $0x99] sm:$0xff] %vm768_vm9, %v747_v50  ;;  %v750_v57 = vadd.f32 %v718_v55, %v686_v54  ;;  %v688_v60 = vld [vmem:[#allocation2 + $0xd9] sm:$0xff]  ;;  %781 = vst.msk [vmem:[#allocation2 + $0xa9] sm:$0xff] %vm768_vm9, %v748_v52  ;;  %v751_v61 = vadd.f32 %v719_v59, %v687_v58  ;;  %v689_v63 = vld [vmem:[#allocation2 + $0xe1] sm:$0xff] }
  0x9b   : > { %v721_v0 = vld [vmem:[%s9282_s12 + $0x88] sm:$0xff]  ;;  %782 = vst.msk [vmem:[#allocation2 + $0xb1] sm:$0xff] %vm768_vm9, %v749_v56  ;;  %v752_v1 = vadd.f32 %v720_v62, %v688_v60  ;;  %v690_v4 = vld [vmem:[#allocation2 + $0xf1] sm:$0xff]  ;;  %v691_v6 = vld [vmem:[#allocation2 + $0xf9] sm:$0xff] }
  0x9c   : > { %783 = vst.msk [vmem:[#allocation2 + $0xc1] sm:$0xff] %vm768_vm9, %v750_v57  ;;  %v753_v3 = vadd.f32 %v721_v0, %v689_v63  ;;  %v722_v5 = vld [vmem:[%s9282_s12 + $0x90] sm:$0xff]  ;;  %784 = vst.msk [vmem:[#allocation2 + $0xc9] sm:$0xff] %vm768_vm9, %v751_v61  ;;  %v723_v8 = vld [vmem:[%s9282_s12 + $0x98] sm:$0xff] }
  0x9d   : > { %v754_v7 = vadd.f32 %v722_v5, %v690_v4  ;;  %v692_v9 = vld [vmem:[#allocation2 + $0x109] sm:$0xff]  ;;  %v724_v11 = vld [vmem:[%s9282_s12 + $0xa0] sm:$0xff]  ;;  %785 = vst.msk [vmem:[#allocation2 + $0xd9] sm:$0xff] %vm768_vm9, %v752_v1  ;;  %v755_v12 = vadd.f32 %v723_v8, %v691_v6  ;;  %v693_v14 = vld [vmem:[#allocation2 + $0x111] sm:$0xff] }
  0x9e   : > { %786 = vst.msk [vmem:[#allocation2 + $0xe1] sm:$0xff] %vm768_vm9, %v753_v3  ;;  %v756_v13 = vadd.f32 %v724_v11, %v692_v9  ;;  %v725_v15 = vld [vmem:[%s9282_s12 + $0xa8] sm:$0xff]  ;;  %v726_v18 = vld [vmem:[%s9282_s12 + $0xb0] sm:$0xff]  ;;  %v727_v20 = vld [vmem:[%s9282_s12 + $0xb8] sm:$0xff] }
  0x9f   : > { %v694_v16 = vld [vmem:[#allocation2 + $0x121] sm:$0xff]  ;;  %787 = vst.msk [vmem:[#allocation2 + $0xf1] sm:$0xff] %vm768_vm9, %v754_v7  ;;  %v757_v17 = vadd.f32 %v725_v15, %v693_v14  ;;  %v695_v19 = vld [vmem:[#allocation2 + $0x129] sm:$0xff]  ;;  %788 = vst.msk [vmem:[#allocation2 + $0xf9] sm:$0xff] %vm768_vm9, %v755_v12 }
  0xa0   : > { %789 = vst.msk [vmem:[#allocation2 + $0x109] sm:$0xff] %vm768_vm9, %v756_v13  ;;  %v758_v21 = vadd.f32 %v726_v18, %v694_v16  ;;  %v759_v22 = vadd.f32 %v727_v20, %v695_v19  ;;  %v696_v23 = vld [vmem:[#allocation2 + $0x139] sm:$0xff]  ;;  %v697_v25 = vld [vmem:[#allocation2 + $0x141] sm:$0xff]  ;;  %v698_v28 = vld [vmem:[#allocation2 + $0x151] sm:$0xff] }
  0xa1   : > { %v728_v24 = vld [vmem:[%s9282_s12 + $0xc0] sm:$0xff]  ;;  %790 = vst.msk [vmem:[#allocation2 + $0x111] sm:$0xff] %vm768_vm9, %v757_v17  ;;  %v729_v27 = vld [vmem:[%s9282_s12 + $0xc8] sm:$0xff]  ;;  %v730_v29 = vld [vmem:[%s9282_s12 + $0xd0] sm:$0xff] }
  0xa2   : > { %v760_v26 = vadd.f32 %v728_v24, %v696_v23  ;;  %791 = vst.msk [vmem:[#allocation2 + $0x121] sm:$0xff] %vm768_vm9, %v758_v21  ;;  %792 = vst.msk [vmem:[#allocation2 + $0x129] sm:$0xff] %vm768_vm9, %v759_v22  ;;  %v761_v30 = vadd.f32 %v729_v27, %v697_v25  ;;  %v762_v31 = vadd.f32 %v730_v29, %v698_v28  ;;  %v699_v32 = vld [vmem:[#allocation2 + $0x159] sm:$0xff]  ;;  %v700_v34 = vld [vmem:[#allocation2 + $0x169] sm:$0xff] }
  0xa3   : > { %v731_v33 = vld [vmem:[%s9282_s12 + $0xd8] sm:$0xff]  ;;  %v732_v36 = vld [vmem:[%s9282_s12 + $0xe0] sm:$0xff]  ;;  %v733_v38 = vld [vmem:[%s9282_s12 + $0xe8] sm:$0xff] }
  0xa4   : > { %793 = vst.msk [vmem:[#allocation2 + $0x139] sm:$0xff] %vm768_vm9, %v760_v26  ;;  %v763_v35 = vadd.f32 %v731_v33, %v699_v32  ;;  %v701_v37 = vld [vmem:[#allocation2 + $0x171] sm:$0xff]  ;;  %794 = vst.msk [vmem:[#allocation2 + $0x141] sm:$0xff] %vm768_vm9, %v761_v30  ;;  %v764_v39 = vadd.f32 %v732_v36, %v700_v34  ;;  %v702_v41 = vld [vmem:[#allocation2 + $0x181] sm:$0xff] }
  0xa5   : > { %795 = vst.msk [vmem:[#allocation2 + $0x151] sm:$0xff] %vm768_vm9, %v762_v31  ;;  %v765_v40 = vadd.f32 %v733_v38, %v701_v37  ;;  %v734_v42 = vld [vmem:[%s9282_s12 + $0xf0] sm:$0xff]  ;;  %v735_v45 = vld [vmem:[%s9282_s12 + $0xf8] sm:$0xff] }
  0xa6   : > { %v703_v43 = vld [vmem:[#allocation2 + $0x189] sm:$0xff]  ;;  %796 = vst.msk [vmem:[#allocation2 + $0x159] sm:$0xff] %vm768_vm9, %v763_v35  ;;  %v766_v44 = vadd.f32 %v734_v42, %v702_v41  ;;  %797 = vst.msk [vmem:[#allocation2 + $0x169] sm:$0xff] %vm768_vm9, %v764_v39 }
  0xa7   : > { %798 = vst.msk [vmem:[#allocation2 + $0x171] sm:$0xff] %vm768_vm9, %v765_v40  ;;  %v767_v46 = vadd.f32 %v735_v45, %v703_v43 }
  0xa8   : > { %799 = vst.msk [vmem:[#allocation2 + $0x181] sm:$0xff] %vm768_vm9, %v766_v44 }
  0xa9   : > { %800 = vst.msk [vmem:[#allocation2 + $0x189] sm:$0xff] %vm768_vm9, %v767_v46 }
  0xaa PF: > { %p7823_p9 = scmp.ne.s32.totalorder %s9187_s18, 3 }
  0xac   : > { %804 = sbr.rel (%p7823_p9) target bundleno = 1319 (0x527), region = 48 }
  0xb1   : > { %v7824_v47 = vld [vmem:[%s13094_s1 + $0x2] sm:$0x3]  ;;  %vm953_vm10 = vcmask 1041408   ;;  %v855_v49 = vld [vmem:[#allocation2 + $0x9] sm:$0xff]  ;;  %vm904_vm11 = vcmask 31744   ;;  %v856_v10 = vld [vmem:[#allocation2 + $0x19] sm:$0xff] }
  0xb2   : > { %v854_v48 = vld [vmem:[#allocation2 + $0x1] sm:$0xff]  ;;  %8921 = vmatprep.subr.msk.bf16.mxu0 %vm953_vm10, %v7824_v47  ;;  %v955_v50 = vsel %vm953_vm10, %v7824_v47, 0  ;;  %v858_v55 = vld [vmem:[#allocation2 + $0x31] sm:$0xff]  ;;  %v859_v56 = vld [vmem:[#allocation2 + $0x39] sm:$0xff]  ;;  %s9207_s16 = smov 32   ;;  %s9208_s17 = smov 64  }
  0xb3   : > { %v886_v51 = vpack.c.bf16 %v855_v49, %v854_v48  ;;  %v857_v2 = vld [vmem:[#allocation2 + $0x21] sm:$0xff]  ;;  %8526 = vmatpush3.bf16.msra.mxu0 %v955_v50  ;;  %v9722_v57 = vpack.c.bf16 %v859_v56, %v858_v55  ;;  %v860_v58 = vld [vmem:[#allocation2 + $0x49] sm:$0xff]  ;;  %v861_v59 = vld [vmem:[#allocation2 + $0x51] sm:$0xff]  ;;  %vm3558_vm12 = vsmask.f32 256  ;;  %s9209_s19 = smov 96  }
  0xb4   : > { %v853_v52 = vld [vmem:[%s13094_s1] sm:$0x3]  ;;  %v9716_v53 = vpack.c.bf16 %v857_v2, %v856_v10  ;;  %v863_v61 = vld [vmem:[#allocation2 + $0x69] sm:$0xff]  ;;  %v826_v63 = vld [vmem:[#allocation2 + $0xf8] sm:$0xff]  ;;  %v9728_v0 = vpack.c.bf16 %v861_v59, %v860_v58  ;;  %vm3429_vm13 = vcmask 261120   ;;  %vm3882_vm14 = vcmask 257024  }
  0xb5   : > { %v1167_v54 = vsel %vm953_vm10, %v853_v52, 0  ;;  %8923 = vmatprep.subr.msk.bf16.mxu1 %vm953_vm10, %v853_v52  ;;  %8527 = vmatprep.mubr.msk.bf16.mxu0 %vm904_vm11, %v886_v51  ;;  %v862_v60 = vld [vmem:[#allocation2 + $0x61] sm:$0xff]  ;;  %v825_v62 = vld [vmem:[#allocation2 + $0xf0] sm:$0xff]  ;;  %v864_v11 = vld [vmem:[#allocation2 + $0x79] sm:$0xff]  ;;  %vm3883_vm15 = vsmask.f32 7938 }
  0xb6   : > { %8922 = vmatprep.subr.msk.bf16.mxu0 %vm953_vm10, %v853_v52  ;;  %8920 = vmatpush3.bf16.msra.mxu1 %v1167_v54  ;;  %v9730_v1 = vpack.c.bf16 %v826_v63, %v825_v62  ;;  %v827_v3 = vld [vmem:[#allocation2 + $0x108] sm:$0xff]  ;;  %v828_v4 = vld [vmem:[#allocation2 + $0x110] sm:$0xff]  ;;  %v9732_v5 = vpack.c.bf16 %v863_v61, %v862_v60  ;;  %v829_v7 = vld [vmem:[#allocation2 + $0x120] sm:$0xff]  ;;  %vm3559_vm0 = vsmask.f32 4368  ;;  %vm3890_vm1 = vcmask 253952  }
  0xb7   : > { %8528 = vmatmul.mubr.msk.bf16.vlgmr.msra.gmra.mxu0 %vm904_vm11, %v9716_v53  ;;  %v9734_v6 = vpack.c.bf16 %v828_v4, %v827_v3  ;;  %v830_v8 = vld [vmem:[#allocation2 + $0x128] sm:$0xff]  ;;  %v831_v12 = vld [vmem:[#allocation2 + $0x138] sm:$0xff]  ;;  %v832_v13 = vld [vmem:[#allocation2 + $0x140] sm:$0xff]  ;;  %vm5848_vm5 = vcmask 523264   ;;  %vm5945_vm6 = vcmask 785408  }
  0xb8   : > { %8560 = vmatpush3.bf16.msra.mxu0 %v1167_v54  ;;  %8531 = vmatprep.mubr.msk.bf16.mxu0 %vm904_vm11, %v9722_v57  ;;  %v9740_v9 = vpack.c.bf16 %v830_v8, %v829_v7  ;;  %v865_v14 = vld [vmem:[#allocation2 + $0x81] sm:$0xff]  ;;  %v833_v15 = vld [vmem:[#allocation2 + $0x150] sm:$0xff]  ;;  %v834_v16 = vld [vmem:[#allocation2 + $0x158] sm:$0xff]  ;;  %v9748_v19 = vpack.c.bf16 %v832_v13, %v831_v12  ;;  %vm6282_vm7 = vsmask.f32 3328 }
  0xb9   : > { %8581 = vmatprep.mubr.msk.bf16.mxu1 %vm904_vm11, %v9730_v1  ;;  %v866_v17 = vld [vmem:[#allocation2 + $0x91] sm:$0xff]  ;;  %v867_v18 = vld [vmem:[#allocation2 + $0x99] sm:$0xff]  ;;  %v9753_v20 = vld [vmem:[%s13094_s1 + $0x4] sm:$0x3]  ;;  %v9755_v21 = vpack.c.bf16 %v865_v14, %v864_v11  ;;  %v9757_v22 = vpack.c.bf16 %v834_v16, %v833_v15  ;;  %vm6283_vm8 = vsmask.f32 7440 }
  0xba   : > { %8582 = vmatmul.mubr.msk.bf16.vlgmr.msra.gmra.mxu1 %vm904_vm11, %v9734_v6  ;;  %8924 = vmatprep.subr.msk.bf16.mxu0 %vm953_vm10, %v9753_v20  ;;  %v9761_v23 = vpack.c.bf16 %v867_v18, %v866_v17  ;;  %v835_v24 = vld [vmem:[#allocation2 + $0x168] sm:$0xff]  ;;  %v836_v25 = vld [vmem:[#allocation2 + $0x170] sm:$0xff]  ;;  %v7874_v28 = vld [vmem:[%s13094_s1 + $0x6] sm:$0x3] }
  0xbb   : > { %8585 = vmatprep.mubr.msk.bf16.mxu1 %vm904_vm11, %v9740_v9  ;;  %v868_v26 = vld [vmem:[#allocation2 + $0xa9] sm:$0xff]  ;;  %v869_v27 = vld [vmem:[#allocation2 + $0xb1] sm:$0xff]  ;;  %v870_v29 = vld [vmem:[#allocation2 + $0xc1] sm:$0xff]  ;;  %8925 = vmatprep.subr.msk.bf16.mxu1 %vm953_vm10, %v7874_v28  ;;  %v1724_v31 = vsel %vm953_vm10, %v7874_v28, 0  ;;  %v9776_v32 = vpack.c.bf16 %v836_v25, %v835_v24 }
  0xbc   : > { %v871_v30 = vld [vmem:[#allocation2 + $0xc9] sm:$0xff]  ;;  %v807_v33 = vld [vmem:[#allocation2 + $0x18] sm:$0xff]  ;;  %v808_v34 = vld [vmem:[#allocation2 + $0x20] sm:$0xff]  ;;  %8628 = vmatpush3.bf16.msra.mxu1 %v1724_v31  ;;  %v9778_v35 = vpack.c.bf16 %v869_v27, %v868_v26 }
  0xbd   : > { %v9780_v36 = vpack.c.bf16 %v871_v30, %v870_v29  ;;  %v9782_v37 = vpack.c.bf16 %v808_v34, %v807_v33  ;;  %v872_v38 = vld [vmem:[#allocation2 + $0xd9] sm:$0xff]  ;;  %v873_v39 = vld [vmem:[#allocation2 + $0xe1] sm:$0xff]  ;;  %v874_v40 = vld [vmem:[#allocation2 + $0xf1] sm:$0xff] }
  0xbe   : > { %v875_v41 = vld [vmem:[#allocation2 + $0xf9] sm:$0xff]  ;;  %v809_v42 = vld [vmem:[#allocation2 + $0x30] sm:$0xff]  ;;  %v811_v44 = vld [vmem:[#allocation2 + $0x48] sm:$0xff]  ;;  %v9792_v46 = vpack.c.bf16 %v873_v39, %v872_v38 }
  0xbf   : > { %8532 = vmatmul.mubr.msk.bf16.gmra.mxu0 %vm904_vm11, %v9728_v0  ;;  %v810_v43 = vld [vmem:[#allocation2 + $0x38] sm:$0xff]  ;;  %v812_v45 = vld [vmem:[#allocation2 + $0x50] sm:$0xff]  ;;  %v9794_v47 = vpack.c.bf16 %v875_v41, %v874_v40  ;;  %v878_v10 = vld [vmem:[#allocation2 + $0x121] sm:$0xff]  ;;  %v1429_v40 = vsel %vm953_vm10, %v9753_v20, 0 }
  0xc0   : > { %8535 = vmatprep.mubr.msk.bf16.mxu0 %vm904_vm11, %v9732_v5  ;;  %v9796_v48 = vpack.c.bf16 %v810_v43, %v809_v42  ;;  %v9798_v49 = vpack.c.bf16 %v812_v45, %v811_v44  ;;  %v876_v50 = vld [vmem:[#allocation2 + $0x109] sm:$0xff]  ;;  %v877_v51 = vld [vmem:[#allocation2 + $0x111] sm:$0xff]  ;;  %v813_v52 = vld [vmem:[#allocation2 + $0x60] sm:$0xff] }
  0xc1   : > { %v879_v2 = vld [vmem:[#allocation2 + $0x129] sm:$0xff]  ;;  %v815_v56 = vld [vmem:[#allocation2 + $0x78] sm:$0xff]  ;;  %v816_v58 = vld [vmem:[#allocation2 + $0x80] sm:$0xff]  ;;  %v9813_v60 = vpack.c.bf16 %v877_v51, %v876_v50 }
  0xc2   : > { %8586 = vmatmul.mubr.msk.bf16.gmra.mxu1 %vm904_vm11, %v9748_v19  ;;  %v814_v54 = vld [vmem:[#allocation2 + $0x68] sm:$0xff]  ;;  %v9815_v61 = vpack.c.bf16 %v879_v2, %v878_v10  ;;  %v9819_v63 = vpack.c.bf16 %v816_v58, %v815_v56  ;;  %v880_v3 = vld [vmem:[#allocation2 + $0x139] sm:$0xff]  ;;  %v882_v7 = vld [vmem:[#allocation2 + $0x151] sm:$0xff] }
  0xc3   : > { %8589 = vmatprep.mubr.msk.bf16.mxu1 %vm904_vm11, %v9757_v22  ;;  %v7908_v55 = vld [vmem:[%s13094_s1 + $0xa] sm:$0x3]  ;;  %v9817_v62 = vpack.c.bf16 %v814_v54, %v813_v52  ;;  %v881_v4 = vld [vmem:[#allocation2 + $0x141] sm:$0xff]  ;;  %v883_v8 = vld [vmem:[#allocation2 + $0x159] sm:$0xff] }
  0xc4   : > { %8927 = vmatprep.subr.msk.bf16.mxu1 %vm953_vm10, %v7908_v55  ;;  %v2312_v59 = vsel %vm953_vm10, %v7908_v55, 0  ;;  %v817_v11 = vld [vmem:[#allocation2 + $0x90] sm:$0xff]  ;;  %v818_v12 = vld [vmem:[#allocation2 + $0x98] sm:$0xff]  ;;  %v819_v13 = vld [vmem:[#allocation2 + $0xa8] sm:$0xff]  ;;  %v9829_v15 = vpack.c.bf16 %v881_v4, %v880_v3  ;;  %v9831_v16 = vpack.c.bf16 %v883_v8, %v882_v7 }
  0xc5   : > { %v820_v14 = vld [vmem:[#allocation2 + $0xb0] sm:$0xff]  ;;  %v9833_v17 = vpack.c.bf16 %v818_v12, %v817_v11  ;;  %v805_v26 = vld [vmem:[#allocation2] sm:$0xff]  ;;  %v806_v27 = vld [vmem:[#allocation2 + $0x8] sm:$0xff] }
  0xc6   : > { %v9835_v18 = vpack.c.bf16 %v820_v14, %v819_v13  ;;  %v884_v24 = vld [vmem:[#allocation2 + $0x169] sm:$0xff]  ;;  %v885_v25 = vld [vmem:[#allocation2 + $0x171] sm:$0xff]  ;;  %v821_v28 = vld [vmem:[#allocation2 + $0xc0] sm:$0xff]  ;;  %v837_v34 = vpack.c.bf16 %v806_v27, %v805_v26 }
  0xc7   : > { %8536 = vmatmul.mubr.msk.bf16.gmra.mxu0 %vm904_vm11, %v9755_v21  ;;  %v822_v29 = vld [vmem:[#allocation2 + $0xc8] sm:$0xff]  ;;  %v823_v30 = vld [vmem:[#allocation2 + $0xd8] sm:$0xff]  ;;  %v824_v31 = vld [vmem:[#allocation2 + $0xe0] sm:$0xff]  ;;  %v9845_v33 = vpack.c.bf16 %v885_v25, %v884_v24 }
  0xc8   : > { %8539 = vmatprep.mubr.msk.bf16.mxu0 %vm904_vm11, %v9761_v23  ;;  %v9847_v38 = vpack.c.bf16 %v822_v29, %v821_v28  ;;  %v9849_v39 = vpack.c.bf16 %v824_v31, %v823_v30  ;;  %v7891_v41 = vld [vmem:[%s13094_s1 + $0x8] sm:$0x3]  ;;  %v1655_v20 = vld [vmem:[#allocation2 + $0x180] sm:$0xff]  ;;  %v1331_v51 = vld [vmem:[#allocation2 + $0xa] sm:$0xff] }
  0xc9   : > { %v1332_v42 = vld [vmem:[#allocation2 + $0x1a] sm:$0xff]  ;;  %v1333_v43 = vld [vmem:[#allocation2 + $0x22] sm:$0xff]  ;;  %v1334_v10 = vld [vmem:[#allocation2 + $0x32] sm:$0xff]  ;;  %v2018_v12 = vsel %vm953_vm10, %v7891_v41, 0 }
  0xca   : > { %8590 = vmatmul.mubr.msk.bf16.gmra.mxu1 %vm904_vm11, %v9776_v32  ;;  %v1363_v45 = vpack.c.bf16 %v1333_v43, %v1332_v42  ;;  %v1330_v50 = vld [vmem:[#allocation2 + $0x2] sm:$0xff]  ;;  %v1335_v2 = vld [vmem:[#allocation2 + $0x3a] sm:$0xff]  ;;  %v1336_v52 = vld [vmem:[#allocation2 + $0x4a] sm:$0xff] }
  0xcb   : > { %8629 = vmatprep.mubr.msk.bf16.mxu1 %vm904_vm11, %v9782_v37  ;;  %v1337_v54 = vld [vmem:[#allocation2 + $0x52] sm:$0xff]  ;;  %v1362_v55 = vpack.c.bf16 %v1331_v51, %v1330_v50  ;;  %v9897_v56 = vpack.c.bf16 %v1335_v2, %v1334_v10  ;;  %v1339_v3 = vld [vmem:[#allocation2 + $0x6a] sm:$0xff]  ;;  %v1340_v4 = vld [vmem:[#allocation2 + $0x7a] sm:$0xff] }
  0xcc   : > { %v9899_v58 = vpack.c.bf16 %v1337_v54, %v1336_v52  ;;  %v1341_v7 = vld [vmem:[#allocation2 + $0x82] sm:$0xff]  ;;  %v7942_v11 = vld [vmem:[%s13094_s1 + $0xe] sm:$0x3]  ;;  %v9920_v14 = vld [vmem:[%s13094_s1 + $0xc] sm:$0x3] }
  0xcd   : > { %v9914_v13 = vpack.c.bf16 %v1341_v7, %v1340_v4  ;;  %v2901_v24 = vsel %vm953_vm10, %v7942_v11, 0  ;;  %v1342_v25 = vld [vmem:[#allocation2 + $0x92] sm:$0xff]  ;;  %v1343_v26 = vld [vmem:[#allocation2 + $0x9a] sm:$0xff]  ;;  %v1344_v27 = vld [vmem:[#allocation2 + $0xaa] sm:$0xff] }
  0xce   : > { %v1345_v28 = vld [vmem:[#allocation2 + $0xb2] sm:$0xff]  ;;  %v9932_v29 = vpack.c.bf16 %v1343_v26, %v1342_v25  ;;  %v1346_v31 = vld [vmem:[#allocation2 + $0xc2] sm:$0xff]  ;;  %v1351_v43 = vld [vmem:[#allocation2 + $0xfa] sm:$0xff] }
  0xcf   : > { %8540 = vmatmul.mubr.msk.bf16.gmra.mxu0 %vm904_vm11, %v9778_v35  ;;  %v9934_v30 = vpack.c.bf16 %v1345_v28, %v1344_v27  ;;  %v1350_v42 = vld [vmem:[#allocation2 + $0xf2] sm:$0xff]  ;;  %v1354_v2 = vld [vmem:[#allocation2 + $0x122] sm:$0xff]  ;;  %v1355_v52 = vld [vmem:[#allocation2 + $0x12a] sm:$0xff] }
  0xd0   : > { %8543 = vmatprep.mubr.msk.bf16.mxu0 %vm904_vm11, %v9780_v36  ;;  %v1353_v50 = vld [vmem:[#allocation2 + $0x112] sm:$0xff]  ;;  %v9956_v51 = vpack.c.bf16 %v1351_v43, %v1350_v42  ;;  %v1356_v54 = vld [vmem:[#allocation2 + $0x13a] sm:$0xff]  ;;  %v2243_v26 = vld [vmem:[#allocation2 + $0x182] sm:$0xff] }
  0xd1   : > { %v1358_v4 = vld [vmem:[#allocation2 + $0x152] sm:$0xff]  ;;  %v1359_v7 = vld [vmem:[#allocation2 + $0x15a] sm:$0xff]  ;;  %v2244_v27 = vld [vmem:[#allocation2 + $0x18a] sm:$0xff] }
  0xd2   : > { %8630 = vmatmul.mubr.msk.bf16.vlgmr.msra.gmra.mxu1 %vm904_vm11, %v9796_v48  ;;  %v9975_v28 = vpack.c.bf16 %v2244_v27, %v2243_v26  ;;  %vm10914_vm2 = vmand %vm3882_vm14, %vm3883_vm15 }
  0xd3   : > { %8633 = vmatprep.mubr.msk.bf16.mxu1 %vm904_vm11, %v9798_v49  ;;  %8696 = vmatpush3.bf16.msra.mxu1 %v2312_v59  ;;  %v1338_v59 = vld [vmem:[#allocation2 + $0x62] sm:$0xff]  ;;  %vm10926_vm3 = vmor %vm3558_vm12, %vm3559_vm0 }
  0xd4   : > { %v9908_v8 = vpack.c.bf16 %v1339_v3, %v1338_v59  ;;  %8929 = vmatprep.subr.msk.bf16.mxu1 %vm953_vm10, %v7942_v11  ;;  %v1374_v59 = vpack.c.bf16 %v1355_v52, %v1354_v2  ;;  %v1360_v11 = vld [vmem:[#allocation2 + $0x16a] sm:$0xff]  ;;  %13112 = vst [vmem:[#allocation4_spill] sm:$0xff] %v9975_v28  ;;  %vm10932_vm4 = vmand %vm3890_vm1, %vm3558_vm12 }
  0xd5   : > { %vm11872_vm9 = vmor %vm6282_vm7, %vm6283_vm8 }
  0xd7   : > { %8544 = vmatmul.mubr.msk.bf16.gmra.mxu0 %vm904_vm11, %v9792_v46 }
  0xd8   : > { %8547 = vmatprep.mubr.msk.bf16.mxu0 %vm904_vm11, %v9794_v47 }
  0xda   : > { %8634 = vmatmul.mubr.msk.bf16.gmra.mxu1 %vm904_vm11, %v9817_v62 }
  0xdb   : > { %8637 = vmatprep.mubr.msk.bf16.mxu1 %vm904_vm11, %v9819_v63 }
  0xdf   : > { %8548 = vmatmul.mubr.msk.bf16.gmra.mxu0 %vm904_vm11, %v9813_v60 }
  0xe0   : > { %8551 = vmatprep.mubr.msk.bf16.mxu0 %vm904_vm11, %v9815_v61 }
  0xe2   : > { %8638 = vmatmul.mubr.msk.bf16.gmra.mxu1 %vm904_vm11, %v9833_v17 }
  0xe3   : > { %8641 = vmatprep.mubr.msk.bf16.mxu1 %vm904_vm11, %v9835_v18 }
  0xe7   : > { %8552 = vmatmul.mubr.msk.bf16.gmra.mxu0 %vm904_vm11, %v9829_v15 }
  0xe8   : > { %8555 = vmatprep.mubr.msk.bf16.mxu0 %vm904_vm11, %v9831_v16 }
  0xea   : > { %8642 = vmatmul.mubr.msk.bf16.gmra.mxu1 %vm904_vm11, %v9847_v38 }
  0xeb   : > { %8645 = vmatprep.mubr.msk.bf16.mxu1 %vm904_vm11, %v9849_v39 }
  0xef   : > { %8556 = vmatmul.mubr.msk.bf16.gmra.mxu0 %vm904_vm11, %v9845_v33 }
  0xf0   : > { %8561 = vmatprep.mubr.msk.bf16.mxu0 %vm904_vm11, %v837_v34  ;;  %v1347_v34 = vld [vmem:[#allocation2 + $0xca] sm:$0xff] }
  0xf2   : > { %8646 = vmatmul.mubr.msk.bf16.gmra.mxu1 %vm904_vm11, %v9730_v1 }
  0xf3   : > { %8649 = vmatprep.mubr.msk.bf16.mxu1 %vm904_vm11, %v9734_v6 }
  0xf7   : > { %8562 = vmatmul.mubr.msk.bf16.vlgmr.msra.gmra.mxu0 %vm904_vm11, %v9782_v37  ;;  %v1656_v37 = vld [vmem:[#allocation2 + $0x188] sm:$0xff] }
  0xf8   : > { %8594 = vmatpush3.bf16.msra.mxu0 %v1429_v40  ;;  %8565 = vmatprep.mubr.msk.bf16.mxu0 %vm904_vm11, %v9796_v48  ;;  %v9888_v44 = vpack.c.bf16 %v1656_v37, %v1655_v20  ;;  %v1348_v40 = vld [vmem:[#allocation2 + $0xda] sm:$0xff]  ;;  %v9944_v20 = vpack.c.bf16 %v1347_v34, %v1346_v31  ;;  %v2607_v31 = vsel %vm953_vm10, %v9920_v14, 0  ;;  %v9995_v34 = vld [vmem:[%s13094_s1 + $0x10] sm:$0x3] }
  0xf9   : > { %8926 = vmatprep.subr.msk.bf16.mxu0 %vm953_vm10, %v7891_v41  ;;  %v1349_v41 = vld [vmem:[#allocation2 + $0xe2] sm:$0xff] }
  0xfa   : > { %8650 = vmatmul.mubr.msk.bf16.gmra.mxu1 %vm904_vm11, %v9740_v9  ;;  %v9946_v37 = vpack.c.bf16 %v1349_v41, %v1348_v40 }
  0xfb   : > { %8653 = vmatprep.mubr.msk.bf16.mxu1 %vm904_vm11, %v9748_v19 }
  0xff   : > { %8566 = vmatmul.mubr.msk.bf16.gmra.mxu0 %vm904_vm11, %v9798_v49 }
 0x100   : > { %8569 = vmatprep.mubr.msk.bf16.mxu0 %vm904_vm11, %v9817_v62 }
 0x102   : > { %8654 = vmatmul.mubr.msk.bf16.gmra.mxu1 %vm904_vm11, %v9757_v22 }
 0x103   : > { %8657 = vmatprep.mubr.msk.bf16.mxu1 %vm904_vm11, %v9776_v32 }
 0x107   : > { %8570 = vmatmul.mubr.msk.bf16.gmra.mxu0 %vm904_vm11, %v9819_v63 }
 0x108   : > { %8573 = vmatprep.mubr.msk.bf16.mxu0 %vm904_vm11, %v9833_v17 }
 0x10a   : > { %8658 = vmatmul.mubr.msk.bf16.gmra.mxu1 %vm904_vm11, %v9888_v44 }
 0x10b   : > { %8697 = vmatprep.mubr.msk.bf16.mxu1 %vm904_vm11, %v1363_v45 }
 0x10f   : > { %8574 = vmatmul.mubr.msk.bf16.gmra.mxu0 %vm904_vm11, %v9835_v18 }
 0x110   : > { %8577 = vmatprep.mubr.msk.bf16.mxu0 %vm904_vm11, %v9847_v38 }
 0x112   : > { %8698 = vmatmul.mubr.msk.bf16.vlgmr.msra.gmra.mxu1 %vm904_vm11, %v9897_v56 }
 0x113   : > { %8701 = vmatprep.mubr.msk.bf16.mxu1 %vm904_vm11, %v9899_v58  ;;  %8764 = vmatpush3.bf16.msra.mxu1 %v2901_v24  ;;  %v1376_v24 = vpack.c.bf16 %v1359_v7, %v1358_v4 }
 0x117   : > { %8578 = vmatmul.mubr.msk.bf16.gmra.mxu0 %vm904_vm11, %v9849_v39 }
 0x118   : > { %8595 = vmatprep.mubr.msk.bf16.mxu0 %vm904_vm11, %v1362_v55  ;;  %v1357_v55 = vld [vmem:[#allocation2 + $0x142] sm:$0xff] }
 0x119   : > { %v1375_v3 = vpack.c.bf16 %v1357_v55, %v1356_v54  ;;  %v1949_v54 = vld [vmem:[#allocation2 + $0x181] sm:$0xff]  ;;  %v1950_v55 = vld [vmem:[#allocation2 + $0x189] sm:$0xff] }
 0x11a   : > { %8702 = vmatmul.mubr.msk.bf16.gmra.mxu1 %vm904_vm11, %v9908_v8 }
 0x11b   : > { %8705 = vmatprep.mubr.msk.bf16.mxu1 %vm904_vm11, %v9914_v13 }
 0x11f   : > { %8596 = vmatmul.mubr.msk.bf16.vlgmr.msra.gmra.mxu0 %vm904_vm11, %v1363_v45  ;;  %v1352_v45 = vld [vmem:[#allocation2 + $0x10a] sm:$0xff] }
 0x120   : > { %8662 = vmatpush3.bf16.msra.mxu0 %v2018_v12  ;;  %8599 = vmatprep.mubr.msk.bf16.mxu0 %vm904_vm11, %v9897_v56  ;;  %v1373_v10 = vpack.c.bf16 %v1353_v50, %v1352_v45  ;;  %v1361_v12 = vld [vmem:[#allocation2 + $0x172] sm:$0xff] }
 0x121   : > { %8928 = vmatprep.subr.msk.bf16.mxu0 %vm953_vm10, %v9920_v14  ;;  %v1377_v25 = vpack.c.bf16 %v1361_v12, %v1360_v11  ;;  %v2826_v14 = vld [vmem:[#allocation2 + $0x151] sm:$0xff] }
 0x122   : > { %8706 = vmatmul.mubr.msk.bf16.gmra.mxu1 %vm904_vm11, %v9932_v29 }
 0x123   : > { %8709 = vmatprep.mubr.msk.bf16.mxu1 %vm904_vm11, %v9934_v30 }
 0x127   : > { %8600 = vmatmul.mubr.msk.bf16.gmra.mxu0 %vm904_vm11, %v9899_v58 }
 0x128   : > { %8603 = vmatprep.mubr.msk.bf16.mxu0 %vm904_vm11, %v9908_v8 }
 0x12a   : > { %8710 = vmatmul.mubr.msk.bf16.gmra.mxu1 %vm904_vm11, %v9944_v20 }
 0x12b   : > { %8713 = vmatprep.mubr.msk.bf16.mxu1 %vm904_vm11, %v9946_v37 }
 0x12f   : > { %8604 = vmatmul.mubr.msk.bf16.gmra.mxu0 %vm904_vm11, %v9914_v13 }
 0x130   : > { %8607 = vmatprep.mubr.msk.bf16.mxu0 %vm904_vm11, %v9932_v29 }
 0x132   : > { %8714 = vmatmul.mubr.msk.bf16.gmra.mxu1 %vm904_vm11, %v9956_v51 }
 0x133   : > { %8717 = vmatprep.mubr.msk.bf16.mxu1 %vm904_vm11, %v1373_v10 }
 0x137   : > { %8608 = vmatmul.mubr.msk.bf16.gmra.mxu0 %vm904_vm11, %v9934_v30 }
 0x138   : > { %8611 = vmatprep.mubr.msk.bf16.mxu0 %vm904_vm11, %v9944_v20 }
 0x13a   : > { %8718 = vmatmul.mubr.msk.bf16.gmra.mxu1 %vm904_vm11, %v1374_v59 }
 0x13b   : > { %8721 = vmatprep.mubr.msk.bf16.mxu1 %vm904_vm11, %v1375_v3 }
 0x13f   : > { %8612 = vmatmul.mubr.msk.bf16.gmra.mxu0 %vm904_vm11, %v9946_v37 }
 0x140   : > { %8615 = vmatprep.mubr.msk.bf16.mxu0 %vm904_vm11, %v9956_v51 }
 0x142   : > { %8722 = vmatmul.mubr.msk.bf16.gmra.mxu1 %vm904_vm11, %v1376_v24 }
 0x143   : > { %8725 = vmatprep.mubr.msk.bf16.mxu1 %vm904_vm11, %v1377_v25 }
 0x147   : > { %8616 = vmatmul.mubr.msk.bf16.gmra.mxu0 %vm904_vm11, %v1373_v10  ;;  %v2829_v10 = vld [vmem:[#allocation2 + $0x171] sm:$0xff] }
 0x148   : > { %8619 = vmatprep.mubr.msk.bf16.mxu0 %vm904_vm11, %v1374_v59 }
 0x14a   : > { %8726 = vmatmul.mubr.msk.bf16.gmra.mxu1 %vm904_vm11, %v9975_v28 }
 0x14b   : > { %8765 = vmatprep.mubr.msk.bf16.mxu1 %vm904_vm11, %v9722_v57 }
 0x14f   : > { %8620 = vmatmul.mubr.msk.bf16.gmra.mxu0 %vm904_vm11, %v1375_v3 }
 0x150   : > { %8623 = vmatprep.mubr.msk.bf16.mxu0 %vm904_vm11, %v1376_v24 }
 0x152   : > { %8766 = vmatmul.mubr.msk.bf16.vlgmr.msra.gmra.mxu1 %vm904_vm11, %v9728_v0 }
 0x153   : > { %8769 = vmatprep.mubr.msk.bf16.mxu1 %vm904_vm11, %v9732_v5 }
 0x157   : > { %8624 = vmatmul.mubr.msk.bf16.gmra.mxu0 %vm904_vm11, %v1377_v25  ;;  %v2833_v25 = vld [vmem:[#allocation2 + $0x1a1] sm:$0xff] }
 0x158   : > { %8663 = vmatprep.mubr.msk.bf16.mxu0 %vm904_vm11, %v9716_v53  ;;  %v2822_v53 = vld [vmem:[#allocation2 + $0x121] sm:$0xff] }
 0x15a   : > { %8770 = vmatmul.mubr.msk.bf16.gmra.mxu1 %vm904_vm11, %v9755_v21 }
 0x15b   : > { %8773 = vmatprep.mubr.msk.bf16.mxu1 %vm904_vm11, %v9761_v23 }
 0x15f   : > { %8664 = vmatmul.mubr.msk.bf16.vlgmr.msra.gmra.mxu0 %vm904_vm11, %v9722_v57  ;;  %v2823_v57 = vld [vmem:[#allocation2 + $0x129] sm:$0xff] }
 0x160   : > { %8730 = vmatpush3.bf16.msra.mxu0 %v2607_v31  ;;  %8667 = vmatprep.mubr.msk.bf16.mxu0 %vm904_vm11, %v9728_v0  ;;  %v2844_v0 = vpack.c.bf16 %v2823_v57, %v2822_v53 }
 0x161   : > { %8930 = vmatprep.subr.msk.bf16.mxu0 %vm953_vm10, %v9995_v34 }
 0x162   : > { %8774 = vmatmul.mubr.msk.bf16.gmra.mxu1 %vm904_vm11, %v9778_v35 }
 0x163   : > { %8777 = vmatprep.mubr.msk.bf16.mxu1 %vm904_vm11, %v9780_v36 }
 0x167   : > { %8668 = vmatmul.mubr.msk.bf16.gmra.mxu0 %vm904_vm11, %v9732_v5 }
 0x168   : > { %8671 = vmatprep.mubr.msk.bf16.mxu0 %vm904_vm11, %v9755_v21  ;;  %v2824_v21 = vld [vmem:[#allocation2 + $0x139] sm:$0xff] }
 0x16a   : > { %8778 = vmatmul.mubr.msk.bf16.gmra.mxu1 %vm904_vm11, %v9792_v46 }
 0x16b   : > { %8781 = vmatprep.mubr.msk.bf16.mxu1 %vm904_vm11, %v9794_v47 }
 0x16f   : > { %8672 = vmatmul.mubr.msk.bf16.gmra.mxu0 %vm904_vm11, %v9761_v23  ;;  %v2825_v23 = vld [vmem:[#allocation2 + $0x141] sm:$0xff] }
 0x170   : > { %8675 = vmatprep.mubr.msk.bf16.mxu0 %vm904_vm11, %v9778_v35  ;;  %v2827_v35 = vld [vmem:[#allocation2 + $0x159] sm:$0xff]  ;;  %v2845_v41 = vpack.c.bf16 %v2825_v23, %v2824_v21 }
 0x171   : > { %v2846_v43 = vpack.c.bf16 %v2827_v35, %v2826_v14 }
 0x172   : > { %8782 = vmatmul.mubr.msk.bf16.gmra.mxu1 %vm904_vm11, %v9813_v60 }
 0x173   : > { %8785 = vmatprep.mubr.msk.bf16.mxu1 %vm904_vm11, %v2844_v0 }
 0x177   : > { %v10025_v5 = vpop.f32.mrf.mxu0  ;;  %8676 = vmatmul.mubr.msk.bf16.gmra.mxu0 %vm904_vm11, %v9780_v36 }
 0x178   : > { %8679 = vmatprep.mubr.msk.bf16.mxu0 %vm904_vm11, %v9792_v46  ;;  %v2828_v46 = vld [vmem:[#allocation2 + $0x169] sm:$0xff] }
 0x179   : > { %v10032_v40 = vpop.f32.mrf.mxu0  ;;  %v2847_v3 = vpack.c.bf16 %v2829_v10, %v2828_v46 }
 0x17a   : > { %v8583_v50 = vpop.f32.mrf.mxu1  ;;  %8786 = vmatmul.mubr.msk.bf16.gmra.mxu1 %vm904_vm11, %v2845_v41 }
 0x17b   : > { %v10034_v42 = vpop.f32.mrf.mxu0  ;;  %8789 = vmatprep.mubr.msk.bf16.mxu1 %vm904_vm11, %v2846_v43 }
 0x17c   : > { %v1283_v2 = vpop.f32.mrf.mxu1 }
 0x17d   : > { %v10036_v45 = vpop.f32.mrf.mxu0 }
 0x17e   : > { %v8584_v59 = vpop.f32.mrf.mxu1 }
 0x17f   : > { %v10039_v36 = vpop.f32.mrf.mxu0  ;;  %8680 = vmatmul.mubr.msk.bf16.gmra.mxu0 %vm904_vm11, %v9794_v47  ;;  %v1966_v47 = vpack.c.bf16 %v1950_v55, %v1949_v54 }
 0x180   : > { %8683 = vmatprep.mubr.msk.bf16.mxu0 %vm904_vm11, %v9813_v60  ;;  %v10050_v7 = vpop.f32.mrf.mxu1  ;;  %v2832_v60 = vld [vmem:[#allocation2 + $0x199] sm:$0xff] }
 0x181   : > { %v10046_v52 = vpop.f32.mrf.mxu0  ;;  %v2849_v53 = vpack.c.bf16 %v2833_v25, %v2832_v60 }
 0x182   : > { %v8587_v12 = vpop.f32.mrf.mxu1  ;;  %8790 = vmatmul.mubr.msk.bf16.gmra.mxu1 %vm904_vm11, %v2847_v3 }
 0x183   : > { %v10048_v4 = vpop.f32.mrf.mxu0  ;;  %8793 = vmatprep.mubr.msk.bf16.mxu1 %vm904_vm11, %v1966_v47 }
 0x184   : > { %v1299_v26 = vpop.f32.mrf.mxu1 }
 0x185   : > { %v10052_v11 = vpop.f32.mrf.mxu0 }
 0x186   : > { %v8588_v31 = vpop.f32.mrf.mxu1 }
 0x187   : > { %v10055_v24 = vpop.f32.mrf.mxu0  ;;  %8684 = vmatmul.mubr.msk.bf16.gmra.mxu0 %vm904_vm11, %v9815_v61 }
 0x188   : > { %8687 = vmatprep.mubr.msk.bf16.mxu0 %vm904_vm11, %v9829_v15  ;;  %v10066_v0 = vpop.f32.mrf.mxu1 }
 0x189   : > { %v10062_v27 = vpop.f32.mrf.mxu0  ;;  %13113 = vst [vmem:[#allocation5_spill] sm:$0xff] %v10066_v0 }
 0x18a   : > { %v8591_v23 = vpop.f32.mrf.mxu1  ;;  %8794 = vmatmul.mubr.msk.bf16.gmra.mxu1 %vm904_vm11, %v2849_v53  ;;  %v3195_v53 = vsel %vm953_vm10, %v9995_v34, 0 }
 0x18b   : > { %v10064_v57 = vpop.f32.mrf.mxu0 }
 0x18c   : > { %v1315_v15 = vpop.f32.mrf.mxu1 }
 0x18d   : > { %v10068_v21 = vpop.f32.mrf.mxu0 }
 0x18e   : > { %v8592_v35 = vpop.f32.mrf.mxu1 }
 0x18f   : > { %v10071_v61 = vpop.f32.mrf.mxu0  ;;  %8688 = vmatmul.mubr.msk.bf16.gmra.mxu0 %vm904_vm11, %v9831_v16 }
 0x190   : > { %8691 = vmatprep.mubr.msk.bf16.mxu0 %vm904_vm11, %v9845_v33  ;;  %v10081_v43 = vpop.f32.mrf.mxu1 }
 0x191   : > { %v10077_v14 = vpop.f32.mrf.mxu0  ;;  %13114 = vst [vmem:[#allocation6_spill] sm:$0xff] %v10081_v43 }
 0x192   : > { %v10085_v10 = vpop.f32.mrf.mxu1 }
 0x193   : > { %v10079_v41 = vpop.f32.mrf.mxu0  ;;  %13115 = vst [vmem:[#allocation7_spill] sm:$0xff] %v10085_v10 }
 0x194   : > { %v10092_v16 = vpop.f32.mrf.mxu1 }
 0x195   : > { %v10083_v46 = vpop.f32.mrf.mxu0  ;;  %13116 = vst [vmem:[#allocation8_spill] sm:$0xff] %v10092_v16 }
 0x196   : > { %v10096_v55 = vpop.f32.mrf.mxu1 }
 0x197   : > { %v10087_v54 = vpop.f32.mrf.mxu0  ;;  %8692 = vmatmul.mubr.msk.bf16.gmra.mxu0 %vm904_vm11, %v1966_v47  ;;  %13117 = vst [vmem:[#allocation9_spill] sm:$0xff] %v10096_v55 }
 0x198   : > { %8731 = vmatprep.mubr.msk.bf16.mxu0 %vm904_vm11, %v9796_v48  ;;  %v10100_v60 = vpop.f32.mrf.mxu1 }
 0x199   : > { %v10094_v33 = vpop.f32.mrf.mxu0  ;;  %13118 = vst [vmem:[#allocation10_spill] sm:$0xff] %v10100_v60 }
 0x19a   : > { %v10106_v10 = vpop.f32.mrf.mxu1 }
 0x19b   : > { %v10098_v3 = vpop.f32.mrf.mxu0  ;;  %13119 = vst [vmem:[#allocation11_spill] sm:$0xff] %v10106_v10 }
 0x19c   : > { %v10114_v55 = vpop.f32.mrf.mxu1 }
 0x19d   : > { %v10102_v25 = vpop.f32.mrf.mxu0 }
 0x19e   : > { %v10118_v43 = vpop.f32.mrf.mxu1 }
 0x19f   : > { %v8549_v47 = vpop.f32.mrf.mxu0  ;;  %8732 = vmatmul.mubr.msk.bf16.vlgmr.msra.gmra.mxu0 %vm904_vm11, %v9798_v49 }
 0x1a0   : > { %v10110_v48 = vadd.f32 %v8583_v50, %v8549_v47  ;;  %8798 = vmatpush3.bf16.msra.mxu0 %v3195_v53  ;;  %8735 = vmatprep.mubr.msk.bf16.mxu0 %vm904_vm11, %v9817_v62  ;;  %v10122_v10 = vpop.f32.mrf.mxu1 }
 0x1a1   : > { %v1071_v60 = vpop.f32.mrf.mxu0  ;;  %13120 = vst [vmem:[#allocation12_spill] sm:$0xff] %v10122_v10 }
 0x1a2   : > { %v10116_v16 = vadd.f32 %v1283_v2, %v1071_v60  ;;  %v10126_v49 = vpop.f32.mrf.mxu1 }
 0x1a3   : > { %v8550_v34 = vpop.f32.mrf.mxu0  ;;  %13121 = vst [vmem:[#allocation13_spill] sm:$0xff] %v10126_v49 }
 0x1a4   : > { %v10120_v0 = vadd.f32 %v8584_v59, %v8550_v34  ;;  %v10134_v2 = vpop.f32.mrf.mxu1 }
 0x1a5   : > { %v10124_v28 = vpop.f32.mrf.mxu0 }
 0x1a6   : > { %v10138_v53 = vpop.f32.mrf.mxu1 }
 0x1a7   : > { %v8553_v50 = vpop.f32.mrf.mxu0  ;;  %8736 = vmatmul.mubr.msk.bf16.gmra.mxu0 %vm904_vm11, %v9819_v63  ;;  %13122 = vst [vmem:[#allocation14_spill] sm:$0xff] %v10138_v53 }
 0x1a8   : > { %v10130_v62 = vadd.f32 %v8587_v12, %v8553_v50  ;;  %8739 = vmatprep.mubr.msk.bf16.mxu0 %vm904_vm11, %v9833_v17  ;;  %v10142_v49 = vpop.f32.mrf.mxu1 }
 0x1a9   : > { %v1087_v60 = vpop.f32.mrf.mxu0  ;;  %13123 = vst [vmem:[#allocation15_spill] sm:$0xff] %v10142_v49 }
 0x1aa   : > { %v10136_v59 = vadd.f32 %v1299_v26, %v1087_v60  ;;  %v10146_v63 = vpop.f32.mrf.mxu1 }
 0x1ab   : > { %v8554_v47 = vpop.f32.mrf.mxu0  ;;  %13124 = vst [vmem:[#allocation16_spill] sm:$0xff] %v10146_v63 }
 0x1ac   : > { %v10140_v34 = vadd.f32 %v8588_v31, %v8554_v47  ;;  %v10154_v26 = vpop.f32.mrf.mxu1 }
 0x1ad   : > { %v10144_v10 = vpop.f32.mrf.mxu0 }
 0x1ae   : > { %v10158_v60 = vpop.f32.mrf.mxu1 }
 0x1af   : > { %v8557_v12 = vpop.f32.mrf.mxu0  ;;  %8740 = vmatmul.mubr.msk.bf16.gmra.mxu0 %vm904_vm11, %v9835_v18 }
 0x1b0   : > { %v10150_v17 = vadd.f32 %v8591_v23, %v8557_v12  ;;  %8743 = vmatprep.mubr.msk.bf16.mxu0 %vm904_vm11, %v9847_v38  ;;  %v10162_v63 = vpop.f32.mrf.mxu1 }
 0x1b1   : > { %v1103_v50 = vpop.f32.mrf.mxu0  ;;  %13125 = vst [vmem:[#allocation17_spill] sm:$0xff] %v10162_v63 }
 0x1b2   : > { %v10156_v31 = vadd.f32 %v1315_v15, %v1103_v50  ;;  %v10166_v18 = vpop.f32.mrf.mxu1 }
 0x1b3   : > { %v8558_v47 = vpop.f32.mrf.mxu0  ;;  %13126 = vst [vmem:[#allocation18_spill] sm:$0xff] %v10166_v18 }
 0x1b4   : > { %v10160_v49 = vadd.f32 %v8592_v35, %v8558_v47  ;;  %v10175_v15 = vpop.f32.mrf.mxu1 }
 0x1b5   : > { %v10164_v53 = vpop.f32.mrf.mxu0 }
 0x1b6   : > { %v10180_v50 = vpop.f32.mrf.mxu1 }
 0x1b7   : > { %v8563_v23 = vpop.f32.mrf.mxu0  ;;  %8744 = vmatmul.mubr.msk.bf16.gmra.mxu0 %vm904_vm11, %v9849_v39 }
 0x1b8   : > { %v10171_v38 = vadd.f32 %v8563_v23, %v10025_v5  ;;  %8747 = vmatprep.mubr.msk.bf16.mxu0 %vm904_vm11, %v9730_v1  ;;  %v10185_v63 = vpop.f32.mrf.mxu1 }
 0x1b9   : > { %v1203_v35 = vpop.f32.mrf.mxu0  ;;  %13127 = vst [vmem:[#allocation19_spill] sm:$0xff] %v10185_v63 }
 0x1ba   : > { %v10178_v12 = vadd.f32 %v1203_v35, %v10032_v40  ;;  %v10190_v23 = vpop.f32.mrf.mxu1 }
 0x1bb   : > { %v8564_v47 = vpop.f32.mrf.mxu0  ;;  %13128 = vst [vmem:[#allocation20_spill] sm:$0xff] %v10190_v23 }
 0x1bc   : > { %v10183_v18 = vadd.f32 %v8564_v47, %v10034_v42  ;;  %v10199_v42 = vpop.f32.mrf.mxu1 }
 0x1bd   : > { %v1206_v39 = vpop.f32.mrf.mxu0  ;;  %13129 = vst [vmem:[#allocation21_spill] sm:$0xff] %v10199_v42 }
 0x1be   : > { %v10188_v5 = vadd.f32 %v1206_v39, %v10036_v45  ;;  %v10204_v45 = vpop.f32.mrf.mxu1 }
 0x1bf   : > { %v8567_v1 = vpop.f32.mrf.mxu0  ;;  %8748 = vmatmul.mubr.msk.bf16.gmra.mxu0 %vm904_vm11, %v9734_v6  ;;  %13130 = vst [vmem:[#allocation22_spill] sm:$0xff] %v10204_v45  ;;  %v10211_v6 = vld [vmem:[#allocation3] sm:$0xff]  }
 0x1c0   : > { %v10195_v40 = vadd.f32 %v8567_v1, %v10039_v36  ;;  %8751 = vmatprep.mubr.msk.bf16.mxu0 %vm904_vm11, %v9740_v9  ;;  %v10209_v63 = vpop.f32.mrf.mxu1  ;;  %4672 = vrot.lane.b32.xlu0 %v10211_v6, %s9207_s16 }
 0x1c1   : > { %v1219_v35 = vpop.f32.mrf.mxu0  ;;  %13131 = vst [vmem:[#allocation23_spill] sm:$0xff] %v10209_v63 }
 0x1c2   : > { %v10202_v47 = vadd.f32 %v1219_v35, %v10046_v52  ;;  %v10216_v9 = vpop.f32.mrf.mxu1  ;;  %v4099_v35 = vld [vmem:[#allocation3 + $0xc] sm:$0x1] }
 0x1c3   : > { %v8568_v39 = vpop.f32.mrf.mxu0  ;;  %13132 = vst [vmem:[#allocation24_spill] sm:$0xff] %v10216_v9 }
 0x1c4   : > { %v10207_v23 = vadd.f32 %v8568_v39, %v10048_v4  ;;  %v10222_v4 = vld [vmem:[#allocation3 + $0x8] sm:$0xf] }
 0x1c5   : > { %v1222_v36 = vpop.f32.mrf.mxu0 }
 0x1c6   : > { %v10214_v1 = vadd.f32 %v1222_v36, %v10052_v11  ;;  %v10229_v11 = vpop.f32.mrf.mxu1  ;;  %v8058_v36 = vcombine.low %v10222_v4, %v4099_v35 }
 0x1c7   : > { %v8571_v52 = vpop.f32.mrf.mxu0  ;;  %8752 = vmatmul.mubr.msk.bf16.gmra.mxu0 %vm904_vm11, %v9748_v19  ;;  %13133 = vst [vmem:[#allocation25_spill] sm:$0xff] %v10229_v11 }
 0x1c8   : > { %v10225_v39 = vadd.f32 %v8571_v52, %v10055_v24  ;;  %8755 = vmatprep.mubr.msk.bf16.mxu0 %vm904_vm11, %v9757_v22  ;;  %v10235_v45 = vpop.f32.mrf.mxu1  ;;  %4674 = vrot.lane.b32.xlu0 %v8058_v36, %s9207_s16 }
 0x1c9   : > { %v1235_v9 = vpop.f32.mrf.mxu0  ;;  %13134 = vst [vmem:[#allocation26_spill] sm:$0xff] %v10235_v45 }
 0x1ca   : > { %v10233_v63 = vadd.f32 %v1235_v9, %v10062_v27  ;;  %v10241_v24 = vpop.f32.mrf.mxu1  ;;  %v2539_v9 = vld [vmem:[#allocation2 + $0x1a0] sm:$0xff] }
 0x1cb   : > { %v8572_v19 = vpop.f32.mrf.mxu0  ;;  %13135 = vst [vmem:[#allocation27_spill] sm:$0xff] %v10241_v24 }
 0x1cc   : > { %v10239_v42 = vadd.f32 %v8572_v19, %v10064_v57  ;;  %v10246_v11 = vpop.f32.mrf.mxu1  ;;  %v2538_v57 = vld [vmem:[#allocation2 + $0x198] sm:$0xff] }
 0x1cd   : > { %v1238_v52 = vpop.f32.mrf.mxu0  ;;  %13136 = vst [vmem:[#allocation28_spill] sm:$0xff] %v10246_v11  ;;  %v2555_v24 = vpack.c.bf16 %v2539_v9, %v2538_v57 }
 0x1ce   : > { %v10244_v22 = vadd.f32 %v1238_v52, %v10068_v21  ;;  %v10255_v36 = vpop.f32.mrf.mxu1 }
 0x1cf   : > { %v8575_v35 = vpop.f32.mrf.mxu0  ;;  %8756 = vmatmul.mubr.msk.bf16.gmra.mxu0 %vm904_vm11, %v9776_v32  ;;  %13137 = vst [vmem:[#allocation29_spill] sm:$0xff] %v10255_v36 }
 0x1d0   : > { %v10251_v27 = vadd.f32 %v8575_v35, %v10071_v61  ;;  %8759 = vmatprep.mubr.msk.bf16.mxu0 %vm904_vm11, %v9888_v44  ;;  %v10260_v52 = vpop.f32.mrf.mxu1 }
 0x1d1   : > { %v1251_v19 = vpop.f32.mrf.mxu0  ;;  %13138 = vst [vmem:[#allocation30_spill] sm:$0xff] %v10260_v52 }
 0x1d2   : > { %v10258_v21 = vadd.f32 %v1251_v19, %v10077_v14  ;;  %v10265_v61 = vpop.f32.mrf.mxu1 }
 0x1d3   : > { %v8576_v11 = vpop.f32.mrf.mxu0  ;;  %13139 = vst [vmem:[#allocation31_spill] sm:$0xff] %v10265_v61 }
 0x1d4   : > { %v10263_v32 = vadd.f32 %v8576_v11, %v10079_v41  ;;  %v10270_v45 = vpop.f32.mrf.mxu1 }
 0x1d5   : > { %v1254_v35 = vpop.f32.mrf.mxu0  ;;  %13140 = vst [vmem:[#allocation32_spill] sm:$0xff] %v10270_v45 }
 0x1d6   : > { %v10268_v44 = vadd.f32 %v1254_v35, %v10083_v46  ;;  %v10278_v57 = vpop.f32.mrf.mxu1 }
 0x1d7   : > { %v8579_v36 = vpop.f32.mrf.mxu0  ;;  %8760 = vmatmul.mubr.msk.bf16.gmra.mxu0 %vm904_vm11, %v2555_v24  ;;  %13141 = vst [vmem:[#allocation33_spill] sm:$0xff] %v10278_v57 }
 0x1d8   : > { %v10274_v14 = vadd.f32 %v8579_v36, %v10087_v54  ;;  %8799 = vmatprep.mubr.msk.bf16.mxu0 %vm904_vm11, %v9897_v56  ;;  %v10283_v9 = vpop.f32.mrf.mxu1 }
 0x1d9   : > { %v1267_v41 = vpop.f32.mrf.mxu0  ;;  %13142 = vst [vmem:[#allocation34_spill] sm:$0xff] %v10283_v9 }
 0x1da   : > { %v10281_v11 = vadd.f32 %v1267_v41, %v10094_v33  ;;  %v10288_v35 = vpop.f32.mrf.mxu1 }
 0x1db   : > { %v8580_v46 = vpop.f32.mrf.mxu0  ;;  %13143 = vst [vmem:[#allocation35_spill] sm:$0xff] %v10288_v35 }
 0x1dc   : > { %v10286_v19 = vadd.f32 %v8580_v46, %v10098_v3  ;;  %v10293_v36 = vpop.f32.mrf.mxu1 }
 0x1dd   : > { %v1270_v24 = vpop.f32.mrf.mxu0  ;;  %13144 = vst [vmem:[#allocation36_spill] sm:$0xff] %v10293_v36 }
 0x1de   : > { %v10291_v54 = vadd.f32 %v1270_v24, %v10102_v25  ;;  %v10302_v3 = vpop.f32.mrf.mxu1 }
 0x1df   : > { %v8597_v56 = vpop.f32.mrf.mxu0  ;;  %8800 = vmatmul.mubr.msk.bf16.vlgmr.msra.gmra.mxu0 %vm904_vm11, %v9899_v58  ;;  %13145 = vst [vmem:[#allocation37_spill] sm:$0xff] %v10302_v3 }
 0x1e0   : > { %v10298_v33 = vadd.f32 %v8597_v56, %v10171_v38  ;;  %8803 = vmatprep.mubr.msk.bf16.mxu0 %vm904_vm11, %v9908_v8  ;;  %v10307_v25 = vpop.f32.mrf.mxu1 }
 0x1e1   : > { %v1465_v41 = vpop.f32.mrf.mxu0  ;;  %13146 = vst [vmem:[#allocation38_spill] sm:$0xff] %v10307_v25 }
 0x1e2   : > { %v10305_v46 = vadd.f32 %v1465_v41, %v10178_v12  ;;  %v10312_v35 = vpop.f32.mrf.mxu1 }
 0x1e3   : > { %v8598_v24 = vpop.f32.mrf.mxu0  ;;  %13147 = vst [vmem:[#allocation39_spill] sm:$0xff] %v10312_v35 }
 0x1e4   : > { %v10310_v36 = vadd.f32 %v8598_v24, %v10183_v18  ;;  %v10317_v56 = vpop.f32.mrf.mxu1 }
 0x1e5   : > { %v1468_v58 = vpop.f32.mrf.mxu0  ;;  %13148 = vst [vmem:[#allocation40_spill] sm:$0xff] %v10317_v56 }
 0x1e6   : > { %v10315_v38 = vadd.f32 %v1468_v58, %v10188_v5  ;;  %v10326_v18 = vpop.f32.mrf.mxu1 }
 0x1e7   : > { %v8601_v8 = vpop.f32.mrf.mxu0  ;;  %8804 = vmatmul.mubr.msk.bf16.gmra.mxu0 %vm904_vm11, %v9914_v13  ;;  %13149 = vst [vmem:[#allocation41_spill] sm:$0xff] %v10326_v18 }
 0x1e8   : > { %v10322_v12 = vadd.f32 %v8601_v8, %v10195_v40  ;;  %8807 = vmatprep.mubr.msk.bf16.mxu0 %vm904_vm11, %v9932_v29  ;;  %v10331_v5 = vpop.f32.mrf.mxu1 }
 0x1e9   : > { %v1481_v41 = vpop.f32.mrf.mxu0  ;;  %13150 = vst [vmem:[#allocation42_spill] sm:$0xff] %v10331_v5 }
 0x1ea   : > { %v10329_v24 = vadd.f32 %v1481_v41, %v10202_v47  ;;  %v10339_v40 = vpop.f32.mrf.mxu1 }
 0x1eb   : > { %v8602_v58 = vpop.f32.mrf.mxu0  ;;  %13151 = vst [vmem:[#allocation43_spill] sm:$0xff] %v10339_v40 }
 0x1ec   : > { %v10334_v56 = vadd.f32 %v8602_v58, %v10207_v23  ;;  %v10351_v41 = vpop.f32.mrf.mxu1 }
 0x1ed   : > { %v1484_v35 = vpop.f32.mrf.mxu0  ;;  %13152 = vst [vmem:[#allocation44_spill] sm:$0xff] %v10351_v41 }
 0x1ee   : > { %v10337_v13 = vadd.f32 %v1484_v35, %v10214_v1 }
 0x1ef   : > { %v8605_v8 = vpop.f32.mrf.mxu0  ;;  %8808 = vmatmul.mubr.msk.bf16.gmra.mxu0 %vm904_vm11, %v9934_v30  ;;  %v10359_v30 = vpop.f32.mrf.mxu1 }
 0x1f0   : > { %v10344_v29 = vadd.f32 %v8605_v8, %v10225_v39  ;;  %8811 = vmatprep.mubr.msk.bf16.mxu0 %vm904_vm11, %v9944_v20  ;;  %v3115_v8 = vld [vmem:[#allocation2 + $0x112] sm:$0xff] }
 0x1f1   : > { %v1497_v47 = vpop.f32.mrf.mxu0 }
 0x1f2   : > { %v10349_v23 = vadd.f32 %v1497_v47, %v10233_v63  ;;  %v3114_v63 = vld [vmem:[#allocation2 + $0x10a] sm:$0xff]  ;;  %v3116_v47 = vld [vmem:[#allocation2 + $0x122] sm:$0xff] }
 0x1f3   : > { %v8606_v1 = vpop.f32.mrf.mxu0  ;;  %v3137_v25 = vpack.c.bf16 %v3115_v8, %v3114_v63  ;;  %v8980_v63 = vld [vmem:[#allocation3 + $0x110] sm:$0xff]  }
 0x1f4   : > { %v10354_v35 = vadd.f32 %v8606_v1, %v10239_v42  ;;  %v3117_v1 = vld [vmem:[#allocation2 + $0x12a] sm:$0xff] }
 0x1f5   : > { %v1500_v58 = vpop.f32.mrf.mxu0 }
 0x1f6   : > { %v10357_v5 = vadd.f32 %v1500_v58, %v10244_v22  ;;  %v10371_v58 = vpop.f32.mrf.mxu1 }
 0x1f7   : > { %v8609_v39 = vpop.f32.mrf.mxu0  ;;  %8812 = vmatmul.mubr.msk.bf16.gmra.mxu0 %vm904_vm11, %v9946_v37  ;;  %13153 = vst [vmem:[#allocation45_spill] sm:$0xff] %v10371_v58 }
 0x1f8   : > { %v10364_v20 = vadd.f32 %v8609_v39, %v10251_v27  ;;  %8815 = vmatprep.mubr.msk.bf16.mxu0 %vm904_vm11, %v9956_v51  ;;  %v3138_v27 = vpack.c.bf16 %v3117_v1, %v3116_v47  ;;  %v10379_v51 = vpop.f32.mrf.mxu1  ;;  %v3120_v47 = vld [vmem:[#allocation2 + $0x152] sm:$0xff] }
 0x1f9   : > { %v1513_v42 = vpop.f32.mrf.mxu0  ;;  %13154 = vst [vmem:[#allocation46_spill] sm:$0xff] %v10379_v51  ;;  %v5036_v51 = vshll.u32 %v8980_v63, 16 }
 0x1fa   : > { %v10369_v22 = vadd.f32 %v1513_v42, %v10258_v21  ;;  %v8129_v21 = vcombine.low %v10222_v4, %v10222_v4 }
 0x1fb   : > { %v8610_v18 = vpop.f32.mrf.mxu0 }
 0x1fc   : > { %v10374_v37 = vadd.f32 %v8610_v18, %v10263_v32  ;;  %v3118_v32 = vld [vmem:[#allocation2 + $0x13a] sm:$0xff]  ;;  %v3119_v18 = vld [vmem:[#allocation2 + $0x142] sm:$0xff]  ;;  %v5280_v4 = vshrl.u32 %v8129_v21, 16  ;;  %v5283_v41 = vshll.u32 %v8129_v21, 16  ;;  %v3123_v21 = vld [vmem:[#allocation2 + $0x172] sm:$0xff] }
 0x1fd   : > { %v1516_v39 = vpop.f32.mrf.mxu0  ;;  %v3139_v45 = vpack.c.bf16 %v3119_v18, %v3118_v32  ;;  %v3122_v18 = vld [vmem:[#allocation2 + $0x16a] sm:$0xff] }
 0x1fe   : > { %v10377_v3 = vadd.f32 %v1516_v39, %v10268_v44  ;;  %v3121_v44 = vld [vmem:[#allocation2 + $0x15a] sm:$0xff]  ;;  %v10391_v39 = vpop.f32.mrf.mxu1 }
 0x1ff   : > { %v8613_v9 = vpop.f32.mrf.mxu0  ;;  %8816 = vmatmul.mubr.msk.bf16.gmra.mxu0 %vm904_vm11, %v3137_v25  ;;  %13155 = vst [vmem:[#allocation47_spill] sm:$0xff] %v10391_v39  ;;  %v5033_v25 = vshrl.u32 %v8980_v63, 16  ;;  %v5273_v39 = vshrl.u32 %v10211_v6, 16 }
 0x200   : > { %v10385_v42 = vadd.f32 %v8613_v9, %v10274_v14  ;;  %8819 = vmatprep.mubr.msk.bf16.mxu0 %vm904_vm11, %v3138_v27  ;;  %v3140_v9 = vpack.c.bf16 %v3121_v44, %v3120_v47 }
 0x201   : > { %v1529_v8 = vpop.f32.mrf.mxu0  ;;  %v10396_v27 = vrot.slane %v5033_v25, 7  ;;  %v4066_v25 = vld [vmem:[#allocation3 + $0x118] sm:$0xf] }
 0x202   : > { %v10389_v1 = vadd.f32 %v1529_v8, %v10281_v11  ;;  %v10401_v11 = vpop.f32.mrf.mxu1 }
 0x203   : > { %v8614_v57 = vpop.f32.mrf.mxu0  ;;  %13156 = vst [vmem:[#allocation48_spill] sm:$0xff] %v10401_v11  ;;  %v5038_v8 = vor.u32 %v5036_v51, %v10396_v27  ;;  %v8982_v51 = vld [vmem:[#allocation3 + $0x120] sm:$0xff]  }
 0x204   : > { %v10394_v14 = vadd.f32 %v8614_v57, %v10286_v19  ;;  %v5282_v57 = vrot.slane %v5280_v4, 7  ;;  %v5048_v11 = vshrl.u32 %v8982_v51, 16 }
 0x205   : > { %v1532_v58 = vpop.f32.mrf.mxu0  ;;  %5216 = vrot.lane.b32.xlu1 %v5038_v8, %s9208_s17  ;;  %v8121_v8 = vcombine.low %v4066_v25, %v4066_v25 }
 0x206   : > { %v10399_v40 = vadd.f32 %v1532_v58, %v10291_v54  ;;  %v5275_v54 = vrot.slane %v5273_v39, 7  ;;  %v5276_v58 = vshll.u32 %v10211_v6, 16  ;;  %v5285_v47 = vor.u32 %v5283_v41, %v5282_v57 }
 0x207   : > { %v8617_v32 = vpop.f32.mrf.mxu0  ;;  %8820 = vmatmul.mubr.msk.bf16.gmra.mxu0 %vm904_vm11, %v3139_v45  ;;  %v10415_v45 = vpop.f32.mrf.mxu1  ;;  %v1287_v6 = vadd.f32 %v10050_v7, %v10124_v28  ;;  %v5050_v57 = vrot.slane %v5048_v11, 7  ;;  %v3126_v28 = vld [vmem:[#allocation2 + $0x19a] sm:$0xff]  ;;  %v3127_v7 = vld [vmem:[#allocation2 + $0x1a2] sm:$0xff] }
 0x208   : > { %v10407_v19 = vadd.f32 %v8617_v32, %v10110_v48  ;;  %8823 = vmatprep.mubr.msk.bf16.mxu0 %vm904_vm11, %v3140_v9  ;;  %13157 = vst [vmem:[#allocation49_spill] sm:$0xff] %v10415_v45  ;;  %v5278_v48 = vor.u32 %v5276_v58, %v5275_v54  ;;  %v3141_v9 = vpack.c.bf16 %v3123_v21, %v3122_v18  ;;  %v5040_v58 = vshrl.u32 %v8121_v8, 16  ;;  %v13160_v11 = vld [vmem:[#allocation4_spill] sm:$0xff] }
 0x209   : > { %v1545_v63 = vpop.f32.mrf.mxu0  ;;  %v5286_v32 = vsel %vm3558_vm12, %v5275_v54, %v5285_v47  ;;  %v10427_v21 = vpop.f32.mrf.mxu1  ;;  %v8981_v54 = vld [vmem:[#allocation3 + $0x110] sm:$0xff]  }
 0x20a   : > { %v10413_v44 = vadd.f32 %v1545_v63, %v10116_v16  ;;  %5632 = vrot.lane.b32.xlu0 %v5278_v48, %s9209_s19  ;;  %5634 = vrot.lane.b32.xlu1 %v5286_v32, %s9209_s19  ;;  %v5051_v16 = vshll.u32 %v8982_v51, 16  ;;  %13158 = vst [vmem:[#allocation50_spill] sm:$0xff] %v10427_v21  ;;  %v4070_v63 = vld [vmem:[#allocation3 + $0x128] sm:$0xf]  ;;  %v5042_v25 = vrot.slane %v5040_v58, 7  ;;  %v5043_v48 = vshll.u32 %v8121_v8, 16 }
 0x20b   : > { %v8618_v4 = vpop.f32.mrf.mxu0  ;;  %v3143_v8 = vpack.c.bf16 %v3127_v7, %v3126_v28  ;;  %v10440_v58 = vpop.f32.mrf.mxu1  ;;  %v5531_v28 = vshll.u32 %v8981_v54, 16 }
 0x20c   : > { %v10421_v39 = vadd.f32 %v8618_v4, %v10120_v0  ;;  %v5053_v0 = vor.u32 %v5051_v16, %v5050_v57  ;;  %v8122_v4 = vcombine.low %v4070_v63, %v4070_v63  ;;  %v5528_v63 = vshrl.u32 %v8981_v54, 16 }
 0x20d   : > { %v1548_v41 = vpop.f32.mrf.mxu0 }
 0x20e   : > { %v10425_v18 = vadd.f32 %v1548_v41, %v1287_v6  ;;  %4740 = vrot.lane.b32.xlu0 %v8981_v54, %s9207_s16  ;;  %5220 = vrot.lane.b32.xlu1 %v5053_v0, %s9208_s17  ;;  %v4166_v6 = vld [vmem:[#allocation3 + $0x118] sm:$0xf]  ;;  %v4167_v41 = vld [vmem:[#allocation3 + $0x11c] sm:$0x1]  ;;  %v5055_v21 = vshrl.u32 %v8122_v4, 16  ;;  %v5058_v52 = vshll.u32 %v8122_v4, 16 }
 0x20f   : > { %v8621_v47 = vpop.f32.mrf.mxu0  ;;  %8824 = vmatmul.mubr.msk.bf16.gmra.mxu0 %vm904_vm11, %v3141_v9  ;;  %v5045_v9 = vor.u32 %v5043_v48, %v5042_v25  ;;  %v8146_v45 = vcombine.low %v4166_v6, %v4166_v6  ;;  %v13161_v0 = vld [vmem:[#allocation5_spill] sm:$0xff] }
 0x210   : > { %v10431_v51 = vadd.f32 %v8621_v47, %v10130_v62  ;;  %8827 = vmatprep.mubr.msk.bf16.mxu0 %vm904_vm11, %v13160_v11  ;;  %v8092_v62 = vcombine.low %v4166_v6, %v4167_v41  ;;  %v5057_v61 = vrot.slane %v5055_v21, 7 }
 0x211   : > { %v1561_v32 = vpop.f32.mrf.mxu0  ;;  %v5046_v11 = vsel %vm3558_vm12, %v10396_v27, %v5045_v9  ;;  %v5535_v48 = vshrl.u32 %v8146_v45, 16  ;;  %v10453_v27 = vpop.f32.mrf.mxu1 }
 0x212   : > { %13159 = vst [vmem:[#allocation51_spill] sm:$0xff] %v10431_v51  ;;  %v10438_v16 = vadd.f32 %v1561_v32, %v10136_v59  ;;  %v1303_v51 = vadd.f32 %v13161_v0, %v10144_v10  ;;  %5218 = vrot.lane.b32.xlu0 %v5046_v11, %s9208_s17  ;;  %v5530_v59 = vrot.slane %v5528_v63, 7  ;;  %v5538_v32 = vshll.u32 %v8146_v45, 16  ;;  %4742 = vrot.lane.b32.xlu1 %v8092_v62, %s9207_s16  ;;  %v8988_v45 = vld [vmem:[#allocation3 + $0x130] sm:$0xff]   ;;  %v8987_v62 = vld [vmem:[#allocation3 + $0x120] sm:$0xff]  }
 0x213   : > { %v8622_v47 = vpop.f32.mrf.mxu0  ;;  %v5060_v6 = vor.u32 %v5058_v52, %v5057_v61 }
 0x214   : > { %v10447_v25 = vadd.f32 %v8622_v47, %v10140_v34  ;;  %v5533_v21 = vor.u32 %v5531_v28, %v5530_v59  ;;  %v5537_v34 = vrot.slane %v5535_v48, 7  ;;  %v5066_v28 = vshll.u32 %v8988_v45, 16 }
 0x215   : > { %v1564_v7 = vpop.f32.mrf.mxu0  ;;  %v5061_v10 = vsel %vm3558_vm12, %v5050_v57, %v5060_v6 }
 0x216   : > { %v10451_v41 = vadd.f32 %v1564_v7, %v1303_v51  ;;  %5700 = vrot.lane.b32.xlu0 %v5533_v21, %s9209_s19  ;;  %5222 = vrot.lane.b32.xlu1 %v5061_v10, %s9208_s17  ;;  %v5540_v52 = vor.u32 %v5538_v32, %v5537_v34  ;;  %v10465_v51 = vpop.f32.mrf.mxu1 }
 0x217   : > { %v8625_v4 = vpop.f32.mrf.mxu0  ;;  %8828 = vmatmul.mubr.msk.bf16.gmra.mxu0 %vm904_vm11, %v3143_v8  ;;  %v5063_v8 = vshrl.u32 %v8988_v45, 16  ;;  %v4170_v45 = vld [vmem:[#allocation3 + $0x128] sm:$0xf] }
 0x218   : > { %v10458_v9 = vadd.f32 %v8625_v4, %v10150_v17  ;;  %v5541_v57 = vsel %vm3558_vm12, %v5530_v59, %v5540_v52  ;;  %v13162_v17 = vld [vmem:[#allocation6_spill] sm:$0xff]  ;;  %v10479_v6 = vpop.f32.mrf.mxu1  ;;  %v4074_v4 = vld [vmem:[#allocation3 + $0x138] sm:$0xf] }
 0x219   : > { %v1577_v54 = vpop.f32.mrf.mxu0  ;;  %v1319_v47 = vadd.f32 %v13162_v17, %v10164_v53  ;;  %v5065_v0 = vrot.slane %v5063_v8, 7  ;;  %v5543_v53 = vshrl.u32 %v8987_v62, 16 }
 0x21a   : > { %v10463_v61 = vadd.f32 %v1577_v54, %v10156_v31  ;;  %4744 = vrot.lane.b32.xlu0 %v8987_v62, %s9207_s16  ;;  %5702 = vrot.lane.b32.xlu1 %v5541_v57, %s9209_s19  ;;  %v13163_v31 = vld [vmem:[#allocation7_spill] sm:$0xff]  ;;  %v8123_v54 = vcombine.low %v4074_v4, %v4074_v4  ;;  %v13166_v57 = vld [vmem:[#allocation9_spill] sm:$0xff] }
 0x21b   : > { %v8626_v63 = vpop.f32.mrf.mxu0  ;;  %v1889_v48 = vadd.f32 %v13163_v31, %v10298_v33  ;;  %v5068_v59 = vor.u32 %v5066_v28, %v5065_v0  ;;  %v5545_v8 = vrot.slane %v5543_v53, 7  ;;  %v5546_v33 = vshll.u32 %v8987_v62, 16  ;;  %v10490_v28 = vpop.f32.mrf.mxu1 }
 0x21c   : > { %v10471_v11 = vadd.f32 %v8626_v63, %v10160_v49  ;;  %v13164_v49 = vld [vmem:[#allocation8_spill] sm:$0xff]  ;;  %v8147_v63 = vcombine.low %v4170_v45, %v4170_v45  ;;  %v1890_v17 = vadd.f32 %v13166_v57, %v10310_v36  ;;  %13168 = vst [vmem:[#allocation6_spill] sm:$0xff] %v10490_v28 }
 0x21d   : > { %v1580_v7 = vpop.f32.mrf.mxu0  ;;  %v1887_v10 = vadd.f32 %v13164_v49, %v10305_v46  ;;  %v5548_v46 = vor.u32 %v5546_v33, %v5545_v8  ;;  %v10501_v33 = vpop.f32.mrf.mxu1 }
 0x21e   : > { %v10477_v32 = vadd.f32 %v1580_v7, %v1319_v47  ;;  %5224 = vrot.lane.b32.xlu0 %v5068_v59, %s9208_s17  ;;  %v5070_v7 = vshrl.u32 %v8123_v54, 16  ;;  %v13169_v59 = vld [vmem:[#allocation10_spill] sm:$0xff]  ;;  %v5553_v36 = vshll.u32 %v8147_v63, 16 }
 0x21f   : > { %v8665_v21 = vpop.f32.mrf.mxu0  ;;  %v1888_v49 = vadd.f32 %v13169_v59, %v10315_v38 }
 0x220   : > { %v10483_v34 = vadd.f32 %v8665_v21, %v1889_v48  ;;  %v4171_v48 = vld [vmem:[#allocation3 + $0x12c] sm:$0x1]  ;;  %v5550_v21 = vshrl.u32 %v8147_v63, 16  ;;  %v5072_v62 = vrot.slane %v5070_v7, 7 }
 0x221   : > { %v2054_v52 = vpop.f32.mrf.mxu0  ;;  %v8094_v53 = vcombine.low %v4170_v45, %v4171_v48  ;;  %v1891_v45 = vadd.f32 %v10114_v55, %v10329_v24  ;;  %v13171_v55 = vld [vmem:[#allocation12_spill] sm:$0xff] }
 0x222   : > { %13165 = vst [vmem:[#allocation4_spill] sm:$0xff] %v10483_v34  ;;  %v10488_v47 = vadd.f32 %v2054_v52, %v1887_v10  ;;  %5704 = vrot.lane.b32.xlu0 %v5548_v46, %s9209_s19  ;;  %v5073_v10 = vshll.u32 %v8123_v54, 16  ;;  %v13170_v52 = vld [vmem:[#allocation11_spill] sm:$0xff]  ;;  %v5552_v28 = vrot.slane %v5550_v21, 7  ;;  %v10513_v46 = vpop.f32.mrf.mxu1  ;;  %v1892_v24 = vadd.f32 %v13171_v55, %v10337_v13  ;;  %v4174_v13 = vld [vmem:[#allocation3 + $0x138] sm:$0xf] }
 0x223   : > { %v8666_v31 = vpop.f32.mrf.mxu0  ;;  %v1893_v57 = vadd.f32 %v13170_v52, %v10322_v12  ;;  %4746 = vrot.lane.b32.xlu1 %v8094_v53, %s9207_s16  ;;  %v1894_v12 = vadd.f32 %v10118_v43, %v10334_v56  ;;  %v13172_v43 = vld [vmem:[#allocation13_spill] sm:$0xff] }
 0x224   : > { %13167 = vst [vmem:[#allocation5_spill] sm:$0xff] %v10488_v47  ;;  %v10494_v4 = vadd.f32 %v8666_v31, %v1890_v17  ;;  %v5075_v17 = vor.u32 %v5073_v10, %v5072_v62  ;;  %v5555_v31 = vor.u32 %v5553_v36, %v5552_v28  ;;  %v4078_v28 = vld [vmem:[#allocation3 + $0x148] sm:$0xf]  ;;  %v1897_v56 = vadd.f32 %v13172_v43, %v10344_v29  ;;  %v10526_v53 = vpop.f32.mrf.mxu1 }
 0x225   : > { %v2057_v34 = vpop.f32.mrf.mxu0  ;;  %v8124_v62 = vcombine.low %v4078_v28, %v4078_v28 }
 0x226   : > { %v10499_v47 = vadd.f32 %v2057_v34, %v1888_v49  ;;  %v5076_v54 = vsel %vm3558_vm12, %v5065_v0, %v5075_v17  ;;  %v5556_v21 = vsel %vm3558_vm12, %v5545_v8, %v5555_v31  ;;  %v1895_v8 = vadd.f32 %v10134_v2, %v10349_v23  ;;  %v8995_v17 = vld [vmem:[#allocation3 + $0x140] sm:$0xff]   ;;  %v13174_v23 = vld [vmem:[#allocation15_spill] sm:$0xff] }
 0x227   : > { %v8669_v38 = vpop.f32.mrf.mxu0  ;;  %5226 = vrot.lane.b32.xlu0 %v5076_v54, %s9208_s17  ;;  %5706 = vrot.lane.b32.xlu1 %v5556_v21, %s9209_s19  ;;  %v5085_v52 = vshrl.u32 %v8124_v62, 16  ;;  %v8994_v21 = vld [vmem:[#allocation3 + $0x130] sm:$0xff]   ;;  %v5078_v55 = vshrl.u32 %v8995_v17, 16  ;;  %v5088_v2 = vshll.u32 %v8124_v62, 16 }
 0x228   : > { %v10506_v7 = vadd.f32 %v8669_v38, %v1893_v57  ;;  %v4175_v38 = vld [vmem:[#allocation3 + $0x13c] sm:$0x1] }
 0x229   : > { %v2070_v63 = vpop.f32.mrf.mxu0  ;;  %v8096_v54 = vcombine.low %v4174_v13, %v4175_v38  ;;  %v5081_v38 = vshll.u32 %v8995_v17, 16  ;;  %v13177_v17 = vld [vmem:[#allocation18_spill] sm:$0xff] }
 0x22a   : > { %v10511_v34 = vadd.f32 %v2070_v63, %v1891_v45  ;;  %v13173_v45 = vld [vmem:[#allocation14_spill] sm:$0xff]  ;;  %v10536_v63 = vpop.f32.mrf.mxu1 }
 0x22b   : > { %v8670_v48 = vpop.f32.mrf.mxu0  ;;  %v1898_v31 = vadd.f32 %v13173_v45, %v10354_v35  ;;  %4750 = vrot.lane.b32.xlu1 %v8096_v54, %s9207_s16  ;;  %4748 = vrot.lane.b32.xlu0 %v8994_v21, %s9207_s16  ;;  %v5080_v35 = vrot.slane %v5078_v55, 7  ;;  %v13176_v21 = vld [vmem:[#allocation17_spill] sm:$0xff] }
 0x22c   : > { %v10519_v59 = vadd.f32 %v8670_v48, %v1894_v12  ;;  %v5087_v12 = vrot.slane %v5085_v52, 7  ;;  %v10548_v13 = vpop.f32.mrf.mxu1  ;;  %v1900_v55 = vadd.f32 %v13176_v21, %v10377_v3 }
 0x22d   : > { %v2073_v0 = vpop.f32.mrf.mxu0 }
 0x22e   : > { %v10524_v49 = vadd.f32 %v2073_v0, %v1892_v24  ;;  %v1896_v24 = vadd.f32 %v13174_v23, %v10357_v5  ;;  %v5090_v43 = vor.u32 %v5088_v2, %v5087_v12  ;;  %v1899_v5 = vadd.f32 %v10154_v26, %v10369_v22  ;;  %v10558_v54 = vpop.f32.mrf.mxu1 }
 0x22f   : > { %v8673_v36 = vpop.f32.mrf.mxu0  ;;  %v5083_v12 = vor.u32 %v5081_v38, %v5080_v35  ;;  %v1905_v23 = vadd.f32 %v13177_v17, %v10385_v42  ;;  %v13179_v42 = vld [vmem:[#allocation19_spill] sm:$0xff]  ;;  %v13180_v38 = vld [vmem:[#allocation20_spill] sm:$0xff] }
 0x230   : > { %v10530_v10 = vadd.f32 %v8673_v36, %v1897_v56  ;;  %v13175_v56 = vld [vmem:[#allocation16_spill] sm:$0xff]  ;;  %v5091_v52 = vsel %vm3558_vm12, %v5080_v35, %v5090_v43 }
 0x231   : > { %v2086_v57 = vpop.f32.mrf.mxu0  ;;  %v1901_v36 = vadd.f32 %v13175_v56, %v10364_v20  ;;  %5230 = vrot.lane.b32.xlu1 %v5091_v52, %s9208_s17  ;;  %5228 = vrot.lane.b32.xlu0 %v5083_v12, %s9208_s17 }
 0x232   : > { %v10534_v29 = vadd.f32 %v2086_v57, %v1895_v8 }
 0x233   : > { %v8674_v48 = vpop.f32.mrf.mxu0 }
 0x234   : > { %v10540_v0 = vadd.f32 %v8674_v48, %v1898_v31  ;;  %v1902_v31 = vadd.f32 %v10158_v60, %v10374_v37  ;;  %v10572_v37 = vpop.f32.mrf.mxu1 }
 0x235   : > { %v2089_v28 = vpop.f32.mrf.mxu0 }
 0x236   : > { %v10546_v8 = vadd.f32 %v2089_v28, %v1896_v24  ;;  %v1903_v28 = vadd.f32 %v10175_v15, %v10389_v1  ;;  %v10582_v56 = vpop.f32.mrf.mxu1  ;;  %v1909_v15 = vadd.f32 %v13180_v38, %v10407_v19  ;;  %v13185_v19 = vld [vmem:[#allocation23_spill] sm:$0xff] }
 0x237   : > { %v8677_v62 = vpop.f32.mrf.mxu0  ;;  %13178 = vst [vmem:[#allocation7_spill] sm:$0xff] %v10582_v56  ;;  %v1908_v17 = vadd.f32 %v13185_v19, %v10425_v18  ;;  %v13193_v19 = vld [vmem:[#allocation28_spill] sm:$0xff]  ;;  %v13210_v56 = vld [vmem:[#allocation45_spill] sm:$0xff] }
 0x238   : > { %v10553_v57 = vadd.f32 %v8677_v62, %v1901_v36  ;;  %v1904_v62 = vadd.f32 %v13179_v42, %v10399_v40 }
 0x239   : > { %v2102_v45 = vpop.f32.mrf.mxu0 }
 0x23a   : > { %v2193_v20 = vadd.f32 %v2102_v45, %v1899_v5  ;;  %v10592_v45 = vpop.f32.mrf.mxu1 }
 0x23b   : > { %v8678_v48 = vpop.f32.mrf.mxu0  ;;  %13181 = vst [vmem:[#allocation8_spill] sm:$0xff] %v10592_v45 }
 0x23c   : > { %v10562_v2 = vadd.f32 %v8678_v48, %v1902_v31  ;;  %v10565_v26 = vadd.f32 %v10359_v30, %v2193_v20  ;;  %v1906_v30 = vadd.f32 %v10180_v50, %v10394_v14  ;;  %v13182_v50 = vld [vmem:[#allocation21_spill] sm:$0xff]  ;;  %v13183_v48 = vld [vmem:[#allocation22_spill] sm:$0xff] }
 0x23d   : > { %v2105_v22 = vpop.f32.mrf.mxu0  ;;  %v1907_v14 = vadd.f32 %v13182_v50, %v10413_v44  ;;  %v1910_v40 = vadd.f32 %v13183_v48, %v10421_v39  ;;  %v13189_v39 = vld [vmem:[#allocation25_spill] sm:$0xff] }
 0x23e   : > { %v10570_v60 = vadd.f32 %v2105_v22, %v1900_v55  ;;  %v10602_v55 = vpop.f32.mrf.mxu1 }
 0x23f   : > { %v8681_v24 = vpop.f32.mrf.mxu0  ;;  %13184 = vst [vmem:[#allocation9_spill] sm:$0xff] %v10602_v55 }
 0x240   : > { %v10576_v3 = vadd.f32 %v8681_v24, %v1905_v23 }
 0x241   : > { %v2118_v35 = vpop.f32.mrf.mxu0 }
 0x242   : > { %v10580_v43 = vadd.f32 %v2118_v35, %v1903_v28  ;;  %v13186_v28 = vld [vmem:[#allocation51_spill] sm:$0xff]  ;;  %v13187_v35 = vld [vmem:[#allocation24_spill] sm:$0xff] }
 0x243   : > { %v8682_v36 = vpop.f32.mrf.mxu0  ;;  %v1913_v44 = vadd.f32 %v13187_v35, %v13186_v28 }
 0x244   : > { %v10586_v52 = vadd.f32 %v8682_v36, %v1906_v30  ;;  %v10612_v36 = vpop.f32.mrf.mxu1 }
 0x245   : > { %v2121_v5 = vpop.f32.mrf.mxu0  ;;  %13188 = vst [vmem:[#allocation10_spill] sm:$0xff] %v10612_v36 }
 0x246   : > { %v10590_v1 = vadd.f32 %v2121_v5, %v1904_v62  ;;  %v1911_v62 = vadd.f32 %v13189_v39, %v10438_v16  ;;  %v10622_v50 = vpop.f32.mrf.mxu1  ;;  %v1917_v16 = vadd.f32 %v13193_v19, %v10458_v9  ;;  %v13196_v39 = vld [vmem:[#allocation30_spill] sm:$0xff]  ;;  %v13198_v9 = vld [vmem:[#allocation31_spill] sm:$0xff] }
 0x247   : > { %v8685_v31 = vpop.f32.mrf.mxu0  ;;  %13191 = vst [vmem:[#allocation11_spill] sm:$0xff] %v10622_v50 }
 0x248   : > { %v10596_v20 = vadd.f32 %v8685_v31, %v1909_v15  ;;  %v13190_v15 = vld [vmem:[#allocation26_spill] sm:$0xff] }
 0x249   : > { %v2134_v12 = vpop.f32.mrf.mxu0  ;;  %v1914_v18 = vadd.f32 %v13190_v15, %v10447_v25  ;;  %v13195_v25 = vld [vmem:[#allocation29_spill] sm:$0xff] }
 0x24a   : > { %v10600_v21 = vadd.f32 %v2134_v12, %v1907_v14  ;;  %v13192_v12 = vld [vmem:[#allocation27_spill] sm:$0xff]  ;;  %v1915_v35 = vadd.f32 %v13195_v25, %v10463_v61 }
 0x24b   : > { %v8686_v22 = vpop.f32.mrf.mxu0  ;;  %v1912_v48 = vadd.f32 %v13192_v12, %v10451_v41  ;;  %v1918_v41 = vadd.f32 %v13196_v39, %v10471_v11 }
 0x24c   : > { %v10606_v23 = vadd.f32 %v8686_v22, %v1910_v40 }
 0x24d   : > { %v2137_v24 = vpop.f32.mrf.mxu0 }
 0x24e   : > { %v10610_v30 = vadd.f32 %v2137_v24, %v1908_v17  ;;  %v10632_v24 = vpop.f32.mrf.mxu1 }
 0x24f   : > { %v8689_v42 = vpop.f32.mrf.mxu0  ;;  %13194 = vst [vmem:[#allocation12_spill] sm:$0xff] %v10632_v24 }
 0x250   : > { %v10616_v5 = vadd.f32 %v8689_v42, %v1913_v44 }
 0x251   : > { %v2150_v38 = vpop.f32.mrf.mxu0 }
 0x252   : > { %v10620_v31 = vadd.f32 %v2150_v38, %v1911_v62  ;;  %v10642_v38 = vpop.f32.mrf.mxu1 }
 0x253   : > { %v8690_v14 = vpop.f32.mrf.mxu0  ;;  %13197 = vst [vmem:[#allocation13_spill] sm:$0xff] %v10642_v38 }
 0x254   : > { %v10626_v40 = vadd.f32 %v8690_v14, %v1914_v18  ;;  %v1916_v18 = vadd.f32 %v13198_v9, %v10477_v32  ;;  %v10650_v61 = vpop.f32.mrf.mxu1 }
 0x255   : > { %v2153_v22 = vpop.f32.mrf.mxu0  ;;  %13199 = vst [vmem:[#allocation14_spill] sm:$0xff] %v10650_v61 }
 0x256   : > { %v10630_v17 = vadd.f32 %v2153_v22, %v1912_v48  ;;  %v10656_v11 = vpop.f32.mrf.mxu1 }
 0x257   : > { %v8693_v28 = vpop.f32.mrf.mxu0  ;;  %13200 = vst [vmem:[#allocation15_spill] sm:$0xff] %v10656_v11 }
 0x258   : > { %v10636_v44 = vadd.f32 %v8693_v28, %v1917_v16  ;;  %v10662_v25 = vpop.f32.mrf.mxu1 }
 0x259   : > { %v2166_v42 = vpop.f32.mrf.mxu0  ;;  %13201 = vst [vmem:[#allocation16_spill] sm:$0xff] %v10662_v25  ;;  %v13207_v25 = vld [vmem:[#allocation43_spill] sm:$0xff] }
 0x25a   : > { %v10640_v62 = vadd.f32 %v2166_v42, %v1915_v35  ;;  %v10668_v42 = vpop.f32.mrf.mxu1  ;;  %v2484_v61 = vadd.f32 %v13207_v25, %v10546_v8  ;;  %v13213_v25 = vld [vmem:[#allocation46_spill] sm:$0xff] }
 0x25b   : > { %v8694_v15 = vpop.f32.mrf.mxu0  ;;  %13202 = vst [vmem:[#allocation17_spill] sm:$0xff] %v10668_v42  ;;  %v13208_v42 = vld [vmem:[#allocation44_spill] sm:$0xff] }
 0x25c   : > { %v10646_v14 = vadd.f32 %v8694_v15, %v1918_v41  ;;  %v10674_v15 = vpop.f32.mrf.mxu1  ;;  %v2489_v24 = vadd.f32 %v13208_v42, %v10553_v57  ;;  %v2488_v57 = vadd.f32 %v13213_v25, %v10570_v60  ;;  %v13214_v42 = vld [vmem:[#allocation47_spill] sm:$0xff] }
 0x25d   : > { %v2169_v12 = vpop.f32.mrf.mxu0  ;;  %13203 = vst [vmem:[#allocation18_spill] sm:$0xff] %v10674_v15 }
 0x25e   : > { %v10648_v48 = vadd.f32 %v2169_v12, %v1916_v18  ;;  %v10680_v12 = vpop.f32.mrf.mxu1 }
 0x25f   : > { %v10652_v22 = vpop.f32.mrf.mxu0  ;;  %13205 = vst [vmem:[#allocation20_spill] sm:$0xff] %v10680_v12  ;;  %v2490_v12 = vadd.f32 %v13210_v56, %v10562_v2 }
 0x260   : > { %v10690_v36 = vpop.f32.mrf.mxu1 }
 0x261   : > { %v10654_v19 = vpop.f32.mrf.mxu0  ;;  %13209 = vst [vmem:[#allocation22_spill] sm:$0xff] %v10690_v36 }
 0x263   : > { %v10658_v16 = vpop.f32.mrf.mxu0 }
 0x265   : > { %v10660_v28 = vpop.f32.mrf.mxu0 }
 0x267   : > { %v10664_v32 = vpop.f32.mrf.mxu0 }
 0x269   : > { %v10666_v35 = vpop.f32.mrf.mxu0 }
 0x26b   : > { %v10670_v39 = vpop.f32.mrf.mxu0 }
 0x26d   : > { %v10672_v41 = vpop.f32.mrf.mxu0 }
 0x26f   : > { %v10676_v9 = vpop.f32.mrf.mxu0 }
 0x271   : > { %v10678_v18 = vpop.f32.mrf.mxu0 }
 0x272   : > { %13204 = vst [vmem:[#allocation19_spill] sm:$0xff] %v10678_v18  ;;  %v10699_v18 = vpop.f32.mrf.mxu1 }
 0x273   : > { %v10682_v11 = vpop.f32.mrf.mxu0  ;;  %13212 = vst [vmem:[#allocation51_spill] sm:$0xff] %v10699_v18 }
 0x274   : > { %13206 = vst [vmem:[#allocation21_spill] sm:$0xff] %v10682_v11  ;;  %v10709_v36 = vpop.f32.mrf.mxu1 }
 0x275   : > { %v2678_v38 = vpop.f32.mrf.mxu0 }
 0x276   : > { %v10688_v50 = vadd.f32 %v2678_v38, %v2484_v61 }
 0x277   : > { %v8745_v15 = vpop.f32.mrf.mxu0 }
 0x278   : > { %v10692_v55 = vadd.f32 %v8745_v15, %v2489_v24  ;;  %v2493_v24 = vadd.f32 %v13214_v42, %v10576_v3  ;;  %v13217_v3 = vld [vmem:[#allocation50_spill] sm:$0xff] }
 0x279   : > { %v2691_v45 = vpop.f32.mrf.mxu0 }
 0x27a   : > { %v10697_v11 = vadd.f32 %v2691_v45, %v10565_v26  ;;  %v13215_v26 = vld [vmem:[#allocation48_spill] sm:$0xff] }
 0x27b   : > { %v8746_v8 = vpop.f32.mrf.mxu0  ;;  %v2491_v56 = vadd.f32 %v13215_v26, %v10580_v43  ;;  %v2497_v43 = vadd.f32 %v10440_v58, %v10596_v20  ;;  %v2496_v58 = vadd.f32 %v10479_v6, %v10610_v30  ;;  %v2502_v6 = vadd.f32 %v10513_v46, %v10626_v40  ;;  %v13220_v46 = vld [vmem:[#allocation32_spill] sm:$0xff] }
 0x27c   : > { %13211 = vst [vmem:[#allocation23_spill] sm:$0xff] %v10697_v11  ;;  %v10703_v38 = vadd.f32 %v8746_v8, %v2490_v12  ;;  %v13216_v11 = vld [vmem:[#allocation49_spill] sm:$0xff]  ;;  %v10719_v8 = vpop.f32.mrf.mxu1 }
 0x27d   : > { %v2694_v61 = vpop.f32.mrf.mxu0  ;;  %v2494_v60 = vadd.f32 %v13216_v11, %v10586_v52  ;;  %v2495_v52 = vadd.f32 %v10453_v27, %v10600_v21 }
 0x27e   : > { %v10707_v15 = vadd.f32 %v2694_v61, %v2488_v57  ;;  %v2492_v57 = vadd.f32 %v13217_v3, %v10590_v1  ;;  %v2498_v1 = vadd.f32 %v10465_v51, %v10606_v23  ;;  %v2499_v51 = vadd.f32 %v10501_v33, %v10620_v31 }
 0x27f   : > { %v8749_v2 = vpop.f32.mrf.mxu0  ;;  %v2505_v33 = vadd.f32 %v10536_v63, %v10636_v44  ;;  %v2503_v44 = vadd.f32 %v10548_v13, %v10640_v62  ;;  %v2506_v13 = vadd.f32 %v10558_v54, %v10646_v14 }
 0x280   : > { %v10713_v45 = vadd.f32 %v8749_v2, %v2493_v24  ;;  %v10727_v24 = vpop.f32.mrf.mxu1 }
 0x281   : > { %v2707_v18 = vpop.f32.mrf.mxu0 }
 0x282   : > { %v10717_v12 = vadd.f32 %v2707_v18, %v2491_v56  ;;  %v10737_v56 = vpop.f32.mrf.mxu1 }
 0x283   : > { %v8750_v25 = vpop.f32.mrf.mxu0 }
 0x284   : > { %v10723_v61 = vadd.f32 %v8750_v25, %v2494_v60  ;;  %v10747_v21 = vpop.f32.mrf.mxu1 }
 0x285   : > { %v2710_v42 = vpop.f32.mrf.mxu0 }
 0x286   : > { %v10729_v2 = vadd.f32 %v2710_v42, %v2492_v57  ;;  %v13218_v57 = vld [vmem:[#allocation6_spill] sm:$0xff]  ;;  %v10757_v30 = vpop.f32.mrf.mxu1 }
 0x287   : > { %v8753_v26 = vpop.f32.mrf.mxu0  ;;  %v2501_v27 = vadd.f32 %v13218_v57, %v10616_v5  ;;  %v2500_v5 = vadd.f32 %v10526_v53, %v10630_v17  ;;  %v13221_v57 = vld [vmem:[#allocation5_spill] sm:$0xff]  ;;  %v13224_v17 = vld [vmem:[#allocation35_spill] sm:$0xff] }
 0x288   : > { %v10733_v11 = vadd.f32 %v8753_v26, %v2497_v43  ;;  %v10767_v31 = vpop.f32.mrf.mxu1 }
 0x289   : > { %v2723_v18 = vpop.f32.mrf.mxu0 }
 0x28a   : > { %v10739_v60 = vadd.f32 %v2723_v18, %v2495_v52 }
 0x28b   : > { %v8754_v25 = vpop.f32.mrf.mxu0 }
 0x28c   : > { %v10743_v20 = vadd.f32 %v8754_v25, %v2498_v1 }
 0x28d   : > { %v2726_v3 = vpop.f32.mrf.mxu0 }
 0x28e   : > { %v10749_v42 = vadd.f32 %v2726_v3, %v2496_v58  ;;  %v13219_v3 = vld [vmem:[#allocation4_spill] sm:$0xff] }
 0x28f   : > { %v8757_v43 = vpop.f32.mrf.mxu0  ;;  %v2477_v40 = vadd.f32 %v13220_v46, %v13219_v3  ;;  %v13227_v46 = vld [vmem:[#allocation38_spill] sm:$0xff] }
 0x290   : > { %v10753_v23 = vadd.f32 %v8757_v43, %v2501_v27  ;;  %v13222_v27 = vld [vmem:[#allocation33_spill] sm:$0xff] }
 0x291   : > { %v2739_v26 = vpop.f32.mrf.mxu0  ;;  %v2475_v43 = vadd.f32 %v13222_v27, %v13221_v57  ;;  %v2482_v57 = vadd.f32 %v13227_v46, %v10519_v59  ;;  %v2772_v62 = vadd.f32 %v10652_v22, %v2477_v40  ;;  %v13231_v59 = vld [vmem:[#allocation42_spill] sm:$0xff] }
 0x292   : > { %v10759_v52 = vadd.f32 %v2739_v26, %v2499_v51  ;;  %v13223_v51 = vld [vmem:[#allocation34_spill] sm:$0xff] }
 0x293   : > { %v8758_v18 = vpop.f32.mrf.mxu0  ;;  %v2478_v26 = vadd.f32 %v13223_v51, %v10494_v4  ;;  %v13228_v4 = vld [vmem:[#allocation39_spill] sm:$0xff]  ;;  %v13229_v51 = vld [vmem:[#allocation40_spill] sm:$0xff]  ;;  %v2777_v40 = vadd.f32 %v10670_v39, %v2482_v57 }
 0x294   : > { %v10763_v1 = vadd.f32 %v8758_v18, %v2502_v6  ;;  %v2476_v6 = vadd.f32 %v13224_v17, %v10499_v47  ;;  %v13225_v18 = vld [vmem:[#allocation36_spill] sm:$0xff]  ;;  %v2480_v27 = vadd.f32 %v13228_v4, %v10524_v49  ;;  %v2485_v47 = vadd.f32 %v13229_v51, %v10530_v10 }
 0x295   : > { %v2742_v25 = vpop.f32.mrf.mxu0  ;;  %v2481_v63 = vadd.f32 %v13225_v18, %v10506_v7  ;;  %v13230_v7 = vld [vmem:[#allocation41_spill] sm:$0xff]  ;;  %v2504_v49 = vadd.f32 %v10572_v37, %v10648_v48  ;;  %v2770_v10 = vadd.f32 %v10654_v19, %v2475_v43  ;;  %v13232_v37 = vld [vmem:[#allocation19_spill] sm:$0xff] }
 0x296   : > { %v10769_v58 = vadd.f32 %v2742_v25, %v2500_v5  ;;  %v13226_v25 = vld [vmem:[#allocation37_spill] sm:$0xff]  ;;  %v2483_v18 = vadd.f32 %v13230_v7, %v10534_v29  ;;  %v2771_v46 = vadd.f32 %v10660_v28, %v2476_v6  ;;  %v13233_v43 = vld [vmem:[#allocation7_spill] sm:$0xff] }
 0x297   : > { %v8761_v53 = vpop.f32.mrf.mxu0  ;;  %v2479_v3 = vadd.f32 %v13226_v25, %v10511_v34  ;;  %v2773_v25 = vadd.f32 %v10658_v16, %v2478_v26  ;;  %v2776_v54 = vadd.f32 %v10664_v32, %v2481_v63  ;;  %v3066_v16 = vadd.f32 %v13233_v43, %v2772_v62  ;;  %v13234_v26 = vld [vmem:[#allocation21_spill] sm:$0xff]  ;;  %v13235_v32 = vld [vmem:[#allocation8_spill] sm:$0xff]  ;;  %v13241_v62 = vld [vmem:[#allocation14_spill] sm:$0xff] }
 0x298   : > { %v10783_v5 = vadd.f32 %v8761_v53, %v2505_v33  ;;  %v10798_v33 = vpop.f32.mrf.mxu1  ;;  %v2486_v53 = vadd.f32 %v13231_v59, %v10540_v0  ;;  %v2775_v0 = vadd.f32 %v10672_v41, %v2480_v27  ;;  %v2778_v48 = vadd.f32 %v13232_v37, %v2483_v18  ;;  %v13236_v63 = vld [vmem:[#allocation9_spill] sm:$0xff]  ;;  %v10826_v41 = vld [vmem:[%s13095_s2] ss:$0 sm:$0xff]  ;;  %v13238_v27 = vld [vmem:[#allocation11_spill] sm:$0xff] }
 0x299   : > { %v2755_v17 = vpop.f32.mrf.mxu0  ;;  %v2774_v14 = vadd.f32 %v10666_v35, %v2479_v3  ;;  %v3064_v35 = vadd.f32 %v13235_v32, %v2770_v10  ;;  %v3067_v3 = vadd.f32 %v13236_v63, %v2773_v25  ;;  %v3070_v51 = vadd.f32 %v13238_v27, %v2776_v54  ;;  %v13240_v18 = vld [vmem:[#allocation13_spill] sm:$0xff]  ;;  %v13243_v10 = vld [vmem:[#allocation16_spill] sm:$0xff] }
 0x29a   : > { %v10800_v34 = vadd.f32 %v2755_v17, %v2503_v44  ;;  %v2780_v44 = vadd.f32 %v10676_v9, %v2485_v47  ;;  %v2781_v4 = vadd.f32 %v13234_v26, %v2486_v53  ;;  %v3020_v28 = vpop.f32.mrf.mxu1  ;;  %v13237_v9 = vld [vmem:[#allocation10_spill] sm:$0xff]  ;;  %v13239_v47 = vld [vmem:[#allocation12_spill] sm:$0xff]  ;;  %v10835_v59 = vadd.f32 %v13241_v62, %v2775_v0  ;;  %v13242_v53 = vld [vmem:[#allocation15_spill] sm:$0xff] }
 0x29b   : > { %v8762_v29 = vpop.f32.mrf.mxu0  ;;  %v3065_v57 = vadd.f32 %v13237_v9, %v2771_v46  ;;  %v3068_v17 = vadd.f32 %v13239_v47, %v2774_v14  ;;  %v10841_v25 = vadd.f32 %v13243_v10, %v2778_v48  ;;  %v13244_v46 = vld [vmem:[#allocation17_spill] sm:$0xff]  ;;  %v13245_v14 = vld [vmem:[#allocation18_spill] sm:$0xff]  ;;  %v13247_v48 = vld [vmem:[#allocation23_spill] sm:$0xff]  ;;  %v10880_v27 = vadd.f32 %v10737_v56, %v10723_v61 }
 0x29c   : > { %v10811_v22 = vadd.f32 %v8762_v29, %v2506_v13  ;;  %v10832_v13 = vadd.f32 %v13240_v18, %v2777_v40  ;;  %v10844_v54 = vadd.f32 %v13244_v46, %v2781_v4  ;;  %v10848_v37 = vadd.f32 %v13245_v14, %v10688_v50  ;;  %v8791_v40 = vpop.f32.mrf.mxu1  ;;  %v13249_v4 = vld [vmem:[#allocation51_spill] sm:$0xff]  ;;  %v3885_v46 = vld [vmem:[#allocation3 + $0x10] sm:$0xf] }
 0x29d   : > { %v2758_v19 = vpop.f32.mrf.mxu0  ;;  %v10861_v32 = vadd.f32 %v13249_v4, %v10703_v38  ;;  %v10865_v50 = vadd.f32 %v10709_v36, %v10707_v15  ;;  %v10876_v38 = vadd.f32 %v10727_v24, %v10717_v12  ;;  %v10884_v36 = vadd.f32 %v10747_v21, %v10729_v2 }
 0x29e   : > { %v10819_v6 = vadd.f32 %v2758_v19, %v2504_v49  ;;  %v10838_v49 = vadd.f32 %v13242_v53, %v2780_v44  ;;  %v13246_v44 = vld [vmem:[#allocation20_spill] sm:$0xff]  ;;  %v10888_v15 = vadd.f32 %v10757_v30, %v10733_v11  ;;  %v3033_v12 = vpop.f32.mrf.mxu1  ;;  %v10899_v2 = vadd.f32 %v10798_v33, %v10743_v20 }
 0x29f   : > { %v8801_v39 = vpop.f32.mrf.mxu0  ;;  %v10853_v43 = vadd.f32 %v13246_v44, %v10692_v55  ;;  %v10902_v11 = vadd.f32 %v3020_v28, %v10749_v42  ;;  %v10905_v21 = vadd.f32 %v8791_v40, %v10753_v23  ;;  %v10910_v18 = vadd.f32 %v3033_v12, %v10759_v52  ;;  %v3895_v42 = vld [vmem:[#allocation3 + $0x20] sm:$0xf] }
 0x2a0   : > { %v3360_v7 = vadd.f32 %v8801_v39, %v3066_v16  ;;  %v13248_v16 = vld [vmem:[#allocation22_spill] sm:$0xff] }
 0x2a1   : > { %v3231_v29 = vpop.f32.mrf.mxu0  ;;  %v10857_v26 = vadd.f32 %v13248_v16, %v13247_v48 }
 0x2a2   : > { %v3399_v0 = vadd.f32 %v10826_v41, %v3360_v7  ;;  %v3358_v19 = vadd.f32 %v3231_v29, %v3064_v35  ;;  %v10869_v35 = vadd.f32 %v10719_v8, %v10713_v45  ;;  %v10892_v8 = vadd.f32 %v10767_v31, %v10739_v60 }
 0x2a3   : > { %v8802_v63 = vpop.f32.mrf.mxu0 }
 0x2a4   : > { %3432 = vst.msk [vmem:[%s9277_s6 + $0x10] sm:$0xff] %vm3429_vm13, %v3399_v0  ;;  %v8298_v55 = vpack.c.bf16 %v3399_v0, %v3399_v0  ;;  %v3397_v39 = vadd.f32 %v10826_v41, %v3358_v19  ;;  %v3361_v9 = vadd.f32 %v8802_v63, %v3067_v3 }
 0x2a5   : > { %v3234_v45 = vpop.f32.mrf.mxu0 }
 0x2a6   : > { %v3579_v24 = vshrl.u32 %v8298_v55, 16  ;;  %3430 = vst.msk [vmem:[%s9277_s6] sm:$0xff] %vm3429_vm13, %v3397_v39  ;;  %v8296_v61 = vpack.c.bf16 %v3397_v39, %v3397_v39  ;;  %v3400_v56 = vadd.f32 %v10826_v41, %v3361_v9  ;;  %v3359_v30 = vadd.f32 %v3234_v45, %v3065_v57 }
 0x2a7   : > { %v8805_v60 = vpop.f32.mrf.mxu0  ;;  %v3582_v3 = vshll.u32 %v8298_v55, 16 }
 0x2a8   : > { %v3581_v31 = vrot.slane %v3579_v24, 7  ;;  %v3562_v47 = vshrl.u32 %v8296_v61, 16  ;;  %3433 = vst.msk [vmem:[%s9277_s6 + $0x18] sm:$0xff] %vm3429_vm13, %v3400_v56  ;;  %v8299_v7 = vpack.c.bf16 %v3400_v56, %v3400_v56  ;;  %v3565_v23 = vshll.u32 %v8296_v61, 16 }
 0x2a9   : > { %v3398_v33 = vadd.f32 %v10826_v41, %v3359_v30  ;;  %v3364_v28 = vadd.f32 %v8805_v60, %v3070_v51  ;;  %v3247_v57 = vpop.f32.mrf.mxu0  ;;  %v8792_v60 = vpop.f32.mrf.mxu1 }
 0x2aa   : > { %v3584_v62 = vor.u32 %v3582_v3, %v3581_v31  ;;  %v3585_v53 = vrot.slane %v3581_v31, 4  ;;  %v3564_v10 = vrot.slane %v3562_v47, 7  ;;  %v3587_v29 = vshrl.u32 %v8299_v7, 16 }
 0x2ab   : > { %v3590_v14 = vshll.u32 %v8299_v7, 16  ;;  %3431 = vst.msk [vmem:[%s9277_s6 + $0x8] sm:$0xff] %vm3429_vm13, %v3398_v33  ;;  %v8297_v52 = vpack.c.bf16 %v3398_v33, %v3398_v33  ;;  %v3403_v40 = vadd.f32 %v10826_v41, %v3364_v28  ;;  %v3362_v0 = vadd.f32 %v3247_v57, %v3068_v17  ;;  %v8806_v19 = vpop.f32.mrf.mxu0  ;;  %v3899_v17 = vld [vmem:[#allocation3 + $0x28] sm:$0x1]  ;;  %v3892_v28 = vld [vmem:[#allocation3 + $0x18] sm:$0x1] }
 0x2ac   : > { %v3896_v44 = vsel %vm10914_vm2, %v3584_v62, %v3895_v42  ;;  %v3567_v48 = vor.u32 %v3565_v23, %v3564_v10  ;;  %v3568_v51 = vrot.slane %v3564_v10, 4  ;;  %v3589_v4 = vrot.slane %v3587_v29, 7 }
 0x2ad   : > { %3897 = vst [vmem:[#allocation3 + $0x20] sm:$0xf] %v3896_v44  ;;  %v3570_v55 = vshrl.u32 %v8297_v52, 16  ;;  %v3573_v39 = vshll.u32 %v8297_v52, 16  ;;  %3436 = vst.msk [vmem:[%s9277_s6 + $0x30] sm:$0xff] %vm3429_vm13, %v3403_v40  ;;  %v8302_v9 = vpack.c.bf16 %v3403_v40, %v3403_v40  ;;  %v3401_v45 = vadd.f32 %v10826_v41, %v3362_v0  ;;  %v3250_v12 = vpop.f32.mrf.mxu0 }
 0x2ae   : > { %v3886_v24 = vsel %vm10914_vm2, %v3567_v48, %v3885_v46  ;;  %v3592_v61 = vor.u32 %v3590_v14, %v3589_v4  ;;  %v3594_v56 = vrot.slane %v3589_v4, 4  ;;  %v3365_v30 = vadd.f32 %v8806_v19, %v10832_v13 }
 0x2af   : > { %3887 = vst [vmem:[#allocation3 + $0x10] sm:$0xf] %v3886_v24  ;;  %v3572_v31 = vrot.slane %v3570_v55, 7  ;;  %v3613_v3 = vshrl.u32 %v8302_v9, 16  ;;  %v3616_v47 = vshll.u32 %v8302_v9, 16  ;;  %3434 = vst.msk [vmem:[%s9277_s6 + $0x20] sm:$0xff] %vm3429_vm13, %v3401_v45  ;;  %v8300_v7 = vpack.c.bf16 %v3401_v45, %v3401_v45  ;;  %v8809_v42 = vpop.f32.mrf.mxu0 }
 0x2b0   : > { %v3593_v23 = vsel %vm10926_vm3, %v3585_v53, %v3592_v61  ;;  %v3900_v33 = vsel %vm10932_vm4, %v3594_v56, %v3899_v17  ;;  %v3404_v57 = vadd.f32 %v10826_v41, %v3365_v30  ;;  %v3363_v13 = vadd.f32 %v3250_v12, %v10835_v59  ;;  %v3909_v53 = vld [vmem:[#allocation3 + $0x40] sm:$0xf]  ;;  %v3902_v45 = vld [vmem:[#allocation3 + $0x30] sm:$0xf] }
 0x2b1   : > { %3898 = vst.msk [vmem:[#allocation3 + $0x24] sm:$0xf] %vm3882_vm14, %v3593_v23  ;;  %3901 = vst [vmem:[#allocation3 + $0x28] sm:$0x1] %v3900_v33  ;;  %v3575_v62 = vor.u32 %v3573_v39, %v3572_v31  ;;  %v3577_v10 = vrot.slane %v3572_v31, 4  ;;  %v3615_v29 = vrot.slane %v3613_v3, 7  ;;  %v3263_v14 = vpop.f32.mrf.mxu0  ;;  %v10952_v52 = vadd.f32 %v8792_v60, %v10763_v1  ;;  %v10962_v1 = vpop.f32.mrf.mxu1 }
 0x2b2   : > { %v3596_v46 = vshrl.u32 %v8300_v7, 16  ;;  %3437 = vst.msk [vmem:[%s9277_s6 + $0x38] sm:$0xff] %vm3429_vm13, %v3404_v57  ;;  %v8303_v40 = vpack.c.bf16 %v3404_v57, %v3404_v57  ;;  %v3402_v0 = vadd.f32 %v10826_v41, %v3363_v13  ;;  %v3368_v59 = vadd.f32 %v8809_v42, %v10838_v49 }
 0x2b3   : > { %v3576_v19 = vsel %vm10926_vm3, %v3568_v51, %v3575_v62  ;;  %v3893_v44 = vsel %vm10932_vm4, %v3577_v10, %v3892_v28  ;;  %v3618_v48 = vor.u32 %v3616_v47, %v3615_v29  ;;  %v3599_v4 = vshll.u32 %v8300_v7, 16  ;;  %v8810_v17 = vpop.f32.mrf.mxu0  ;;  %v3913_v47 = vld [vmem:[#allocation3 + $0x48] sm:$0x1]  ;;  %v10976_v28 = vpop.f32.mrf.mxu1  ;;  %v3906_v10 = vld [vmem:[#allocation3 + $0x38] sm:$0x1] }
 0x2b4   : > { %3889 = vst.msk [vmem:[#allocation3 + $0x14] sm:$0xf] %vm3882_vm14, %v3576_v19  ;;  %3894 = vst [vmem:[#allocation3 + $0x18] sm:$0x1] %v3893_v44  ;;  %v3619_v55 = vrot.slane %v3615_v29, 4  ;;  %v3598_v39 = vrot.slane %v3596_v46, 7  ;;  %v8301_v49 = vpack.c.bf16 %v3402_v0, %v3402_v0  ;;  %v3407_v12 = vadd.f32 %v10826_v41, %v3368_v59 }
 0x2b5   : > { %v3621_v9 = vshrl.u32 %v8303_v40, 16  ;;  %3435 = vst.msk [vmem:[%s9277_s6 + $0x28] sm:$0xff] %vm3429_vm13, %v3402_v0  ;;  %v3910_v51 = vsel %vm10914_vm2, %v3618_v48, %v3909_v53  ;;  %v3366_v24 = vadd.f32 %v3263_v14, %v10841_v25  ;;  %v3369_v61 = vadd.f32 %v8810_v17, %v10844_v54  ;;  %v3266_v56 = vpop.f32.mrf.mxu0 }
 0x2b6   : > { %3911 = vst [vmem:[#allocation3 + $0x40] sm:$0xf] %v3910_v51  ;;  %v3601_v30 = vor.u32 %v3599_v4, %v3598_v39  ;;  %v3624_v31 = vshll.u32 %v8303_v40, 16  ;;  %v3604_v3 = vshrl.u32 %v8301_v49, 16  ;;  %v3607_v7 = vshll.u32 %v8301_v49, 16  ;;  %3440 = vst.msk [vmem:[%s9277_s6 + $0x50] sm:$0xff] %vm3429_vm13, %v3407_v12 }
 0x2b7   : > { %v3623_v60 = vrot.slane %v3621_v9, 7  ;;  %v8306_v42 = vpack.c.bf16 %v3407_v12, %v3407_v12  ;;  %v3405_v23 = vadd.f32 %v10826_v41, %v3366_v24  ;;  %v3408_v33 = vadd.f32 %v10826_v41, %v3369_v61  ;;  %v8813_v25 = vpop.f32.mrf.mxu0  ;;  %v3923_v4 = vld [vmem:[#allocation3 + $0x60] sm:$0xf] }
 0x2b8   : > { %v3903_v54 = vsel %vm10914_vm2, %v3601_v30, %v3902_v45  ;;  %v3606_v62 = vrot.slane %v3604_v3, 7  ;;  %v3602_v29 = vrot.slane %v3598_v39, 4  ;;  %v10984_v0 = vld [vmem:[#allocation3 + $0x20] sm:$0xff]   ;;  %v3049_v45 = vpop.f32.mrf.mxu1  ;;  %v3367_v61 = vadd.f32 %v3266_v56, %v10848_v37  ;;  %v4107_v30 = vld [vmem:[#allocation3 + $0x2c] sm:$0x1] }
 0x2b9   : > { %v3626_v57 = vor.u32 %v3624_v31, %v3623_v60  ;;  %v3628_v13 = vrot.slane %v3623_v60, 4  ;;  %3904 = vst [vmem:[#allocation3 + $0x30] sm:$0xf] %v3903_v54  ;;  %v3647_v46 = vshrl.u32 %v8306_v42, 16  ;;  %3438 = vst.msk [vmem:[%s9277_s6 + $0x40] sm:$0xff] %vm3429_vm13, %v3405_v23  ;;  %v8304_v14 = vpack.c.bf16 %v3405_v23, %v3405_v23  ;;  %v3279_v40 = vpop.f32.mrf.mxu0  ;;  %4680 = vrot.lane.b32.xlu0 %v10984_v0, %s9207_s16 }
 0x2ba   : > { %3441 = vst.msk [vmem:[%s9277_s6 + $0x58] sm:$0xff] %vm3429_vm13, %v3408_v33  ;;  %v8307_v53 = vpack.c.bf16 %v3408_v33, %v3408_v33  ;;  %v3609_v44 = vor.u32 %v3607_v7, %v3606_v62  ;;  %v3611_v48 = vrot.slane %v3606_v62, 4  ;;  %v3650_v39 = vshll.u32 %v8306_v42, 16  ;;  %v3916_v3 = vld [vmem:[#allocation3 + $0x50] sm:$0xf] }
 0x2bb   : > { %v3627_v59 = vsel %vm10926_vm3, %v3619_v55, %v3626_v57  ;;  %v3914_v19 = vsel %vm10932_vm4, %v3628_v13, %v3913_v47  ;;  %v3649_v17 = vrot.slane %v3647_v46, 7  ;;  %v3630_v9 = vshrl.u32 %v8304_v14, 16  ;;  %v8814_v51 = vpop.f32.mrf.mxu0  ;;  %v4106_v54 = vld [vmem:[#allocation3 + $0x28] sm:$0xf] }
 0x2bc   : > { %3912 = vst.msk [vmem:[#allocation3 + $0x44] sm:$0xf] %vm3882_vm14, %v3627_v59  ;;  %3915 = vst [vmem:[#allocation3 + $0x48] sm:$0x1] %v3914_v19  ;;  %v3655_v49 = vshrl.u32 %v8307_v53, 16  ;;  %v3610_v55 = vsel %vm10926_vm3, %v3602_v29, %v3609_v44  ;;  %v3907_v12 = vsel %vm10932_vm4, %v3611_v48, %v3906_v10  ;;  %v3633_v24 = vshll.u32 %v8304_v14, 16  ;;  %v8796_v14 = vpop.f32.mrf.mxu1 }
 0x2bd   : > { %3905 = vst.msk [vmem:[#allocation3 + $0x34] sm:$0xf] %vm3882_vm14, %v3610_v55  ;;  %3908 = vst [vmem:[#allocation3 + $0x38] sm:$0x1] %v3907_v12  ;;  %v3652_v60 = vor.u32 %v3650_v39, %v3649_v17  ;;  %v10999_v31 = vrot.slane %v3630_v9, 7  ;;  %v3658_v7 = vshll.u32 %v8307_v53, 16  ;;  %v3282_v42 = vpop.f32.mrf.mxu0  ;;  %v11003_v23 = vadd.f32 %v10962_v1, %v10769_v58 }
 0x2be   : > { %v3657_v47 = vrot.slane %v3655_v49, 7  ;;  %v3406_v33 = vadd.f32 %v10826_v41, %v3367_v61  ;;  %v3372_v37 = vadd.f32 %v8813_v25, %v10853_v43  ;;  %v3370_v56 = vadd.f32 %v3279_v40, %v10857_v26  ;;  %v3927_v29 = vld [vmem:[#allocation3 + $0x68] sm:$0x1] }
 0x2bf   : > { %v3653_v57 = vrot.slane %v3649_v17, 4  ;;  %v3924_v13 = vsel %vm10914_vm2, %v3652_v60, %v3923_v4  ;;  %v3635_v62 = vor.u32 %v3633_v24, %v10999_v31  ;;  %v8817_v46 = vpop.f32.mrf.mxu0  ;;  %v8062_v40 = vcombine.low %v4106_v54, %v4107_v30 }
 0x2c0   : > { %v3660_v10 = vor.u32 %v3658_v7, %v3657_v47  ;;  %3925 = vst [vmem:[#allocation3 + $0x60] sm:$0xf] %v3924_v13  ;;  %v3662_v58 = vrot.slane %v3657_v47, 4  ;;  %3439 = vst.msk [vmem:[%s9277_s6 + $0x48] sm:$0xff] %vm3429_vm13, %v3406_v33  ;;  %v8305_v43 = vpack.c.bf16 %v3406_v33, %v3406_v33  ;;  %v3411_v26 = vadd.f32 %v10826_v41, %v3372_v37 }
 0x2c1   : > { %v3409_v1 = vadd.f32 %v10826_v41, %v3370_v56  ;;  %v3917_v25 = vsel %vm10914_vm2, %v3635_v62, %v3916_v3  ;;  %v11019_v59 = vcombine.low %v4106_v54, %v4106_v54  ;;  %v3295_v19 = vpop.f32.mrf.mxu0  ;;  %v11023_v44 = vadd.f32 %v10976_v28, %v10783_v5  ;;  %v3920_v5 = vld [vmem:[#allocation3 + $0x58] sm:$0x1]  ;;  %4682 = vrot.lane.b32.xlu1 %v8062_v40, %s9207_s16  ;;  %v11043_v3 = vld [vmem:[#allocation3 + $0x10] sm:$0xff]  }
 0x2c2   : > { %v3661_v53 = vsel %vm10926_vm3, %v3653_v57, %v3660_v10  ;;  %3918 = vst [vmem:[#allocation3 + $0x50] sm:$0xf] %v3917_v25  ;;  %v3928_v48 = vsel %vm10932_vm4, %v3662_v58, %v3927_v29  ;;  %v3638_v4 = vshrl.u32 %v8305_v43, 16  ;;  %3444 = vst.msk [vmem:[%s9277_s6 + $0x70] sm:$0xff] %vm3429_vm13, %v3411_v26  ;;  %v8310_v17 = vpack.c.bf16 %v3411_v26, %v3411_v26  ;;  %v3930_v56 = vld [vmem:[#allocation3 + $0x70] sm:$0xf] }
 0x2c3   : > { %3926 = vst.msk [vmem:[#allocation3 + $0x64] sm:$0xf] %vm3882_vm14, %v3661_v53  ;;  %v11033_v39 = vadd.f32 %v3049_v45, %v10800_v34  ;;  %v11036_v9 = vadd.f32 %v8796_v14, %v10811_v22  ;;  %3929 = vst [vmem:[#allocation3 + $0x68] sm:$0x1] %v3928_v48  ;;  %v8308_v28 = vpack.c.bf16 %v3409_v1, %v3409_v1  ;;  %v8818_v55 = vpop.f32.mrf.mxu0  ;;  %v3636_v12 = vrot.slane %v10999_v31, 4 }
 0x2c4   : > { %3442 = vst.msk [vmem:[%s9277_s6 + $0x60] sm:$0xff] %vm3429_vm13, %v3409_v1  ;;  %v3373_v49 = vadd.f32 %v8814_v51, %v10861_v32  ;;  %v3640_v24 = vrot.slane %v3638_v4, 7  ;;  %v3641_v61 = vshll.u32 %v8305_v43, 16  ;;  %v3681_v30 = vshrl.u32 %v8310_v17, 16  ;;  %v3937_v51 = vld [vmem:[#allocation3 + $0x80] sm:$0xf] }
 0x2c5   : > { %v3684_v60 = vshll.u32 %v8310_v17, 16  ;;  %v3664_v34 = vshrl.u32 %v8308_v28, 16  ;;  %v5310_v45 = vshrl.u32 %v11019_v59, 16  ;;  %v11045_v47 = vpop.f32.mrf.mxu0  ;;  %v3667_v37 = vshll.u32 %v8308_v28, 16  ;;  %4676 = vrot.lane.b32.xlu1 %v11043_v3, %s9207_s16  ;;  %v4103_v58 = vld [vmem:[#allocation3 + $0x1c] sm:$0x1] }
 0x2c6   : > { %v3412_v22 = vadd.f32 %v10826_v41, %v3373_v49  ;;  %v3643_v7 = vor.u32 %v3641_v61, %v3640_v24  ;;  %v3645_v33 = vrot.slane %v3640_v24, 4  ;;  %v3683_v32 = vrot.slane %v3681_v30, 7  ;;  %v4102_v40 = vld [vmem:[#allocation3 + $0x18] sm:$0xf]  ;;  %v3941_v49 = vld [vmem:[#allocation3 + $0x88] sm:$0x1] }
 0x2c7   : > { %v11047_v31 = vrot.slane %v3664_v34, 7  ;;  %v3371_v57 = vadd.f32 %v3282_v42, %v10865_v50  ;;  %v3376_v13 = vadd.f32 %v8817_v46, %v10869_v35  ;;  %v5313_v14 = vshll.u32 %v11019_v59, 16  ;;  %v11062_v46 = vpop.f32.mrf.mxu0  ;;  %v4002_v17 = vld [vmem:[#allocation3 + $0x18] sm:$0xf]  ;;  %v9060_v59 = vld [vmem:[%s13096_s3 + $0x20] sm:$0xff]  }
 0x2c8   : > { %3445 = vst.msk [vmem:[%s9277_s6 + $0x78] sm:$0xff] %vm3429_vm13, %v3412_v22  ;;  %v8311_v54 = vpack.c.bf16 %v3412_v22, %v3412_v22  ;;  %v3644_v62 = vsel %vm10926_vm3, %v3636_v12, %v3643_v7  ;;  %v3921_v10 = vsel %vm10932_vm4, %v3645_v33, %v3920_v5  ;;  %v3686_v29 = vor.u32 %v3684_v60, %v3683_v32 }
 0x2c9   : > { %3919 = vst.msk [vmem:[#allocation3 + $0x54] sm:$0xf] %vm3882_vm14, %v3644_v62  ;;  %3922 = vst [vmem:[#allocation3 + $0x58] sm:$0x1] %v3921_v10  ;;  %v3687_v43 = vrot.slane %v3683_v32, 4  ;;  %v3669_v50 = vor.u32 %v3667_v37, %v11047_v31  ;;  %v3410_v1 = vadd.f32 %v10826_v41, %v3371_v57  ;;  %v3415_v25 = vadd.f32 %v10826_v41, %v3376_v13  ;;  %v11081_v7 = vpop.f32.mrf.mxu0 }
 0x2ca   : > { %v3689_v35 = vshrl.u32 %v8311_v54, 16  ;;  %v3692_v42 = vshll.u32 %v8311_v54, 16  ;;  %v3938_v26 = vsel %vm10914_vm2, %v3686_v29, %v3937_v51  ;;  %v5303_v53 = vshrl.u32 %v10984_v0, 16  ;;  %v3934_v10 = vld [vmem:[#allocation3 + $0x78] sm:$0x1] }
 0x2cb   : > { %3939 = vst [vmem:[#allocation3 + $0x80] sm:$0xf] %v3938_v26  ;;  %v3931_v48 = vsel %vm10914_vm2, %v3669_v50, %v3930_v56  ;;  %v5306_v5 = vshll.u32 %v10984_v0, 16  ;;  %v3374_v28 = vadd.f32 %v3295_v19, %v10876_v38  ;;  %3443 = vst.msk [vmem:[%s9277_s6 + $0x68] sm:$0xff] %vm3429_vm13, %v3410_v1  ;;  %v8309_v12 = vpack.c.bf16 %v3410_v1, %v3410_v1  ;;  %v3951_v29 = vld [vmem:[#allocation3 + $0xa0] sm:$0xf] }
 0x2cc   : > { %v3691_v4 = vrot.slane %v3689_v35, 7  ;;  %3932 = vst [vmem:[#allocation3 + $0x70] sm:$0xf] %v3931_v48  ;;  %3448 = vst.msk [vmem:[%s9277_s6 + $0x90] sm:$0xff] %vm3429_vm13, %v3415_v25  ;;  %v8314_v24 = vpack.c.bf16 %v3415_v25, %v3415_v25  ;;  %v11077_v61 = vrot.slane %v5303_v53, 7  ;;  %v3377_v30 = vadd.f32 %v8818_v55, %v10880_v27  ;;  %v8822_v35 = vpop.f32.mrf.mxu0 }
 0x2cd   : > { %v3413_v22 = vadd.f32 %v10826_v41, %v3374_v28  ;;  %v8060_v0 = vcombine.low %v4102_v40, %v4103_v58  ;;  %v11083_v38 = vcombine.low %v4002_v17, %v4002_v17  ;;  %v3672_v19 = vshrl.u32 %v8309_v12, 16  ;;  %v9006_v17 = vld [vmem:[#allocation3 + $0x20] sm:$0xff]  }
 0x2ce   : > { %v3694_v60 = vor.u32 %v3692_v42, %v3691_v4  ;;  %v3696_v34 = vrot.slane %v3691_v4, 4  ;;  %v3675_v33 = vshll.u32 %v8309_v12, 16  ;;  %v3715_v32 = vshrl.u32 %v8314_v24, 16 }
 0x2cf   : > { %v5308_v27 = vor.u32 %v5306_v5, %v11077_v61  ;;  %3446 = vst.msk [vmem:[%s9277_s6 + $0x80] sm:$0xff] %vm3429_vm13, %v3413_v22  ;;  %v8312_v55 = vpack.c.bf16 %v3413_v22, %v3413_v22  ;;  %4678 = vrot.lane.b32.xlu1 %v8060_v0, %s9207_s16  ;;  %v3674_v56 = vrot.slane %v3672_v19, 7  ;;  %v3718_v57 = vshll.u32 %v8314_v24, 16 }
 0x2d0   : > { %v3695_v51 = vsel %vm10926_vm3, %v3687_v43, %v3694_v60  ;;  %v3942_v37 = vsel %vm10932_vm4, %v3696_v34, %v3941_v49  ;;  %v11094_v54 = vrot.slane %v3715_v32, 7  ;;  %v3416_v13 = vadd.f32 %v10826_v41, %v3377_v30  ;;  %v3314_v60 = vpop.f32.mrf.mxu0 }
 0x2d1   : > { %3940 = vst.msk [vmem:[#allocation3 + $0x84] sm:$0xf] %vm3882_vm14, %v3695_v51  ;;  %3943 = vst [vmem:[#allocation3 + $0x88] sm:$0x1] %v3942_v37  ;;  %v3670_v62 = vrot.slane %v11047_v31, 4  ;;  %5640 = vrot.lane.b32.xlu0 %v5308_v27, %s9209_s19  ;;  %v3698_v58 = vshrl.u32 %v8312_v55, 16  ;;  %v11099_v43 = vcombine.low %v4102_v40, %v4102_v40  ;;  %v3375_v50 = vadd.f32 %v11045_v47, %v10884_v36 }
 0x2d2   : > { %v3677_v42 = vor.u32 %v3675_v33, %v3674_v56  ;;  %v3679_v26 = vrot.slane %v3674_v56, 4  ;;  %v3720_v1 = vor.u32 %v3718_v57, %v11094_v54  ;;  %3449 = vst.msk [vmem:[%s9277_s6 + $0x98] sm:$0xff] %vm3429_vm13, %v3416_v13  ;;  %v5288_v25 = vshrl.u32 %v11043_v3, 16  ;;  %v3944_v40 = vld [vmem:[#allocation3 + $0x90] sm:$0xf] }
 0x2d3   : > { %v3721_v31 = vrot.slane %v11094_v54, 4  ;;  %v11108_v53 = vrot.slane %v3698_v58, 7  ;;  %v3701_v48 = vshll.u32 %v8312_v55, 16  ;;  %v8315_v4 = vpack.c.bf16 %v3416_v13, %v3416_v13  ;;  %v4006_v33 = vld [vmem:[#allocation3 + $0x28] sm:$0xf] }
 0x2d4   : > { %v3678_v36 = vsel %vm10926_vm3, %v3670_v62, %v3677_v42  ;;  %v3935_v47 = vsel %vm10932_vm4, %v3679_v26, %v3934_v10  ;;  %v3952_v5 = vsel %vm10914_vm2, %v3720_v1, %v3951_v29  ;;  %v3414_v28 = vadd.f32 %v10826_v41, %v3375_v50  ;;  %v3955_v55 = vld [vmem:[#allocation3 + $0xa8] sm:$0x1]  ;;  %v11144_v1 = vld [vmem:[#allocation3 + $0x10] sm:$0xff]  }
 0x2d5   : > { %3933 = vst.msk [vmem:[#allocation3 + $0x74] sm:$0xf] %vm3882_vm14, %v3678_v36  ;;  %3936 = vst [vmem:[#allocation3 + $0x78] sm:$0x1] %v3935_v47  ;;  %v3703_v49 = vor.u32 %v3701_v48, %v11108_v53  ;;  %v3704_v12 = vrot.slane %v11108_v53, 4  ;;  %v3723_v24 = vshrl.u32 %v8315_v4, 16  ;;  %v3380_v19 = vadd.f32 %v11062_v46, %v10888_v15  ;;  %v11135_v46 = vpop.f32.mrf.mxu0 }
 0x2d6   : > { %3953 = vst [vmem:[#allocation3 + $0xa0] sm:$0xf] %v3952_v5  ;;  %v3726_v30 = vshll.u32 %v8315_v4, 16  ;;  %3447 = vst.msk [vmem:[%s9277_s6 + $0x88] sm:$0xff] %vm3429_vm13, %v3414_v28  ;;  %v8313_v34 = vpack.c.bf16 %v3414_v28, %v3414_v28  ;;  %v11122_v22 = vrot.slane %v5288_v25, 7  ;;  %v5291_v0 = vshll.u32 %v11043_v3, 16 }
 0x2d7   : > { %v3945_v32 = vsel %vm10914_vm2, %v3703_v49, %v3944_v40  ;;  %v3725_v51 = vrot.slane %v3723_v24, 7  ;;  %v4808_v37 = vshrl.u32 %v9006_v17, 16  ;;  %v4811_v27 = vshll.u32 %v9006_v17, 16  ;;  %v9052_v26 = vld [vmem:[%s13096_s3 + $0x38] sm:$0xff]   ;;  %v3948_v25 = vld [vmem:[#allocation3 + $0x98] sm:$0x1]  ;;  %v3327_v28 = vpop.f32.mrf.mxu0 }
 0x2d8   : > { %3946 = vst [vmem:[#allocation3 + $0x90] sm:$0xf] %v3945_v32  ;;  %v3706_v56 = vshrl.u32 %v8313_v34, 16  ;;  %v3709_v54 = vshll.u32 %v8313_v34, 16  ;;  %v5293_v57 = vor.u32 %v5291_v0, %v11122_v22  ;;  %v3419_v13 = vadd.f32 %v10826_v41, %v3380_v19  ;;  %v11153_v17 = vld [vmem:[#allocation3 + $0x40] sm:$0xff]   ;;  %8831 = vmatprep.subr.bf16.mxu1 %v9052_v26 }
 0x2d9   : > { %v3728_v3 = vor.u32 %v3726_v30, %v3725_v51  ;;  %v3730_v62 = vrot.slane %v3725_v51, 4  ;;  %v11131_v10 = vrot.slane %v4808_v37, 7  ;;  %v3378_v15 = vadd.f32 %v11081_v7, %v10892_v8  ;;  %8832 = vmatpush3.bf16.msra.mxu1 %v9052_v26  ;;  %v9055_v49 = vld [vmem:[%s13096_s3 + $0x30] sm:$0xff]  }
 0x2da   : > { %v3708_v29 = vrot.slane %v3706_v56, 7  ;;  %5636 = vrot.lane.b32.xlu0 %v5293_v57, %s9209_s19  ;;  %3452 = vst.msk [vmem:[%s9277_s6 + $0xb0] sm:$0xff] %vm3429_vm13, %v3419_v13  ;;  %v8318_v58 = vpack.c.bf16 %v3419_v13, %v3419_v13  ;;  %v3381_v50 = vadd.f32 %v8822_v35, %v10899_v2  ;;  %v8106_v42 = vcombine.low %v4006_v33, %v4006_v33  ;;  %v3965_v19 = vld [vmem:[#allocation3 + $0xc0] sm:$0xf]  ;;  %v8826_v13 = vpop.f32.mrf.mxu0 }
 0x2db   : > { %v3729_v8 = vsel %vm10926_vm3, %v3721_v31, %v3728_v3  ;;  %v3956_v7 = vsel %vm10932_vm4, %v3730_v62, %v3955_v55  ;;  %v4813_v53 = vor.u32 %v4811_v27, %v11131_v10  ;;  %v3417_v48 = vadd.f32 %v10826_v41, %v3378_v15  ;;  %8833 = vmatprep.subr.bf16.mxu1 %v9055_v49  ;;  %v9057_v3 = vld [vmem:[%s13096_s3 + $0x28] sm:$0xff]   ;;  %v3958_v15 = vld [vmem:[#allocation3 + $0xb0] sm:$0xf] }
 0x2dc   : > { %3954 = vst.msk [vmem:[#allocation3 + $0xa4] sm:$0xf] %vm3882_vm14, %v3729_v8  ;;  %3957 = vst [vmem:[#allocation3 + $0xa8] sm:$0x1] %v3956_v7  ;;  %v3711_v2 = vor.u32 %v3709_v54, %v3708_v29  ;;  %v3713_v35 = vrot.slane %v3708_v29, 4  ;;  %v3749_v40 = vshrl.u32 %v8318_v58, 16  ;;  %v3420_v36 = vadd.f32 %v10826_v41, %v3381_v50 }
 0x2dd   : > { %v3752_v4 = vshll.u32 %v8318_v58, 16  ;;  %5156 = vrot.lane.b32.xlu1 %v4813_v53, %s9208_s17  ;;  %3450 = vst.msk [vmem:[%s9277_s6 + $0xa0] sm:$0xff] %vm3429_vm13, %v3417_v48  ;;  %v8316_v31 = vpack.c.bf16 %v3417_v48, %v3417_v48  ;;  %v4815_v47 = vshrl.u32 %v8106_v42, 16  ;;  %v4818_v5 = vshll.u32 %v8106_v42, 16  ;;  %8834 = vmatpush3.bf16.msra.mxu1 %v9055_v49 }
 0x2de   : > { %v3712_v24 = vsel %vm10926_vm3, %v3704_v12, %v3711_v2  ;;  %v3949_v30 = vsel %vm10932_vm4, %v3713_v35, %v3948_v25  ;;  %v3751_v34 = vrot.slane %v3749_v40, 7  ;;  %4688 = vrot.lane.b32.xlu0 %v11153_v17, %s9207_s16  ;;  %v3379_v0 = vadd.f32 %v3314_v60, %v10902_v11  ;;  %3453 = vst.msk [vmem:[%s9277_s6 + $0xb8] sm:$0xff] %vm3429_vm13, %v3420_v36  ;;  %v3969_v25 = vld [vmem:[#allocation3 + $0xc8] sm:$0x1] }
 0x2df   : > { %3947 = vst.msk [vmem:[#allocation3 + $0x94] sm:$0xf] %vm3882_vm14, %v3712_v24  ;;  %3950 = vst [vmem:[#allocation3 + $0x98] sm:$0x1] %v3949_v30  ;;  %v3732_v33 = vshrl.u32 %v8316_v31, 16  ;;  %v3735_v32 = vshll.u32 %v8316_v31, 16  ;;  %v8319_v51 = vpack.c.bf16 %v3420_v36, %v3420_v36  ;;  %8835 = vmatprep.subr.bf16.mxu1 %v9057_v3  ;;  %v3384_v36 = vadd.f32 %v11135_v46, %v10905_v21 }
 0x2e0   : > { %v4817_v12 = vrot.slane %v4815_v47, 7  ;;  %v3754_v37 = vor.u32 %v3752_v4, %v3751_v34  ;;  %v3755_v27 = vrot.slane %v3751_v34, 4  ;;  %v3418_v55 = vadd.f32 %v10826_v41, %v3379_v0  ;;  %v3330_v47 = vpop.f32.mrf.mxu0  ;;  %v3962_v34 = vld [vmem:[#allocation3 + $0xb8] sm:$0x1] }
 0x2e1   : > { %v4793_v56 = vshrl.u32 %v11144_v1, 16  ;;  %v3734_v54 = vrot.slane %v3732_v33, 7  ;;  %v3757_v11 = vshrl.u32 %v8319_v51, 16  ;;  %v3760_v60 = vshll.u32 %v8319_v51, 16  ;;  %8836 = vmatpush3.bf16.msra.mxu1 %v9057_v3  ;;  %v11238_v3 = vld [vmem:[%s13095_s2] ss:$0 sm:$0xff] }
 0x2e2   : > { %v4820_v57 = vor.u32 %v4818_v5, %v4817_v12  ;;  %v3966_v62 = vsel %vm10914_vm2, %v3754_v37, %v3965_v19  ;;  %3451 = vst.msk [vmem:[%s9277_s6 + $0xa8] sm:$0xff] %vm3429_vm13, %v3418_v55  ;;  %v8317_v29 = vpack.c.bf16 %v3418_v55, %v3418_v55  ;;  %v4800_v50 = vshrl.u32 %v11083_v38, 16  ;;  %v8829_v12 = vpop.f32.mrf.mxu0  ;;  %8837 = vmatprep.subr.bf16.mxu1 %v9060_v59 }
 0x2e3   : > { %v11181_v58 = vrot.slane %v4793_v56, 7  ;;  %3967 = vst [vmem:[#allocation3 + $0xc0] sm:$0xf] %v3966_v62  ;;  %v3737_v42 = vor.u32 %v3735_v32, %v3734_v54  ;;  %v3738_v26 = vrot.slane %v3734_v54, 4  ;;  %v3759_v8 = vrot.slane %v3757_v11, 7  ;;  %v11227_v11 = vld [vmem:[#allocation3 + $0x30] sm:$0xff]  }
 0x2e4   : > { %v4821_v7 = vsel %vm3558_vm12, %v11131_v10, %v4820_v57  ;;  %v3740_v53 = vshrl.u32 %v8317_v29, 16  ;;  %v3743_v48 = vshll.u32 %v8317_v29, 16  ;;  %v4802_v2 = vrot.slane %v4800_v50, 7  ;;  %v3979_v57 = vld [vmem:[#allocation3 + $0xe0] sm:$0xf] }
 0x2e5   : > { %5158 = vrot.lane.b32.xlu1 %v4821_v7, %s9208_s17  ;;  %v4803_v35 = vshll.u32 %v11083_v38, 16  ;;  %v3959_v40 = vsel %vm10914_vm2, %v3737_v42, %v3958_v15  ;;  %v3762_v4 = vor.u32 %v3760_v60, %v3759_v8  ;;  %v3764_v31 = vrot.slane %v3759_v8, 4  ;;  %8838 = vmatpush3.bf16.msra.mxu1 %v9060_v59  ;;  %v4114_v8 = vld [vmem:[#allocation3 + $0x48] sm:$0xf]  ;;  %v4115_v7 = vld [vmem:[#allocation3 + $0x4c] sm:$0x1] }
 0x2e6   : > { %3960 = vst [vmem:[#allocation3 + $0xb0] sm:$0xf] %v3959_v40  ;;  %v3742_v10 = vrot.slane %v3740_v53, 7  ;;  %v5312_v49 = vrot.slane %v5310_v45, 7  ;;  %v3382_v24 = vadd.f32 %v3327_v28, %v10910_v18  ;;  %v3423_v21 = vadd.f32 %v10826_v41, %v3384_v36  ;;  %v9010_v28 = vld [vmem:[#allocation3 + $0x40] sm:$0xff]  }
 0x2e7   : > { %v4805_v5 = vor.u32 %v4803_v35, %v4802_v2  ;;  %v3763_v38 = vsel %vm10926_vm3, %v3755_v27, %v3762_v4  ;;  %v3970_v30 = vsel %vm10932_vm4, %v3764_v31, %v3969_v25  ;;  %v3385_v46 = vadd.f32 %v8826_v13, %v10952_v52  ;;  %v3343_v25 = vpop.f32.mrf.mxu0  ;;  %v9066_v35 = vld [vmem:[%s13096_s3 + $0x10] sm:$0xff]  }
 0x2e8   : > { %3968 = vst.msk [vmem:[#allocation3 + $0xc4] sm:$0xf] %vm3882_vm14, %v3763_v38  ;;  %3971 = vst [vmem:[#allocation3 + $0xc8] sm:$0x1] %v3970_v30  ;;  %v3745_v0 = vor.u32 %v3743_v48, %v3742_v10  ;;  %v3747_v19 = vrot.slane %v3742_v10, 4  ;;  %v5315_v18 = vor.u32 %v5313_v14, %v5312_v49  ;;  %v8322_v33 = vpack.c.bf16 %v3423_v21, %v3423_v21 }
 0x2e9   : > { %v4806_v45 = vsel %vm3558_vm12, %v11181_v58, %v4805_v5  ;;  %3456 = vst.msk [vmem:[%s9277_s6 + $0xd0] sm:$0xff] %vm3429_vm13, %v3423_v21  ;;  %v3421_v52 = vadd.f32 %v10826_v41, %v3382_v24  ;;  %v3424_v32 = vadd.f32 %v10826_v41, %v3385_v46  ;;  %v4796_v51 = vshll.u32 %v11144_v1, 16  ;;  %v3972_v10 = vld [vmem:[#allocation3 + $0xd0] sm:$0xf]  ;;  %v8830_v46 = vpop.f32.mrf.mxu0 }
 0x2ea   : > { %5154 = vrot.lane.b32.xlu0 %v4806_v45, %s9208_s17  ;;  %v3746_v14 = vsel %vm10926_vm3, %v3738_v26, %v3745_v0  ;;  %v3963_v37 = vsel %vm10932_vm4, %v3747_v19, %v3962_v34  ;;  %v5316_v27 = vsel %vm3558_vm12, %v11077_v61, %v5315_v18  ;;  %v3383_v55 = vadd.f32 %v3330_v47, %v11003_v23  ;;  %v9063_v23 = vld [vmem:[%s13096_s3 + $0x18] sm:$0xff]   ;;  %v3052_v0 = vpop.f32.mrf.mxu1 }
 0x2eb   : > { %v5295_v41 = vshrl.u32 %v11099_v43, 16  ;;  %3961 = vst.msk [vmem:[#allocation3 + $0xb4] sm:$0xf] %vm3882_vm14, %v3746_v14  ;;  %3964 = vst [vmem:[#allocation3 + $0xb8] sm:$0x1] %v3963_v37  ;;  %v3783_v56 = vshrl.u32 %v8322_v33, 16  ;;  %5642 = vrot.lane.b32.xlu1 %v5316_v27, %s9209_s19  ;;  %v8320_v54 = vpack.c.bf16 %v3421_v52, %v3421_v52  ;;  %v8323_v60 = vpack.c.bf16 %v3424_v32, %v3424_v32 }
 0x2ec   : > { %3454 = vst.msk [vmem:[%s9277_s6 + $0xc0] sm:$0xff] %vm3429_vm13, %v3421_v52  ;;  %3457 = vst.msk [vmem:[%s9277_s6 + $0xd8] sm:$0xff] %vm3429_vm13, %v3424_v32  ;;  %v3786_v61 = vshll.u32 %v8322_v33, 16  ;;  %v4798_v13 = vor.u32 %v4796_v51, %v11181_v58  ;;  %v3422_v62 = vadd.f32 %v11238_v3, %v3383_v55  ;;  %v4838_v15 = vshrl.u32 %v9010_v28, 16  ;;  %8839 = vmatprep.subr.bf16.mxu1 %v9063_v23  ;;  %v3983_v34 = vld [vmem:[#allocation3 + $0xe8] sm:$0x1] }
 0x2ed   : > { %v3785_v29 = vrot.slane %v3783_v56, 7  ;;  %v3766_v50 = vshrl.u32 %v8320_v54, 16  ;;  %v3791_v42 = vshrl.u32 %v8323_v60, 16  ;;  %v4841_v26 = vshll.u32 %v9010_v28, 16  ;;  %8840 = vmatpush3.bf16.msra.mxu1 %v9063_v23  ;;  %v3976_v51 = vld [vmem:[#allocation3 + $0xd8] sm:$0x1] }
 0x2ee   : > { %4684 = vrot.lane.b32.xlu0 %v11227_v11, %s9207_s16  ;;  %v3769_v58 = vshll.u32 %v8320_v54, 16  ;;  %3455 = vst.msk [vmem:[%s9277_s6 + $0xc8] sm:$0xff] %vm3429_vm13, %v3422_v62  ;;  %v8321_v53 = vpack.c.bf16 %v3422_v62, %v3422_v62  ;;  %v11245_v48 = vrot.slane %v4838_v15, 7  ;;  %v3388_v2 = vadd.f32 %v8829_v12, %v11023_v44  ;;  %8841 = vmatprep.subr.bf16.mxu1 %v9066_v35  ;;  %v11278_v62 = vld [vmem:[#allocation3 + $0x30] sm:$0xff]  }
 0x2ef   : > { %v3788_v40 = vor.u32 %v3786_v61, %v3785_v29  ;;  %v3768_v4 = vrot.slane %v3766_v50, 7  ;;  %v3793_v31 = vrot.slane %v3791_v42, 7  ;;  %v3794_v36 = vshll.u32 %v8323_v60, 16  ;;  %5152 = vrot.lane.b32.xlu1 %v4798_v13, %s9208_s17  ;;  %v3346_v60 = vpop.f32.mrf.mxu0 }
 0x2f0   : > { %v3789_v47 = vrot.slane %v3785_v29, 4  ;;  %v3774_v5 = vshrl.u32 %v8321_v53, 16  ;;  %v4843_v49 = vor.u32 %v4841_v26, %v11245_v48  ;;  %v3427_v24 = vadd.f32 %v11238_v3, %v3388_v2 }
 0x2f1   : > { %v3980_v44 = vsel %vm10914_vm2, %v3788_v40, %v3979_v57  ;;  %v3771_v38 = vor.u32 %v3769_v58, %v3768_v4  ;;  %v3796_v30 = vor.u32 %v3794_v36, %v3793_v31  ;;  %v3777_v21 = vshll.u32 %v8321_v53, 16  ;;  %8842 = vmatpush3.bf16.msra.mxu1 %v9066_v35  ;;  %v4111_v53 = vld [vmem:[#allocation3 + $0x3c] sm:$0x1] }
 0x2f2   : > { %3981 = vst [vmem:[#allocation3 + $0xe0] sm:$0xf] %v3980_v44  ;;  %v3798_v19 = vrot.slane %v3793_v31, 4  ;;  %v3776_v45 = vrot.slane %v3774_v5, 7  ;;  %5164 = vrot.lane.b32.xlu0 %v4843_v49, %s9208_s17  ;;  %3460 = vst.msk [vmem:[%s9277_s6 + $0xf0] sm:$0xff] %vm3429_vm13, %v3427_v24  ;;  %v8326_v18 = vpack.c.bf16 %v3427_v24, %v3427_v24  ;;  %v8066_v28 = vcombine.low %v4114_v8, %v4115_v7 }
 0x2f3   : > { %v3772_v33 = vrot.slane %v3768_v4, 4  ;;  %v3973_v52 = vsel %vm10914_vm2, %v3771_v38, %v3972_v10  ;;  %v3797_v32 = vsel %vm10926_vm3, %v3789_v47, %v3796_v30  ;;  %v3386_v12 = vadd.f32 %v3343_v25, %v11033_v39  ;;  %v4110_v31 = vld [vmem:[#allocation3 + $0x38] sm:$0xf]  ;;  %v11305_v49 = vld [vmem:[#allocation3 + $0x48] sm:$0xf] }
 0x2f4   : > { %3974 = vst [vmem:[#allocation3 + $0xd0] sm:$0xf] %v3973_v52  ;;  %3982 = vst.msk [vmem:[#allocation3 + $0xe4] sm:$0xf] %vm3882_vm14, %v3797_v32  ;;  %v3984_v59 = vsel %vm10932_vm4, %v3798_v19, %v3983_v34  ;;  %v3779_v14 = vor.u32 %v3777_v21, %v3776_v45  ;;  %v3781_v37 = vrot.slane %v3776_v45, 4  ;;  %v3817_v27 = vshrl.u32 %v8326_v18, 16  ;;  %4690 = vrot.lane.b32.xlu1 %v8066_v28, %s9207_s16 }
 0x2f5   : > { %v3093_v55 = vadd.f32 %v3052_v0, %v10819_v6  ;;  %v5298_v56 = vshll.u32 %v11099_v43, 16  ;;  %3985 = vst [vmem:[#allocation3 + $0xe8] sm:$0x1] %v3984_v59  ;;  %v3820_v54 = vshll.u32 %v8326_v18, 16  ;;  %v3425_v39 = vadd.f32 %v11238_v3, %v3386_v12  ;;  %v3993_v6 = vld [vmem:[#allocation3 + $0x100] sm:$0xf]  ;;  %v11327_v59 = vpop.permute.xlu0 %4672 }
 0x2f6   : > { %v3780_v23 = vsel %vm10926_vm3, %v3772_v33, %v3779_v14  ;;  %v3977_v61 = vsel %vm10932_vm4, %v3781_v37, %v3976_v51  ;;  %v11275_v57 = vrot.slane %v3817_v27, 7  ;;  %v5333_v13 = vshrl.u32 %v11153_v17, 16  ;;  %v11322_v28 = vld [vmem:[#allocation3 + $0x38] sm:$0xf]  ;;  %v3997_v51 = vld [vmem:[#allocation3 + $0x108] sm:$0x1] }
 0x2f7   : > { %3975 = vst.msk [vmem:[#allocation3 + $0xd4] sm:$0xf] %vm3882_vm14, %v3780_v23  ;;  %3978 = vst [vmem:[#allocation3 + $0xd8] sm:$0x1] %v3977_v61  ;;  %v11281_v15 = vcombine.low %v4114_v8, %v4114_v8  ;;  %v8324_v29 = vpack.c.bf16 %v3425_v39, %v3425_v39  ;;  %v3389_v50 = vadd.f32 %v8830_v46, %v11036_v9  ;;  %v5297_v42 = vrot.slane %v5295_v41, 7  ;;  %v9070_v8 = vld [vmem:[%s13096_s3 + $0x8] sm:$0xff]  }
 0x2f8   : > { %3458 = vst.msk [vmem:[%s9277_s6 + $0xe0] sm:$0xff] %vm3429_vm13, %v3425_v39  ;;  %v3822_v26 = vor.u32 %v3820_v54, %v11275_v57  ;;  %v11289_v7 = vrot.slane %v5333_v13, 7  ;;  %v5336_v25 = vshll.u32 %v11153_v17, 16  ;;  %v3387_v58 = vadd.f32 %v3346_v60, %v3093_v55  ;;  %v3986_v41 = vld [vmem:[#allocation3 + $0xf0] sm:$0xf]  ;;  %8843 = vmatprep.subr.bf16.mxu1 %v9070_v8 }
 0x2f9   : > { %v3800_v2 = vshrl.u32 %v8324_v29, 16  ;;  %v3428_v35 = vadd.f32 %v11238_v3, %v3389_v50  ;;  %v5300_v9 = vor.u32 %v5298_v56, %v5297_v42  ;;  %v4823_v4 = vshrl.u32 %v11278_v62, 16  ;;  %8844 = vmatpush3.bf16.msra.mxu1 %v9070_v8  ;;  %v9072_v46 = vld [vmem:[%s13096_s3] sm:$0xff]   ;;  %v3990_v27 = vld [vmem:[#allocation3 + $0xf8] sm:$0x1] }
 0x2fa   : > { %v3994_v43 = vsel %vm10914_vm2, %v3822_v26, %v3993_v6  ;;  %v5338_v40 = vor.u32 %v5336_v25, %v11289_v7  ;;  %v3426_v17 = vadd.f32 %v11238_v3, %v3387_v58  ;;  %v3803_v47 = vshll.u32 %v8324_v29, 16  ;;  %8845 = vmatprep.subr.bf16.mxu1 %v9072_v46 }
 0x2fb   : > { %3995 = vst [vmem:[#allocation3 + $0x100] sm:$0xf] %v3994_v43  ;;  %v3802_v36 = vrot.slane %v3800_v2, 7  ;;  %3461 = vst.msk [vmem:[%s9277_s6 + $0xf8] sm:$0xff] %vm3429_vm13, %v3428_v35  ;;  %v8327_v10 = vpack.c.bf16 %v3428_v35, %v3428_v35  ;;  %v5301_v5 = vsel %vm3558_vm12, %v11122_v22, %v5300_v9  ;;  %v5340_v24 = vshrl.u32 %v11281_v15, 16  ;;  %v9017_v43 = vld [vmem:[#allocation3 + $0x60] sm:$0xff]  }
 0x2fc   : > { %5648 = vrot.lane.b32.xlu0 %v5338_v40, %s9209_s19  ;;  %5638 = vrot.lane.b32.xlu1 %v5301_v5, %s9209_s19  ;;  %3459 = vst.msk [vmem:[%s9277_s6 + $0xe8] sm:$0xff] %vm3429_vm13, %v3426_v17  ;;  %v8325_v3 = vpack.c.bf16 %v3426_v17, %v3426_v17  ;;  %v11312_v44 = vrot.slane %v4823_v4, 7  ;;  %v4826_v38 = vshll.u32 %v11278_v62, 16  ;;  %v3823_v30 = vrot.slane %v11275_v57, 4  ;;  %v11358_v17 = vpop.permute.xlu1 %5216 }
 0x2fd   : > { %v3805_v34 = vor.u32 %v3803_v47, %v3802_v36  ;;  %v3825_v22 = vshrl.u32 %v8327_v10, 16  ;;  %v8064_v21 = vcombine.low %v4110_v31, %v4111_v53  ;;  %v3806_v0 = vrot.slane %v3802_v36, 4  ;;  %8846 = vmatpush3.bf16.msra.mxu1 %v9072_v46  ;;  %v11350_v53 = vpop.permute.xlu0 %4674  ;;  %13256 = vst [vmem:[#allocation24_spill] sm:$0xff] %v11358_v17  ;;  %v11575_v17 = vld [vmem:[#allocation3 + $0x2c] sm:$0x1] }
 0x2fe   : > { %v3808_v19 = vshrl.u32 %v8325_v3, 16  ;;  %v4828_v45 = vor.u32 %v4826_v38, %v11312_v44  ;;  %v11320_v18 = vcombine.low %v4110_v31, %v4110_v31  ;;  %v3828_v32 = vshll.u32 %v8327_v10, 16  ;;  %v9021_v31 = vld [vmem:[#allocation3 + $0x50] sm:$0xff]  }
 0x2ff   : > { %v3987_v33 = vsel %vm10914_vm2, %v3805_v34, %v3986_v41  ;;  %v3827_v52 = vrot.slane %v3825_v22, 7  ;;  %v5318_v12 = vshrl.u32 %v11227_v11, 16  ;;  %v3811_v37 = vshll.u32 %v8325_v3, 16  ;;  %v11370_v3 = vld [vmem:[#allocation3 + $0x58] sm:$0xf] }
 0x300   : > { %3988 = vst [vmem:[#allocation3 + $0xf0] sm:$0xf] %v3987_v33  ;;  %v3810_v14 = vrot.slane %v3808_v19, 7  ;;  %5160 = vrot.lane.b32.xlu0 %v4828_v45, %s9208_s17  ;;  %4686 = vrot.lane.b32.xlu1 %v8064_v21, %s9207_s16  ;;  %v5321_v55 = vshll.u32 %v11227_v11, 16  ;;  %v8108_v20 = vcombine.low %v11305_v49, %v11305_v49  ;;  %v8107_v60 = vcombine.low %v11322_v28, %v11322_v28  ;;  %v11375_v21 = vpop.permute.xlu1 %5634 }
 0x301   : > { %v3830_v56 = vor.u32 %v3828_v32, %v3827_v52  ;;  %v3832_v54 = vrot.slane %v3827_v52, 4  ;;  %v11334_v39 = vrot.slane %v5318_v12, 7  ;;  %v5342_v13 = vrot.slane %v5340_v24, 7  ;;  %v11360_v4 = vpop.permute.xlu0 %5632  ;;  %v11368_v24 = vld [vmem:[#allocation3 + $0x68] sm:$0xf]  ;;  %13257 = vst [vmem:[#allocation25_spill] sm:$0xff] %v11370_v3 }
 0x302   : > { %v3813_v23 = vor.u32 %v3811_v37, %v3810_v14  ;;  %v3815_v61 = vrot.slane %v3810_v14, 4  ;;  %v4845_v57 = vshrl.u32 %v8108_v20, 16  ;;  %v4848_v50 = vshll.u32 %v8108_v20, 16  ;;  %v4118_v12 = vld [vmem:[#allocation3 + $0x58] sm:$0xf] }
 0x303   : > { %v3831_v6 = vsel %vm10926_vm3, %v3823_v30, %v3830_v56  ;;  %v3998_v11 = vsel %vm10932_vm4, %v3832_v54, %v3997_v51  ;;  %v5323_v29 = vor.u32 %v5321_v55, %v11334_v39  ;;  %v4830_v58 = vshrl.u32 %v8107_v60, 16  ;;  %v4119_v14 = vld [vmem:[#allocation3 + $0x5c] sm:$0x1]  ;;  %v11394_v56 = vld [vmem:[#allocation3 + $0x50] sm:$0xff]  }
 0x304   : > { %3996 = vst.msk [vmem:[#allocation3 + $0x104] sm:$0xf] %vm3882_vm14, %v3831_v6  ;;  %3999 = vst [vmem:[#allocation3 + $0x108] sm:$0x1] %v3998_v11  ;;  %v3814_v42 = vsel %vm10926_vm3, %v3806_v0, %v3813_v23  ;;  %v3991_v26 = vsel %vm10932_vm4, %v3815_v61, %v3990_v27  ;;  %v4847_v25 = vrot.slane %v4845_v57, 7  ;;  %v5343_v8 = vshll.u32 %v11281_v15, 16  ;;  %v11392_v20 = vpop.permute.xlu1 %5220 }
 0x305   : > { %3989 = vst.msk [vmem:[#allocation3 + $0xf4] sm:$0xf] %vm3882_vm14, %v3814_v42  ;;  %3992 = vst [vmem:[#allocation3 + $0xf8] sm:$0x1] %v3991_v26  ;;  %5644 = vrot.lane.b32.xlu0 %v5323_v29, %s9209_s19  ;;  %v4832_v35 = vrot.slane %v4830_v58, 7  ;;  %v4833_v9 = vshll.u32 %v8107_v60, 16  ;;  %v8110_v46 = vcombine.low %v11368_v24, %v11368_v24  ;;  %v8109_v0 = vcombine.low %v11370_v3, %v11370_v3  ;;  %v11381_v19 = vpop.permute.xlu0 %4740 }
 0x306   : > { %v4850_v2 = vor.u32 %v4848_v50, %v4847_v25  ;;  %v5325_v16 = vshrl.u32 %v11320_v18, 16  ;;  %v5345_v41 = vor.u32 %v5343_v8, %v5342_v13  ;;  %v4123_v15 = vld [vmem:[#allocation3 + $0x6c] sm:$0x1]  ;;  %v5363_v36 = vshrl.u32 %v9017_v43, 16  ;;  %v9025_v26 = vld [vmem:[#allocation3 + $0x80] sm:$0xff]  }
 0x307   : > { %v4835_v40 = vor.u32 %v4833_v9, %v4832_v35  ;;  %v5328_v38 = vshll.u32 %v11320_v18, 16  ;;  %v5348_v22 = vshrl.u32 %v9021_v31, 16  ;;  %v5366_v45 = vshll.u32 %v9017_v43, 16  ;;  %v9030_v25 = vld [vmem:[#allocation3 + $0x80] sm:$0xff]  }
 0x308   : > { %v4851_v63 = vsel %vm3558_vm12, %v11245_v48, %v4850_v2  ;;  %v5346_v47 = vsel %vm3558_vm12, %v11289_v7, %v5345_v41  ;;  %v4122_v48 = vld [vmem:[#allocation3 + $0x68] sm:$0xf]  ;;  %v5327_v5 = vrot.slane %v5325_v16, 7  ;;  %v11373_v34 = vrot.slane %v5363_v36, 7  ;;  %v9024_v7 = vld [vmem:[#allocation3 + $0x60] sm:$0xff]   ;;  %v11402_v58 = vpop.permute.xlu1 %4742 }
 0x309   : > { %5166 = vrot.lane.b32.xlu1 %v4851_v63, %s9208_s17  ;;  %4696 = vrot.lane.b32.xlu0 %v9017_v43, %s9207_s16  ;;  %v4836_v10 = vsel %vm3558_vm12, %v11312_v44, %v4835_v40  ;;  %v8070_v30 = vcombine.low %v4122_v48, %v4123_v15  ;;  %v11386_v33 = vrot.slane %v5348_v22, 7  ;;  %v4868_v52 = vshrl.u32 %v9024_v7, 16  ;;  %v11396_v54 = vpop.permute.xlu0 %5218 }
 0x30a   : > { %v5330_v44 = vor.u32 %v5328_v38, %v5327_v5  ;;  %v5368_v18 = vor.u32 %v5366_v45, %v11373_v34  ;;  %v8135_v32 = vcombine.low %v4122_v48, %v4122_v48  ;;  %v4875_v37 = vshrl.u32 %v8110_v46, 16  ;;  %13258 = vst [vmem:[#allocation26_spill] sm:$0xff] %v11396_v54  ;;  %v9033_v38 = vld [vmem:[#allocation3 + $0x70] sm:$0xff]  }
 0x30b   : > { %v4860_v27 = vshrl.u32 %v8109_v0, 16  ;;  %v5351_v55 = vshll.u32 %v9021_v31, 16  ;;  %v8068_v60 = vcombine.low %v4118_v12, %v4119_v14  ;;  %v4870_v61 = vrot.slane %v4868_v52, 7 }
 0x30c   : > { %v5331_v51 = vsel %vm3558_vm12, %v11334_v39, %v5330_v44  ;;  %v5370_v39 = vshrl.u32 %v8135_v32, 16  ;;  %v4877_v57 = vrot.slane %v4875_v37, 7  ;;  %v4871_v6 = vshll.u32 %v9024_v7, 16  ;;  %v11412_v36 = vpop.permute.xlu1 %5222 }
 0x30d   : > { %5650 = vrot.lane.b32.xlu1 %v5346_v47, %s9209_s19  ;;  %5162 = vrot.lane.b32.xlu0 %v4836_v10, %s9208_s17  ;;  %v5353_v23 = vor.u32 %v5351_v55, %v11386_v33  ;;  %v4862_v13 = vrot.slane %v4860_v27, 7  ;;  %v4878_v11 = vshll.u32 %v8110_v46, 16  ;;  %v4853_v29 = vshrl.u32 %v11394_v56, 16  ;;  %v11404_v9 = vpop.permute.xlu0 %5700  ;;  %v9029_v10 = vld [vmem:[#allocation3 + $0x70] sm:$0xff]   ;;  %v11423_v46 = vld [vmem:[#allocation3 + $0x88] sm:$0xf] }
 0x30e   : > { %v4863_v50 = vshll.u32 %v8109_v0, 16  ;;  %v4873_v42 = vor.u32 %v4871_v6, %v4870_v61  ;;  %v5372_v35 = vrot.slane %v5370_v39, 7  ;;  %v5373_v43 = vshll.u32 %v8135_v32, 16  ;;  %13260 = vst [vmem:[#allocation28_spill] sm:$0xff] %v11423_v46  ;;  %v11436_v55 = vld [vmem:[#allocation3 + $0x78] sm:$0xf] }
 0x30f   : > { %v4880_v8 = vor.u32 %v4878_v11, %v4877_v57  ;;  %v4855_v16 = vrot.slane %v4853_v29, 7  ;;  %v4898_v63 = vshrl.u32 %v9030_v25, 16  ;;  %v8134_v41 = vcombine.low %v4118_v12, %v4118_v12  ;;  %v4131_v12 = vld [vmem:[#allocation3 + $0x8c] sm:$0x1]  ;;  %13263 = vst [vmem:[#allocation31_spill] sm:$0xff] %v11436_v55 }
 0x310   : > { %v4865_v2 = vor.u32 %v4863_v50, %v4862_v13  ;;  %v5393_v5 = vshrl.u32 %v9025_v26, 16  ;;  %v4856_v7 = vshll.u32 %v11394_v56, 16  ;;  %v4901_v44 = vshll.u32 %v9030_v25, 16  ;;  %v11428_v32 = vpop.permute.xlu1 %5702 }
 0x311   : > { %4698 = vrot.lane.b32.xlu1 %v8070_v30, %s9207_s16  ;;  %4692 = vrot.lane.b32.xlu0 %v9021_v31, %s9207_s16  ;;  %v4881_v40 = vsel %vm3558_vm12, %v4870_v61, %v4880_v8  ;;  %v5375_v31 = vor.u32 %v5373_v43, %v5372_v35  ;;  %v11414_v47 = vpop.permute.xlu0 %4744  ;;  %v11416_v48 = vrot.slane %v4898_v63, 7  ;;  %v5355_v30 = vshrl.u32 %v8134_v41, 16  ;;  %13261 = vst [vmem:[#allocation29_spill] sm:$0xff] %v11428_v32  ;;  %v4127_v8 = vld [vmem:[#allocation3 + $0x7c] sm:$0x1] }
 0x312   : > { %v4866_v15 = vsel %vm3558_vm12, %v4855_v16, %v4865_v2  ;;  %13259 = vst [vmem:[#allocation27_spill] sm:$0xff] %v11414_v47  ;;  %v4858_v0 = vor.u32 %v4856_v7, %v4855_v16  ;;  %v4883_v52 = vshrl.u32 %v9033_v38, 16  ;;  %v8112_v37 = vcombine.low %v11423_v46, %v11423_v46  ;;  %v4126_v16 = vld [vmem:[#allocation3 + $0x78] sm:$0xf]  ;;  %v11679_v47 = vld [vmem:[#allocation3 + $0xec] sm:$0x1] }
 0x313   : > { %v5376_v22 = vsel %vm3558_vm12, %v11373_v34, %v5375_v31  ;;  %v4903_v45 = vor.u32 %v4901_v44, %v11416_v48  ;;  %v5357_v34 = vrot.slane %v5355_v30, 7  ;;  %v5396_v27 = vshll.u32 %v9025_v26, 16  ;;  %v11818_v46 = vld [vmem:[#allocation3 + $0x6c] sm:$0x1] }
 0x314   : > { %v11439_v39 = vrot.slane %v4883_v52, 7  ;;  %v5378_v57 = vshrl.u32 %v9029_v10, 16  ;;  %v11441_v13 = vpop.permute.xlu1 %4746  ;;  %v4905_v29 = vshrl.u32 %v8112_v37, 16  ;;  %v8111_v50 = vcombine.low %v11436_v55, %v11436_v55  ;;  %13280 = vst [vmem:[#allocation34_spill] sm:$0xff] %v11818_v46 }
 0x315   : > { %5646 = vrot.lane.b32.xlu1 %v5331_v51, %s9209_s19  ;;  %5656 = vrot.lane.b32.xlu0 %v5368_v18, %s9209_s19  ;;  %v11426_v18 = vrot.slane %v5393_v5, 7  ;;  %v4130_v51 = vld [vmem:[#allocation3 + $0x88] sm:$0xf]  ;;  %v11430_v14 = vpop.permute.xlu0 %5224  ;;  %13264 = vst [vmem:[#allocation43_spill] sm:$0xff] %v11441_v13  ;;  %v4908_v31 = vshll.u32 %v8112_v37, 16  ;;  %v8072_v5 = vcombine.low %v4126_v16, %v4127_v8  ;;  %v11459_v30 = vcombine.low %v4126_v16, %v4126_v16 }
 0x316   : > { %13262 = vst [vmem:[#allocation30_spill] sm:$0xff] %v11430_v14  ;;  %v8137_v6 = vcombine.low %v4130_v51, %v4130_v51  ;;  %v11450_v2 = vrot.slane %v5378_v57, 7  ;;  %v4907_v63 = vrot.slane %v4905_v29, 7  ;;  %v4038_v8 = vld [vmem:[#allocation3 + $0xa8] sm:$0xf] }
 0x317   : > { %v5398_v61 = vor.u32 %v5396_v27, %v11426_v18  ;;  %v5385_v37 = vshrl.u32 %v11459_v30, 16 }
 0x318   : > { %v5400_v35 = vshrl.u32 %v8137_v6, 16  ;;  %v5403_v52 = vshll.u32 %v8137_v6, 16  ;;  %v4138_v6 = vld [vmem:[#allocation3 + $0xa8] sm:$0xf] }
 0x319   : > { %4694 = vrot.lane.b32.xlu1 %v8068_v60, %s9207_s16  ;;  %5652 = vrot.lane.b32.xlu0 %v5353_v23, %s9209_s19  ;;  %v5358_v60 = vshll.u32 %v8134_v41, 16  ;;  %v8074_v23 = vcombine.low %v4130_v51, %v4131_v12  ;;  %v4890_v41 = vshrl.u32 %v8111_v50, 16  ;;  %v4893_v51 = vshll.u32 %v8111_v50, 16  ;;  %v4071_v12 = vld [vmem:[#allocation3 + $0x12c] sm:$0x1]  ;;  %v11572_v50 = vld [vmem:[#allocation3 + $0xc0] sm:$0xff]  }
 0x31a   : > { %v5402_v7 = vrot.slane %v5400_v35, 7  ;;  %v11565_v35 = vld [vmem:[#allocation3 + $0xc8] sm:$0xf] }
 0x31b   : > { %v5360_v11 = vor.u32 %v5358_v60, %v5357_v34  ;;  %v4892_v44 = vrot.slane %v4890_v41, 7  ;;  %v11469_v34 = vld [vmem:[#allocation3 + $0xa0] sm:$0xff]  }
 0x31c   : > { %v5405_v60 = vor.u32 %v5403_v52, %v5402_v7  ;;  %v5423_v41 = vshrl.u32 %v11469_v34, 16  ;;  %v11496_v7 = vcombine.low %v4138_v6, %v4138_v6  ;;  %v9129_v52 = vld [vmem:[#allocation3 + $0x18] sm:$0xf] }
 0x31d   : > { %5172 = vrot.lane.b32.xlu1 %v4873_v42, %s9208_s17  ;;  %4704 = vrot.lane.b32.xlu0 %v9025_v26, %s9207_s16  ;;  %v4886_v42 = vshll.u32 %v9033_v38, 16  ;;  %v11447_v26 = vpop.permute.xlu0 %5704  ;;  %v5361_v43 = vsel %vm3558_vm12, %v11386_v33, %v5360_v11  ;;  %v11477_v11 = vld [vmem:[#allocation3 + $0x130] sm:$0xff]  }
 0x31e   : > { %13265 = vst [vmem:[#allocation44_spill] sm:$0xff] %v11447_v26  ;;  %v5558_v29 = vshrl.u32 %v11477_v11, 16 }
 0x31f   : > { %v4888_v25 = vor.u32 %v4886_v42, %v11439_v39  ;;  %v4003_v42 = vld [vmem:[#allocation3 + $0x1c] sm:$0x1] }
 0x321   : > { %5174 = vrot.lane.b32.xlu1 %v4881_v40, %s9208_s17  ;;  %5170 = vrot.lane.b32.xlu0 %v4866_v15, %s9208_s17  ;;  %v5381_v40 = vshll.u32 %v9029_v10, 16  ;;  %v11456_v15 = vpop.permute.xlu1 %5706  ;;  %v11461_v33 = vpop.permute.xlu0 %5226 }
 0x322   : > { %13266 = vst [vmem:[#allocation45_spill] sm:$0xff] %v11456_v15  ;;  %13267 = vst [vmem:[#allocation46_spill] sm:$0xff] %v11461_v33  ;;  %v11640_v33 = vld [vmem:[#allocation3 + $0xbc] sm:$0x1] }
 0x323   : > { %v5383_v38 = vor.u32 %v5381_v40, %v11450_v2 }
 0x325   : > { %5658 = vrot.lane.b32.xlu1 %v5376_v22, %s9209_s19  ;;  %4700 = vrot.lane.b32.xlu0 %v9029_v10, %s9207_s16  ;;  %v4910_v22 = vor.u32 %v4908_v31, %v4907_v63  ;;  %v11467_v10 = vpop.permute.xlu1 %4750  ;;  %v11487_v63 = vld [vmem:[#allocation3 + $0x90] sm:$0xff]   ;;  %v4034_v31 = vld [vmem:[#allocation3 + $0x98] sm:$0xf] }
 0x326   : > { %13268 = vst [vmem:[#allocation47_spill] sm:$0xff] %v11467_v10 }
 0x327   : > { %v4911_v27 = vsel %vm3558_vm12, %v11416_v48, %v4910_v22  ;;  %v9127_v48 = vld [vmem:[#allocation3 + $0x128] sm:$0xf]  ;;  %v4139_v22 = vld [vmem:[#allocation3 + $0xac] sm:$0x1] }
 0x329   : > { %5168 = vrot.lane.b32.xlu1 %v4858_v0, %s9208_s17  ;;  %5180 = vrot.lane.b32.xlu0 %v4903_v45, %s9208_s17  ;;  %v9125_v0 = vld [vmem:[#allocation3 + $0x138] sm:$0xf]  ;;  %v11490_v40 = vpop.permute.xlu1 %5230 }
 0x32a   : > { %v11463_v45 = vcombine.low %v9125_v0, %v9125_v0  ;;  %13270 = vst [vmem:[#allocation49_spill] sm:$0xff] %v11490_v40  ;;  %v11618_v40 = vld [vmem:[#allocation3 + $0xb8] sm:$0xf] }
 0x32c   : > { %v5565_v57 = vshrl.u32 %v11463_v45, 16 }
 0x32d   : > { %4706 = vrot.lane.b32.xlu1 %v8074_v23, %s9207_s16  ;;  %5664 = vrot.lane.b32.xlu0 %v5398_v61, %s9209_s19  ;;  %v4895_v23 = vor.u32 %v4893_v51, %v4892_v44  ;;  %v11474_v61 = vpop.permute.xlu0 %4748  ;;  %v5387_v44 = vrot.slane %v5385_v37, 7  ;;  %v8010_v51 = vcombine.low %v9129_v52, %v4003_v42  ;;  %v8078_v42 = vcombine.low %v4138_v6, %v4139_v22 }
 0x32e   : > { %13269 = vst [vmem:[#allocation48_spill] sm:$0xff] %v11474_v61  ;;  %v11498_v0 = vrot.slane %v5565_v57, 7  ;;  %v11517_v57 = vld [vmem:[#allocation3 + $0x90] sm:$0xff]   ;;  %v9131_v61 = vld [vmem:[#allocation3 + $0x20] sm:$0xff]  }
 0x32f   : > { %v11536_v6 = vsel %vm3429_vm13, %v8010_v51, %v11350_v53 }
 0x331   : > { %5654 = vrot.lane.b32.xlu1 %v5361_v43, %s9209_s19  ;;  %5176 = vrot.lane.b32.xlu0 %v4888_v25, %s9208_s17  ;;  %v8044_v25 = vcombine.low %v9127_v48, %v4071_v12  ;;  %v9128_v43 = vld [vmem:[#allocation3 + $0x120] sm:$0xff]   ;;  %v11504_v12 = vld [vmem:[#allocation3 + $0x98] sm:$0xf]  ;;  %v11521_v48 = vrot.slane %v5423_v41, 7 }
 0x332   : > { %v5814_v16 = vsel %vm3429_vm13, %v9128_v43, %v11381_v19  ;;  %v11500_v19 = vrot.slane %v5558_v29, 7  ;;  %v11519_v29 = vcombine.low %v4034_v31, %v4034_v31  ;;  %v11544_v31 = vld [vmem:[#allocation3 + $0xc0] sm:$0xff]  }
 0x333   : > { %v5817_v37 = vsel %vm3429_vm13, %v8044_v25, %v11402_v58  ;;  %v4683_v43 = vpop.permute.xlu1 %4682  ;;  %v5430_v58 = vshrl.u32 %v11496_v7, 16  ;;  %v4135_v25 = vld [vmem:[#allocation3 + $0x9c] sm:$0x1] }
 0x334   : > { %v4920_v22 = vshrl.u32 %v11519_v29, 16  ;;  %v8076_v52 = vcombine.low %v11504_v12, %v4135_v25 }
 0x335   : > { %4702 = vrot.lane.b32.xlu1 %v8072_v5, %s9207_s16  ;;  %5660 = vrot.lane.b32.xlu0 %v5383_v38, %s9209_s19  ;;  %v5406_v5 = vsel %vm3558_vm12, %v11426_v18, %v5405_v60  ;;  %v4896_v38 = vsel %vm3558_vm12, %v11439_v39, %v4895_v23  ;;  %v11506_v18 = vld [vmem:[#allocation3 + $0xa0] sm:$0xff]   ;;  %v5918_v39 = vsel %vm5848_vm5, %v5814_v16, %v11392_v20  ;;  %v5388_v60 = vshll.u32 %v11459_v30, 16  ;;  %v11515_v23 = vpop.permute.xlu0 %5228 }
 0x336   : > { %13271 = vst [vmem:[#allocation50_spill] sm:$0xff] %v11515_v23  ;;  %v11527_v20 = vsel %vm3429_vm13, %v11144_v1, %v11327_v59  ;;  %v11532_v16 = vcombine.low %v11504_v12, %v11504_v12  ;;  %v5426_v1 = vshll.u32 %v11469_v34, 16  ;;  %v4928_v59 = vshrl.u32 %v11506_v18, 16 }
 0x337   : > { %v5390_v30 = vor.u32 %v5388_v60, %v5387_v44  ;;  %v11552_v53 = vsel %vm5945_vm6, %v5918_v39, %v11404_v9  ;;  %v4011_v60 = vld [vmem:[#allocation3 + $0x3c] sm:$0x1]  ;;  %v5411_v9 = vshll.u32 %v11487_v63, 16  ;;  %v4677_v25 = vpop.permute.xlu1 %4676  ;;  %v4922_v54 = vrot.slane %v4920_v22, 7  ;;  %v11590_v22 = vld [vmem:[#allocation3 + $0xb0] sm:$0xff]  }
 0x338   : > { %13273 = vst [vmem:[#allocation4_spill] sm:$0xff] %v11552_v53  ;;  %v5428_v44 = vor.u32 %v5426_v1, %v11521_v48  ;;  %v4930_v12 = vrot.slane %v4928_v59, 7  ;;  %v4958_v1 = vshrl.u32 %v11544_v31, 16  ;;  %v5734_v10 = vsel %vm3429_vm13, %v9131_v61, %v4677_v25  ;;  %v11682_v53 = vld [vmem:[#allocation3 + $0xd8] sm:$0xf] }
 0x339   : > { %5182 = vrot.lane.b32.xlu1 %v4911_v27, %s9208_s17  ;;  %4712 = vrot.lane.b32.xlu0 %v11469_v34, %s9207_s16  ;;  %v11508_v27 = vcombine.low %v4038_v8, %v4038_v8  ;;  %v5408_v8 = vshrl.u32 %v11487_v63, 16  ;;  %v5433_v34 = vshll.u32 %v11496_v7, 16  ;;  %v4681_v39 = vpop.permute.xlu0 %4680  ;;  %v5418_v7 = vshll.u32 %v11532_v16, 16 }
 0x33a   : > { %v11581_v59 = vsel %vm3429_vm13, %v11278_v62, %v4681_v39  ;;  %v11599_v39 = vld [vmem:[#allocation3 + $0x28] sm:$0xf] }
 0x33b   : > { %v4935_v41 = vshrl.u32 %v11508_v27, 16  ;;  %v11559_v51 = vrot.slane %v5408_v8, 7 }
 0x33d   : > { %5666 = vrot.lane.b32.xlu1 %v5406_v5, %s9209_s19  ;;  %5178 = vrot.lane.b32.xlu0 %v4896_v38, %s9208_s17  ;;  %v11548_v5 = vsel %vm5848_vm5, %v5817_v37, %v11412_v36  ;;  %v4913_v38 = vshrl.u32 %v11517_v57, 16  ;;  %v5391_v36 = vsel %vm3558_vm12, %v11450_v2, %v5390_v30  ;;  %v5415_v37 = vshrl.u32 %v11532_v16, 16  ;;  %v4046_v2 = vld [vmem:[#allocation3 + $0xc8] sm:$0xf] }
 0x33e   : > { %13272 = vst [vmem:[#allocation6_spill] sm:$0xff] %v11548_v5  ;;  %v4937_v8 = vrot.slane %v4935_v41, 7  ;;  %v4931_v30 = vshll.u32 %v11506_v18, 16  ;;  %v4938_v16 = vshll.u32 %v11508_v27, 16  ;;  %v11585_v41 = vcombine.low %v11565_v35, %v11565_v35  ;;  %v11587_v18 = vld [vmem:[#allocation3 + $0xb0] sm:$0xff]  }
 0x33f   : > { %v4946_v61 = vshll.u32 %v11587_v18, 16 }
 0x340   : > { %v4933_v62 = vor.u32 %v4931_v30, %v4930_v12  ;;  %v4940_v27 = vor.u32 %v4938_v16, %v4937_v8  ;;  %v5453_v30 = vshrl.u32 %v11572_v50, 16  ;;  %v4042_v8 = vld [vmem:[#allocation3 + $0xb8] sm:$0xf]  ;;  %v4961_v16 = vshll.u32 %v11544_v31, 16 }
 0x341   : > { %4714 = vrot.lane.b32.xlu1 %v8078_v42, %s9207_s16  ;;  %4708 = vrot.lane.b32.xlu0 %v11487_v63, %s9207_s16  ;;  %v5432_v42 = vrot.slane %v5430_v58, 7  ;;  %v8014_v63 = vcombine.low %v11322_v28, %v4011_v60  ;;  %v4915_v58 = vrot.slane %v4913_v38, 7  ;;  %v4923_v28 = vshll.u32 %v11519_v29, 16 }
 0x342   : > { %v4916_v60 = vshll.u32 %v11517_v57, 16  ;;  %v5460_v23 = vshrl.u32 %v11585_v41, 16  ;;  %v5417_v29 = vrot.slane %v5415_v37, 7  ;;  %v4941_v31 = vsel %vm3558_vm12, %v4930_v12, %v4940_v27  ;;  %v11646_v12 = vld [vmem:[#allocation3 + $0xe8] sm:$0xf] }
 0x343   : > { %v5435_v38 = vor.u32 %v5433_v34, %v5432_v42  ;;  %v11603_v34 = vrot.slane %v4958_v1, 7  ;;  %v11605_v42 = vld [vmem:[#allocation3 + $0xcc] sm:$0x1]  ;;  %v11608_v57 = vsel %vm3429_vm13, %v8014_v63, %v4683_v43  ;;  %v4943_v1 = vshrl.u32 %v11587_v18, 16 }
 0x344   : > { %v5438_v63 = vshrl.u32 %v11590_v22, 16  ;;  %v5455_v15 = vrot.slane %v5453_v30, 7  ;;  %v5462_v26 = vrot.slane %v5460_v23, 7  ;;  %v11665_v18 = vcombine.low %v11646_v12, %v11646_v12 }
 0x345   : > { %5662 = vrot.lane.b32.xlu1 %v5391_v36, %s9209_s19  ;;  %5672 = vrot.lane.b32.xlu0 %v5428_v44, %s9209_s19  ;;  %v5413_v44 = vor.u32 %v5411_v9, %v11559_v51  ;;  %v11593_v36 = vcombine.low %v4046_v2, %v4046_v2  ;;  %v11597_v9 = vpop.permute.xlu0 %5640  ;;  %v4925_v2 = vor.u32 %v4923_v28, %v4922_v54 }
 0x346   : > { %v5436_v43 = vsel %vm3558_vm12, %v11521_v48, %v5435_v38  ;;  %v11633_v37 = vor.u32 %v4961_v16, %v11603_v34  ;;  %v5456_v48 = vshll.u32 %v11572_v50, 16  ;;  %v11636_v38 = vcombine.low %v4042_v8, %v4042_v8 }
 0x347   : > { %v4965_v28 = vshrl.u32 %v11593_v36, 16  ;;  %v4926_v54 = vsel %vm3558_vm12, %v4915_v58, %v4925_v2  ;;  %v5463_v16 = vshll.u32 %v11585_v41, 16  ;;  %v11649_v8 = vrot.slane %v4943_v1, 7 }
 0x348   : > { %v11654_v25 = vrot.slane %v5438_v63, 7  ;;  %v5441_v41 = vshll.u32 %v11590_v22, 16  ;;  %v4950_v23 = vshrl.u32 %v11636_v38, 16 }
 0x349   : > { %4710 = vrot.lane.b32.xlu1 %v8076_v52, %s9207_s16  ;;  %5668 = vrot.lane.b32.xlu0 %v5413_v44, %s9209_s19  ;;  %v11610_v52 = vor.u32 %v4916_v60, %v4915_v58  ;;  %v11613_v44 = vpop.permute.xlu1 %4678  ;;  %v11626_v60 = vld [vmem:[#allocation3 + $0xe0] sm:$0xff]   ;;  %v11651_v58 = vld [vmem:[#allocation3 + $0xd0] sm:$0xff]   ;;  %v4967_v2 = vrot.slane %v4965_v28, 7  ;;  %v4968_v28 = vshll.u32 %v11593_v36, 16  ;;  %v5465_v14 = vor.u32 %v5463_v16, %v5462_v26 }
 0x34a   : > { %v5483_v30 = vshrl.u32 %v11626_v60, 16  ;;  %v5486_v32 = vshll.u32 %v11626_v60, 16 }
 0x34b   : > { %v4970_v36 = vor.u32 %v4968_v28, %v4967_v2  ;;  %v5490_v2 = vshrl.u32 %v11665_v18, 16 }
 0x34c   : > { %v5637_v27 = vpop.permute.xlu0 %5636  ;;  %v11687_v5 = vrot.slane %v5483_v30, 7  ;;  %v13275_v30 = vcombine.low %v11599_v39, %v11575_v17  ;;  %v4953_v17 = vshll.u32 %v11636_v38, 16 }
 0x34d   : > { %5188 = vrot.lane.b32.xlu1 %v4933_v62, %s9208_s17  ;;  %4720 = vrot.lane.b32.xlu0 %v11572_v50, %s9207_s16  ;;  %v11644_v62 = vcombine.low %v11618_v40, %v11618_v40  ;;  %v5420_v50 = vor.u32 %v5418_v7, %v5417_v29  ;;  %v5458_v29 = vor.u32 %v5456_v48, %v5455_v15  ;;  %v5468_v48 = vshrl.u32 %v11651_v58, 16 }
 0x34e   : > { %v11677_v7 = vor.u32 %v4946_v61, %v11649_v8  ;;  %v11719_v61 = vsel %vm3558_vm12, %v5455_v15, %v5465_v14  ;;  %v4050_v15 = vld [vmem:[#allocation3 + $0xd8] sm:$0xf] }
 0x34f   : > { %v5157_v13 = vpop.permute.xlu1 %5156  ;;  %v5445_v1 = vshrl.u32 %v11644_v62, 16  ;;  %v5448_v63 = vshll.u32 %v11644_v62, 16  ;;  %v11685_v62 = vor.u32 %v5441_v41, %v11654_v25  ;;  %v11706_v41 = vsel %vm3429_vm13, %v13275_v30, %v11613_v44  ;;  %v11725_v30 = vld [vmem:[#allocation3 + $0xdc] sm:$0x1] }
 0x350   : > { %v5854_v26 = vsel %vm5848_vm5, %v5734_v10, %v5157_v13  ;;  %v11696_v16 = vpop.permute.xlu0 %4688  ;;  %v11710_v13 = vld [vmem:[#allocation3 + $0x4c] sm:$0x1]  ;;  %v11714_v10 = vcombine.low %v11682_v53, %v11682_v53  ;;  %v11722_v39 = vrot.slane %v5468_v48, 7  ;;  %v5471_v44 = vshll.u32 %v11651_v58, 16 }
 0x351   : > { %5190 = vrot.lane.b32.xlu1 %v4941_v31, %s9208_s17  ;;  %5186 = vrot.lane.b32.xlu0 %v4926_v54, %s9208_s17  ;;  %v11670_v54 = vld [vmem:[#allocation3 + $0x5c] sm:$0x1]  ;;  %v11674_v31 = vsel %vm3558_vm12, %v11559_v51, %v5420_v50  ;;  %v11690_v51 = vld [vmem:[#allocation3 + $0xe0] sm:$0xff]   ;;  %v4952_v50 = vrot.slane %v4950_v23, 7  ;;  %v4054_v23 = vld [vmem:[#allocation3 + $0xe8] sm:$0xf] }
 0x352   : > { %13274 = vst [vmem:[#allocation32_spill] sm:$0xff] %v11670_v54  ;;  %v5493_v54 = vshll.u32 %v11665_v18, 16  ;;  %v4988_v14 = vshrl.u32 %v11690_v51, 16  ;;  %v5492_v48 = vrot.slane %v5490_v2, 7  ;;  %v11756_v2 = vor.u32 %v5471_v44, %v11722_v39 }
 0x353   : > { %v4955_v38 = vor.u32 %v4953_v17, %v4952_v50  ;;  %v4991_v17 = vshll.u32 %v11690_v51, 16  ;;  %v13276_v18 = vshll.u32 %v11463_v45, 16 }
 0x355   : > { %5674 = vrot.lane.b32.xlu1 %v5436_v43, %s9209_s19  ;;  %4716 = vrot.lane.b32.xlu0 %v11590_v22, %s9207_s16  ;;  %v5447_v43 = vrot.slane %v5445_v1, 7  ;;  %v11728_v1 = vsel %vm5945_vm6, %v5854_v26, %v5637_v27  ;;  %v11732_v22 = vsel %vm3558_vm12, %v11603_v34, %v4970_v36  ;;  %v11741_v27 = vor.u32 %v5486_v32, %v11687_v5  ;;  %v11745_v34 = vld [vmem:[#allocation3 + $0xd0] sm:$0xff]  }
 0x356   : > { %v11743_v26 = vcombine.low %v4054_v23, %v4054_v23  ;;  %v11758_v23 = vcombine.low %v4050_v15, %v4050_v15  ;;  %v5570_v3 = vor.u32 %v13276_v18, %v11498_v0  ;;  %v13277_v32 = vcombine.low %v11565_v35, %v11605_v42 }
 0x357   : > { %v11716_v28 = vpop.permute.xlu1 %5158  ;;  %v5450_v36 = vor.u32 %v5448_v63, %v5447_v43  ;;  %v11762_v43 = vrot.slane %v4988_v14, 7  ;;  %v4973_v45 = vshrl.u32 %v11745_v34, 16  ;;  %v8158_v55 = vcombine.high %v11728_v1, %v11728_v1 }
 0x358   : > { %v4995_v51 = vshrl.u32 %v11743_v26, 16  ;;  %v4980_v18 = vshrl.u32 %v11758_v23, 16 }
 0x359   : > { %5184 = vrot.lane.b32.xlu1 %v11610_v52, %s9208_s17  ;;  %5196 = vrot.lane.b32.xlu0 %v11633_v37, %s9208_s17  ;;  %v5475_v52 = vshrl.u32 %v11714_v10, 16  ;;  %v8157_v37 = vcombine.low %v11728_v1, %v11728_v1  ;;  %v11785_v35 = vsel %vm3558_vm12, %v11654_v25, %v5450_v36  ;;  %v4983_v25 = vshll.u32 %v11758_v23, 16  ;;  %v11801_v36 = vld [vmem:[#allocation3 + $0x100] sm:$0xff]  }
 0x35b   : > { %v11787_v42 = vrot.slane %v5475_v52, 7  ;;  %v6320_v14 = vshrl.u32 %v8157_v37, 16  ;;  %v4997_v52 = vrot.slane %v4995_v51, 7 }
 0x35c   : > { %v5155_v50 = vpop.permute.xlu0 %5154 }
 0x35d   : > { %v5852_v63 = vsel %vm5848_vm5, %v11536_v6, %v5155_v50  ;;  %4722 = vrot.lane.b32.xlu1 %v13277_v32, %s9207_s16  ;;  %5680 = vrot.lane.b32.xlu0 %v5458_v29, %s9209_s19  ;;  %v11775_v15 = vpop.permute.xlu1 %5642  ;;  %v11779_v6 = vsel %vm3558_vm12, %v11649_v8, %v4955_v38  ;;  %v11789_v29 = vld [vmem:[#allocation3 + $0x7c] sm:$0x1]  ;;  %v6323_v8 = vshll.u32 %v8157_v37, 16  ;;  %v4998_v38 = vshll.u32 %v11743_v26, 16 }
 0x35e   : > { %v5949_v44 = vsel %vm5945_vm6, %v5852_v63, %v11375_v21  ;;  %13278 = vst [vmem:[#allocation5_spill] sm:$0xff] %v11789_v29  ;;  %v11793_v21 = vsel %vm3558_vm12, %v11500_v19, %v5570_v3  ;;  %v11798_v63 = vor.u32 %v4991_v17, %v11762_v43  ;;  %v11807_v26 = vrot.slane %v4973_v45, 7 }
 0x35f   : > { %v8155_v0 = vcombine.low %v5949_v44, %v5949_v44  ;;  %13279 = vst [vmem:[#allocation33_spill] sm:$0xff] %v11793_v21  ;;  %v6322_v51 = vrot.slane %v6320_v14, 4  ;;  %v6325_v45 = vrot.slane %v6323_v8, 5  ;;  %v11836_v8 = vld [vmem:[#allocation3 + $0x10c] sm:$0x1] }
 0x360   : > { %v11813_v21 = vpop.permute.xlu0 %4684 }
 0x361   : > { %v6305_v50 = vshll.u32 %v8155_v0, 16  ;;  %v6309_v32 = vshrl.u32 %v8155_v0, 16  ;;  %5670 = vrot.lane.b32.xlu1 %v11674_v31, %s9209_s19  ;;  %5192 = vrot.lane.b32.xlu0 %v11677_v7, %s9208_s17  ;;  %v5153_v3 = vpop.permute.xlu1 %5152  ;;  %v5495_v0 = vor.u32 %v5493_v54, %v5492_v48  ;;  %v4976_v7 = vshll.u32 %v11745_v34, 16  ;;  %v11831_v34 = vld [vmem:[#allocation3 + $0x100] sm:$0xff]  }
 0x362   : > { %v5850_v31 = vsel %vm5848_vm5, %v11527_v20, %v5153_v3  ;;  %v4982_v54 = vrot.slane %v4980_v18, 7  ;;  %v8156_v48 = vcombine.high %v5949_v44, %v5949_v44  ;;  %v13281_v20 = vcombine.low %v11618_v40, %v11640_v33  ;;  %v11839_v33 = vld [vmem:[#allocation3 + $0x108] sm:$0xf] }
 0x363   : > { %v11811_v17 = vrot.slane %v6305_v50, 5  ;;  %v6311_v23 = vrot.slane %v6309_v32, 4  ;;  %v5947_v37 = vsel %vm5945_vm6, %v5850_v31, %v11360_v4  ;;  %v5018_v32 = vshrl.u32 %v11801_v36, 16 }
 0x364   : > { %v8153_v29 = vcombine.low %v5947_v37, %v5947_v37  ;;  %v8154_v50 = vcombine.high %v5947_v37, %v5947_v37  ;;  %v5000_v4 = vor.u32 %v4998_v38, %v4997_v52  ;;  %v6326_v40 = vor.u32 %v6325_v45, %v6322_v51  ;;  %v11848_v46 = vpop.permute.xlu0 %5164 }
 0x365   : > { %4718 = vrot.lane.b32.xlu1 %v13281_v20, %s9207_s16  ;;  %5676 = vrot.lane.b32.xlu0 %v11685_v62, %s9209_s19  ;;  %v6312_v1 = vor.u32 %v6311_v23, %v11811_v17  ;;  %v11843_v62 = vsel %vm3558_vm12, %v11687_v5, %v5495_v0  ;;  %v11846_v38 = vor.u32 %v4976_v7, %v11807_v26  ;;  %v6315_v52 = vshll.u32 %v8156_v48, 16 }
 0x366   : > { %v6286_v18 = vshrl.u32 %v8153_v29, 16  ;;  %v6289_v3 = vshll.u32 %v8153_v29, 16  ;;  %v6295_v37 = vshll.u32 %v8154_v50, 16  ;;  %v6299_v31 = vshrl.u32 %v8154_v50, 16  ;;  %v11850_v23 = vpop.permute.xlu1 %4690 }
 0x367   : > { %v4985_v5 = vor.u32 %v4983_v25, %v4982_v54  ;;  %v8090_v0 = vcombine.low %v11839_v33, %v11836_v8  ;;  %v5513_v7 = vshrl.u32 %v11831_v34, 16  ;;  %v6329_v51 = vshll.u32 %v8158_v55, 16 }
 0x368   : > { %v6288_v20 = vrot.slane %v6286_v18, 4  ;;  %v6291_v14 = vrot.slane %v6289_v3, 5  ;;  %v6297_v44 = vrot.slane %v6295_v37, 5  ;;  %v6301_v29 = vrot.slane %v6299_v31, 4 }
 0x369   : > { %5198 = vrot.lane.b32.xlu1 %v11732_v22, %s9208_s17  ;;  %4728 = vrot.lane.b32.xlu0 %v11626_v60, %s9207_s16  ;;  %v6313_v45 = vrot.slane %v6312_v1, 4  ;;  %v11859_v50 = vrot.slane %v5018_v32, 7  ;;  %v6333_v18 = vshrl.u32 %v8158_v55, 16  ;;  %v11863_v22 = vsel %vm3558_vm12, %v11762_v43, %v5000_v4 }
 0x36a   : > { %v6292_v48 = vor.u32 %v6291_v14, %v6288_v20  ;;  %v6302_v3 = vor.u32 %v6301_v29, %v6297_v44  ;;  %v11867_v60 = vcombine.low %v11839_v33, %v11839_v33  ;;  %v6327_v25 = vrot.slane %v6326_v40, 4  ;;  %v11890_v40 = vld [vmem:[#allocation3 + $0xf0] sm:$0xff]   ;;  %v4062_v29 = vld [vmem:[#allocation3 + $0x108] sm:$0xf] }
 0x36b   : > { %v6317_v54 = vrot.slane %v6315_v52, 5  ;;  %v5516_v31 = vshll.u32 %v11831_v34, 16  ;;  %v11879_v55 = vsel %vm3429_vm13, %v11394_v56, %v11696_v16  ;;  %v11885_v4 = vrot.slane %v5513_v7, 7 }
 0x36c   : > { %v6293_v37 = vrot.slane %v6292_v48, 4  ;;  %v6303_v43 = vrot.slane %v6302_v3, 4  ;;  %v13284_v14 = vshll.u32 %v11714_v10, 16  ;;  %v6331_v52 = vrot.slane %v6329_v51, 5  ;;  %v4058_v3 = vld [vmem:[#allocation3 + $0xf8] sm:$0xf] }
 0x36d   : > { %5682 = vrot.lane.b32.xlu1 %v11719_v61, %s9209_s19  ;;  %5194 = vrot.lane.b32.xlu0 %v11779_v6, %s9208_s17  ;;  %v5856_v56 = vsel %vm5848_vm5, %v11706_v41, %v11716_v28  ;;  %v6318_v16 = vsel %vm11872_vm9, %v6313_v45, %v6317_v54  ;;  %v6335_v7 = vrot.slane %v6333_v18, 4  ;;  %v11907_v41 = vsel %vm3558_vm12, %v11807_v26, %v4985_v5 }
 0x36e   : > { %v5480_v1 = vor.u32 %v13284_v14, %v11787_v42  ;;  %v11897_v61 = vpop.permute.xlu0 %5648  ;;  %v5639_v6 = vpop.permute.xlu1 %5638  ;;  %v6298_v20 = vsel %vm11872_vm9, %v6293_v37, %v6297_v44  ;;  %v6308_v42 = vsel %vm11872_vm9, %v6303_v43, %v11811_v17  ;;  %v6332_v28 = vsel %vm11872_vm9, %v6327_v25, %v6331_v52  ;;  %v11917_v17 = vld [vmem:[#allocation3 + $0xf0] sm:$0xff]  }
 0x36f   : > { %v5953_v10 = vsel %vm5945_vm6, %v5856_v56, %v5639_v6  ;;  %v8249_v48 = vcombine.low %v6298_v20, %v6308_v42  ;;  %v8250_v44 = vcombine.low %v6318_v16, %v6332_v28  ;;  %v13285_v18 = vcombine.low %v11646_v12, %v11679_v47 }
 0x370   : > { %v8159_v51 = vcombine.low %v5953_v10, %v5953_v10  ;;  %v8160_v45 = vcombine.high %v5953_v10, %v5953_v10  ;;  %v13286_v26 = vshll.u32 %v11801_v36, 16  ;;  %v5003_v25 = vshrl.u32 %v11890_v40, 16 }
 0x371   : > { %4730 = vrot.lane.b32.xlu1 %v13285_v18, %s9207_s16  ;;  %4724 = vrot.lane.b32.xlu0 %v11651_v58, %s9207_s16  ;;  %v11925_v54 = vcombine.low %v4062_v29, %v4062_v29  ;;  %v11928_v47 = vor.u32 %v5516_v31, %v11885_v4  ;;  %v11932_v12 = vsel %vm3558_vm12, %v11722_v39, %v5480_v1  ;;  %v5006_v56 = vshll.u32 %v11890_v40, 16 }
 0x372   : > { %v11922_v5 = vor.u32 %v13286_v26, %v11859_v50  ;;  %v6339_v37 = vshll.u32 %v8159_v51, 16  ;;  %v6343_v43 = vshrl.u32 %v8159_v51, 16  ;;  %v5161_v14 = vpop.permute.xlu0 %5160  ;;  %8847 = vmatprep.mubr.bf16.mxu1 %v8249_v48  ;;  %v6336_v58 = vor.u32 %v6335_v7, %v6331_v52  ;;  %v11945_v39 = vpop.permute.xlu1 %4686  ;;  %v9132_v7 = vld [vmem:[#allocation3 + $0x40] sm:$0xff]   ;;  %v11953_v51 = vld [vmem:[#allocation3 + $0xf8] sm:$0xf] }
 0x373   : > { %v5858_v36 = vsel %vm5848_vm5, %v11581_v59, %v5161_v14  ;;  %8848 = vmatmul.mubr.bf16.vlgmr.msra.gmra.mxu1 %v8250_v44  ;;  %v11937_v16 = vcombine.low %v4058_v3, %v4058_v3  ;;  %v6349_v29 = vshll.u32 %v8160_v45, 16  ;;  %v11947_v59 = vrot.slane %v5003_v25, 7 }
 0x374   : > { %v6341_v6 = vrot.slane %v6339_v37, 5  ;;  %v6345_v20 = vrot.slane %v6343_v43, 4  ;;  %v5955_v31 = vsel %vm5945_vm6, %v5858_v36, %v11597_v9  ;;  %v5498_v1 = vshrl.u32 %v11917_v17, 16 }
 0x375   : > { %v8161_v10 = vcombine.low %v5955_v31, %v5955_v31  ;;  %5678 = vrot.lane.b32.xlu1 %v11785_v35, %s9209_s19  ;;  %5688 = vrot.lane.b32.xlu0 %v11741_v27, %s9209_s19  ;;  %v5025_v52 = vshrl.u32 %v11925_v54, 16  ;;  %v5744_v42 = vsel %vm3429_vm13, %v9132_v7, %v11813_v21  ;;  %v8162_v28 = vcombine.high %v5955_v31, %v5955_v31 }
 0x376   : > { %v6346_v9 = vor.u32 %v6345_v20, %v6341_v6  ;;  %v5520_v35 = vshrl.u32 %v11867_v60, 16  ;;  %v5862_v27 = vsel %vm5848_vm5, %v5744_v42, %v11848_v46  ;;  %v6337_v44 = vrot.slane %v6336_v58, 4 }
 0x377   : > { %v6354_v45 = vshrl.u32 %v8161_v10, 16  ;;  %v6357_v48 = vshll.u32 %v8161_v10, 16  ;;  %v5645_v3 = vpop.permute.xlu0 %5644  ;;  %v6351_v26 = vrot.slane %v6349_v29, 5  ;;  %v5010_v37 = vshrl.u32 %v11937_v16, 16 }
 0x378   : > { %v6347_v18 = vrot.slane %v6346_v9, 4  ;;  %v5959_v25 = vsel %vm5945_vm6, %v5862_v27, %v5645_v3  ;;  %v13287_v21 = vcombine.low %v11682_v53, %v11725_v30  ;;  %v6342_v46 = vsel %vm11872_vm9, %v6337_v44, %v6341_v6  ;;  %v11976_v30 = vld [vmem:[#allocation3 + $0xfc] sm:$0x1] }
 0x379   : > { %5684 = vrot.lane.b32.xlu0 %v11756_v2, %s9209_s19  ;;  %v11970_v43 = vcombine.low %v11953_v51, %v11953_v51  ;;  %v11972_v14 = vrot.slane %v5498_v1, 7  ;;  %v5027_v58 = vrot.slane %v5025_v52, 7  ;;  %v6363_v36 = vshll.u32 %v8162_v28, 16 }
 0x37a   : > { %4726 = vrot.lane.b32.xlu1 %v13287_v21, %s9207_s16  ;;  %v6367_v20 = vshrl.u32 %v8162_v28, 16  ;;  %v8165_v29 = vcombine.low %v5959_v25, %v5959_v25  ;;  %v6352_v53 = vsel %vm11872_vm9, %v6347_v18, %v6351_v26  ;;  %v6356_v31 = vrot.slane %v6354_v45, 4 }
 0x37b   : > { %v6359_v2 = vrot.slane %v6357_v48, 5  ;;  %v5167_v10 = vpop.permute.xlu1 %5166  ;;  %v11978_v7 = vpop.permute.xlu0 %4696  ;;  %v8251_v6 = vcombine.low %v6342_v46, %v6352_v53  ;;  %v5522_v42 = vrot.slane %v5520_v35, 7  ;;  %v5028_v1 = vshll.u32 %v11925_v54, 16 }
 0x37c   : > { %v6388_v9 = vshrl.u32 %v8165_v29, 16  ;;  %v6391_v27 = vshll.u32 %v8165_v29, 16  ;;  %v5012_v52 = vrot.slane %v5010_v37, 7  ;;  %v8088_v28 = vcombine.low %v11953_v51, %v11976_v30  ;;  %v12160_v51 = vld [vmem:[#allocation3 + $0x158] sm:$0xf] }
 0x37d   : > { %4736 = vrot.lane.b32.xlu0 %v11831_v34, %s9207_s16  ;;  %v5501_v45 = vshll.u32 %v11917_v17, 16  ;;  %v5523_v48 = vshll.u32 %v11867_v60, 16  ;;  %v5505_v35 = vshrl.u32 %v11970_v43, 16  ;;  %v11990_v3 = vrot.slane %v6363_v36, 5  ;;  %8851 = vmatprep.mubr.bf16.mxu1 %v8251_v6 }
 0x37e   : > { %5204 = vrot.lane.b32.xlu1 %v11798_v63, %s9208_s17  ;;  %v6369_v44 = vrot.slane %v6367_v20, 4  ;;  %v5030_v54 = vor.u32 %v5028_v1, %v5027_v58  ;;  %v5013_v18 = vshll.u32 %v11937_v16, 16  ;;  %v6360_v63 = vor.u32 %v6359_v2, %v6356_v31  ;;  %v4082_v16 = vld [vmem:[#allocation3 + $0x158] sm:$0xf] }
 0x37f   : > { %v11993_v26 = vpop.permute.xlu1 %5650  ;;  %v5163_v34 = vpop.permute.xlu0 %5162  ;;  %v11998_v37 = vor.u32 %v5006_v56, %v11947_v59  ;;  %v12001_v60 = vor.u32 %v5501_v45, %v11972_v14  ;;  %v5525_v21 = vor.u32 %v5523_v48, %v5522_v42  ;;  %v6390_v46 = vrot.slane %v6388_v9, 4 }
 0x380   : > { %v6393_v36 = vrot.slane %v6391_v27, 5  ;;  %v5860_v58 = vsel %vm5848_vm5, %v11608_v57, %v5163_v34  ;;  %v5015_v20 = vor.u32 %v5013_v18, %v5012_v52  ;;  %v8166_v29 = vcombine.high %v5959_v25, %v5959_v25  ;;  %v12036_v52 = vld [vmem:[#allocation3 + $0x8c] sm:$0x1] }
 0x381   : > { %v5957_v53 = vsel %vm5945_vm6, %v5860_v58, %v11775_v15  ;;  %5202 = vrot.lane.b32.xlu0 %v11907_v41, %s9208_s17  ;;  %v13288_v40 = vshll.u32 %v11477_v11, 16  ;;  %v5507_v31 = vrot.slane %v5505_v35, 7  ;;  %v6370_v57 = vor.u32 %v6369_v44, %v11990_v3 }
 0x382   : > { %5206 = vrot.lane.b32.xlu1 %v11863_v22, %s9208_s17  ;;  %v8163_v2 = vcombine.low %v5957_v53, %v5957_v53  ;;  %v8164_v6 = vcombine.high %v5957_v53, %v5957_v53  ;;  %v12019_v25 = vsel %vm3558_vm12, %v11859_v50, %v5030_v54  ;;  %v6361_v15 = vrot.slane %v6360_v63, 4 }
 0x383   : > { %v12014_v56 = vor.u32 %v13288_v40, %v11500_v19  ;;  %v12021_v42 = vpop.permute.xlu1 %4698  ;;  %v12023_v22 = vpop.permute.xlu0 %4692  ;;  %v12027_v41 = vsel %vm3558_vm12, %v11885_v4, %v5525_v21  ;;  %v5508_v11 = vshll.u32 %v11970_v43, 16  ;;  %v12030_v19 = vcombine.low %v4082_v16, %v4082_v16 }
 0x384   : > { %v6394_v9 = vor.u32 %v6393_v36, %v6390_v46  ;;  %v6373_v27 = vshll.u32 %v8163_v2, 16  ;;  %v6377_v1 = vshrl.u32 %v8163_v2, 16  ;;  %v12034_v50 = vsel %vm3558_vm12, %v11947_v59, %v5015_v20  ;;  %v12067_v2 = vld [vmem:[#allocation3 + $0x160] sm:$0xff]  }
 0x385   : > { %v13289_v45 = vcombine.low %v11305_v49, %v11710_v13  ;;  %v6397_v48 = vshll.u32 %v8166_v29, 16  ;;  %v6401_v35 = vshrl.u32 %v8166_v29, 16  ;;  %4732 = vrot.lane.b32.xlu0 %v11917_v17, %s9207_s16  ;;  %v5510_v43 = vor.u32 %v5508_v11, %v5507_v31  ;;  %v13290_v13 = vld [vmem:[#allocation28_spill] sm:$0xff]  ;;  %v12065_v29 = vld [vmem:[#allocation3 + $0x140] sm:$0xff]  }
 0x386   : > { %5690 = vrot.lane.b32.xlu1 %v11843_v62, %s9209_s19  ;;  %v6371_v44 = vrot.slane %v6370_v57, 4  ;;  %v6375_v59 = vrot.slane %v6373_v27, 5  ;;  %v6379_v54 = vrot.slane %v6377_v1, 4  ;;  %v6383_v18 = vshll.u32 %v8164_v6, 16 }
 0x387   : > { %v5747_v4 = vsel %vm3429_vm13, %v13289_v45, %v11945_v39  ;;  %v5647_v34 = vpop.permute.xlu1 %5646  ;;  %v12048_v21 = vpop.permute.xlu0 %5656  ;;  %v6366_v49 = vsel %vm11872_vm9, %v6361_v15, %v11990_v3  ;;  %v12055_v39 = vld [vmem:[#allocation3 + $0x150] sm:$0xff]   ;;  %v5100_v17 = vshrl.u32 %v12030_v19, 16  ;;  %v6395_v46 = vrot.slane %v6394_v9, 4  ;;  %v12077_v45 = vld [vmem:[#allocation3 + $0x148] sm:$0xf] }
 0x388   : > { %v5864_v63 = vsel %vm5848_vm5, %v5747_v4, %v5167_v10  ;;  %v6380_v36 = vor.u32 %v6379_v54, %v6375_v59  ;;  %v6376_v10 = vsel %vm11872_vm9, %v6371_v44, %v6375_v59  ;;  %v6399_v53 = vrot.slane %v6397_v48, 5 }
 0x389   : > { %v5961_v58 = vsel %vm5945_vm6, %v5864_v63, %v5647_v34  ;;  %5212 = vrot.lane.b32.xlu0 %v11922_v5, %s9208_s17  ;;  %v8252_v3 = vcombine.low %v6366_v49, %v6376_v10  ;;  %v6403_v40 = vrot.slane %v6401_v35, 4  ;;  %v6385_v31 = vrot.slane %v6383_v18, 5  ;;  %v4086_v18 = vld [vmem:[#allocation3 + $0x168] sm:$0xf] }
 0x38a   : > { %v8167_v20 = vcombine.low %v5961_v58, %v5961_v58  ;;  %v8168_v16 = vcombine.high %v5961_v58, %v5961_v58  ;;  %5200 = vrot.lane.b32.xlu1 %v11846_v38, %s9208_s17  ;;  %v6381_v57 = vrot.slane %v6380_v36, 4  ;;  %v5093_v38 = vshrl.u32 %v12055_v39, 16  ;;  %v12103_v58 = vld [vmem:[#allocation3 + $0x14c] sm:$0x1] }
 0x38b   : > { %v12069_v11 = vpop.permute.xlu1 %4694  ;;  %v5653_v9 = vpop.permute.xlu0 %5652  ;;  %8852 = vmatmul.mubr.bf16.gmra.mxu1 %v8252_v3  ;;  %v5573_v27 = vshrl.u32 %v12065_v29, 16  ;;  %v6400_v1 = vsel %vm11872_vm9, %v6395_v46, %v6399_v53  ;;  %v5102_v4 = vrot.slane %v5100_v17, 7  ;;  %v5103_v48 = vshll.u32 %v12030_v19, 16  ;;  %v9133_v17 = vld [vmem:[#allocation3 + $0x60] sm:$0xff]   ;;  %v12099_v46 = vld [vmem:[#allocation3 + $0x150] sm:$0xff]  }
 0x38c   : > { %v6407_v6 = vshll.u32 %v8167_v20, 16  ;;  %v6411_v15 = vshrl.u32 %v8167_v20, 16  ;;  %v6386_v5 = vsel %vm11872_vm9, %v6381_v57, %v6385_v31  ;;  %v6417_v59 = vshll.u32 %v8168_v16, 16 }
 0x38d   : > { %5696 = vrot.lane.b32.xlu0 %v11928_v47, %s9209_s19  ;;  %v8253_v54 = vcombine.low %v6386_v5, %v6400_v1  ;;  %v6404_v63 = vor.u32 %v6403_v40, %v6399_v53  ;;  %v12088_v34 = vsel %vm3558_vm12, %v11972_v14, %v5510_v43  ;;  %v12092_v19 = vcombine.low %v12077_v45, %v12077_v45 }
 0x38e   : > { %v6409_v35 = vrot.slane %v6407_v6, 5  ;;  %v6413_v44 = vrot.slane %v6411_v15, 4  ;;  %4738 = vrot.lane.b32.xlu1 %v8090_v0, %s9207_s16  ;;  %v5108_v49 = vshrl.u32 %v12067_v2, 16  ;;  %v5754_v8 = vsel %vm3429_vm13, %v9133_v17, %v12023_v22  ;;  %v13291_v15 = vld [vmem:[#allocation25_spill] sm:$0xff] }
 0x38f   : > { %v5173_v0 = vpop.permute.xlu1 %5172  ;;  %v12097_v47 = vpop.permute.xlu0 %4704  ;;  %8855 = vmatprep.mubr.bf16.mxu1 %v8253_v54  ;;  %v5095_v36 = vrot.slane %v5093_v38, 7  ;;  %v5096_v14 = vshll.u32 %v12055_v39, 16  ;;  %v12105_v10 = vrot.slane %v5573_v27, 7  ;;  %v5576_v20 = vshll.u32 %v12065_v29, 16  ;;  %v13292_v38 = vld [vmem:[#allocation32_spill] sm:$0xff] }
 0x390   : > { %v6414_v33 = vor.u32 %v6413_v44, %v6409_v35  ;;  %v5870_v43 = vsel %vm5848_vm5, %v5754_v8, %v5173_v0  ;;  %v12108_v16 = vcombine.low %v4086_v18, %v4086_v18  ;;  %v6419_v3 = vrot.slane %v6417_v59, 5  ;;  %v12158_v0 = vld [vmem:[#allocation3 + $0x160] sm:$0xff]  }
 0x391   : > { %5208 = vrot.lane.b32.xlu0 %v11998_v37, %s9208_s17  ;;  %v5105_v53 = vor.u32 %v5103_v48, %v5102_v4  ;;  %v5588_v39 = vshrl.u32 %v12099_v46, 16  ;;  %v6405_v40 = vrot.slane %v6404_v63, 4  ;;  %v5967_v31 = vsel %vm5945_vm6, %v5870_v43, %v5653_v9  ;;  %v12131_v48 = vld [vmem:[#allocation3 + $0x170] sm:$0xff]   ;;  %v12170_v43 = vld [vmem:[#allocation3 + $0x15c] sm:$0x1] }
 0x392   : > { %v6415_v22 = vrot.slane %v6414_v33, 4  ;;  %5686 = vrot.lane.b32.xlu1 %v11932_v12, %s9209_s19  ;;  %v12116_v57 = vrot.slane %v5108_v49, 7  ;;  %v5111_v6 = vshll.u32 %v12067_v2, 16  ;;  %v13293_v27 = vcombine.low %v13291_v15, %v13292_v38 }
 0x393   : > { %v12126_v37 = vpop.permute.xlu1 %5174  ;;  %v5171_v1 = vpop.permute.xlu0 %5170  ;;  %v8098_v4 = vcombine.low %v12077_v45, %v12103_v58  ;;  %v5580_v9 = vshrl.u32 %v12092_v19, 16  ;;  %v6410_v2 = vsel %vm11872_vm9, %v6405_v40, %v6409_v35  ;;  %v12135_v44 = vor.u32 %v5096_v14, %v5095_v36 }
 0x394   : > { %v5752_v5 = vsel %vm3429_vm13, %v13293_v27, %v11850_v23  ;;  %v6420_v12 = vsel %vm11872_vm9, %v6415_v22, %v6419_v3  ;;  %v5591_v23 = vshll.u32 %v12099_v46, 16  ;;  %v5115_v59 = vshrl.u32 %v12108_v16, 16 }
 0x395   : > { %v8173_v54 = vcombine.low %v5967_v31, %v5967_v31  ;;  %v5868_v18 = vsel %vm5848_vm5, %v5752_v5, %v5171_v1  ;;  %v8254_v63 = vcombine.low %v6410_v2, %v6420_v12  ;;  %5692 = vrot.lane.b32.xlu0 %v12001_v60, %s9209_s19  ;;  %v12146_v49 = vrot.slane %v5588_v39, 7 }
 0x396   : > { %4734 = vrot.lane.b32.xlu1 %v8088_v28, %s9207_s16  ;;  %v12149_v35 = vsel %vm3558_vm12, %v5095_v36, %v5105_v53  ;;  %v12152_v17 = vor.u32 %v5576_v20, %v12105_v10  ;;  %v12155_v8 = vor.u32 %v5111_v6, %v12116_v57  ;;  %v5583_v33 = vshll.u32 %v12092_v19, 16 }
 0x397   : > { %v8174_v30 = vcombine.high %v5967_v31, %v5967_v31  ;;  %v12164_v28 = vsel %vm5945_vm6, %v5868_v18, %v11993_v26  ;;  %8856 = vmatmul.mubr.bf16.gmra.mxu1 %v8254_v63  ;;  %v12166_v60 = vpop.permute.xlu1 %5658  ;;  %v12168_v36 = vpop.permute.xlu0 %4700  ;;  %v5582_v14 = vrot.slane %v5580_v9, 7  ;;  %v5123_v20 = vshrl.u32 %v12131_v48, 16  ;;  %v9134_v9 = vld [vmem:[#allocation3 + $0x70] sm:$0xff]  }
 0x398   : > { %v8171_v19 = vcombine.low %v12164_v28, %v12164_v28  ;;  %v5117_v22 = vrot.slane %v5115_v59, 7  ;;  %v5118_v3 = vshll.u32 %v12108_v16, 16  ;;  %v5603_v53 = vshrl.u32 %v12158_v0, 16 }
 0x399   : > { %v6456_v26 = vshrl.u32 %v8173_v54, 16  ;;  %v6459_v39 = vshll.u32 %v8173_v54, 16  ;;  %5210 = vrot.lane.b32.xlu0 %v12034_v50, %s9208_s17  ;;  %v12182_v40 = vor.u32 %v5591_v23, %v12146_v49  ;;  %v12186_v31 = vcombine.low %v12160_v51, %v12160_v51 }
 0x39a   : > { %5214 = vrot.lane.b32.xlu1 %v12019_v25, %s9208_s17  ;;  %v6441_v6 = vshll.u32 %v8171_v19, 16  ;;  %v6445_v15 = vshrl.u32 %v8171_v19, 16  ;;  %v5126_v38 = vshll.u32 %v12131_v48, 16  ;;  %v6465_v27 = vshll.u32 %v8174_v30, 16 }
 0x39b   : > { %v6469_v5 = vshrl.u32 %v8174_v30, 16  ;;  %v5169_v25 = vpop.permute.xlu1 %5168  ;;  %v12191_v12 = vpop.permute.xlu0 %5180  ;;  %v12193_v50 = vor.u32 %v5583_v33, %v5582_v14  ;;  %v12195_v1 = vrot.slane %v5123_v20, 7  ;;  %v5759_v2 = vsel %vm3429_vm13, %v9134_v9, %v11978_v7 }
 0x39c   : > { %v5866_v23 = vsel %vm5848_vm5, %v11879_v55, %v5169_v25  ;;  %v12201_v59 = vor.u32 %v5118_v3, %v5117_v22  ;;  %v12203_v54 = vrot.slane %v5603_v53, 7  ;;  %v6458_v18 = vrot.slane %v6456_v26, 4 }
 0x39d   : > { %v6461_v63 = vrot.slane %v6459_v39, 5  ;;  %v5963_v30 = vsel %vm5945_vm6, %v5866_v23, %v11897_v61  ;;  %5708 = vrot.lane.b32.xlu0 %v12014_v56, %s9209_s19  ;;  %v5595_v7 = vshrl.u32 %v12186_v31, 16  ;;  %v12212_v33 = vrot.slane %v6441_v6, 5  ;;  %v13296_v23 = vld [vmem:[#allocation33_spill] sm:$0xff] }
 0x39e   : > { %5698 = vrot.lane.b32.xlu1 %v12027_v41, %s9209_s19  ;;  %v6447_v55 = vrot.slane %v6445_v15, 4  ;;  %v8169_v14 = vcombine.low %v5963_v30, %v5963_v30  ;;  %v8170_v20 = vcombine.high %v5963_v30, %v5963_v30  ;;  %v12214_v19 = vrot.slane %v6465_v27, 5  ;;  %v13294_v15 = vld [vmem:[#allocation34_spill] sm:$0xff] }
 0x39f   : > { %v12216_v22 = vrot.slane %v6469_v5, 4  ;;  %v12218_v3 = vpop.permute.xlu1 %4706  ;;  %v12220_v61 = vpop.permute.xlu0 %5664  ;;  %v5606_v41 = vshll.u32 %v12158_v0, 16  ;;  %v5598_v53 = vshll.u32 %v12186_v31, 16  ;;  %v8172_v56 = vcombine.high %v12164_v28, %v12164_v28 }
 0x3a0   : > { %v6422_v26 = vshrl.u32 %v8169_v14, 16  ;;  %v6425_v39 = vshll.u32 %v8169_v14, 16  ;;  %v6431_v6 = vshll.u32 %v8170_v20, 16  ;;  %v13295_v27 = vcombine.low %v11368_v24, %v13294_v15 }
 0x3a1   : > { %v6462_v25 = vor.u32 %v6461_v63, %v6458_v18  ;;  %v6435_v9 = vshrl.u32 %v8170_v20, 16  ;;  %4752 = vrot.lane.b32.xlu0 %v12065_v29, %s9207_s16  ;;  %v12235_v30 = vrot.slane %v5595_v7, 7  ;;  %v6448_v28 = vor.u32 %v6447_v55, %v12212_v33  ;;  %v9135_v18 = vld [vmem:[#allocation3 + $0x80] sm:$0xff]  }
 0x3a2   : > { %v5757_v5 = vsel %vm3429_vm13, %v13295_v27, %v12069_v11  ;;  %5710 = vrot.lane.b32.xlu1 %v13296_v23, %s9209_s19  ;;  %v6424_v14 = vrot.slane %v6422_v26, 4  ;;  %v6427_v16 = vrot.slane %v6425_v39, 5  ;;  %v6433_v62 = vrot.slane %v6431_v6, 5 }
 0x3a3   : > { %v6472_v24 = vor.u32 %v12216_v22, %v12214_v19  ;;  %v5872_v11 = vsel %vm5848_vm5, %v5757_v5, %v12126_v37  ;;  %v5764_v63 = vsel %vm3429_vm13, %v9135_v18, %v12168_v36  ;;  %v6437_v20 = vrot.slane %v6435_v9, 4  ;;  %v5655_v15 = vpop.permute.xlu1 %5654  ;;  %v5177_v29 = vpop.permute.xlu0 %5176 }
 0x3a4   : > { %v6451_v7 = vshll.u32 %v8172_v56, 16  ;;  %v6428_v27 = vor.u32 %v6427_v16, %v6424_v14  ;;  %v5969_v55 = vsel %vm5945_vm6, %v5872_v11, %v5655_v15  ;;  %v5874_v26 = vsel %vm5848_vm5, %v5759_v2, %v5177_v29 }
 0x3a5   : > { %v6438_v39 = vor.u32 %v6437_v20, %v6433_v62  ;;  %v8175_v6 = vcombine.low %v5969_v55, %v5969_v55  ;;  %v8176_v23 = vcombine.high %v5969_v55, %v5969_v55  ;;  %v5971_v22 = vsel %vm5945_vm6, %v5874_v26, %v12048_v21  ;;  %4756 = vrot.lane.b32.xlu0 %v12099_v46, %s9207_s16 }
 0x3a6   : > { %5694 = vrot.lane.b32.xlu1 %v12088_v34, %s9209_s19  ;;  %v6463_v37 = vrot.slane %v6462_v25, 4  ;;  %v6449_v36 = vrot.slane %v6448_v28, 4  ;;  %v8177_v5 = vcombine.low %v5971_v22, %v5971_v22  ;;  %v8178_v9 = vcombine.high %v5971_v22, %v5971_v22 }
 0x3a7   : > { %v6475_v16 = vshll.u32 %v8175_v6, 16  ;;  %v6479_v56 = vshrl.u32 %v8175_v6, 16  ;;  %v12252_v14 = vpop.permute.xlu1 %4702  ;;  %v5661_v2 = vpop.permute.xlu0 %5660  ;;  %v6429_v11 = vrot.slane %v6428_v27, 4  ;;  %v6439_v18 = vrot.slane %v6438_v39, 4 }
 0x3a8   : > { %v6453_v20 = vrot.slane %v6451_v7, 5  ;;  %v6485_v15 = vshll.u32 %v8176_v23, 16  ;;  %v6490_v21 = vshrl.u32 %v8177_v5, 16  ;;  %v6493_v29 = vshll.u32 %v8177_v5, 16 }
 0x3a9   : > { %v6477_v55 = vrot.slane %v6475_v16, 5  ;;  %v6481_v34 = vrot.slane %v6479_v56, 4  ;;  %v6499_v25 = vshll.u32 %v8178_v9, 16  ;;  %v6503_v28 = vshrl.u32 %v8178_v9, 16  ;;  %5234 = vrot.lane.b32.xlu0 %v12149_v35, %s9208_s17 }
 0x3aa   : > { %4754 = vrot.lane.b32.xlu1 %v8098_v4, %s9207_s16  ;;  %v5878_v46 = vsel %vm5848_vm5, %v5764_v63, %v12191_v12  ;;  %v6492_v26 = vrot.slane %v6490_v21, 4  ;;  %v6495_v6 = vrot.slane %v6493_v29, 5  ;;  %v6454_v7 = vsel %vm11872_vm9, %v6449_v36, %v6453_v20  ;;  %v12272_v12 = vld [vmem:[#allocation3 + $0x178] sm:$0xf] }
 0x3ab   : > { %v6482_v27 = vor.u32 %v6481_v34, %v6477_v55  ;;  %v5975_v39 = vsel %vm5945_vm6, %v5878_v46, %v5661_v2  ;;  %v6434_v23 = vsel %vm11872_vm9, %v6429_v11, %v6433_v62  ;;  %v6444_v45 = vsel %vm11872_vm9, %v6439_v18, %v12212_v33  ;;  %v5183_v58 = vpop.permute.xlu1 %5182  ;;  %v12270_v4 = vpop.permute.xlu0 %4712 }
 0x3ac   : > { %v6487_v63 = vrot.slane %v6485_v15, 5  ;;  %v8181_v35 = vcombine.low %v5975_v39, %v5975_v39  ;;  %v6468_v22 = vsel %vm11872_vm9, %v6463_v37, %v12214_v19  ;;  %v6473_v36 = vrot.slane %v6472_v24, 4  ;;  %v13297_v19 = vld [vmem:[#allocation31_spill] sm:$0xff]  ;;  %v13298_v24 = vld [vmem:[#allocation5_spill] sm:$0xff] }
 0x3ad   : > { %v6483_v5 = vrot.slane %v6482_v27, 4  ;;  %v12277_v9 = vrot.slane %v6499_v25, 5  ;;  %v6505_v62 = vrot.slane %v6503_v28, 4  ;;  %v8255_v16 = vcombine.low %v6434_v23, %v6444_v45  ;;  %5712 = vrot.lane.b32.xlu0 %v12152_v17, %s9209_s19 }
 0x3ae   : > { %5232 = vrot.lane.b32.xlu1 %v12135_v44, %s9208_s17  ;;  %v6524_v33 = vshrl.u32 %v8181_v35, 16  ;;  %v6527_v56 = vshll.u32 %v8181_v35, 16  ;;  %v8256_v2 = vcombine.low %v6454_v7, %v6468_v22  ;;  %v12285_v11 = vcombine.low %v12272_v12, %v12272_v12 }
 0x3af   : > { %v13299_v37 = vcombine.low %v13297_v19, %v13298_v24  ;;  %v6496_v20 = vor.u32 %v6495_v6, %v6492_v26  ;;  %8859 = vmatprep.mubr.bf16.mxu1 %v8255_v16  ;;  %v12292_v15 = vpop.permute.xlu1 %5666  ;;  %v5179_v44 = vpop.permute.xlu0 %5178  ;;  %v6478_v21 = vsel %vm11872_vm9, %v6473_v36, %v6477_v55  ;;  %v6488_v17 = vsel %vm11872_vm9, %v6483_v5, %v6487_v63 }
 0x3b0   : > { %v6526_v29 = vrot.slane %v6524_v33, 4  ;;  %v6529_v34 = vrot.slane %v6527_v56, 5  ;;  %8860 = vmatmul.mubr.bf16.gmra.mxu1 %v8256_v2  ;;  %v8257_v28 = vcombine.low %v6478_v21, %v6488_v17  ;;  %v6506_v46 = vor.u32 %v6505_v62, %v12277_v9 }
 0x3b1   : > { %v5762_v18 = vsel %vm3429_vm13, %v13299_v37, %v12021_v42  ;;  %v8182_v42 = vcombine.high %v5975_v39, %v5975_v39  ;;  %v5586_v55 = vsel %vm3558_vm12, %v12105_v10, %v12193_v50  ;;  %5716 = vrot.lane.b32.xlu0 %v12182_v40, %s9209_s19  ;;  %v5128_v27 = vor.u32 %v5126_v38, %v12195_v1  ;;  %v12312_v39 = vld [vmem:[#allocation3 + $0x168] sm:$0xf] }
 0x3b2   : > { %v5876_v25 = vsel %vm5848_vm5, %v5762_v18, %v5179_v44  ;;  %5236 = vrot.lane.b32.xlu1 %v12155_v8, %s9208_s17  ;;  %8863 = vmatprep.mubr.bf16.mxu1 %v8257_v28  ;;  %v5121_v10 = vsel %vm3558_vm12, %v12116_v57, %v12201_v59  ;;  %v5608_v50 = vor.u32 %v5606_v41, %v12203_v54  ;;  %v5130_v40 = vshrl.u32 %v12285_v11, 16 }
 0x3b3   : > { %v5973_v26 = vsel %vm5945_vm6, %v5876_v25, %v12166_v60  ;;  %v6497_v60 = vrot.slane %v6496_v20, 4  ;;  %v12314_v23 = vpop.permute.xlu1 %4714  ;;  %v12316_v8 = vpop.permute.xlu0 %4708  ;;  %v6530_v45 = vor.u32 %v6529_v34, %v6526_v29  ;;  %v5600_v63 = vor.u32 %v5598_v53, %v12235_v30  ;;  %v13302_v29 = vld [vmem:[#allocation29_spill] sm:$0xff]  ;;  %v13303_v34 = vld [vmem:[#allocation6_spill] sm:$0xff] }
 0x3b4   : > { %v8179_v6 = vcombine.low %v5973_v26, %v5973_v26  ;;  %v8180_v7 = vcombine.high %v5973_v26, %v5973_v26  ;;  %v6507_v35 = vrot.slane %v6506_v46, 4  ;;  %v13300_v22 = vcombine.low %v13290_v13, %v12036_v52  ;;  %v4035_v26 = vld [vmem:[#allocation3 + $0x9c] sm:$0x1] }
 0x3b5   : > { %v6533_v59 = vshll.u32 %v8182_v42, 16  ;;  %v12336_v41 = vcombine.low %v12312_v39, %v12312_v39  ;;  %v6537_v36 = vshrl.u32 %v8182_v42, 16  ;;  %4760 = vrot.lane.b32.xlu0 %v12158_v0, %s9207_s16  ;;  %v6502_v13 = vsel %vm11872_vm9, %v6497_v60, %v12277_v9  ;;  %v12350_v0 = vld [vmem:[#allocation3 + $0x180] sm:$0xff]  }
 0x3b6   : > { %v6509_v48 = vshll.u32 %v8179_v6, 16  ;;  %v6513_v38 = vshrl.u32 %v8179_v6, 16  ;;  %v5767_v57 = vsel %vm3429_vm13, %v13300_v22, %v12252_v14  ;;  %5714 = vrot.lane.b32.xlu1 %v5586_v55, %s9209_s19  ;;  %v6519_v16 = vshll.u32 %v8180_v7, 16 }
 0x3b7   : > { %v5880_v31 = vsel %vm5848_vm5, %v5767_v57, %v5183_v58  ;;  %v5663_v53 = vpop.permute.xlu1 %5662  ;;  %v12341_v52 = vpop.permute.xlu0 %5672  ;;  %v5132_v30 = vrot.slane %v5130_v40, 7  ;;  %v5133_v14 = vshll.u32 %v12285_v11, 16  ;;  %v6531_v33 = vrot.slane %v6530_v45, 4  ;;  %v4094_v11 = vld [vmem:[#allocation3 + $0x188] sm:$0xf] }
 0x3b8   : > { %v6511_v5 = vrot.slane %v6509_v48, 5  ;;  %v6515_v62 = vrot.slane %v6513_v38, 4  ;;  %v5977_v2 = vsel %vm5945_vm6, %v5880_v31, %v5663_v53  ;;  %v13301_v37 = vcombine.low %v12160_v51, %v12170_v43 }
 0x3b9   : > { %v8183_v58 = vcombine.low %v5977_v2, %v5977_v2  ;;  %v8184_v24 = vcombine.high %v5977_v2, %v5977_v2  ;;  %v5610_v18 = vshrl.u32 %v12336_v41, 16  ;;  %v6535_v20 = vrot.slane %v6533_v59, 5  ;;  %5240 = vrot.lane.b32.xlu0 %v5128_v27, %s9208_s17  ;;  %v12370_v27 = vld [vmem:[#allocation3 + $0x178] sm:$0xf] }
 0x3ba   : > { %v6516_v56 = vor.u32 %v6515_v62, %v6511_v5  ;;  %v6512_v19 = vsel %vm11872_vm9, %v6507_v35, %v6511_v5  ;;  %4758 = vrot.lane.b32.xlu1 %v13301_v37, %s9207_s16  ;;  %v6539_v44 = vrot.slane %v6537_v36, 4  ;;  %v6521_v21 = vrot.slane %v6519_v16, 5  ;;  %v4187_v35 = vld [vmem:[#allocation3 + $0x16c] sm:$0x1]  ;;  %v9136_v5 = vld [vmem:[#allocation3 + $0xa0] sm:$0xff]   ;;  %v13304_v37 = vld [vmem:[#allocation4_spill] sm:$0xff] }
 0x3bb   : > { %v8258_v9 = vcombine.low %v6502_v13, %v6512_v19  ;;  %v12361_v25 = vsel %vm5945_vm6, %v13303_v34, %v13302_v29  ;;  %v6543_v28 = vshll.u32 %v8183_v58, 16  ;;  %v6547_v46 = vshrl.u32 %v8183_v58, 16  ;;  %v12363_v42 = vpop.permute.xlu1 %4710  ;;  %v5669_v51 = vpop.permute.xlu0 %5668 }
 0x3bc   : > { %v6517_v17 = vrot.slane %v6516_v56, 4  ;;  %v5135_v43 = vor.u32 %v5133_v14, %v5132_v30  ;;  %v6536_v6 = vsel %vm11872_vm9, %v6531_v33, %v6535_v20  ;;  %v5138_v7 = vshrl.u32 %v12350_v0, 16  ;;  %v9110_v30 = vld [vmem:[#allocation3 + $0x170] sm:$0xff]  }
 0x3bd   : > { %8864 = vmatmul.mubr.bf16.gmra.mxu1 %v8258_v9  ;;  %v12372_v60 = vcombine.low %v4094_v11, %v4094_v11  ;;  %v6545_v40 = vrot.slane %v6543_v28, 5  ;;  %v6549_v45 = vrot.slane %v6547_v46, 4  ;;  %v6553_v48 = vshll.u32 %v8184_v24, 16  ;;  %5720 = vrot.lane.b32.xlu0 %v5608_v50, %s9209_s19 }
 0x3be   : > { %v6522_v55 = vsel %vm11872_vm9, %v6517_v17, %v6521_v21  ;;  %5238 = vrot.lane.b32.xlu1 %v5121_v10, %s9208_s17  ;;  %v6540_v22 = vor.u32 %v6539_v44, %v6535_v20  ;;  %v5601_v57 = vsel %vm3558_vm12, %v12146_v49, %v5600_v63  ;;  %v5612_v59 = vrot.slane %v5610_v18, 7  ;;  %v9137_v49 = vld [vmem:[#allocation3 + $0x98] sm:$0xf] }
 0x3bf   : > { %v8259_v38 = vcombine.low %v6522_v55, %v6536_v6  ;;  %v5613_v36 = vshll.u32 %v12336_v41, 16  ;;  %v5774_v62 = vsel %vm3429_vm13, %v9136_v5, %v12316_v8  ;;  %v6550_v16 = vor.u32 %v6549_v45, %v6545_v40  ;;  %v5189_v31 = vpop.permute.xlu1 %5188  ;;  %v12381_v53 = vpop.permute.xlu0 %4720 }
 0x3c0   : > { %v5136_v10 = vsel %vm3558_vm12, %v12195_v1, %v5135_v43  ;;  %v12387_v50 = vcombine.low %v12370_v27, %v12370_v27  ;;  %v8026_v63 = vcombine.low %v9137_v49, %v4035_v26  ;;  %v5886_v41 = vsel %vm5848_vm5, %v5774_v62, %v5189_v31 }
 0x3c1   : > { %8867 = vmatprep.mubr.bf16.mxu1 %v8259_v38  ;;  %v8102_v13 = vcombine.low %v12312_v39, %v4187_v35  ;;  %v5141_v8 = vshll.u32 %v12350_v0, 16  ;;  %v6551_v14 = vrot.slane %v6550_v16, 4  ;;  %v6555_v33 = vrot.slane %v6553_v48, 5  ;;  %5242 = vrot.lane.b32.xlu0 %v5136_v10, %s9208_s17 }
 0x3c2   : > { %5718 = vrot.lane.b32.xlu1 %v5601_v57, %s9209_s19  ;;  %v12393_v56 = vrot.slane %v5138_v7, 7  ;;  %v5145_v1 = vshrl.u32 %v12372_v60, 16  ;;  %v6541_v2 = vrot.slane %v6540_v22, 4  ;;  %v5983_v19 = vsel %vm5945_vm6, %v5886_v41, %v5669_v51 }
 0x3c3   : > { %v5615_v58 = vor.u32 %v5613_v36, %v5612_v59  ;;  %v5618_v24 = vshrl.u32 %v9110_v30, 16  ;;  %v12400_v39 = vcombine.low %v13304_v37, %v13304_v37  ;;  %v12404_v0 = vcombine.high %v13304_v37, %v13304_v37  ;;  %v12408_v18 = vpop.permute.xlu1 %5190  ;;  %v5187_v11 = vpop.permute.xlu0 %5186  ;;  %v12443_v59 = vld [vmem:[#allocation3 + $0xbc] sm:$0x1]  ;;  %v4039_v37 = vld [vmem:[#allocation3 + $0xac] sm:$0x1] }
 0x3c4   : > { %v6556_v9 = vsel %vm11872_vm9, %v6551_v14, %v6555_v33  ;;  %v5625_v20 = vshrl.u32 %v12387_v50, 16  ;;  %v12413_v44 = vcombine.low %v12361_v25, %v12361_v25  ;;  %v5772_v21 = vsel %vm3429_vm13, %v8026_v63, %v12218_v3  ;;  %v4191_v3 = vld [vmem:[#allocation3 + $0x17c] sm:$0x1]  ;;  %v9138_v63 = vld [vmem:[#allocation3 + $0x90] sm:$0xff]  }
 0x3c5   : > { %v6546_v17 = vsel %vm11872_vm9, %v6541_v2, %v6545_v40  ;;  %v5148_v29 = vshll.u32 %v12372_v60, 16  ;;  %v8189_v34 = vcombine.low %v5983_v19, %v5983_v19  ;;  %v5884_v28 = vsel %vm5848_vm5, %v5772_v21, %v5187_v11  ;;  %4764 = vrot.lane.b32.xlu0 %v9110_v30, %s9207_s16 }
 0x3c6   : > { %4762 = vrot.lane.b32.xlu1 %v8102_v13, %s9207_s16  ;;  %v8260_v46 = vcombine.low %v6546_v17, %v6556_v9  ;;  %v5147_v51 = vrot.slane %v5145_v1, 7  ;;  %v5616_v43 = vsel %vm3558_vm12, %v12203_v54, %v5615_v58  ;;  %v5143_v26 = vor.u32 %v5141_v8, %v12393_v56  ;;  %v9139_v1 = vld [vmem:[#allocation3 + $0x130] sm:$0xff]  }
 0x3c7   : > { %v5620_v55 = vrot.slane %v5618_v24, 7  ;;  %v5621_v6 = vshll.u32 %v9110_v30, 16  ;;  %v8190_v7 = vcombine.high %v5983_v19, %v5983_v19  ;;  %v12428_v60 = vsel %vm5945_vm6, %v5884_v28, %v12292_v15  ;;  %v12430_v40 = vpop.permute.xlu1 %5674  ;;  %v12432_v45 = vpop.permute.xlu0 %4716  ;;  %v12441_v15 = vld [vmem:[#allocation3 + $0x13c] sm:$0x1]  ;;  %v12457_v19 = vld [vmem:[#allocation3 + $0x138] sm:$0xf] }
 0x3c8   : > { %8868 = vmatmul.mubr.bf16.gmra.mxu1 %v8260_v46  ;;  %v5627_v48 = vrot.slane %v5625_v20, 7  ;;  %v5628_v38 = vshll.u32 %v12387_v50, 16  ;;  %v6864_v54 = vshrl.u32 %v12400_v39, 16  ;;  %v6867_v35 = vshll.u32 %v12400_v39, 16  ;;  %v12461_v24 = vld [vmem:[#allocation3 + $0xb8] sm:$0xf] }
 0x3c9   : > { %v8224_v22 = vcombine.high %v12361_v25, %v12361_v25  ;;  %v8187_v57 = vcombine.low %v12428_v60, %v12428_v60  ;;  %v6592_v36 = vshrl.u32 %v8189_v34, 16  ;;  %v6595_v5 = vshll.u32 %v8189_v34, 16  ;;  %5244 = vrot.lane.b32.xlu0 %v5143_v26, %s9208_s17 }
 0x3ca   : > { %5722 = vrot.lane.b32.xlu1 %v5616_v43, %s9209_s19  ;;  %v8104_v62 = vcombine.low %v12370_v27, %v4191_v3  ;;  %v5150_v16 = vor.u32 %v5148_v29, %v5147_v51  ;;  %v6873_v31 = vshll.u32 %v12404_v0, 16  ;;  %v5623_v49 = vor.u32 %v5621_v6, %v5620_v55  ;;  %v13305_v27 = vld [vmem:[#allocation27_spill] sm:$0xff] }
 0x3cb   : > { %v6577_v10 = vshll.u32 %v8187_v57, 16  ;;  %v6581_v50 = vshrl.u32 %v8187_v57, 16  ;;  %v5769_v41 = vsel %vm3429_vm13, %v9138_v63, %v12097_v47  ;;  %v6601_v13 = vshll.u32 %v8190_v7, 16  ;;  %v5185_v8 = vpop.permute.xlu1 %5184  ;;  %v12451_v14 = vpop.permute.xlu0 %5196  ;;  %v9142_v51 = vld [vmem:[#allocation3 + $0xa8] sm:$0xf] }
 0x3cc   : > { %v6605_v30 = vshrl.u32 %v8190_v7, 16  ;;  %v5630_v33 = vor.u32 %v5628_v38, %v5627_v48  ;;  %v12455_v2 = vsel %vm3429_vm13, %v9139_v1, %v13305_v27  ;;  %v8046_v58 = vcombine.low %v12457_v19, %v12441_v15  ;;  %v9145_v19 = vld [vmem:[#allocation3 + $0xc8] sm:$0xf] }
 0x3cd   : > { %v8030_v47 = vcombine.low %v12461_v24, %v12443_v59  ;;  %v5882_v9 = vsel %vm5848_vm5, %v5769_v41, %v5185_v8  ;;  %v6594_v11 = vrot.slane %v6592_v36, 4  ;;  %v6597_v20 = vrot.slane %v6595_v5, 5  ;;  %5724 = vrot.lane.b32.xlu0 %v5623_v49, %s9209_s19  ;;  %v9143_v36 = vld [vmem:[#allocation3 + $0xb0] sm:$0xff]   ;;  %v13307_v24 = vld [vmem:[#allocation43_spill] sm:$0xff] }
 0x3ce   : > { %v5979_v21 = vsel %vm5945_vm6, %v5882_v9, %v12220_v61  ;;  %4766 = vrot.lane.b32.xlu1 %v8104_v62, %s9207_s16  ;;  %v5151_v17 = vsel %vm3558_vm12, %v12393_v56, %v5150_v16  ;;  %v12471_v29 = vrot.slane %v6577_v10, 5  ;;  %v6583_v34 = vrot.slane %v6581_v50, 4 }
 0x3cf   : > { %v8185_v28 = vcombine.low %v5979_v21, %v5979_v21  ;;  %v8186_v46 = vcombine.high %v5979_v21, %v5979_v21  ;;  %v8028_v43 = vcombine.low %v9142_v51, %v4039_v37  ;;  %v12474_v26 = vrot.slane %v6601_v13, 5  ;;  %v12478_v6 = vpop.permute.xlu1 %4722  ;;  %v12480_v61 = vpop.permute.xlu0 %5680  ;;  %v9144_v13 = vld [vmem:[#allocation3 + $0xc0] sm:$0xff]  }
 0x3d0   : > { %v12476_v3 = vrot.slane %v6605_v30, 4  ;;  %v5631_v7 = vsel %vm3558_vm12, %v5620_v55, %v5630_v33  ;;  %v8188_v56 = vcombine.high %v12428_v60, %v12428_v60  ;;  %v5779_v5 = vsel %vm3429_vm13, %v9143_v36, %v12270_v4 }
 0x3d1   : > { %v6558_v48 = vshrl.u32 %v8185_v28, 16  ;;  %v6561_v38 = vshll.u32 %v8185_v28, 16  ;;  %v6567_v57 = vshll.u32 %v8186_v46, 16  ;;  %v5777_v62 = vsel %vm3429_vm13, %v8028_v43, %v12363_v42 }
 0x3d2   : > { %v6598_v16 = vor.u32 %v6597_v20, %v6594_v11  ;;  %v6571_v10 = vshrl.u32 %v8186_v46, 16  ;;  %5246 = vrot.lane.b32.xlu1 %v5151_v17, %s9208_s17  ;;  %v6584_v50 = vor.u32 %v6583_v34, %v12471_v29  ;;  %v6608_v60 = vor.u32 %v12476_v3, %v12474_v26 }
 0x3d3   : > { %v6560_v55 = vrot.slane %v6558_v48, 4  ;;  %v6563_v49 = vrot.slane %v6561_v38, 5  ;;  %v6569_v63 = vrot.slane %v6567_v57, 5  ;;  %v5888_v41 = vsel %vm5848_vm5, %v5777_v62, %v12408_v18  ;;  %v5671_v30 = vpop.permute.xlu1 %5670  ;;  %v5193_v8 = vpop.permute.xlu0 %5192 }
 0x3d4   : > { %v5784_v4 = vsel %vm3429_vm13, %v9144_v13, %v12432_v45  ;;  %v6573_v42 = vrot.slane %v6571_v10, 4  ;;  %v6587_v33 = vshll.u32 %v8188_v56, 16  ;;  %v5985_v27 = vsel %vm5945_vm6, %v5888_v41, %v5671_v30 }
 0x3d5   : > { %v6564_v1 = vor.u32 %v6563_v49, %v6560_v55  ;;  %v5890_v37 = vsel %vm5848_vm5, %v5779_v5, %v5193_v8  ;;  %v8191_v11 = vcombine.low %v5985_v27, %v5985_v27  ;;  %v8192_v20 = vcombine.high %v5985_v27, %v5985_v27 }
 0x3d6   : > { %v6574_v9 = vor.u32 %v6573_v42, %v6569_v63  ;;  %v5987_v21 = vsel %vm5945_vm6, %v5890_v37, %v12341_v52  ;;  %5726 = vrot.lane.b32.xlu1 %v5631_v7, %s9209_s19  ;;  %v6599_v18 = vrot.slane %v6598_v16, 4  ;;  %v6585_v17 = vrot.slane %v6584_v50, 4 }
 0x3d7   : > { %v8193_v45 = vcombine.low %v5987_v21, %v5987_v21  ;;  %v8194_v34 = vcombine.high %v5987_v21, %v5987_v21  ;;  %v6611_v28 = vshll.u32 %v8191_v11, 16  ;;  %v6615_v46 = vshrl.u32 %v8191_v11, 16  ;;  %v12502_v51 = vpop.permute.xlu1 %4718  ;;  %v5677_v43 = vpop.permute.xlu0 %5676 }
 0x3d8   : > { %v6565_v3 = vrot.slane %v6564_v1, 4  ;;  %v6575_v56 = vrot.slane %v6574_v9, 4  ;;  %v6589_v48 = vrot.slane %v6587_v33, 5  ;;  %v6621_v38 = vshll.u32 %v8192_v20, 16  ;;  %v13306_v20 = vld [vmem:[#allocation30_spill] sm:$0xff] }
 0x3d9   : > { %v6626_v57 = vshrl.u32 %v8193_v45, 16  ;;  %v6629_v36 = vshll.u32 %v8193_v45, 16  ;;  %v6613_v5 = vrot.slane %v6611_v28, 5  ;;  %v6617_v62 = vrot.slane %v6615_v46, 4  ;;  %v4047_v28 = vld [vmem:[#allocation3 + $0xcc] sm:$0x1] }
 0x3da   : > { %v6635_v52 = vshll.u32 %v8194_v34, 16  ;;  %v6639_v10 = vshrl.u32 %v8194_v34, 16  ;;  %v5894_v7 = vsel %vm5848_vm5, %v5784_v4, %v12451_v14  ;;  %v6590_v55 = vsel %vm11872_vm9, %v6585_v17, %v6589_v48 }
 0x3db   : > { %v6628_v16 = vrot.slane %v6626_v57, 4  ;;  %v6631_v50 = vrot.slane %v6629_v36, 5  ;;  %v6618_v49 = vor.u32 %v6617_v62, %v6613_v5  ;;  %v5991_v41 = vsel %vm5945_vm6, %v5894_v7, %v5677_v43  ;;  %v5199_v30 = vpop.permute.xlu1 %5198  ;;  %v12514_v8 = vpop.permute.xlu0 %4728  ;;  %v13308_v57 = vld [vmem:[#allocation44_spill] sm:$0xff] }
 0x3dc   : > { %v6570_v13 = vsel %vm11872_vm9, %v6565_v3, %v6569_v63  ;;  %v6580_v42 = vsel %vm11872_vm9, %v6575_v56, %v12471_v29  ;;  %v6623_v33 = vrot.slane %v6621_v38, 5  ;;  %v8197_v14 = vcombine.low %v5991_v41, %v5991_v41 }
 0x3dd   : > { %v6604_v4 = vsel %vm11872_vm9, %v6599_v18, %v12474_v26  ;;  %v6609_v1 = vrot.slane %v6608_v60, 4  ;;  %v6619_v27 = vrot.slane %v6618_v49, 4  ;;  %v6637_v37 = vrot.slane %v6635_v52, 5 }
 0x3de   : > { %v6641_v9 = vrot.slane %v6639_v10, 4  ;;  %v8261_v11 = vcombine.low %v6570_v13, %v6580_v42  ;;  %v5922_v63 = vsel %vm5848_vm5, %v12455_v2, %v13306_v20  ;;  %v6660_v21 = vshrl.u32 %v8197_v14, 16  ;;  %v13310_v20 = vld [vmem:[#allocation45_spill] sm:$0xff] }
 0x3df   : > { %v6663_v29 = vshll.u32 %v8197_v14, 16  ;;  %v8262_v17 = vcombine.low %v6590_v55, %v6604_v4  ;;  %v5782_v45 = vsel %vm3429_vm13, %v8030_v47, %v12314_v23  ;;  %v6632_v34 = vor.u32 %v6631_v50, %v6628_v16  ;;  %v12527_v26 = vpop.permute.xlu1 %5682  ;;  %v5195_v60 = vpop.permute.xlu0 %5194 }
 0x3e0   : > { %8871 = vmatprep.mubr.bf16.mxu1 %v8261_v11  ;;  %v6614_v18 = vsel %vm11872_vm9, %v6609_v1, %v6613_v5  ;;  %v6624_v2 = vsel %vm11872_vm9, %v6619_v27, %v6623_v33  ;;  %v6662_v46 = vrot.slane %v6660_v21, 4  ;;  %v5892_v3 = vsel %vm5848_vm5, %v5782_v45, %v5195_v60 }
 0x3e1   : > { %v6665_v43 = vrot.slane %v6663_v29, 5  ;;  %8872 = vmatmul.mubr.bf16.gmra.mxu1 %v8262_v17  ;;  %v8263_v59 = vcombine.low %v6614_v18, %v6624_v2  ;;  %v5822_v23 = vsel %vm3429_vm13, %v8046_v58, %v13307_v24  ;;  %v6642_v47 = vor.u32 %v6641_v9, %v6637_v37 }
 0x3e2   : > { %v8198_v56 = vcombine.high %v5991_v41, %v5991_v41  ;;  %v5989_v48 = vsel %vm5945_vm6, %v5892_v3, %v12430_v40  ;;  %v6877_v38 = vshrl.u32 %v12404_v0, 16  ;;  %v6019_v36 = vsel %vm5945_vm6, %v5922_v63, %v13308_v57  ;;  %v13309_v40 = vld [vmem:[#allocation46_spill] sm:$0xff] }
 0x3e3   : > { %v8195_v5 = vcombine.low %v5989_v48, %v5989_v48  ;;  %v8196_v62 = vcombine.high %v5989_v48, %v5989_v48  ;;  %8875 = vmatprep.mubr.bf16.mxu1 %v8263_v59  ;;  %v6883_v52 = vshll.u32 %v12413_v44, 16  ;;  %v6887_v10 = vshrl.u32 %v12413_v44, 16  ;;  %v12546_v7 = vpop.permute.xlu1 %4730  ;;  %v12548_v16 = vpop.permute.xlu0 %4724 }
 0x3e4   : > { %v6633_v15 = vrot.slane %v6632_v34, 4  ;;  %v8032_v58 = vcombine.low %v9145_v19, %v4047_v28  ;;  %v5924_v50 = vsel %vm5848_vm5, %v5822_v23, %v13309_v40  ;;  %v6666_v55 = vor.u32 %v6665_v43, %v6662_v46 }
 0x3e5   : > { %v6645_v49 = vshll.u32 %v8195_v5, 16  ;;  %v6649_v41 = vshrl.u32 %v8195_v5, 16  ;;  %v8225_v13 = vcombine.low %v6019_v36, %v6019_v36  ;;  %v6643_v42 = vrot.slane %v6642_v47, 4 }
 0x3e6   : > { %v5787_v33 = vsel %vm3429_vm13, %v8032_v58, %v12502_v51  ;;  %v6669_v14 = vshll.u32 %v8198_v56, 16  ;;  %v6673_v4 = vshrl.u32 %v8198_v56, 16  ;;  %v6655_v9 = vshll.u32 %v8196_v62, 16 }
 0x3e7   : > { %v6647_v1 = vrot.slane %v6645_v49, 5  ;;  %v6651_v27 = vrot.slane %v6649_v41, 4  ;;  %v8226_v11 = vcombine.high %v6019_v36, %v6019_v36  ;;  %v12556_v63 = vsel %vm5945_vm6, %v5924_v50, %v13310_v20  ;;  %v5679_v29 = vpop.permute.xlu1 %5678  ;;  %v12559_v17 = vpop.permute.xlu0 %5688 }
 0x3e8   : > { %v5896_v21 = vsel %vm5848_vm5, %v5787_v33, %v5199_v30  ;;  %v6638_v45 = vsel %vm11872_vm9, %v6633_v15, %v6637_v37  ;;  %v6667_v34 = vrot.slane %v6666_v55, 4  ;;  %v6898_v2 = vshrl.u32 %v8225_v13, 16 }
 0x3e9   : > { %v6652_v51 = vor.u32 %v6651_v27, %v6647_v1  ;;  %v5993_v60 = vsel %vm5945_vm6, %v5896_v21, %v5679_v29  ;;  %v6648_v18 = vsel %vm11872_vm9, %v6643_v42, %v6647_v1  ;;  %v6671_v3 = vrot.slane %v6669_v14, 5 }
 0x3ea   : > { %v8199_v28 = vcombine.low %v5993_v60, %v5993_v60  ;;  %v8200_v46 = vcombine.high %v5993_v60, %v5993_v60  ;;  %v8264_v43 = vcombine.low %v6638_v45, %v6648_v18  ;;  %v6675_v59 = vrot.slane %v6673_v4, 4  ;;  %v4051_v4 = vld [vmem:[#allocation3 + $0xdc] sm:$0x1]  ;;  %v9146_v45 = vld [vmem:[#allocation3 + $0xd8] sm:$0xf]  ;;  %v9147_v60 = vld [vmem:[#allocation3 + $0xe0] sm:$0xff]  }
 0x3eb   : > { %v6657_v30 = vrot.slane %v6655_v9, 5  ;;  %v6653_v24 = vrot.slane %v6652_v51, 4  ;;  %v6901_v23 = vshll.u32 %v8225_v13, 16  ;;  %v8227_v47 = vcombine.low %v12556_v63, %v12556_v63  ;;  %v5685_v57 = vpop.permute.xlu0 %5684 }
 0x3ec   : > { %v6679_v37 = vshll.u32 %v8199_v28, 16  ;;  %v6683_v56 = vshrl.u32 %v8199_v28, 16  ;;  %v12568_v48 = vpop.permute.xlu1 %4726  ;;  %8876 = vmatmul.mubr.bf16.gmra.mxu1 %v8264_v43  ;;  %v6907_v36 = vshll.u32 %v8226_v11, 16  ;;  %v6911_v5 = vshrl.u32 %v8226_v11, 16  ;;  %v4079_v11 = vld [vmem:[#allocation3 + $0x14c] sm:$0x1] }
 0x3ed   : > { %v6658_v62 = vsel %vm11872_vm9, %v6653_v24, %v6657_v30  ;;  %v6672_v15 = vsel %vm11872_vm9, %v6667_v34, %v6671_v3  ;;  %v6689_v40 = vshll.u32 %v8200_v46, 16  ;;  %v6866_v55 = vrot.slane %v6864_v54, 4  ;;  %v9148_v43 = vld [vmem:[#allocation3 + $0x148] sm:$0xf] }
 0x3ee   : > { %v6681_v19 = vrot.slane %v6679_v37, 5  ;;  %v6685_v58 = vrot.slane %v6683_v56, 4  ;;  %v8265_v50 = vcombine.low %v6658_v62, %v6672_v15  ;;  %v6869_v49 = vrot.slane %v6867_v35, 5 }
 0x3ef   : > { %v12580_v41 = vrot.slane %v6873_v31, 5  ;;  %v6676_v13 = vor.u32 %v6675_v59, %v6671_v3  ;;  %v6879_v42 = vrot.slane %v6877_v38, 4  ;;  %v6917_v33 = vshll.u32 %v8227_v47, 16  ;;  %v12582_v9 = vpop.permute.xlu0 %4736 }
 0x3f0   : > { %v6921_v14 = vshrl.u32 %v8227_v47, 16  ;;  %v6686_v1 = vor.u32 %v6685_v58, %v6681_v19  ;;  %v5205_v27 = vpop.permute.xlu1 %5204  ;;  %8879 = vmatprep.mubr.bf16.mxu1 %v8265_v50  ;;  %v12586_v54 = vrot.slane %v6883_v52, 5  ;;  %v6889_v39 = vrot.slane %v6887_v10, 4  ;;  %v13311_v58 = vld [vmem:[#allocation47_spill] sm:$0xff] }
 0x3f1   : > { %v6900_v0 = vrot.slane %v6898_v2, 4  ;;  %v6903_v35 = vrot.slane %v6901_v23, 5  ;;  %v12590_v31 = vrot.slane %v6907_v36, 5  ;;  %v6913_v38 = vrot.slane %v6911_v5, 4 }
 0x3f2   : > { %v6687_v20 = vrot.slane %v6686_v1, 4  ;;  %v6691_v21 = vrot.slane %v6689_v40, 5  ;;  %v8228_v29 = vcombine.high %v12556_v63, %v12556_v63  ;;  %v8034_v34 = vcombine.low %v9146_v45, %v4051_v4 }
 0x3f3   : > { %v6677_v51 = vrot.slane %v6676_v13, 4  ;;  %v5794_v52 = vsel %vm3429_vm13, %v9147_v60, %v12548_v16  ;;  %v12596_v44 = vrot.slane %v6917_v33, 5  ;;  %v6923_v10 = vrot.slane %v6921_v14, 4  ;;  %v5203_v46 = vpop.permute.xlu0 %5202  ;;  %v12656_v60 = vld [vmem:[#allocation3 + $0xf8] sm:$0xf] }
 0x3f4   : > { %v6692_v18 = vsel %vm11872_vm9, %v6687_v20, %v6691_v21  ;;  %v5902_v2 = vsel %vm5848_vm5, %v5794_v52, %v5205_v27  ;;  %v12601_v28 = vpop.permute.xlu1 %5206  ;;  %v12606_v63 = vshll.u32 %v8224_v22, 16  ;;  %v8048_v3 = vcombine.low %v9148_v43, %v4079_v11  ;;  %v9150_v20 = vld [vmem:[#allocation3 + $0xd0] sm:$0xff]  }
 0x3f5   : > { %v5792_v16 = vsel %vm3429_vm13, %v8034_v34, %v12478_v6  ;;  %v6682_v59 = vsel %vm11872_vm9, %v6677_v51, %v6681_v19  ;;  %v6870_v30 = vor.u32 %v6869_v49, %v6866_v55  ;;  %v6880_v24 = vor.u32 %v6879_v42, %v12580_v41  ;;  %v9149_v55 = vld [vmem:[#allocation3 + $0x140] sm:$0xff]   ;;  %v13312_v49 = vld [vmem:[#allocation48_spill] sm:$0xff]  ;;  %v12635_v42 = vld [vmem:[#allocation3 + $0xfc] sm:$0x1] }
 0x3f6   : > { %v5900_v23 = vsel %vm5848_vm5, %v5792_v16, %v5203_v46  ;;  %v8266_v47 = vcombine.low %v6682_v59, %v6692_v18  ;;  %v6890_v37 = vor.u32 %v6889_v39, %v12586_v54  ;;  %v6904_v56 = vor.u32 %v6903_v35, %v6900_v0  ;;  %v12641_v39 = vld [vmem:[#allocation3 + $0x11c] sm:$0x1]  ;;  %v13314_v34 = vld [vmem:[#allocation50_spill] sm:$0xff]  ;;  %v12661_v46 = vld [vmem:[#allocation3 + $0x10c] sm:$0x1] }
 0x3f7   : > { %v6914_v25 = vor.u32 %v6913_v38, %v12590_v31  ;;  %v5999_v22 = vsel %vm5945_vm6, %v5902_v2, %v5685_v57  ;;  %v6924_v36 = vor.u32 %v6923_v10, %v12596_v44  ;;  %v12618_v5 = vshll.u32 %v8228_v29, 16  ;;  %v12626_v15 = vpop.permute.xlu0 %4732  ;;  %v13313_v38 = vld [vmem:[#allocation49_spill] sm:$0xff]  ;;  %v9152_v10 = vld [vmem:[#allocation3 + $0xe8] sm:$0xf] }
 0x3f8   : > { %v12622_v6 = vsel %vm5945_vm6, %v5900_v23, %v12527_v26  ;;  %8880 = vmatmul.mubr.bf16.gmra.mxu1 %v8266_v47  ;;  %v12624_v62 = vpop.permute.xlu1 %5690  ;;  %v6895_v19 = vrot.slane %v12606_v63, 5  ;;  %v5827_v40 = vsel %vm3429_vm13, %v8048_v3, %v13311_v58  ;;  %v12631_v50 = vrot.slane %v6870_v30, 4  ;;  %v4055_v26 = vld [vmem:[#allocation3 + $0xec] sm:$0x1]  ;;  %v12665_v3 = vld [vmem:[#allocation3 + $0x118] sm:$0xf] }
 0x3f9   : > { %v6881_v57 = vrot.slane %v6880_v24, 4  ;;  %v5824_v13 = vsel %vm3429_vm13, %v9149_v55, %v13312_v49  ;;  %v8205_v33 = vcombine.low %v5999_v22, %v5999_v22  ;;  %v6891_v14 = vrot.slane %v6890_v37, 4 }
 0x3fa   : > { %v12637_v4 = vrot.slane %v6904_v56, 4  ;;  %v6915_v1 = vrot.slane %v6914_v25, 4  ;;  %v8203_v27 = vcombine.low %v12622_v6, %v12622_v6  ;;  %v6925_v0 = vrot.slane %v6924_v36, 4  ;;  %v12671_v56 = vld [vmem:[#allocation3 + $0x108] sm:$0xf] }
 0x3fb   : > { %v6929_v35 = vrot.slane %v12618_v5, 5  ;;  %v12646_v11 = vsel %vm5848_vm5, %v5827_v40, %v13313_v38  ;;  %v5789_v21 = vsel %vm3429_vm13, %v9150_v20, %v12381_v53  ;;  %v12650_v45 = vpop.permute.xlu0 %5212  ;;  %v12654_v51 = vsel %vm5848_vm5, %v5824_v13, %v13314_v34 }
 0x3fc   : > { %v5201_v29 = vpop.permute.xlu1 %5200  ;;  %v8038_v52 = vcombine.low %v12656_v60, %v12635_v42  ;;  %v8036_v18 = vcombine.low %v9152_v10, %v4055_v26  ;;  %v8206_v63 = vcombine.high %v5999_v22, %v5999_v22  ;;  %v6728_v53 = vshrl.u32 %v8205_v33, 16  ;;  %v9156_v10 = vld [vmem:[#allocation3 + $0xf0] sm:$0xff]  }
 0x3fd   : > { %v5898_v2 = vsel %vm5848_vm5, %v5789_v21, %v5201_v29  ;;  %v8042_v16 = vcombine.low %v12665_v3, %v12641_v39  ;;  %v6731_v59 = vshll.u32 %v8205_v33, 16  ;;  %v6713_v30 = vshll.u32 %v8203_v27, 16  ;;  %v13316_v3 = vld [vmem:[#allocation26_spill] sm:$0xff] }
 0x3fe   : > { %v5995_v43 = vsel %vm5945_vm6, %v5898_v2, %v12480_v61  ;;  %v6717_v24 = vshrl.u32 %v8203_v27, 16  ;;  %v8040_v25 = vcombine.low %v12671_v56, %v12661_v46  ;;  %v6876_v61 = vsel %vm11872_vm9, %v12631_v50, %v12580_v41 }
 0x3ff   : > { %v8201_v23 = vcombine.low %v5995_v43, %v5995_v43  ;;  %v5697_v37 = vpop.permute.xlu0 %5696  ;;  %v6886_v22 = vsel %vm11872_vm9, %v6881_v57, %v12586_v54  ;;  %v6896_v36 = vsel %vm11872_vm9, %v6891_v14, %v6895_v19  ;;  %v5797_v5 = vsel %vm3429_vm13, %v8036_v18, %v12568_v48  ;;  %v9155_v48 = vld [vmem:[#allocation3 + $0x110] sm:$0xff]  }
 0x400   : > { %v12669_v47 = vpop.permute.xlu1 %4738  ;;  %v8202_v58 = vcombine.high %v5995_v43, %v5995_v43  ;;  %v6910_v40 = vsel %vm11872_vm9, %v12637_v4, %v12590_v31  ;;  %v6920_v55 = vsel %vm11872_vm9, %v6915_v1, %v12596_v44  ;;  %v6737_v49 = vshll.u32 %v8206_v63, 16  ;;  %v12719_v43 = vld [vmem:[#allocation3 + $0x16c] sm:$0x1] }
 0x401   : > { %v6741_v13 = vshrl.u32 %v8206_v63, 16  ;;  %v6694_v26 = vshrl.u32 %v8201_v23, 16  ;;  %v6697_v54 = vshll.u32 %v8201_v23, 16  ;;  %v6730_v57 = vrot.slane %v6728_v53, 4 }
 0x402   : > { %v6733_v33 = vrot.slane %v6731_v59, 5  ;;  %v12693_v19 = vrot.slane %v6713_v30, 5  ;;  %v6719_v14 = vrot.slane %v6717_v24, 4  ;;  %v5809_v27 = vsel %vm3429_vm13, %v9155_v48, %v12582_v9  ;;  %v12710_v9 = vld [vmem:[#allocation3 + $0x15c] sm:$0x1]  ;;  %v13315_v30 = vld [vmem:[#allocation24_spill] sm:$0xff] }
 0x403   : > { %v5904_v31 = vsel %vm5848_vm5, %v5797_v5, %v12601_v28  ;;  %v5209_v38 = vpop.permute.xlu0 %5208  ;;  %v12699_v20 = vcombine.low %v6886_v22, %v6896_v36  ;;  %v12703_v44 = vsel %vm11872_vm9, %v6925_v0, %v6929_v35  ;;  %v8204_v1 = vcombine.high %v12622_v6, %v12622_v6  ;;  %v12721_v59 = vld [vmem:[#allocation3 + $0x17c] sm:$0x1]  ;;  %v12730_v5 = vld [vmem:[#allocation3 + $0x158] sm:$0xf] }
 0x404   : > { %v5687_v4 = vpop.permute.xlu1 %5686  ;;  %v6703_v21 = vshll.u32 %v8202_v58, 16  ;;  %v6707_v29 = vshrl.u32 %v8202_v58, 16  ;;  %v5799_v28 = vsel %vm3429_vm13, %v9156_v10, %v12514_v8  ;;  %v6696_v18 = vrot.slane %v6694_v26, 4 }
 0x405   : > { %v12708_v34 = vsel %vm5945_vm6, %v5904_v31, %v5687_v4  ;;  %v6699_v2 = vrot.slane %v6697_v54, 5  ;;  %v12714_v63 = vcombine.low %v6910_v40, %v6920_v55  ;;  %v6734_v0 = vor.u32 %v6733_v33, %v6730_v57  ;;  %v12740_v57 = vld [vmem:[#allocation3 + $0x168] sm:$0xf]  ;;  %v9159_v4 = vld [vmem:[#allocation3 + $0x100] sm:$0xff]  }
 0x406   : > { %v12716_v35 = vrot.slane %v6737_v49, 5  ;;  %v6743_v53 = vrot.slane %v6741_v13, 4  ;;  %v6720_v6 = vor.u32 %v6719_v14, %v12693_v19  ;;  %v5914_v24 = vsel %vm5848_vm5, %v5809_v27, %v13315_v30 }
 0x407   : > { %v8207_v8 = vcombine.low %v12708_v34, %v12708_v34  ;;  %v5906_v23 = vsel %vm5848_vm5, %v5799_v28, %v5209_v38  ;;  %v5693_v36 = vpop.permute.xlu0 %5692  ;;  %v8050_v58 = vcombine.low %v12730_v5, %v12710_v9  ;;  %v6723_v40 = vshll.u32 %v8204_v1, 16 }
 0x408   : > { %v12728_v22 = vpop.permute.xlu1 %4734  ;;  %v6705_v55 = vrot.slane %v6703_v21, 5  ;;  %v6709_v49 = vrot.slane %v6707_v29, 4  ;;  %v6011_v13 = vsel %vm5945_vm6, %v5914_v24, %v5697_v37  ;;  %v5802_v26 = vsel %vm3429_vm13, %v8038_v52, %v12546_v7 }
 0x409   : > { %v6700_v54 = vor.u32 %v6699_v2, %v6696_v18  ;;  %v8052_v33 = vcombine.low %v12740_v57, %v12719_v43  ;;  %v8054_v14 = vcombine.low %v12272_v12, %v12721_v59  ;;  %v6735_v48 = vrot.slane %v6734_v0, 4 }
 0x40a   : > { %v6744_v27 = vor.u32 %v6743_v53, %v12716_v35  ;;  %v6721_v31 = vrot.slane %v6720_v6, 4  ;;  %v6003_v37 = vsel %vm5945_vm6, %v5906_v23, %v12559_v17  ;;  %v5804_v7 = vsel %vm3429_vm13, %v9159_v4, %v12626_v15 }
 0x40b   : > { %v8217_v42 = vcombine.low %v6011_v13, %v6011_v13  ;;  %v6747_v60 = vshll.u32 %v8207_v8, 16  ;;  %v6751_v52 = vshrl.u32 %v8207_v8, 16  ;;  %v5211_v1 = vpop.permute.xlu0 %5210  ;;  %v6725_v21 = vrot.slane %v6723_v40, 5 }
 0x40c   : > { %v12751_v38 = vpop.permute.xlu1 %5214  ;;  %v6710_v29 = vor.u32 %v6709_v49, %v6705_v55  ;;  %v5910_v10 = vsel %vm5848_vm5, %v5804_v7, %v12650_v45  ;;  %v5812_v17 = vsel %vm3429_vm13, %v8042_v16, %v12669_v47  ;;  %v8218_v28 = vcombine.high %v6011_v13, %v6011_v13 }
 0x40d   : > { %v8209_v18 = vcombine.low %v6003_v37, %v6003_v37  ;;  %v6007_v15 = vsel %vm5945_vm6, %v5910_v10, %v5693_v36  ;;  %v6701_v2 = vrot.slane %v6700_v54, 4  ;;  %v8210_v0 = vcombine.high %v6003_v37, %v6003_v37 }
 0x40e   : > { %v6726_v53 = vsel %vm11872_vm9, %v6721_v31, %v6725_v21  ;;  %v6740_v6 = vsel %vm11872_vm9, %v6735_v48, %v12716_v35  ;;  %v12766_v45 = vrot.slane %v6744_v27, 4  ;;  %v6830_v30 = vshrl.u32 %v8217_v42, 16 }
 0x40f   : > { %v12768_v24 = vrot.slane %v6747_v60, 5  ;;  %v6753_v39 = vrot.slane %v6751_v52, 4  ;;  %v5916_v16 = vsel %vm5848_vm5, %v5812_v17, %v13316_v3  ;;  %v5709_v8 = vpop.permute.xlu0 %5708  ;;  %v6833_v23 = vshll.u32 %v8217_v42, 16 }
 0x410   : > { %v5699_v47 = vpop.permute.xlu1 %5698  ;;  %v8213_v36 = vcombine.low %v6007_v15, %v6007_v15  ;;  %v6706_v40 = vsel %vm11872_vm9, %v6701_v2, %v6705_v55  ;;  %v6711_v49 = vrot.slane %v6710_v29, 4  ;;  %v6839_v13 = vshll.u32 %v8218_v28, 16 }
 0x411   : > { %v8208_v35 = vcombine.high %v12708_v34, %v12708_v34  ;;  %v6762_v54 = vshrl.u32 %v8209_v18, 16  ;;  %v6765_v48 = vshll.u32 %v8209_v18, 16  ;;  %v6843_v27 = vshrl.u32 %v8218_v28, 16 }
 0x412   : > { %v6771_v31 = vshll.u32 %v8210_v0, 16  ;;  %v6775_v37 = vshrl.u32 %v8210_v0, 16  ;;  %v6716_v4 = vsel %vm11872_vm9, %v6711_v49, %v12693_v19  ;;  %v12779_v7 = vrot.slane %v6830_v30, 4 }
 0x413   : > { %v6754_v42 = vor.u32 %v6753_v39, %v12768_v24  ;;  %v8267_v60 = vcombine.low %v6706_v40, %v6716_v4  ;;  %v5908_v55 = vsel %vm5848_vm5, %v5802_v26, %v5211_v1  ;;  %v12785_v21 = vpop.permute.xlu0 %4752  ;;  %v6796_v34 = vshrl.u32 %v8213_v36, 16 }
 0x414   : > { %v12783_v52 = vpop.permute.xlu1 %5710  ;;  %v6799_v29 = vshll.u32 %v8213_v36, 16  ;;  %v8268_v10 = vcombine.low %v6726_v53, %v6740_v6  ;;  %v6005_v17 = vsel %vm5945_vm6, %v5908_v55, %v12624_v62  ;;  %v6757_v28 = vshll.u32 %v8208_v35, 16 }
 0x415   : > { %v6764_v18 = vrot.slane %v6762_v54, 4  ;;  %v6767_v19 = vrot.slane %v6765_v48, 5  ;;  %8883 = vmatprep.mubr.bf16.mxu1 %v8267_v60  ;;  %v8211_v2 = vcombine.low %v6005_v17, %v6005_v17  ;;  %v12789_v0 = vrot.slane %v6771_v31, 5 }
 0x416   : > { %v6777_v30 = vrot.slane %v6775_v37, 4  ;;  %v8214_v39 = vcombine.high %v6007_v15, %v6007_v15  ;;  %8884 = vmatmul.mubr.bf16.gmra.mxu1 %v8268_v10  ;;  %v12792_v26 = vsel %vm5945_vm6, %v5916_v16, %v5699_v47  ;;  %v12794_v1 = vrot.slane %v6833_v23, 5 }
 0x417   : > { %v12796_v3 = vrot.slane %v6839_v13, 5  ;;  %v12798_v53 = vrot.slane %v6843_v27, 4  ;;  %v6755_v62 = vrot.slane %v6754_v42, 4  ;;  %v6798_v36 = vrot.slane %v6796_v34, 4  ;;  %v12800_v54 = vpop.permute.xlu0 %4756 }
 0x418   : > { %v5695_v6 = vpop.permute.xlu1 %5694  ;;  %v6801_v40 = vrot.slane %v6799_v29, 5  ;;  %v6781_v49 = vshll.u32 %v8211_v2, 16  ;;  %v6785_v35 = vshrl.u32 %v8211_v2, 16  ;;  %v6759_v48 = vrot.slane %v6757_v28, 5 }
 0x419   : > { %v6768_v15 = vor.u32 %v6767_v19, %v6764_v18  ;;  %v5807_v16 = vsel %vm3429_vm13, %v8040_v25, %v12728_v22  ;;  %v8219_v47 = vcombine.low %v12792_v26, %v12792_v26  ;;  %v6778_v23 = vor.u32 %v6777_v30, %v12789_v0 }
 0x41a   : > { %v6805_v13 = vshll.u32 %v8214_v39, 16  ;;  %v6809_v27 = vshrl.u32 %v8214_v39, 16  ;;  %v5912_v31 = vsel %vm5848_vm5, %v5807_v16, %v12751_v38  ;;  %v8212_v37 = vcombine.high %v6005_v17, %v6005_v17 }
 0x41b   : > { %v6023_v4 = vsel %vm5945_vm6, %v12654_v51, %v5709_v8  ;;  %v6750_v46 = vsel %vm11872_vm9, %v12766_v45, %v12768_v24  ;;  %v6760_v56 = vsel %vm11872_vm9, %v6755_v62, %v6759_v48  ;;  %v6802_v22 = vor.u32 %v6801_v40, %v6798_v36  ;;  %v12822_v34 = vpop.permute.xlu0 %5234 }
 0x41c   : > { %v12820_v25 = vpop.permute.xlu1 %4754  ;;  %v6783_v42 = vrot.slane %v6781_v49, 5  ;;  %v6787_v60 = vrot.slane %v6785_v35, 4  ;;  %v8269_v55 = vcombine.low %v6750_v46, %v6760_v56  ;;  %v6836_v38 = vor.u32 %v12794_v1, %v12779_v7 }
 0x41d   : > { %v6849_v51 = vshll.u32 %v8219_v47, 16  ;;  %v6853_v8 = vshrl.u32 %v8219_v47, 16  ;;  %v6009_v29 = vsel %vm5945_vm6, %v5912_v31, %v5695_v6  ;;  %v6846_v45 = vor.u32 %v12798_v53, %v12796_v3 }
 0x41e   : > { %v6769_v24 = vrot.slane %v6768_v15, 4  ;;  %v6807_v10 = vrot.slane %v6805_v13, 5  ;;  %v8229_v17 = vcombine.low %v6023_v4, %v6023_v4  ;;  %8887 = vmatprep.mubr.bf16.mxu1 %v8269_v55  ;;  %v6779_v28 = vrot.slane %v6778_v23, 4 }
 0x41f   : > { %v6811_v18 = vrot.slane %v6809_v27, 4  ;;  %v6791_v19 = vshll.u32 %v8212_v37, 16  ;;  %v8215_v2 = vcombine.low %v6009_v29, %v6009_v29  ;;  %v6803_v39 = vrot.slane %v6802_v22, 4  ;;  %v5713_v36 = vpop.permute.xlu0 %5712 }
 0x420   : > { %v5233_v30 = vpop.permute.xlu1 %5232  ;;  %v6788_v62 = vor.u32 %v6787_v60, %v6783_v42  ;;  %v8220_v7 = vcombine.high %v12792_v26, %v12792_v26  ;;  %v8216_v1 = vcombine.high %v6009_v29, %v6009_v29  ;;  %v12831_v6 = vrot.slane %v6849_v51, 5 }
 0x421   : > { %v6855_v40 = vrot.slane %v6853_v8, 4  ;;  %v6815_v53 = vshll.u32 %v8215_v2, 16  ;;  %v6819_v49 = vshrl.u32 %v8215_v2, 16  ;;  %v8230_v35 = vcombine.high %v6023_v4, %v6023_v4 }
 0x422   : > { %v6932_v48 = vshrl.u32 %v8229_v17, 16  ;;  %v6774_v15 = vsel %vm11872_vm9, %v6769_v24, %v12789_v0  ;;  %v6784_v16 = vsel %vm11872_vm9, %v6779_v28, %v6783_v42  ;;  %v6793_v47 = vrot.slane %v6791_v19, 5 }
 0x423   : > { %v6817_v23 = vrot.slane %v6815_v53, 5  ;;  %v6821_v13 = vrot.slane %v6819_v49, 4  ;;  %v8270_v26 = vcombine.low %v6774_v15, %v6784_v16  ;;  %v6935_v31 = vshll.u32 %v8229_v17, 16  ;;  %v5717_v56 = vpop.permute.xlu0 %5716 }
 0x424   : > { %v5237_v27 = vpop.permute.xlu1 %5236  ;;  %v12841_v37 = vsel %vm5945_vm6, %v12646_v11, %v12783_v52  ;;  %v6825_v4 = vshll.u32 %v8216_v1, 16  ;;  %v6789_v46 = vrot.slane %v6788_v62, 4  ;;  %v6812_v22 = vor.u32 %v6811_v18, %v6807_v10  ;;  %v9160_v52 = vld [vmem:[#allocation3 + $0x150] sm:$0xff]  }
 0x425   : > { %v6856_v0 = vor.u32 %v6855_v40, %v12831_v6  ;;  %v6859_v60 = vshll.u32 %v8220_v7, 16  ;;  %v6822_v55 = vor.u32 %v6821_v13, %v6817_v23  ;;  %8888 = vmatmul.mubr.bf16.gmra.mxu1 %v8270_v26  ;;  %v6934_v42 = vrot.slane %v6932_v48, 4 }
 0x426   : > { %v6941_v51 = vshll.u32 %v8230_v35, 16  ;;  %v6794_v8 = vsel %vm11872_vm9, %v6789_v46, %v6793_v47  ;;  %v6808_v29 = vsel %vm11872_vm9, %v6803_v39, %v6807_v10  ;;  %v8231_v11 = vcombine.low %v12841_v37, %v12841_v37  ;;  %v9161_v10 = vld [vmem:[#allocation3 + $0x160] sm:$0xff]  }
 0x427   : > { %v5829_v24 = vsel %vm3429_vm13, %v9160_v52, %v12785_v21  ;;  %v6823_v17 = vrot.slane %v6822_v55, 4  ;;  %v8271_v28 = vcombine.low %v6794_v8, %v6808_v29  ;;  %v6937_v19 = vrot.slane %v6935_v31, 5  ;;  %v4761_v1 = vpop.permute.xlu0 %4760  ;;  %v12889_v8 = vld [vmem:[#allocation3 + $0x188] sm:$0xf] }
 0x428   : > { %v5715_v18 = vpop.permute.xlu1 %5714  ;;  %v6945_v2 = vshrl.u32 %v8230_v35, 16  ;;  %v6827_v62 = vrot.slane %v6825_v4, 5  ;;  %v5930_v7 = vsel %vm5848_vm5, %v5829_v24, %v5233_v30  ;;  %v6837_v40 = vrot.slane %v6836_v38, 4  ;;  %v9163_v24 = vld [vmem:[#allocation3 + $0x170] sm:$0xff]  }
 0x429   : > { %v6847_v53 = vrot.slane %v6846_v45, 4  ;;  %v6813_v49 = vrot.slane %v6812_v22, 4  ;;  %v5834_v39 = vsel %vm3429_vm13, %v9161_v10, %v12800_v54  ;;  %8891 = vmatprep.mubr.bf16.mxu1 %v8271_v28  ;;  %v6861_v48 = vrot.slane %v6859_v60, 5 }
 0x42a   : > { %v6828_v21 = vsel %vm11872_vm9, %v6823_v17, %v6827_v62  ;;  %v5832_v35 = vsel %vm3429_vm13, %v8050_v58, %v12820_v25  ;;  %v5934_v30 = vsel %vm5848_vm5, %v5834_v39, %v5237_v27  ;;  %v6857_v38 = vrot.slane %v6856_v0, 4  ;;  %v12873_v27 = vld [vmem:[#allocation3 + $0x18c] sm:$0x1] }
 0x42b   : > { %v6951_v45 = vshll.u32 %v8231_v11, 16  ;;  %v6955_v15 = vshrl.u32 %v8231_v11, 16  ;;  %v6027_v16 = vsel %vm5945_vm6, %v5930_v7, %v5713_v36  ;;  %v6938_v54 = vor.u32 %v6937_v19, %v6934_v42  ;;  %v5241_v4 = vpop.permute.xlu0 %5240 }
 0x42c   : > { %v4759_v47 = vpop.permute.xlu1 %4758  ;;  %v12864_v13 = vrot.slane %v6941_v51, 5  ;;  %v6947_v26 = vrot.slane %v6945_v2, 4  ;;  %v6818_v31 = vsel %vm11872_vm9, %v6813_v49, %v6817_v23  ;;  %v8232_v9 = vcombine.high %v12841_v37, %v12841_v37 }
 0x42d   : > { %v5932_v5 = vsel %vm5848_vm5, %v5832_v35, %v12822_v34  ;;  %v6031_v58 = vsel %vm5945_vm6, %v5934_v30, %v5717_v56  ;;  %v8272_v25 = vcombine.low %v6818_v31, %v6828_v21  ;;  %v8233_v36 = vcombine.low %v6027_v16, %v6027_v16 }
 0x42e   : > { %v6842_v46 = vsel %vm11872_vm9, %v6837_v40, %v12796_v3  ;;  %v6852_v23 = vsel %vm11872_vm9, %v6847_v53, %v12831_v6  ;;  %v12882_v22 = vsel %vm5945_vm6, %v5932_v5, %v5715_v18  ;;  %v12884_v37 = vrot.slane %v6951_v45, 5 }
 0x42f   : > { %v6957_v34 = vrot.slane %v6955_v15, 4  ;;  %v8234_v0 = vcombine.high %v6027_v16, %v6027_v16  ;;  %8892 = vmatmul.mubr.bf16.gmra.mxu1 %v8272_v25  ;;  %v8273_v56 = vcombine.low %v6842_v46, %v6852_v23  ;;  %v6862_v55 = vsel %vm11872_vm9, %v6857_v38, %v6861_v48  ;;  %v5721_v51 = vpop.permute.xlu0 %5720 }
 0x430   : > { %v5239_v60 = vpop.permute.xlu1 %5238  ;;  %v6948_v42 = vor.u32 %v6947_v26, %v12864_v13  ;;  %v8237_v3 = vcombine.low %v6031_v58, %v6031_v58  ;;  %v8056_v6 = vcombine.low %v12889_v8, %v12873_v27  ;;  %v12893_v29 = vrot.slane %v6938_v54, 4 }
 0x431   : > { %v12895_v11 = vshll.u32 %v8232_v9, 16  ;;  %8895 = vmatprep.mubr.bf16.mxu1 %v8273_v56  ;;  %v8235_v52 = vcombine.low %v12882_v22, %v12882_v22  ;;  %v5839_v17 = vsel %vm3429_vm13, %v9163_v24, %v4761_v1  ;;  %v6966_v28 = vshrl.u32 %v8233_v36, 16 }
 0x432   : > { %v6969_v18 = vshll.u32 %v8233_v36, 16  ;;  %v8238_v19 = vcombine.high %v6031_v58, %v6031_v58  ;;  %v5837_v2 = vsel %vm3429_vm13, %v8052_v33, %v4759_v47  ;;  %v6958_v62 = vor.u32 %v6957_v34, %v12884_v37 }
 0x433   : > { %v6975_v7 = vshll.u32 %v8234_v0, 16  ;;  %v6979_v40 = vshrl.u32 %v8234_v0, 16  ;;  %v5936_v53 = vsel %vm5848_vm5, %v5837_v2, %v5239_v60  ;;  %v8849_v10 = vpop.f32.mrf.mxu1  ;;  %v7000_v39 = vshrl.u32 %v8237_v3, 16  ;;  %v5243_v35 = vpop.permute.xlu0 %5242 }
 0x434   : > { %v5719_v49 = vpop.permute.xlu1 %5718  ;;  %v7003_v1 = vshll.u32 %v8237_v3, 16  ;;  %v5938_v48 = vsel %vm5848_vm5, %v5839_v17, %v5241_v4  ;;  %7632 = vst [vmem:[%s9287_s15 + $0x10] sm:$0xff] %v8849_v10  ;;  %v6985_v43 = vshll.u32 %v8235_v52, 16  ;;  %v6989_v57 = vshrl.u32 %v8235_v52, 16 }
 0x435   : > { %v12908_v21 = vsel %vm5945_vm6, %v5936_v53, %v5719_v49  ;;  %v8274_v33 = vcombine.low %v6862_v55, %v6876_v61  ;;  %v7343_v38 = vpop.f32.mrf.mxu1  ;;  %v12918_v45 = vrot.slane %v6948_v42, 4  ;;  %v6968_v15 = vrot.slane %v6966_v28, 4 }
 0x436   : > { %v8239_v30 = vcombine.low %v12908_v21, %v12908_v21  ;;  %v6971_v16 = vrot.slane %v6969_v18, 5  ;;  %v7009_v47 = vshll.u32 %v8238_v19, 16  ;;  %7630 = vst [vmem:[%s9287_s15] sm:$0xff] %v7343_v38  ;;  %v6959_v54 = vrot.slane %v6958_v62, 4 }
 0x437   : > { %v6963_v26 = vrot.slane %v12895_v11, 5  ;;  %v7013_v31 = vshrl.u32 %v8238_v19, 16  ;;  %8896 = vmatmul.mubr.bf16.gmra.mxu1 %v8274_v33  ;;  %v6035_v4 = vsel %vm5945_vm6, %v5938_v48, %v5721_v51  ;;  %v8850_v50 = vpop.f32.mrf.mxu1  ;;  %v12923_v61 = vrot.slane %v6975_v7, 5  ;;  %v4765_v25 = vpop.permute.xlu0 %4764  ;;  %v9164_v51 = vld [vmem:[#allocation3 + $0x180] sm:$0xff]  }
 0x438   : > { %v4763_v41 = vpop.permute.xlu1 %4762  ;;  %v6981_v9 = vrot.slane %v6979_v40, 4  ;;  %v7002_v5 = vrot.slane %v7000_v39, 4  ;;  %v7005_v58 = vrot.slane %v7003_v1, 5  ;;  %8899 = vmatprep.mubr.bf16.mxu1 %v12699_v20  ;;  %7633 = vst [vmem:[%s9287_s15 + $0x18] sm:$0xff] %v8850_v50  ;;  %v12927_v36 = vrot.slane %v6985_v43, 5 }
 0x439   : > { %v6991_v46 = vrot.slane %v6989_v57, 4  ;;  %v7019_v23 = vshll.u32 %v8239_v30, 16  ;;  %v7023_v34 = vshrl.u32 %v8239_v30, 16  ;;  %v7346_v0 = vpop.f32.mrf.mxu1  ;;  %v6972_v56 = vor.u32 %v6971_v16, %v6968_v15 }
 0x43a   : > { %v12929_v60 = vrot.slane %v7009_v47, 5  ;;  %v8241_v55 = vcombine.low %v6035_v4, %v6035_v4  ;;  %v5842_v42 = vsel %vm3429_vm13, %v8054_v14, %v4763_v41  ;;  %7631 = vst [vmem:[%s9287_s15 + $0x8] sm:$0xff] %v7346_v0  ;;  %v12936_v3 = vrot.slane %v7013_v31, 4 }
 0x43b   : > { %v6944_v20 = vsel %vm11872_vm9, %v12893_v29, %v12864_v13  ;;  %v5844_v11 = vsel %vm3429_vm13, %v9164_v51, %v4765_v25  ;;  %v5940_v52 = vsel %vm5848_vm5, %v5842_v42, %v5243_v35  ;;  %v6982_v17 = vor.u32 %v6981_v9, %v12923_v61  ;;  %v5245_v14 = vpop.permute.xlu0 %5244 }
 0x43c   : > { %v5723_v24 = vpop.permute.xlu1 %5722  ;;  %v7006_v28 = vor.u32 %v7005_v58, %v7002_v5  ;;  %v8242_v12 = vcombine.high %v6035_v4, %v6035_v4  ;;  %v8236_v18 = vcombine.high %v12882_v22, %v12882_v22  ;;  %v6992_v19 = vor.u32 %v6991_v46, %v12927_v36 }
 0x43d   : > { %v12946_v59 = vsel %vm5945_vm6, %v5940_v52, %v5723_v24  ;;  %v12951_v13 = vrot.slane %v7019_v23, 5  ;;  %v7025_v29 = vrot.slane %v7023_v34, 4  ;;  %v7034_v2 = vshrl.u32 %v8241_v55, 16 }
 0x43e   : > { %v8240_v62 = vcombine.high %v12908_v21, %v12908_v21  ;;  %v8277_v7 = vcombine.low %v12703_v44, %v6944_v20  ;;  %v5942_v40 = vsel %vm5848_vm5, %v5844_v11, %v5245_v14  ;;  %v6964_v53 = vsel %vm11872_vm9, %v6959_v54, %v6963_v26 }
 0x43f   : > { %v6973_v49 = vrot.slane %v6972_v56, 4  ;;  %v7037_v10 = vshll.u32 %v8241_v55, 16  ;;  %8900 = vmatmul.mubr.bf16.gmra.mxu1 %v12714_v63  ;;  %v8243_v22 = vcombine.low %v12946_v59, %v12946_v59  ;;  %v6983_v1 = vrot.slane %v6982_v17, 4  ;;  %v5725_v44 = vpop.permute.xlu0 %5724 }
 0x440   : > { %v4767_v39 = vpop.permute.xlu1 %4766  ;;  %v7007_v48 = vrot.slane %v7006_v28, 4  ;;  %v7016_v21 = vor.u32 %v12936_v3, %v12929_v60  ;;  %v7043_v35 = vshll.u32 %v8242_v12, 16  ;;  %8903 = vmatprep.mubr.bf16.mxu1 %v8277_v7  ;;  %v6995_v43 = vshll.u32 %v8236_v18, 16 }
 0x441   : > { %v7047_v57 = vshrl.u32 %v8242_v12, 16  ;;  %v7026_v33 = vor.u32 %v7025_v29, %v12951_v13  ;;  %v6039_v30 = vsel %vm5945_vm6, %v5942_v40, %v5725_v44  ;;  %v6993_v38 = vrot.slane %v6992_v19, 4 }
 0x442   : > { %v7036_v63 = vrot.slane %v7034_v2, 4  ;;  %v7029_v15 = vshll.u32 %v8240_v62, 16  ;;  %v8245_v16 = vcombine.low %v6039_v30, %v6039_v30  ;;  %v7039_v47 = vrot.slane %v7037_v10, 5 }
 0x443   : > { %v7053_v54 = vshll.u32 %v8243_v22, 16  ;;  %v7057_v26 = vshrl.u32 %v8243_v22, 16  ;;  %v6988_v31 = vsel %vm11872_vm9, %v6983_v1, %v12927_v36  ;;  %v12969_v41 = vrot.slane %v7043_v35, 5 }
 0x444   : > { %v5247_v4 = vpop.permute.xlu1 %5246  ;;  %v6954_v50 = vsel %vm11872_vm9, %v12918_v45, %v12884_v37  ;;  %v7068_v9 = vshrl.u32 %v8245_v16, 16  ;;  %v7071_v5 = vshll.u32 %v8245_v16, 16  ;;  %v7049_v58 = vrot.slane %v7047_v57, 4 }
 0x445   : > { %v7027_v25 = vrot.slane %v7026_v33, 4  ;;  %v8278_v46 = vcombine.low %v6954_v50, %v6964_v53  ;;  %v6978_v23 = vsel %vm11872_vm9, %v6973_v49, %v12923_v61  ;;  %v5847_v36 = vsel %vm3429_vm13, %v8056_v6, %v4767_v39 }
 0x446   : > { %v8279_v34 = vcombine.low %v6978_v23, %v6988_v31  ;;  %v7070_v0 = vrot.slane %v7068_v9, 4  ;;  %v7073_v56 = vrot.slane %v7071_v5, 5  ;;  %v7055_v55 = vrot.slane %v7053_v54, 5 }
 0x447   : > { %v7059_v42 = vrot.slane %v7057_v26, 4  ;;  %8904 = vmatmul.mubr.bf16.gmra.mxu1 %v8278_v46  ;;  %v8246_v37 = vcombine.high %v6039_v30, %v6039_v30  ;;  %v5944_v45 = vsel %vm5848_vm5, %v5847_v36, %v5247_v4  ;;  %v6997_v20 = vrot.slane %v6995_v43, 5 }
 0x448   : > { %v5727_v3 = vpop.permute.xlu1 %5726  ;;  %v7031_v51 = vrot.slane %v7029_v15, 5  ;;  %v8244_v61 = vcombine.high %v12946_v59, %v12946_v59  ;;  %8907 = vmatprep.mubr.bf16.mxu1 %v8279_v34  ;;  %v7017_v27 = vrot.slane %v7016_v21, 4  ;;  %v7074_v8 = vor.u32 %v7073_v56, %v7070_v0 }
 0x449   : > { %v6041_v11 = vsel %vm5945_vm6, %v5944_v45, %v5727_v3  ;;  %v6998_v52 = vsel %vm11872_vm9, %v6993_v38, %v6997_v20  ;;  %v7040_v24 = vor.u32 %v7039_v47, %v7036_v63  ;;  %v7050_v17 = vor.u32 %v7049_v58, %v12969_v41 }
 0x44a   : > { %v8247_v6 = vcombine.low %v6041_v11, %v6041_v11  ;;  %v7032_v28 = vsel %vm11872_vm9, %v7027_v25, %v7031_v51  ;;  %v7060_v12 = vor.u32 %v7059_v42, %v7055_v55  ;;  %v7077_v14 = vshll.u32 %v8246_v37, 16 }
 0x44b   : > { %v8853_v19 = vpop.f32.mrf.mxu1  ;;  %v7063_v29 = vshll.u32 %v8244_v61, 16  ;;  %v7081_v2 = vshrl.u32 %v8246_v37, 16  ;;  %v7012_v62 = vsel %vm11872_vm9, %v7007_v48, %v12929_v60  ;;  %v7022_v7 = vsel %vm11872_vm9, %v7017_v27, %v12951_v13 }
 0x44c   : > { %v7087_v59 = vshll.u32 %v8247_v6, 16  ;;  %v7091_v18 = vshrl.u32 %v8247_v6, 16  ;;  %7636 = vst [vmem:[%s9287_s15 + $0x30] sm:$0xff] %v8853_v19  ;;  %v7075_v40 = vrot.slane %v7074_v8, 4  ;;  %v8280_v53 = vcombine.low %v6998_v52, %v7012_v62 }
 0x44d   : > { %v7359_v22 = vpop.f32.mrf.mxu1  ;;  %v8281_v39 = vcombine.low %v7022_v7, %v7032_v28  ;;  %v8248_v1 = vcombine.high %v6041_v11, %v6041_v11  ;;  %v7061_v21 = vrot.slane %v7060_v12, 4  ;;  %v7079_v35 = vrot.slane %v7077_v14, 5 }
 0x44e   : > { %v7089_v49 = vrot.slane %v7087_v59, 5  ;;  %v7093_v10 = vrot.slane %v7091_v18, 4  ;;  %7634 = vst [vmem:[%s9287_s15 + $0x20] sm:$0xff] %v7359_v22  ;;  %v7041_v60 = vrot.slane %v7040_v24, 4  ;;  %v7051_v48 = vrot.slane %v7050_v17, 4 }
 0x44f   : > { %8908 = vmatmul.mubr.bf16.gmra.mxu1 %v8280_v53  ;;  %v8854_v44 = vpop.f32.mrf.mxu1  ;;  %v7083_v43 = vrot.slane %v7081_v2, 4  ;;  %v7065_v57 = vrot.slane %v7063_v29, 5  ;;  %v7080_v33 = vsel %vm11872_vm9, %v7075_v40, %v7079_v35  ;;  %v7097_v38 = vshll.u32 %v8248_v1, 16 }
 0x450   : > { %8911 = vmatprep.mubr.bf16.mxu1 %v8281_v39  ;;  %v7094_v13 = vor.u32 %v7093_v10, %v7089_v49  ;;  %7637 = vst [vmem:[%s9287_s15 + $0x38] sm:$0xff] %v8854_v44  ;;  %v7056_v63 = vsel %vm11872_vm9, %v7051_v48, %v7055_v55  ;;  %v7046_v54 = vsel %vm11872_vm9, %v7041_v60, %v12969_v41 }
 0x451   : > { %v7362_v30 = vpop.f32.mrf.mxu1  ;;  %v7066_v15 = vsel %vm11872_vm9, %v7061_v21, %v7065_v57  ;;  %v7084_v16 = vor.u32 %v7083_v43, %v7079_v35  ;;  %v8282_v31 = vcombine.low %v7046_v54, %v7056_v63  ;;  %v7099_v4 = vrot.slane %v7097_v38, 5 }
 0x452   : > { %7635 = vst [vmem:[%s9287_s15 + $0x28] sm:$0xff] %v7362_v30  ;;  %v7095_v47 = vrot.slane %v7094_v13, 4  ;;  %v8283_v26 = vcombine.low %v7066_v15, %v7080_v33 }
 0x453   : > { %v7085_v9 = vrot.slane %v7084_v16, 4 }
 0x454   : > { %v7100_v5 = vsel %vm11872_vm9, %v7095_v47, %v7099_v4 }
 0x455   : > { %v7090_v41 = vsel %vm11872_vm9, %v7085_v9, %v7089_v49 }
 0x456   : > { %v8284_v25 = vcombine.low %v7090_v41, %v7100_v5 }
 0x457   : > { %8912 = vmatmul.mubr.bf16.gmra.mxu1 %v8282_v31  ;;  %v8857_v50 = vpop.f32.mrf.mxu1 }
 0x458   : > { %8915 = vmatprep.mubr.bf16.mxu1 %v8283_v26  ;;  %7640 = vst [vmem:[%s9287_s15 + $0x50] sm:$0xff] %v8857_v50 }
 0x459   : > { %v7375_v58 = vpop.f32.mrf.mxu1 }
 0x45a   : > { %7638 = vst [vmem:[%s9287_s15 + $0x40] sm:$0xff] %v7375_v58 }
 0x45b   : > { %v8858_v46 = vpop.f32.mrf.mxu1 }
 0x45c   : > { %7641 = vst [vmem:[%s9287_s15 + $0x58] sm:$0xff] %v8858_v46 }
 0x45d   : > { %v7378_v23 = vpop.f32.mrf.mxu1 }
 0x45e   : > { %7639 = vst [vmem:[%s9287_s15 + $0x48] sm:$0xff] %v7378_v23 }
 0x45f   : > { %8916 = vmatmul.mubr.bf16.gmra.mxu1 %v8284_v25 }
 0x470   : > { %v8861_v34 = vpop.f32.mrf.mxu1 }
 0x471   : > { %7644 = vst [vmem:[%s9287_s15 + $0x70] sm:$0xff] %v8861_v34 }
 0x472   : > { %v7391_v36 = vpop.f32.mrf.mxu1 }
 0x473   : > { %7642 = vst [vmem:[%s9287_s15 + $0x60] sm:$0xff] %v7391_v36 }
 0x474   : > { %v8862_v32 = vpop.f32.mrf.mxu1 }
 0x475   : > { %7645 = vst [vmem:[%s9287_s15 + $0x78] sm:$0xff] %v8862_v32 }
 0x476   : > { %v7394_v0 = vpop.f32.mrf.mxu1 }
 0x477   : > { %7643 = vst [vmem:[%s9287_s15 + $0x68] sm:$0xff] %v7394_v0 }
 0x47d   : > { %v8865_v56 = vpop.f32.mrf.mxu1 }
 0x47e   : > { %7648 = vst [vmem:[%s9287_s15 + $0x90] sm:$0xff] %v8865_v56 }
 0x47f   : > { %v7407_v55 = vpop.f32.mrf.mxu1 }
 0x480   : > { %7646 = vst [vmem:[%s9287_s15 + $0x80] sm:$0xff] %v7407_v55 }
 0x481   : > { %v8866_v42 = vpop.f32.mrf.mxu1 }
 0x482   : > { %7649 = vst [vmem:[%s9287_s15 + $0x98] sm:$0xff] %v8866_v42 }
 0x483   : > { %v7410_v37 = vpop.f32.mrf.mxu1 }
 0x484   : > { %7647 = vst [vmem:[%s9287_s15 + $0x88] sm:$0xff] %v7410_v37 }
 0x488   : > { %v8869_v45 = vpop.f32.mrf.mxu1 }
 0x489   : > { %7652 = vst [vmem:[%s9287_s15 + $0xb0] sm:$0xff] %v8869_v45 }
 0x48a   : > { %v7423_v3 = vpop.f32.mrf.mxu1 }
 0x48b   : > { %7650 = vst [vmem:[%s9287_s15 + $0xa0] sm:$0xff] %v7423_v3 }
 0x48c   : > { %v8870_v20 = vpop.f32.mrf.mxu1 }
 0x48d   : > { %7653 = vst [vmem:[%s9287_s15 + $0xb8] sm:$0xff] %v8870_v20 }
 0x48e   : > { %v7426_v51 = vpop.f32.mrf.mxu1 }
 0x48f   : > { %7651 = vst [vmem:[%s9287_s15 + $0xa8] sm:$0xff] %v7426_v51 }
 0x4a1   : > { %v8873_v61 = vpop.f32.mrf.mxu1 }
 0x4a2   : > { %7656 = vst [vmem:[%s9287_s15 + $0xd0] sm:$0xff] %v8873_v61 }
 0x4a3   : > { %v7439_v11 = vpop.f32.mrf.mxu1 }
 0x4a4   : > { %7654 = vst [vmem:[%s9287_s15 + $0xc0] sm:$0xff] %v7439_v11 }
 0x4a5   : > { %v8874_v27 = vpop.f32.mrf.mxu1 }
 0x4a6   : > { %7657 = vst [vmem:[%s9287_s15 + $0xd8] sm:$0xff] %v8874_v27 }
 0x4a7   : > { %v7442_v8 = vpop.f32.mrf.mxu1 }
 0x4a8   : > { %7655 = vst [vmem:[%s9287_s15 + $0xc8] sm:$0xff] %v7442_v8 }
 0x4ac   : > { %v8877_v6 = vpop.f32.mrf.mxu1 }
 0x4ad   : > { %7660 = vst [vmem:[%s9287_s15 + $0xf0] sm:$0xff] %v8877_v6 }
 0x4ae   : > { %v7455_v52 = vpop.f32.mrf.mxu1 }
 0x4af   : > { %7658 = vst [vmem:[%s9287_s15 + $0xe0] sm:$0xff] %v7455_v52 }
 0x4b0   : > { %v8878_v24 = vpop.f32.mrf.mxu1 }
 0x4b1   : > { %7661 = vst [vmem:[%s9287_s15 + $0xf8] sm:$0xff] %v8878_v24 }
 0x4b2   : > { %v7458_v17 = vpop.f32.mrf.mxu1 }
 0x4b3   : > { %7659 = vst [vmem:[%s9287_s15 + $0xe8] sm:$0xff] %v7458_v17 }
 0x4b8   : > { %v8881_v28 = vpop.f32.mrf.mxu1 }
 0x4b9   : > { %7664 = vst [vmem:[%s9287_s15 + $0x110] sm:$0xff] %v8881_v28 }
 0x4ba   : > { %v7471_v12 = vpop.f32.mrf.mxu1 }
 0x4bb   : > { %7662 = vst [vmem:[%s9287_s15 + $0x100] sm:$0xff] %v7471_v12 }
 0x4bc   : > { %v8882_v14 = vpop.f32.mrf.mxu1 }
 0x4bd   : > { %7665 = vst [vmem:[%s9287_s15 + $0x118] sm:$0xff] %v8882_v14 }
 0x4be   : > { %v7474_v59 = vpop.f32.mrf.mxu1 }
 0x4bf   : > { %7663 = vst [vmem:[%s9287_s15 + $0x108] sm:$0xff] %v7474_v59 }
 0x4d6   : > { %v8885_v18 = vpop.f32.mrf.mxu1 }
 0x4d7   : > { %7668 = vst [vmem:[%s9287_s15 + $0x130] sm:$0xff] %v8885_v18 }
 0x4d8   : > { %v7487_v19 = vpop.f32.mrf.mxu1 }
 0x4d9   : > { %7666 = vst [vmem:[%s9287_s15 + $0x120] sm:$0xff] %v7487_v19 }
 0x4da   : > { %v8886_v29 = vpop.f32.mrf.mxu1 }
 0x4db   : > { %7669 = vst [vmem:[%s9287_s15 + $0x138] sm:$0xff] %v8886_v29 }
 0x4dc   : > { %v7490_v2 = vpop.f32.mrf.mxu1 }
 0x4dd   : > { %7667 = vst [vmem:[%s9287_s15 + $0x128] sm:$0xff] %v7490_v2 }
 0x4e5   : > { %v8889_v62 = vpop.f32.mrf.mxu1 }
 0x4e6   : > { %7672 = vst [vmem:[%s9287_s15 + $0x150] sm:$0xff] %v8889_v62 }
 0x4e7   : > { %v7503_v7 = vpop.f32.mrf.mxu1 }
 0x4e8   : > { %7670 = vst [vmem:[%s9287_s15 + $0x140] sm:$0xff] %v7503_v7 }
 0x4e9   : > { %v8890_v40 = vpop.f32.mrf.mxu1 }
 0x4ea   : > { %7673 = vst [vmem:[%s9287_s15 + $0x158] sm:$0xff] %v8890_v40 }
 0x4eb   : > { %v7506_v53 = vpop.f32.mrf.mxu1 }
 0x4ec   : > { %7671 = vst [vmem:[%s9287_s15 + $0x148] sm:$0xff] %v7506_v53 }
 0x4ef   : > { %v8893_v49 = vpop.f32.mrf.mxu1 }
 0x4f0   : > { %7676 = vst [vmem:[%s9287_s15 + $0x170] sm:$0xff] %v8893_v49 }
 0x4f1   : > { %v7519_v10 = vpop.f32.mrf.mxu1 }
 0x4f2   : > { %7674 = vst [vmem:[%s9287_s15 + $0x160] sm:$0xff] %v7519_v10 }
 0x4f3   : > { %v8894_v22 = vpop.f32.mrf.mxu1 }
 0x4f4   : > { %7677 = vst [vmem:[%s9287_s15 + $0x178] sm:$0xff] %v8894_v22 }
 0x4f5   : > { %v7522_v39 = vpop.f32.mrf.mxu1 }
 0x4f6   : > { %7675 = vst [vmem:[%s9287_s15 + $0x168] sm:$0xff] %v7522_v39 }
 0x4f7   : > { %v8897_v1 = vpop.f32.mrf.mxu1 }
 0x4f8   : > { %7680 = vst [vmem:[%s9287_s15 + $0x190] sm:$0xff] %v8897_v1 }
 0x4f9   : > { %v7535_v21 = vpop.f32.mrf.mxu1 }
 0x4fa   : > { %7678 = vst [vmem:[%s9287_s15 + $0x180] sm:$0xff] %v7535_v21 }
 0x4fb   : > { %v8898_v35 = vpop.f32.mrf.mxu1 }
 0x4fc   : > { %7681 = vst [vmem:[%s9287_s15 + $0x198] sm:$0xff] %v8898_v35 }
 0x4fd   : > { %v7538_v44 = vpop.f32.mrf.mxu1 }
 0x4fe   : > { %7679 = vst [vmem:[%s9287_s15 + $0x188] sm:$0xff] %v7538_v44 }
 0x4ff   : > { %v8901_v60 = vpop.f32.mrf.mxu1 }
 0x500   : > { %7684 = vst [vmem:[%s9287_s15 + $0x1b0] sm:$0xff] %v8901_v60 }
 0x501   : > { %v7551_v48 = vpop.f32.mrf.mxu1 }
 0x502   : > { %7682 = vst [vmem:[%s9287_s15 + $0x1a0] sm:$0xff] %v7551_v48 }
 0x503   : > { %v8902_v43 = vpop.f32.mrf.mxu1 }
 0x504   : > { %7685 = vst [vmem:[%s9287_s15 + $0x1b8] sm:$0xff] %v8902_v43 }
 0x505   : > { %v7554_v13 = vpop.f32.mrf.mxu1 }
 0x506   : > { %7683 = vst [vmem:[%s9287_s15 + $0x1a8] sm:$0xff] %v7554_v13 }
 0x507   : > { %v8905_v57 = vpop.f32.mrf.mxu1 }
 0x508   : > { %7688 = vst [vmem:[%s9287_s15 + $0x1d0] sm:$0xff] %v8905_v57 }
 0x509   : > { %v7567_v33 = vpop.f32.mrf.mxu1 }
 0x50a   : > { %7686 = vst [vmem:[%s9287_s15 + $0x1c0] sm:$0xff] %v7567_v33 }
 0x50b   : > { %v8906_v30 = vpop.f32.mrf.mxu1 }
 0x50c   : > { %7689 = vst [vmem:[%s9287_s15 + $0x1d8] sm:$0xff] %v8906_v30 }
 0x50d   : > { %v7570_v38 = vpop.f32.mrf.mxu1 }
 0x50e   : > { %7687 = vst [vmem:[%s9287_s15 + $0x1c8] sm:$0xff] %v7570_v38 }
 0x50f   : > { %v8909_v63 = vpop.f32.mrf.mxu1 }
 0x510   : > { %7692 = vst [vmem:[%s9287_s15 + $0x1f0] sm:$0xff] %v8909_v63 }
 0x511   : > { %v7583_v15 = vpop.f32.mrf.mxu1 }
 0x512   : > { %7690 = vst [vmem:[%s9287_s15 + $0x1e0] sm:$0xff] %v7583_v15 }
 0x513   : > { %v8910_v16 = vpop.f32.mrf.mxu1 }
 0x514   : > { %7693 = vst [vmem:[%s9287_s15 + $0x1f8] sm:$0xff] %v8910_v16 }
 0x515   : > { %v7586_v47 = vpop.f32.mrf.mxu1 }
 0x516   : > { %7691 = vst [vmem:[%s9287_s15 + $0x1e8] sm:$0xff] %v7586_v47 }
 0x517   : > { %v8913_v54 = vpop.f32.mrf.mxu1 }
 0x518   : > { %7696 = vst [vmem:[%s9287_s15 + $0x210] sm:$0xff] %v8913_v54 }
 0x519   : > { %v7599_v26 = vpop.f32.mrf.mxu1 }
 0x51a   : > { %7694 = vst [vmem:[%s9287_s15 + $0x200] sm:$0xff] %v7599_v26 }
 0x51b   : > { %v8914_v31 = vpop.f32.mrf.mxu1 }
 0x51c   : > { %7697 = vst [vmem:[%s9287_s15 + $0x218] sm:$0xff] %v8914_v31 }
 0x51d   : > { %v7602_v4 = vpop.f32.mrf.mxu1 }
 0x51e   : > { %7695 = vst [vmem:[%s9287_s15 + $0x208] sm:$0xff] %v7602_v4 }
 0x51f   : > { %v8917_v50 = vpop.f32.mrf.mxu1 }
 0x520   : > { %7700 = vst [vmem:[%s9287_s15 + $0x230] sm:$0xff] %v8917_v50 }
 0x521   : > { %v7615_v9 = vpop.f32.mrf.mxu1 }
 0x522   : > { %7698 = vst [vmem:[%s9287_s15 + $0x220] sm:$0xff] %v7615_v9 }
 0x523   : > { %v8918_v5 = vpop.f32.mrf.mxu1 }
 0x524   : > { %7701 = vst [vmem:[%s9287_s15 + $0x238] sm:$0xff] %v8918_v5 }
 0x525   : > { %v7618_v58 = vpop.f32.mrf.mxu1 }
 0x526   : > { %7699 = vst [vmem:[%s9287_s15 + $0x228] sm:$0xff] %v7618_v58 }
 0x527 PF: > { %s16_s22 = sadd.s32 1, %s9203_s22   ;;  %s13317_s18 = smov %s9195_s20 }
 0x528   : > { %p13_p10 = scmp.ge.s32.totalorder %s16_s22, 10   ;;  %s13318_s19 = smov %s9199_s21 }
 0x529   : > { %s13319_s20 = smov %s13322_s23  ;;  %s13320_s21 = smov %s13326_s24 }
 0x52a   :  { %15 = sbr.rel (!%p13_p10) target bundleno = 3 (0x3), region = 105 }

</bundles_post_ra>
